<compile_context>
chip_gen: v6e
topology: v6e:2x2x1
jax: 0.10.0
libtpu: 0.0.40
codegen_flags: <defaults>
</compile_context>

<pallas_src>
import functools
import numpy as np
import jax
import jax.numpy as jnp
from jax.experimental import pallas as pl
from jax.experimental.pallas import tpu as pltpu


# ---------------------------------------------------------------------------
# Fused 3x3 conv (+folded BN) (+ReLU) (+ optional chain of fused 1x1 stages)
# ---------------------------------------------------------------------------
def _conv3x3_chain_kernel(*refs, H, Wp, relu, chain_relu):
    n_chain = len(chain_relu)
    x_ref, w_ref, b_ref = refs[0], refs[1], refs[2]
    o_ref = refs[3 + 2 * n_chain]
    M = H * Wp
    cout = w_ref.shape[-1]

    # 3x3 conv (padding=1) as 9 shifted bf16 MXU matmuls, f32 accumulation.
    acc = jnp.zeros((M, cout), jnp.float32)
    for k in range(9):
        dy, dx = k // 3, k % 3
        xs = x_ref[0, pl.ds(dy * Wp + dx, M), :]          # (M, Cin) bf16, VMEM
        acc = acc + jnp.dot(xs, w_ref[k], preferred_element_type=jnp.float32)

    y = acc + b_ref[...]                                  # folded-BN bias
    if relu:
        y = jnp.maximum(y, 0.0)

    # Fused pointwise (1x1 conv + folded BN + optional ReLU) chain, all in VMEM.
    for i in range(n_chain):
        wc = refs[3 + 2 * i][...]
        bc = refs[4 + 2 * i][...]
        y = jnp.dot(y.astype(jnp.bfloat16), wc,
                    preferred_element_type=jnp.float32) + bc
        if chain_relu[i]:
            y = jnp.maximum(y, 0.0)

    o_ref[0] = y.astype(o_ref.dtype)


def conv3x3_fused(x, w9, b, *, relu=True, chain=(), out_dtype=jnp.bfloat16):
    """x: (N, H, W, Cin). w9: (9, Cin, Cout) bf16 with BN scale folded.
    b: (1, Cout) f32. chain: tuple of (w (C,C'), b (1,C'), relu_flag) 1x1 stages
    fused after the 3x3 conv. Returns (N, H, W, C_last)."""
    N, H, W, cin = x.shape
    cout = w9.shape[-1]

    # Keep the MXU contraction dim >= 8 (img_ch == 1 inputs).
    if cin < 8:
        x = jnp.pad(x, ((0, 0), (0, 0), (0, 0), (0, 8 - cin)))
        w9 = jnp.pad(w9, ((0, 0), (0, 8 - cin), (0, 0)))
        cin = 8

    Wp = W + 2
    M = H * Wp
    R = (H + 2) * Wp + 2
    # Spatial zero-pad, flatten (H+2, W+2) -> rows (free reshape), and add two
    # trailing rows so the (dy=2, dx=2) shifted window stays in bounds.
    xp = jnp.pad(x.astype(jnp.bfloat16), ((0, 0), (1, 1), (1, 1), (0, 0)))
    xf = jnp.pad(xp.reshape(N, (H + 2) * Wp, cin), ((0, 0), (0, 2), (0, 0)))

    c_last = chain[-1][0].shape[-1] if chain else cout

    ins = [xf, w9.astype(jnp.bfloat16), b.astype(jnp.float32)]
    in_specs = [
        pl.BlockSpec((1, R, cin), lambda n: (n, 0, 0)),
        pl.BlockSpec((9, cin, cout), lambda n: (0, 0, 0)),
        pl.BlockSpec((1, cout), lambda n: (0, 0)),
    ]
    chain_relu = []
    for (wc, bc, rc) in chain:
        ins += [wc.astype(jnp.bfloat16), bc.astype(jnp.float32)]
        in_specs += [pl.BlockSpec(wc.shape, lambda n: (0, 0)),
                     pl.BlockSpec(bc.shape, lambda n: (0, 0))]
        chain_relu.append(bool(rc))

    flops = 2 * N * M * cin * cout * 9
    prev_c = cout
    for (wc, _, _) in chain:
        flops += 2 * N * M * prev_c * wc.shape[-1]
        prev_c = wc.shape[-1]
    bytes_accessed = N * M * c_last * jnp.dtype(out_dtype).itemsize
    for a in ins:
        bytes_accessed += a.size * a.dtype.itemsize

    out = pl.pallas_call(
        functools.partial(_conv3x3_chain_kernel, H=H, Wp=Wp, relu=relu,
                          chain_relu=tuple(chain_relu)),
        out_shape=jax.ShapeDtypeStruct((N, M, c_last), out_dtype),
        grid=(N,),
        in_specs=in_specs,
        out_specs=pl.BlockSpec((1, M, c_last), lambda n: (n, 0, 0)),
        compiler_params=pltpu.CompilerParams(
            dimension_semantics=("parallel",),
            vmem_limit_bytes=32 * 1024 * 1024),
        cost_estimate=pl.CostEstimate(flops=int(flops), transcendentals=0,
                                      bytes_accessed=int(bytes_accessed)),
    )(*ins)

    # Drop the 2 padded-width garbage columns per output row.
    return out.reshape(N, H, Wp, c_last)[:, :, :W, :]


# ---------------------------------------------------------------------------
# 2x2 stride-2 max / avg pooling (free reshape + on-chip reduce)
# ---------------------------------------------------------------------------
def _pool2_kernel(x_ref, o_ref, *, mode, C):
    t0 = x_ref[:, 0, :, :]                     # even input rows: (Ho, Wo, 2C)
    t1 = x_ref[:, 1, :, :]                     # odd input rows
    if mode == "max":
        v = jnp.maximum(t0, t1)
        o_ref[...] = jnp.maximum(v[:, :, :C], v[:, :, C:]).astype(o_ref.dtype)
    else:  # avg
        v = t0 + t1
        o_ref[...] = ((v[:, :, :C] + v[:, :, C:]) * 0.25).astype(o_ref.dtype)


def pool2(x, mode):
    """2x2 stride-2 pooling on NHWC. The reshape below is a pure view change
    (no HBM copies); the 2x2 reduction happens in VMEM."""
    N, H, W, C = x.shape
    assert H % 2 == 0 and W % 2 == 0, "pool2 requires even spatial dims"
    Ho, Wo = H // 2, W // 2
    xr = x.reshape(N * Ho, 2, Wo, 2 * C)
    out = pl.pallas_call(
        functools.partial(_pool2_kernel, mode=mode, C=C),
        out_shape=jax.ShapeDtypeStruct((N * Ho, Wo, C), x.dtype),
        grid=(N,),
        in_specs=[pl.BlockSpec((Ho, 2, Wo, 2 * C), lambda n: (n, 0, 0, 0))],
        out_specs=pl.BlockSpec((Ho, Wo, C), lambda n: (n, 0, 0)),
        compiler_params=pltpu.CompilerParams(dimension_semantics=("parallel",)),
        cost_estimate=pl.CostEstimate(
            flops=int(3 * N * Ho * Wo * C), transcendentals=0,
            bytes_accessed=int(x.size * x.dtype.itemsize
                               + N * Ho * Wo * C * x.dtype.itemsize)),
    )(xr)
    return out.reshape(N, Ho, Wo, C)


def upsample2(x):
    # TODO(synk): fuse nearest-upsample into the following conv's index_map to
    # avoid materializing the 4x tensor; negligible at these spatial sizes.
    return jnp.repeat(jnp.repeat(x, 2, axis=1), 2, axis=2)


# ---------------------------------------------------------------------------
# Deterministic parameter construction (mirrors GT_UFPN_Net.__init__)
# BN scale is folded into the conv weights; only the bias remains.
# ---------------------------------------------------------------------------
def _conv3x3_bn(key, cin, cout):
    k1, k2, k3 = jax.random.split(key, 3)
    w = jax.random.normal(k1, (3, 3, cin, cout), jnp.float32) / np.sqrt(9 * cin)
    gamma = 1.0 + 0.1 * jax.random.normal(k2, (cout,), jnp.float32)
    beta = 0.1 * jax.random.normal(k3, (cout,), jnp.float32)
    w = (w * gamma).reshape(9, cin, cout)
    return w.astype(jnp.bfloat16), beta.reshape(1, cout).astype(jnp.float32)


def _conv1x1_bn(key, cin, cout):
    k1, k2, k3 = jax.random.split(key, 3)
    w = jax.random.normal(k1, (cin, cout), jnp.float32) / np.sqrt(cin)
    gamma = 1.0 + 0.1 * jax.random.normal(k2, (cout,), jnp.float32)
    beta = 0.1 * jax.random.normal(k3, (cout,), jnp.float32)
    return (w * gamma).astype(jnp.bfloat16), beta.reshape(1, cout).astype(jnp.float32)


def init_params(key, img_ch=1, output_ch=1,
                middle_channel=(2, 4, 8, 16, 32), encode_len=3):
    mc = list(middle_channel)[len(middle_channel) - encode_len:]
    mc = [img_ch, *mc]                       # e.g. [1, 8, 16, 32]
    index_len = encode_len - 1
    keys = iter(jax.random.split(key, 64))
    p = {"index_len": index_len}

    p["pre_encode"] = _conv3x3_bn(next(keys), mc[0], mc[1])
    p["encode"] = [_conv3x3_bn(next(keys), 2 * mc[i], mc[i + 1])
                   for i in range(1, encode_len)]

    p["up"], p["decode"] = [], []
    next_dim = 1
    for i in range(1, encode_len):
        now_dim = encode_len - i + 1
        next_dim = encode_len - i
        p["up"].append(_conv3x3_bn(next(keys), mc[now_dim], 2 * mc[next_dim]))
        p["decode"].append({
            "c3": _conv3x3_bn(next(keys), 2 * mc[now_dim], mc[next_dim]),
            "c1a": _conv1x1_bn(next(keys), mc[next_dim], mc[next_dim]),
            "c1b": _conv1x1_bn(next(keys), mc[next_dim], mc[next_dim]),
        })

    p["CBR"] = [_conv3x3_bn(next(keys), mc[0], mc[i + 1])
                for i in range(encode_len)]

    # last_decode: plain Conv1x1 (bias, no BN, no ReLU)
    kw = next(keys)
    w = jax.random.normal(kw, (mc[next_dim], output_ch), jnp.float32) / np.sqrt(mc[next_dim])
    bb = 0.1 * jax.random.normal(jax.random.fold_in(kw, 1), (1, output_ch), jnp.float32)
    p["last_decode"] = (w.astype(jnp.bfloat16), bb)
    return p


# ---------------------------------------------------------------------------
# Forward pass (mirrors GT_UFPN_Net.forward, need_return_dict=False)
# ---------------------------------------------------------------------------
def gt_ufpn_forward(params, x_nchw):
    index_len = params["index_len"]
    x = jnp.transpose(x_nchw, (0, 2, 3, 1)).astype(jnp.float32)    # NCHW -> NHWC

    # build_feature_pyramid: repeated AvgPool2d(2)
    x_list, xi = [], x
    for _ in range(index_len + 1):
        xi = pool2(xi, "avg")
        x_list.append(xi)

    pre_x_list = [conv3x3_fused(x_list[i], *params["CBR"][i])
                  for i in range(index_len + 1)]

    out = conv3x3_fused(x, *params["pre_encode"])
    out_pool = pool2(out, "max")
    out_list = [out]
    for idx in range(index_len):
        x_temp = jnp.concatenate([pre_x_list[idx], out_pool], axis=-1)
        out = conv3x3_fused(x_temp, *params["encode"][idx])
        out_pool = pool2(out, "max")
        out_list.append(out)

    x_temp = out_pool
    for idx in range(index_len):
        up = conv3x3_fused(upsample2(x_temp), *params["up"][idx])      # up_conv
        x_in = jnp.concatenate([up, out_list[index_len - idx]], axis=-1)
        d = params["decode"][idx]
        chain = [(*d["c1a"], True), (*d["c1b"], True)]
        out_dtype = jnp.bfloat16
        if idx == index_len - 1:
            # last_decode is a 1x1 conv and commutes with the nearest-neighbour
            # last_up, so fuse it into the final decode kernel; upsample after.
            chain.append((*params["last_decode"], False))
            out_dtype = jnp.float32
        x_temp = conv3x3_fused(x_in, *d["c3"], chain=tuple(chain),
                               out_dtype=out_dtype)

    outp = upsample2(x_temp)                        # last_up (after fused 1x1)
    outp = jnp.transpose(outp, (0, 3, 1, 2))        # back to NCHW
    return outp, 0                                  # need_return_dict=False


# ---------------------------------------------------------------------------
if __name__ == "__main__":
    key = jax.random.PRNGKey(0)
    k_param, k_x = jax.random.split(key)
    params = init_params(k_param, img_ch=1, output_ch=1,
                         middle_channel=(2, 4, 8, 16, 32), encode_len=3)
    x = jax.random.normal(k_x, (2, 1, 16, 16), jnp.float32)

    fwd = jax.jit(lambda xx: gt_ufpn_forward(params, xx))
    out, zero = fwd(x)
    out = jax.block_until_ready(out)
    assert out.shape == (2, 1, 16, 16), out.shape
    assert zero == 0
    print("KERNEL_OK")
</pallas_src>

<mosaic_0001>
module attributes {stable_mosaic.version = 11 : i64} {
  func.func @_conv3x3_chain_kernel(%arg0: i32, %arg1: memref<1x326x8xbf16, #tpu.memory_space<vmem>>, %arg2: memref<9x8x8xbf16, #tpu.memory_space<vmem>>, %arg3: memref<1x8xf32, #tpu.memory_space<vmem>>, %arg4: memref<1x288x8xbf16, #tpu.memory_space<vmem>>) attributes {dimension_semantics = [#tpu.dimension_semantics<parallel>], iteration_bounds = array<i64: 2>, scalar_prefetch = 0 : i64, scratch_operands = 0 : i64, tpu.core_type = #tpu.core_type<tc>, window_params = [{transform_indices = @transform_0, window_bounds = array<i64: 1, 326, 8>}, {pipeline_mode = #tpu.pipeline_mode<synchronous>, transform_indices = @transform_1, window_bounds = array<i64: 9, 8, 8>}, {pipeline_mode = #tpu.pipeline_mode<synchronous>, transform_indices = @transform_2, window_bounds = array<i64: 1, 8>}, {transform_indices = @transform_3, window_bounds = array<i64: 1, 288, 8>}]} {
    %cst = arith.constant 0.000000e+00 : f32
    %0 = vector.broadcast %cst : f32 to vector<288x8xf32>
    %c0 = arith.constant 0 : index
    %c0_0 = arith.constant 0 : index
    %c0_1 = arith.constant 0 : index
    %1 = vector.load %arg1[%c0, %c0_0, %c0_1] : memref<1x326x8xbf16, #tpu.memory_space<vmem>>, vector<1x288x8xbf16>
    %2 = vector.shape_cast %1 : vector<1x288x8xbf16> to vector<288x8xbf16>
    %c0_2 = arith.constant 0 : index
    %c0_3 = arith.constant 0 : index
    %c0_4 = arith.constant 0 : index
    %3 = vector.load %arg2[%c0_2, %c0_3, %c0_4] : memref<9x8x8xbf16, #tpu.memory_space<vmem>>, vector<1x8x8xbf16>
    %4 = vector.shape_cast %3 : vector<1x8x8xbf16> to vector<8x8xbf16>
    %cst_5 = arith.constant dense<0.000000e+00> : vector<288x8xf32>
    %5 = tpu.matmul %2, %4, %cst_5 {dimension_numbers = #tpu.dot_dimension_numbers<[1], [0], [0], [1], [0, 0, 1, 1], [], []>} : vector<288x8xbf16>, vector<8x8xbf16>, vector<288x8xf32> -> vector<288x8xf32>
    %6 = arith.addf %0, %5 : vector<288x8xf32>
    %c0_6 = arith.constant 0 : index
    %c1 = arith.constant 1 : index
    %c0_7 = arith.constant 0 : index
    %7 = vector.load %arg1[%c0_6, %c1, %c0_7] : memref<1x326x8xbf16, #tpu.memory_space<vmem>>, vector<1x288x8xbf16>
    %8 = vector.shape_cast %7 : vector<1x288x8xbf16> to vector<288x8xbf16>
    %c1_8 = arith.constant 1 : index
    %c0_9 = arith.constant 0 : index
    %c0_10 = arith.constant 0 : index
    %9 = vector.load %arg2[%c1_8, %c0_9, %c0_10] : memref<9x8x8xbf16, #tpu.memory_space<vmem>>, vector<1x8x8xbf16>
    %10 = vector.shape_cast %9 : vector<1x8x8xbf16> to vector<8x8xbf16>
    %cst_11 = arith.constant dense<0.000000e+00> : vector<288x8xf32>
    %11 = tpu.matmul %8, %10, %cst_11 {dimension_numbers = #tpu.dot_dimension_numbers<[1], [0], [0], [1], [0, 0, 1, 1], [], []>} : vector<288x8xbf16>, vector<8x8xbf16>, vector<288x8xf32> -> vector<288x8xf32>
    %12 = arith.addf %6, %11 : vector<288x8xf32>
    %c0_12 = arith.constant 0 : index
    %c2 = arith.constant 2 : index
    %c0_13 = arith.constant 0 : index
    %13 = vector.load %arg1[%c0_12, %c2, %c0_13] : memref<1x326x8xbf16, #tpu.memory_space<vmem>>, vector<1x288x8xbf16>
    %14 = vector.shape_cast %13 : vector<1x288x8xbf16> to vector<288x8xbf16>
    %c2_14 = arith.constant 2 : index
    %c0_15 = arith.constant 0 : index
    %c0_16 = arith.constant 0 : index
    %15 = vector.load %arg2[%c2_14, %c0_15, %c0_16] : memref<9x8x8xbf16, #tpu.memory_space<vmem>>, vector<1x8x8xbf16>
    %16 = vector.shape_cast %15 : vector<1x8x8xbf16> to vector<8x8xbf16>
    %cst_17 = arith.constant dense<0.000000e+00> : vector<288x8xf32>
    %17 = tpu.matmul %14, %16, %cst_17 {dimension_numbers = #tpu.dot_dimension_numbers<[1], [0], [0], [1], [0, 0, 1, 1], [], []>} : vector<288x8xbf16>, vector<8x8xbf16>, vector<288x8xf32> -> vector<288x8xf32>
    %18 = arith.addf %12, %17 : vector<288x8xf32>
    %c0_18 = arith.constant 0 : index
    %c18 = arith.constant 18 : index
    %c0_19 = arith.constant 0 : index
    %19 = vector.load %arg1[%c0_18, %c18, %c0_19] : memref<1x326x8xbf16, #tpu.memory_space<vmem>>, vector<1x288x8xbf16>
    %20 = vector.shape_cast %19 : vector<1x288x8xbf16> to vector<288x8xbf16>
    %c3 = arith.constant 3 : index
    %c0_20 = arith.constant 0 : index
    %c0_21 = arith.constant 0 : index
    %21 = vector.load %arg2[%c3, %c0_20, %c0_21] : memref<9x8x8xbf16, #tpu.memory_space<vmem>>, vector<1x8x8xbf16>
    %22 = vector.shape_cast %21 : vector<1x8x8xbf16> to vector<8x8xbf16>
    %cst_22 = arith.constant dense<0.000000e+00> : vector<288x8xf32>
    %23 = tpu.matmul %20, %22, %cst_22 {dimension_numbers = #tpu.dot_dimension_numbers<[1], [0], [0], [1], [0, 0, 1, 1], [], []>} : vector<288x8xbf16>, vector<8x8xbf16>, vector<288x8xf32> -> vector<288x8xf32>
    %24 = arith.addf %18, %23 : vector<288x8xf32>
    %c0_23 = arith.constant 0 : index
    %c19 = arith.constant 19 : index
    %c0_24 = arith.constant 0 : index
    %25 = vector.load %arg1[%c0_23, %c19, %c0_24] : memref<1x326x8xbf16, #tpu.memory_space<vmem>>, vector<1x288x8xbf16>
    %26 = vector.shape_cast %25 : vector<1x288x8xbf16> to vector<288x8xbf16>
    %c4 = arith.constant 4 : index
    %c0_25 = arith.constant 0 : index
    %c0_26 = arith.constant 0 : index
    %27 = vector.load %arg2[%c4, %c0_25, %c0_26] : memref<9x8x8xbf16, #tpu.memory_space<vmem>>, vector<1x8x8xbf16>
    %28 = vector.shape_cast %27 : vector<1x8x8xbf16> to vector<8x8xbf16>
    %cst_27 = arith.constant dense<0.000000e+00> : vector<288x8xf32>
    %29 = tpu.matmul %26, %28, %cst_27 {dimension_numbers = #tpu.dot_dimension_numbers<[1], [0], [0], [1], [0, 0, 1, 1], [], []>} : vector<288x8xbf16>, vector<8x8xbf16>, vector<288x8xf32> -> vector<288x8xf32>
    %30 = arith.addf %24, %29 : vector<288x8xf32>
    %c0_28 = arith.constant 0 : index
    %c20 = arith.constant 20 : index
    %c0_29 = arith.constant 0 : index
    %31 = vector.load %arg1[%c0_28, %c20, %c0_29] : memref<1x326x8xbf16, #tpu.memory_space<vmem>>, vector<1x288x8xbf16>
    %32 = vector.shape_cast %31 : vector<1x288x8xbf16> to vector<288x8xbf16>
    %c5 = arith.constant 5 : index
    %c0_30 = arith.constant 0 : index
    %c0_31 = arith.constant 0 : index
    %33 = vector.load %arg2[%c5, %c0_30, %c0_31] : memref<9x8x8xbf16, #tpu.memory_space<vmem>>, vector<1x8x8xbf16>
    %34 = vector.shape_cast %33 : vector<1x8x8xbf16> to vector<8x8xbf16>
    %cst_32 = arith.constant dense<0.000000e+00> : vector<288x8xf32>
    %35 = tpu.matmul %32, %34, %cst_32 {dimension_numbers = #tpu.dot_dimension_numbers<[1], [0], [0], [1], [0, 0, 1, 1], [], []>} : vector<288x8xbf16>, vector<8x8xbf16>, vector<288x8xf32> -> vector<288x8xf32>
    %36 = arith.addf %30, %35 : vector<288x8xf32>
    %c0_33 = arith.constant 0 : index
    %c36 = arith.constant 36 : index
    %c0_34 = arith.constant 0 : index
    %37 = vector.load %arg1[%c0_33, %c36, %c0_34] : memref<1x326x8xbf16, #tpu.memory_space<vmem>>, vector<1x288x8xbf16>
    %38 = vector.shape_cast %37 : vector<1x288x8xbf16> to vector<288x8xbf16>
    %c6 = arith.constant 6 : index
    %c0_35 = arith.constant 0 : index
    %c0_36 = arith.constant 0 : index
    %39 = vector.load %arg2[%c6, %c0_35, %c0_36] : memref<9x8x8xbf16, #tpu.memory_space<vmem>>, vector<1x8x8xbf16>
    %40 = vector.shape_cast %39 : vector<1x8x8xbf16> to vector<8x8xbf16>
    %cst_37 = arith.constant dense<0.000000e+00> : vector<288x8xf32>
    %41 = tpu.matmul %38, %40, %cst_37 {dimension_numbers = #tpu.dot_dimension_numbers<[1], [0], [0], [1], [0, 0, 1, 1], [], []>} : vector<288x8xbf16>, vector<8x8xbf16>, vector<288x8xf32> -> vector<288x8xf32>
    %42 = arith.addf %36, %41 : vector<288x8xf32>
    %c0_38 = arith.constant 0 : index
    %c37 = arith.constant 37 : index
    %c0_39 = arith.constant 0 : index
    %43 = vector.load %arg1[%c0_38, %c37, %c0_39] : memref<1x326x8xbf16, #tpu.memory_space<vmem>>, vector<1x288x8xbf16>
    %44 = vector.shape_cast %43 : vector<1x288x8xbf16> to vector<288x8xbf16>
    %c7 = arith.constant 7 : index
    %c0_40 = arith.constant 0 : index
    %c0_41 = arith.constant 0 : index
    %45 = vector.load %arg2[%c7, %c0_40, %c0_41] : memref<9x8x8xbf16, #tpu.memory_space<vmem>>, vector<1x8x8xbf16>
    %46 = vector.shape_cast %45 : vector<1x8x8xbf16> to vector<8x8xbf16>
    %cst_42 = arith.constant dense<0.000000e+00> : vector<288x8xf32>
    %47 = tpu.matmul %44, %46, %cst_42 {dimension_numbers = #tpu.dot_dimension_numbers<[1], [0], [0], [1], [0, 0, 1, 1], [], []>} : vector<288x8xbf16>, vector<8x8xbf16>, vector<288x8xf32> -> vector<288x8xf32>
    %48 = arith.addf %42, %47 : vector<288x8xf32>
    %c0_43 = arith.constant 0 : index
    %c38 = arith.constant 38 : index
    %c0_44 = arith.constant 0 : index
    %49 = vector.load %arg1[%c0_43, %c38, %c0_44] : memref<1x326x8xbf16, #tpu.memory_space<vmem>>, vector<1x288x8xbf16>
    %50 = vector.shape_cast %49 : vector<1x288x8xbf16> to vector<288x8xbf16>
    %c8 = arith.constant 8 : index
    %c0_45 = arith.constant 0 : index
    %c0_46 = arith.constant 0 : index
    %51 = vector.load %arg2[%c8, %c0_45, %c0_46] : memref<9x8x8xbf16, #tpu.memory_space<vmem>>, vector<1x8x8xbf16>
    %52 = vector.shape_cast %51 : vector<1x8x8xbf16> to vector<8x8xbf16>
    %cst_47 = arith.constant dense<0.000000e+00> : vector<288x8xf32>
    %53 = tpu.matmul %50, %52, %cst_47 {dimension_numbers = #tpu.dot_dimension_numbers<[1], [0], [0], [1], [0, 0, 1, 1], [], []>} : vector<288x8xbf16>, vector<8x8xbf16>, vector<288x8xf32> -> vector<288x8xf32>
    %54 = arith.addf %48, %53 : vector<288x8xf32>
    %c0_48 = arith.constant 0 : index
    %c0_49 = arith.constant 0 : index
    %55 = vector.load %arg3[%c0_48, %c0_49] : memref<1x8xf32, #tpu.memory_space<vmem>>, vector<1x8xf32>
    %56 = vector.broadcast %55 : vector<1x8xf32> to vector<288x8xf32>
    %57 = arith.addf %54, %56 : vector<288x8xf32>
    %cst_50 = arith.constant 0.000000e+00 : f32
    %58 = vector.broadcast %cst_50 : f32 to vector<288x8xf32>
    %59 = arith.maximumf %57, %58 : vector<288x8xf32>
    %60 = arith.truncf %59 : vector<288x8xf32> to vector<288x8xbf16>
    %c0_51 = arith.constant 0 : index
    %c0_52 = arith.constant 0 : index
    %c0_53 = arith.constant 0 : index
    %61 = vector.load %arg4[%c0_51, %c0_52, %c0_53] : memref<1x288x8xbf16, #tpu.memory_space<vmem>>, vector<1x288x8xbf16>
    %62 = vector.shape_cast %61 : vector<1x288x8xbf16> to vector<288x8xbf16>
    %63 = vector.shape_cast %60 : vector<288x8xbf16> to vector<1x288x8xbf16>
    tpu.vector_store %arg4[%c0_51, %c0_52, %c0_53], %63 {strides = array<i32>} : memref<1x288x8xbf16, #tpu.memory_space<vmem>>, vector<1x288x8xbf16>,
    return
  }
  func.func @transform_0(%arg0: i32) -> (i32, i32, i32) {
    %c0_i32 = arith.constant 0 : i32
    %c0_i32_0 = arith.constant 0 : i32
    %c0_i32_1 = arith.constant 0 : i32
    return %arg0, %c0_i32, %c0_i32_0 : i32, i32, i32
  }
  func.func @transform_1(%arg0: i32) -> (i32, i32, i32) {
    %c0_i32 = arith.constant 0 : i32
    %c0_i32_0 = arith.constant 0 : i32
    %c0_i32_1 = arith.constant 0 : i32
    %c0_i32_2 = arith.constant 0 : i32
    return %c0_i32, %c0_i32_0, %c0_i32_1 : i32, i32, i32
  }
  func.func @transform_2(%arg0: i32) -> (i32, i32) {
    %c0_i32 = arith.constant 0 : i32
    %c0_i32_0 = arith.constant 0 : i32
    %c0_i32_1 = arith.constant 0 : i32
    return %c0_i32, %c0_i32_0 : i32, i32
  }
  func.func @transform_3(%arg0: i32) -> (i32, i32, i32) {
    %c0_i32 = arith.constant 0 : i32
    %c0_i32_0 = arith.constant 0 : i32
    %c0_i32_1 = arith.constant 0 : i32
    return %arg0, %c0_i32, %c0_i32_0 : i32, i32, i32
  }
}

module attributes {stable_mosaic.version = 11 : i64} {
  func.func @_pool2_kernel(%arg0: i32, %arg1: memref<8x2x8x16xbf16, #tpu.memory_space<vmem>>, %arg2: memref<8x8x8xbf16, #tpu.memory_space<vmem>>) attributes {dimension_semantics = [#tpu.dimension_semantics<parallel>], iteration_bounds = array<i64: 2>, scalar_prefetch = 0 : i64, scratch_operands = 0 : i64, tpu.core_type = #tpu.core_type<tc>, window_params = [{transform_indices = @transform_0, window_bounds = array<i64: 8, 2, 8, 16>}, {transform_indices = @transform_1, window_bounds = array<i64: 8, 8, 8>}]} {
    %c0 = arith.constant 0 : index
    %c0_0 = arith.constant 0 : index
    %c0_1 = arith.constant 0 : index
    %c0_2 = arith.constant 0 : index
    %0 = vector.load %arg1[%c0, %c0_0, %c0_1, %c0_2] : memref<8x2x8x16xbf16, #tpu.memory_space<vmem>>, vector<8x1x8x16xbf16>
    %1 = vector.shape_cast %0 : vector<8x1x8x16xbf16> to vector<8x8x16xbf16>
    %c0_3 = arith.constant 0 : index
    %c1 = arith.constant 1 : index
    %c0_4 = arith.constant 0 : index
    %c0_5 = arith.constant 0 : index
    %2 = vector.load %arg1[%c0_3, %c1, %c0_4, %c0_5] : memref<8x2x8x16xbf16, #tpu.memory_space<vmem>>, vector<8x1x8x16xbf16>
    %3 = vector.shape_cast %2 : vector<8x1x8x16xbf16> to vector<8x8x16xbf16>
    %4 = arith.maximumf %1, %3 : vector<8x8x16xbf16>
    %5 = vector.extract_strided_slice %4 {offsets = [0, 0, 0], sizes = [8, 8, 8], strides = [1, 1, 1]} : vector<8x8x16xbf16> to vector<8x8x8xbf16>
    %6 = vector.extract_strided_slice %4 {offsets = [0, 0, 8], sizes = [8, 8, 8], strides = [1, 1, 1]} : vector<8x8x16xbf16> to vector<8x8x8xbf16>
    %7 = arith.maximumf %5, %6 : vector<8x8x8xbf16>
    %c0_6 = arith.constant 0 : index
    %c0_7 = arith.constant 0 : index
    %c0_8 = arith.constant 0 : index
    %8 = vector.load %arg2[%c0_6, %c0_7, %c0_8] : memref<8x8x8xbf16, #tpu.memory_space<vmem>>, vector<8x8x8xbf16>
    tpu.vector_store %arg2[%c0_6, %c0_7, %c0_8], %7 {strides = array<i32>} : memref<8x8x8xbf16, #tpu.memory_space<vmem>>, vector<8x8x8xbf16>,
    return
  }
  func.func @transform_0(%arg0: i32) -> (i32, i32, i32, i32) {
    %c0_i32 = arith.constant 0 : i32
    %c0_i32_0 = arith.constant 0 : i32
    %c0_i32_1 = arith.constant 0 : i32
    %c0_i32_2 = arith.constant 0 : i32
    return %arg0, %c0_i32, %c0_i32_0, %c0_i32_1 : i32, i32, i32, i32
  }
  func.func @transform_1(%arg0: i32) -> (i32, i32, i32) {
    %c0_i32 = arith.constant 0 : i32
    %c0_i32_0 = arith.constant 0 : i32
    %c0_i32_1 = arith.constant 0 : i32
    return %arg0, %c0_i32, %c0_i32_0 : i32, i32, i32
  }
}

module attributes {stable_mosaic.version = 11 : i64} {
  func.func @_pool2_kernel(%arg0: i32, %arg1: memref<8x2x8x2xf32, #tpu.memory_space<vmem>>, %arg2: memref<8x8x1xf32, #tpu.memory_space<vmem>>) attributes {dimension_semantics = [#tpu.dimension_semantics<parallel>], iteration_bounds = array<i64: 2>, scalar_prefetch = 0 : i64, scratch_operands = 0 : i64, tpu.core_type = #tpu.core_type<tc>, window_params = [{transform_indices = @transform_0, window_bounds = array<i64: 8, 2, 8, 2>}, {transform_indices = @transform_1, window_bounds = array<i64: 8, 8, 1>}]} {
    %c0 = arith.constant 0 : index
    %c0_0 = arith.constant 0 : index
    %c0_1 = arith.constant 0 : index
    %c0_2 = arith.constant 0 : index
    %0 = vector.load %arg1[%c0, %c0_0, %c0_1, %c0_2] : memref<8x2x8x2xf32, #tpu.memory_space<vmem>>, vector<8x1x8x2xf32>
    %1 = vector.shape_cast %0 : vector<8x1x8x2xf32> to vector<8x8x2xf32>
    %c0_3 = arith.constant 0 : index
    %c1 = arith.constant 1 : index
    %c0_4 = arith.constant 0 : index
    %c0_5 = arith.constant 0 : index
    %2 = vector.load %arg1[%c0_3, %c1, %c0_4, %c0_5] : memref<8x2x8x2xf32, #tpu.memory_space<vmem>>, vector<8x1x8x2xf32>
    %3 = vector.shape_cast %2 : vector<8x1x8x2xf32> to vector<8x8x2xf32>
    %4 = arith.addf %1, %3 : vector<8x8x2xf32>
    %5 = vector.extract_strided_slice %4 {offsets = [0, 0, 0], sizes = [8, 8, 1], strides = [1, 1, 1]} : vector<8x8x2xf32> to vector<8x8x1xf32>
    %6 = vector.extract_strided_slice %4 {offsets = [0, 0, 1], sizes = [8, 8, 1], strides = [1, 1, 1]} : vector<8x8x2xf32> to vector<8x8x1xf32>
    %7 = arith.addf %5, %6 : vector<8x8x1xf32>
    %cst = arith.constant 2.500000e-01 : f32
    %8 = vector.broadcast %cst : f32 to vector<8x8x1xf32>
    %9 = arith.mulf %7, %8 : vector<8x8x1xf32>
    %c0_6 = arith.constant 0 : index
    %c0_7 = arith.constant 0 : index
    %c0_8 = arith.constant 0 : index
    %10 = vector.load %arg2[%c0_6, %c0_7, %c0_8] : memref<8x8x1xf32, #tpu.memory_space<vmem>>, vector<8x8x1xf32>
    tpu.vector_store %arg2[%c0_6, %c0_7, %c0_8], %9 {strides = array<i32>} : memref<8x8x1xf32, #tpu.memory_space<vmem>>, vector<8x8x1xf32>,
    return
  }
  func.func @transform_0(%arg0: i32) -> (i32, i32, i32, i32) {
    %c0_i32 = arith.constant 0 : i32
    %c0_i32_0 = arith.constant 0 : i32
    %c0_i32_1 = arith.constant 0 : i32
    %c0_i32_2 = arith.constant 0 : i32
    return %arg0, %c0_i32, %c0_i32_0, %c0_i32_1 : i32, i32, i32, i32
  }
  func.func @transform_1(%arg0: i32) -> (i32, i32, i32) {
    %c0_i32 = arith.constant 0 : i32
    %c0_i32_0 = arith.constant 0 : i32
    %c0_i32_1 = arith.constant 0 : i32
    return %arg0, %c0_i32, %c0_i32_0 : i32, i32, i32
  }
}

module attributes {stable_mosaic.version = 11 : i64} {
  func.func @_conv3x3_chain_kernel(%arg0: i32, %arg1: memref<1x102x8xbf16, #tpu.memory_space<vmem>>, %arg2: memref<9x8x8xbf16, #tpu.memory_space<vmem>>, %arg3: memref<1x8xf32, #tpu.memory_space<vmem>>, %arg4: memref<1x80x8xbf16, #tpu.memory_space<vmem>>) attributes {dimension_semantics = [#tpu.dimension_semantics<parallel>], iteration_bounds = array<i64: 2>, scalar_prefetch = 0 : i64, scratch_operands = 0 : i64, tpu.core_type = #tpu.core_type<tc>, window_params = [{transform_indices = @transform_0, window_bounds = array<i64: 1, 102, 8>}, {pipeline_mode = #tpu.pipeline_mode<synchronous>, transform_indices = @transform_1, window_bounds = array<i64: 9, 8, 8>}, {pipeline_mode = #tpu.pipeline_mode<synchronous>, transform_indices = @transform_2, window_bounds = array<i64: 1, 8>}, {transform_indices = @transform_3, window_bounds = array<i64: 1, 80, 8>}]} {
    %cst = arith.constant 0.000000e+00 : f32
    %0 = vector.broadcast %cst : f32 to vector<80x8xf32>
    %c0 = arith.constant 0 : index
    %c0_0 = arith.constant 0 : index
    %c0_1 = arith.constant 0 : index
    %1 = vector.load %arg1[%c0, %c0_0, %c0_1] : memref<1x102x8xbf16, #tpu.memory_space<vmem>>, vector<1x80x8xbf16>
    %2 = vector.shape_cast %1 : vector<1x80x8xbf16> to vector<80x8xbf16>
    %c0_2 = arith.constant 0 : index
    %c0_3 = arith.constant 0 : index
    %c0_4 = arith.constant 0 : index
    %3 = vector.load %arg2[%c0_2, %c0_3, %c0_4] : memref<9x8x8xbf16, #tpu.memory_space<vmem>>, vector<1x8x8xbf16>
    %4 = vector.shape_cast %3 : vector<1x8x8xbf16> to vector<8x8xbf16>
    %cst_5 = arith.constant dense<0.000000e+00> : vector<80x8xf32>
    %5 = tpu.matmul %2, %4, %cst_5 {dimension_numbers = #tpu.dot_dimension_numbers<[1], [0], [0], [1], [0, 0, 1, 1], [], []>} : vector<80x8xbf16>, vector<8x8xbf16>, vector<80x8xf32> -> vector<80x8xf32>
    %6 = arith.addf %0, %5 : vector<80x8xf32>
    %c0_6 = arith.constant 0 : index
    %c1 = arith.constant 1 : index
    %c0_7 = arith.constant 0 : index
    %7 = vector.load %arg1[%c0_6, %c1, %c0_7] : memref<1x102x8xbf16, #tpu.memory_space<vmem>>, vector<1x80x8xbf16>
    %8 = vector.shape_cast %7 : vector<1x80x8xbf16> to vector<80x8xbf16>
    %c1_8 = arith.constant 1 : index
    %c0_9 = arith.constant 0 : index
    %c0_10 = arith.constant 0 : index
    %9 = vector.load %arg2[%c1_8, %c0_9, %c0_10] : memref<9x8x8xbf16, #tpu.memory_space<vmem>>, vector<1x8x8xbf16>
    %10 = vector.shape_cast %9 : vector<1x8x8xbf16> to vector<8x8xbf16>
    %cst_11 = arith.constant dense<0.000000e+00> : vector<80x8xf32>
    %11 = tpu.matmul %8, %10, %cst_11 {dimension_numbers = #tpu.dot_dimension_numbers<[1], [0], [0], [1], [0, 0, 1, 1], [], []>} : vector<80x8xbf16>, vector<8x8xbf16>, vector<80x8xf32> -> vector<80x8xf32>
    %12 = arith.addf %6, %11 : vector<80x8xf32>
    %c0_12 = arith.constant 0 : index
    %c2 = arith.constant 2 : index
    %c0_13 = arith.constant 0 : index
    %13 = vector.load %arg1[%c0_12, %c2, %c0_13] : memref<1x102x8xbf16, #tpu.memory_space<vmem>>, vector<1x80x8xbf16>
    %14 = vector.shape_cast %13 : vector<1x80x8xbf16> to vector<80x8xbf16>
    %c2_14 = arith.constant 2 : index
    %c0_15 = arith.constant 0 : index
    %c0_16 = arith.constant 0 : index
    %15 = vector.load %arg2[%c2_14, %c0_15, %c0_16] : memref<9x8x8xbf16, #tpu.memory_space<vmem>>, vector<1x8x8xbf16>
    %16 = vector.shape_cast %15 : vector<1x8x8xbf16> to vector<8x8xbf16>
    %cst_17 = arith.constant dense<0.000000e+00> : vector<80x8xf32>
    %17 = tpu.matmul %14, %16, %cst_17 {dimension_numbers = #tpu.dot_dimension_numbers<[1], [0], [0], [1], [0, 0, 1, 1], [], []>} : vector<80x8xbf16>, vector<8x8xbf16>, vector<80x8xf32> -> vector<80x8xf32>
    %18 = arith.addf %12, %17 : vector<80x8xf32>
    %c0_18 = arith.constant 0 : index
    %c10 = arith.constant 10 : index
    %c0_19 = arith.constant 0 : index
    %19 = vector.load %arg1[%c0_18, %c10, %c0_19] : memref<1x102x8xbf16, #tpu.memory_space<vmem>>, vector<1x80x8xbf16>
    %20 = vector.shape_cast %19 : vector<1x80x8xbf16> to vector<80x8xbf16>
    %c3 = arith.constant 3 : index
    %c0_20 = arith.constant 0 : index
    %c0_21 = arith.constant 0 : index
    %21 = vector.load %arg2[%c3, %c0_20, %c0_21] : memref<9x8x8xbf16, #tpu.memory_space<vmem>>, vector<1x8x8xbf16>
    %22 = vector.shape_cast %21 : vector<1x8x8xbf16> to vector<8x8xbf16>
    %cst_22 = arith.constant dense<0.000000e+00> : vector<80x8xf32>
    %23 = tpu.matmul %20, %22, %cst_22 {dimension_numbers = #tpu.dot_dimension_numbers<[1], [0], [0], [1], [0, 0, 1, 1], [], []>} : vector<80x8xbf16>, vector<8x8xbf16>, vector<80x8xf32> -> vector<80x8xf32>
    %24 = arith.addf %18, %23 : vector<80x8xf32>
    %c0_23 = arith.constant 0 : index
    %c11 = arith.constant 11 : index
    %c0_24 = arith.constant 0 : index
    %25 = vector.load %arg1[%c0_23, %c11, %c0_24] : memref<1x102x8xbf16, #tpu.memory_space<vmem>>, vector<1x80x8xbf16>
    %26 = vector.shape_cast %25 : vector<1x80x8xbf16> to vector<80x8xbf16>
    %c4 = arith.constant 4 : index
    %c0_25 = arith.constant 0 : index
    %c0_26 = arith.constant 0 : index
    %27 = vector.load %arg2[%c4, %c0_25, %c0_26] : memref<9x8x8xbf16, #tpu.memory_space<vmem>>, vector<1x8x8xbf16>
    %28 = vector.shape_cast %27 : vector<1x8x8xbf16> to vector<8x8xbf16>
    %cst_27 = arith.constant dense<0.000000e+00> : vector<80x8xf32>
    %29 = tpu.matmul %26, %28, %cst_27 {dimension_numbers = #tpu.dot_dimension_numbers<[1], [0], [0], [1], [0, 0, 1, 1], [], []>} : vector<80x8xbf16>, vector<8x8xbf16>, vector<80x8xf32> -> vector<80x8xf32>
    %30 = arith.addf %24, %29 : vector<80x8xf32>
    %c0_28 = arith.constant 0 : index
    %c12 = arith.constant 12 : index
    %c0_29 = arith.constant 0 : index
    %31 = vector.load %arg1[%c0_28, %c12, %c0_29] : memref<1x102x8xbf16, #tpu.memory_space<vmem>>, vector<1x80x8xbf16>
    %32 = vector.shape_cast %31 : vector<1x80x8xbf16> to vector<80x8xbf16>
    %c5 = arith.constant 5 : index
    %c0_30 = arith.constant 0 : index
    %c0_31 = arith.constant 0 : index
    %33 = vector.load %arg2[%c5, %c0_30, %c0_31] : memref<9x8x8xbf16, #tpu.memory_space<vmem>>, vector<1x8x8xbf16>
    %34 = vector.shape_cast %33 : vector<1x8x8xbf16> to vector<8x8xbf16>
    %cst_32 = arith.constant dense<0.000000e+00> : vector<80x8xf32>
    %35 = tpu.matmul %32, %34, %cst_32 {dimension_numbers = #tpu.dot_dimension_numbers<[1], [0], [0], [1], [0, 0, 1, 1], [], []>} : vector<80x8xbf16>, vector<8x8xbf16>, vector<80x8xf32> -> vector<80x8xf32>
    %36 = arith.addf %30, %35 : vector<80x8xf32>
    %c0_33 = arith.constant 0 : index
    %c20 = arith.constant 20 : index
    %c0_34 = arith.constant 0 : index
    %37 = vector.load %arg1[%c0_33, %c20, %c0_34] : memref<1x102x8xbf16, #tpu.memory_space<vmem>>, vector<1x80x8xbf16>
    %38 = vector.shape_cast %37 : vector<1x80x8xbf16> to vector<80x8xbf16>
    %c6 = arith.constant 6 : index
    %c0_35 = arith.constant 0 : index
    %c0_36 = arith.constant 0 : index
    %39 = vector.load %arg2[%c6, %c0_35, %c0_36] : memref<9x8x8xbf16, #tpu.memory_space<vmem>>, vector<1x8x8xbf16>
    %40 = vector.shape_cast %39 : vector<1x8x8xbf16> to vector<8x8xbf16>
    %cst_37 = arith.constant dense<0.000000e+00> : vector<80x8xf32>
    %41 = tpu.matmul %38, %40, %cst_37 {dimension_numbers = #tpu.dot_dimension_numbers<[1], [0], [0], [1], [0, 0, 1, 1], [], []>} : vector<80x8xbf16>, vector<8x8xbf16>, vector<80x8xf32> -> vector<80x8xf32>
    %42 = arith.addf %36, %41 : vector<80x8xf32>
    %c0_38 = arith.constant 0 : index
    %c21 = arith.constant 21 : index
    %c0_39 = arith.constant 0 : index
    %43 = vector.load %arg1[%c0_38, %c21, %c0_39] : memref<1x102x8xbf16, #tpu.memory_space<vmem>>, vector<1x80x8xbf16>
    %44 = vector.shape_cast %43 : vector<1x80x8xbf16> to vector<80x8xbf16>
    %c7 = arith.constant 7 : index
    %c0_40 = arith.constant 0 : index
    %c0_41 = arith.constant 0 : index
    %45 = vector.load %arg2[%c7, %c0_40, %c0_41] : memref<9x8x8xbf16, #tpu.memory_space<vmem>>, vector<1x8x8xbf16>
    %46 = vector.shape_cast %45 : vector<1x8x8xbf16> to vector<8x8xbf16>
    %cst_42 = arith.constant dense<0.000000e+00> : vector<80x8xf32>
    %47 = tpu.matmul %44, %46, %cst_42 {dimension_numbers = #tpu.dot_dimension_numbers<[1], [0], [0], [1], [0, 0, 1, 1], [], []>} : vector<80x8xbf16>, vector<8x8xbf16>, vector<80x8xf32> -> vector<80x8xf32>
    %48 = arith.addf %42, %47 : vector<80x8xf32>
    %c0_43 = arith.constant 0 : index
    %c22 = arith.constant 22 : index
    %c0_44 = arith.constant 0 : index
    %49 = vector.load %arg1[%c0_43, %c22, %c0_44] : memref<1x102x8xbf16, #tpu.memory_space<vmem>>, vector<1x80x8xbf16>
    %50 = vector.shape_cast %49 : vector<1x80x8xbf16> to vector<80x8xbf16>
    %c8 = arith.constant 8 : index
    %c0_45 = arith.constant 0 : index
    %c0_46 = arith.constant 0 : index
    %51 = vector.load %arg2[%c8, %c0_45, %c0_46] : memref<9x8x8xbf16, #tpu.memory_space<vmem>>, vector<1x8x8xbf16>
    %52 = vector.shape_cast %51 : vector<1x8x8xbf16> to vector<8x8xbf16>
    %cst_47 = arith.constant dense<0.000000e+00> : vector<80x8xf32>
    %53 = tpu.matmul %50, %52, %cst_47 {dimension_numbers = #tpu.dot_dimension_numbers<[1], [0], [0], [1], [0, 0, 1, 1], [], []>} : vector<80x8xbf16>, vector<8x8xbf16>, vector<80x8xf32> -> vector<80x8xf32>
    %54 = arith.addf %48, %53 : vector<80x8xf32>
    %c0_48 = arith.constant 0 : index
    %c0_49 = arith.constant 0 : index
    %55 = vector.load %arg3[%c0_48, %c0_49] : memref<1x8xf32, #tpu.memory_space<vmem>>, vector<1x8xf32>
    %56 = vector.broadcast %55 : vector<1x8xf32> to vector<80x8xf32>
    %57 = arith.addf %54, %56 : vector<80x8xf32>
    %cst_50 = arith.constant 0.000000e+00 : f32
    %58 = vector.broadcast %cst_50 : f32 to vector<80x8xf32>
    %59 = arith.maximumf %57, %58 : vector<80x8xf32>
    %60 = arith.truncf %59 : vector<80x8xf32> to vector<80x8xbf16>
    %c0_51 = arith.constant 0 : index
    %c0_52 = arith.constant 0 : index
    %c0_53 = arith.constant 0 : index
    %61 = vector.load %arg4[%c0_51, %c0_52, %c0_53] : memref<1x80x8xbf16, #tpu.memory_space<vmem>>, vector<1x80x8xbf16>
    %62 = vector.shape_cast %61 : vector<1x80x8xbf16> to vector<80x8xbf16>
    %63 = vector.shape_cast %60 : vector<80x8xbf16> to vector<1x80x8xbf16>
    tpu.vector_store %arg4[%c0_51, %c0_52, %c0_53], %63 {strides = array<i32>} : memref<1x80x8xbf16, #tpu.memory_space<vmem>>, vector<1x80x8xbf16>,
    return
  }
  func.func @transform_0(%arg0: i32) -> (i32, i32, i32) {
    %c0_i32 = arith.constant 0 : i32
    %c0_i32_0 = arith.constant 0 : i32
    %c0_i32_1 = arith.constant 0 : i32
    return %arg0, %c0_i32, %c0_i32_0 : i32, i32, i32
  }
  func.func @transform_1(%arg0: i32) -> (i32, i32, i32) {
    %c0_i32 = arith.constant 0 : i32
    %c0_i32_0 = arith.constant 0 : i32
    %c0_i32_1 = arith.constant 0 : i32
    %c0_i32_2 = arith.constant 0 : i32
    return %c0_i32, %c0_i32_0, %c0_i32_1 : i32, i32, i32
  }
  func.func @transform_2(%arg0: i32) -> (i32, i32) {
    %c0_i32 = arith.constant 0 : i32
    %c0_i32_0 = arith.constant 0 : i32
    %c0_i32_1 = arith.constant 0 : i32
    return %c0_i32, %c0_i32_0 : i32, i32
  }
  func.func @transform_3(%arg0: i32) -> (i32, i32, i32) {
    %c0_i32 = arith.constant 0 : i32
    %c0_i32_0 = arith.constant 0 : i32
    %c0_i32_1 = arith.constant 0 : i32
    return %arg0, %c0_i32, %c0_i32_0 : i32, i32, i32
  }
}

module attributes {stable_mosaic.version = 11 : i64} {
  func.func @_conv3x3_chain_kernel(%arg0: i32, %arg1: memref<1x102x16xbf16, #tpu.memory_space<vmem>>, %arg2: memref<9x16x16xbf16, #tpu.memory_space<vmem>>, %arg3: memref<1x16xf32, #tpu.memory_space<vmem>>, %arg4: memref<1x80x16xbf16, #tpu.memory_space<vmem>>) attributes {dimension_semantics = [#tpu.dimension_semantics<parallel>], iteration_bounds = array<i64: 2>, scalar_prefetch = 0 : i64, scratch_operands = 0 : i64, tpu.core_type = #tpu.core_type<tc>, window_params = [{transform_indices = @transform_0, window_bounds = array<i64: 1, 102, 16>}, {pipeline_mode = #tpu.pipeline_mode<synchronous>, transform_indices = @transform_1, window_bounds = array<i64: 9, 16, 16>}, {pipeline_mode = #tpu.pipeline_mode<synchronous>, transform_indices = @transform_2, window_bounds = array<i64: 1, 16>}, {transform_indices = @transform_3, window_bounds = array<i64: 1, 80, 16>}]} {
    %cst = arith.constant 0.000000e+00 : f32
    %0 = vector.broadcast %cst : f32 to vector<80x16xf32>
    %c0 = arith.constant 0 : index
    %c0_0 = arith.constant 0 : index
    %c0_1 = arith.constant 0 : index
    %1 = vector.load %arg1[%c0, %c0_0, %c0_1] : memref<1x102x16xbf16, #tpu.memory_space<vmem>>, vector<1x80x16xbf16>
    %2 = vector.shape_cast %1 : vector<1x80x16xbf16> to vector<80x16xbf16>
    %c0_2 = arith.constant 0 : index
    %c0_3 = arith.constant 0 : index
    %c0_4 = arith.constant 0 : index
    %3 = vector.load %arg2[%c0_2, %c0_3, %c0_4] : memref<9x16x16xbf16, #tpu.memory_space<vmem>>, vector<1x16x16xbf16>
    %4 = vector.shape_cast %3 : vector<1x16x16xbf16> to vector<16x16xbf16>
    %cst_5 = arith.constant dense<0.000000e+00> : vector<80x16xf32>
    %5 = tpu.matmul %2, %4, %cst_5 {dimension_numbers = #tpu.dot_dimension_numbers<[1], [0], [0], [1], [0, 0, 1, 1], [], []>} : vector<80x16xbf16>, vector<16x16xbf16>, vector<80x16xf32> -> vector<80x16xf32>
    %6 = arith.addf %0, %5 : vector<80x16xf32>
    %c0_6 = arith.constant 0 : index
    %c1 = arith.constant 1 : index
    %c0_7 = arith.constant 0 : index
    %7 = vector.load %arg1[%c0_6, %c1, %c0_7] : memref<1x102x16xbf16, #tpu.memory_space<vmem>>, vector<1x80x16xbf16>
    %8 = vector.shape_cast %7 : vector<1x80x16xbf16> to vector<80x16xbf16>
    %c1_8 = arith.constant 1 : index
    %c0_9 = arith.constant 0 : index
    %c0_10 = arith.constant 0 : index
    %9 = vector.load %arg2[%c1_8, %c0_9, %c0_10] : memref<9x16x16xbf16, #tpu.memory_space<vmem>>, vector<1x16x16xbf16>
    %10 = vector.shape_cast %9 : vector<1x16x16xbf16> to vector<16x16xbf16>
    %cst_11 = arith.constant dense<0.000000e+00> : vector<80x16xf32>
    %11 = tpu.matmul %8, %10, %cst_11 {dimension_numbers = #tpu.dot_dimension_numbers<[1], [0], [0], [1], [0, 0, 1, 1], [], []>} : vector<80x16xbf16>, vector<16x16xbf16>, vector<80x16xf32> -> vector<80x16xf32>
    %12 = arith.addf %6, %11 : vector<80x16xf32>
    %c0_12 = arith.constant 0 : index
    %c2 = arith.constant 2 : index
    %c0_13 = arith.constant 0 : index
    %13 = vector.load %arg1[%c0_12, %c2, %c0_13] : memref<1x102x16xbf16, #tpu.memory_space<vmem>>, vector<1x80x16xbf16>
    %14 = vector.shape_cast %13 : vector<1x80x16xbf16> to vector<80x16xbf16>
    %c2_14 = arith.constant 2 : index
    %c0_15 = arith.constant 0 : index
    %c0_16 = arith.constant 0 : index
    %15 = vector.load %arg2[%c2_14, %c0_15, %c0_16] : memref<9x16x16xbf16, #tpu.memory_space<vmem>>, vector<1x16x16xbf16>
    %16 = vector.shape_cast %15 : vector<1x16x16xbf16> to vector<16x16xbf16>
    %cst_17 = arith.constant dense<0.000000e+00> : vector<80x16xf32>
    %17 = tpu.matmul %14, %16, %cst_17 {dimension_numbers = #tpu.dot_dimension_numbers<[1], [0], [0], [1], [0, 0, 1, 1], [], []>} : vector<80x16xbf16>, vector<16x16xbf16>, vector<80x16xf32> -> vector<80x16xf32>
    %18 = arith.addf %12, %17 : vector<80x16xf32>
    %c0_18 = arith.constant 0 : index
    %c10 = arith.constant 10 : index
    %c0_19 = arith.constant 0 : index
    %19 = vector.load %arg1[%c0_18, %c10, %c0_19] : memref<1x102x16xbf16, #tpu.memory_space<vmem>>, vector<1x80x16xbf16>
    %20 = vector.shape_cast %19 : vector<1x80x16xbf16> to vector<80x16xbf16>
    %c3 = arith.constant 3 : index
    %c0_20 = arith.constant 0 : index
    %c0_21 = arith.constant 0 : index
    %21 = vector.load %arg2[%c3, %c0_20, %c0_21] : memref<9x16x16xbf16, #tpu.memory_space<vmem>>, vector<1x16x16xbf16>
    %22 = vector.shape_cast %21 : vector<1x16x16xbf16> to vector<16x16xbf16>
    %cst_22 = arith.constant dense<0.000000e+00> : vector<80x16xf32>
    %23 = tpu.matmul %20, %22, %cst_22 {dimension_numbers = #tpu.dot_dimension_numbers<[1], [0], [0], [1], [0, 0, 1, 1], [], []>} : vector<80x16xbf16>, vector<16x16xbf16>, vector<80x16xf32> -> vector<80x16xf32>
    %24 = arith.addf %18, %23 : vector<80x16xf32>
    %c0_23 = arith.constant 0 : index
    %c11 = arith.constant 11 : index
    %c0_24 = arith.constant 0 : index
    %25 = vector.load %arg1[%c0_23, %c11, %c0_24] : memref<1x102x16xbf16, #tpu.memory_space<vmem>>, vector<1x80x16xbf16>
    %26 = vector.shape_cast %25 : vector<1x80x16xbf16> to vector<80x16xbf16>
    %c4 = arith.constant 4 : index
    %c0_25 = arith.constant 0 : index
    %c0_26 = arith.constant 0 : index
    %27 = vector.load %arg2[%c4, %c0_25, %c0_26] : memref<9x16x16xbf16, #tpu.memory_space<vmem>>, vector<1x16x16xbf16>
    %28 = vector.shape_cast %27 : vector<1x16x16xbf16> to vector<16x16xbf16>
    %cst_27 = arith.constant dense<0.000000e+00> : vector<80x16xf32>
    %29 = tpu.matmul %26, %28, %cst_27 {dimension_numbers = #tpu.dot_dimension_numbers<[1], [0], [0], [1], [0, 0, 1, 1], [], []>} : vector<80x16xbf16>, vector<16x16xbf16>, vector<80x16xf32> -> vector<80x16xf32>
    %30 = arith.addf %24, %29 : vector<80x16xf32>
    %c0_28 = arith.constant 0 : index
    %c12 = arith.constant 12 : index
    %c0_29 = arith.constant 0 : index
    %31 = vector.load %arg1[%c0_28, %c12, %c0_29] : memref<1x102x16xbf16, #tpu.memory_space<vmem>>, vector<1x80x16xbf16>
    %32 = vector.shape_cast %31 : vector<1x80x16xbf16> to vector<80x16xbf16>
    %c5 = arith.constant 5 : index
    %c0_30 = arith.constant 0 : index
    %c0_31 = arith.constant 0 : index
    %33 = vector.load %arg2[%c5, %c0_30, %c0_31] : memref<9x16x16xbf16, #tpu.memory_space<vmem>>, vector<1x16x16xbf16>
    %34 = vector.shape_cast %33 : vector<1x16x16xbf16> to vector<16x16xbf16>
    %cst_32 = arith.constant dense<0.000000e+00> : vector<80x16xf32>
    %35 = tpu.matmul %32, %34, %cst_32 {dimension_numbers = #tpu.dot_dimension_numbers<[1], [0], [0], [1], [0, 0, 1, 1], [], []>} : vector<80x16xbf16>, vector<16x16xbf16>, vector<80x16xf32> -> vector<80x16xf32>
    %36 = arith.addf %30, %35 : vector<80x16xf32>
    %c0_33 = arith.constant 0 : index
    %c20 = arith.constant 20 : index
    %c0_34 = arith.constant 0 : index
    %37 = vector.load %arg1[%c0_33, %c20, %c0_34] : memref<1x102x16xbf16, #tpu.memory_space<vmem>>, vector<1x80x16xbf16>
    %38 = vector.shape_cast %37 : vector<1x80x16xbf16> to vector<80x16xbf16>
    %c6 = arith.constant 6 : index
    %c0_35 = arith.constant 0 : index
    %c0_36 = arith.constant 0 : index
    %39 = vector.load %arg2[%c6, %c0_35, %c0_36] : memref<9x16x16xbf16, #tpu.memory_space<vmem>>, vector<1x16x16xbf16>
    %40 = vector.shape_cast %39 : vector<1x16x16xbf16> to vector<16x16xbf16>
    %cst_37 = arith.constant dense<0.000000e+00> : vector<80x16xf32>
    %41 = tpu.matmul %38, %40, %cst_37 {dimension_numbers = #tpu.dot_dimension_numbers<[1], [0], [0], [1], [0, 0, 1, 1], [], []>} : vector<80x16xbf16>, vector<16x16xbf16>, vector<80x16xf32> -> vector<80x16xf32>
    %42 = arith.addf %36, %41 : vector<80x16xf32>
    %c0_38 = arith.constant 0 : index
    %c21 = arith.constant 21 : index
    %c0_39 = arith.constant 0 : index
    %43 = vector.load %arg1[%c0_38, %c21, %c0_39] : memref<1x102x16xbf16, #tpu.memory_space<vmem>>, vector<1x80x16xbf16>
    %44 = vector.shape_cast %43 : vector<1x80x16xbf16> to vector<80x16xbf16>
    %c7 = arith.constant 7 : index
    %c0_40 = arith.constant 0 : index
    %c0_41 = arith.constant 0 : index
    %45 = vector.load %arg2[%c7, %c0_40, %c0_41] : memref<9x16x16xbf16, #tpu.memory_space<vmem>>, vector<1x16x16xbf16>
    %46 = vector.shape_cast %45 : vector<1x16x16xbf16> to vector<16x16xbf16>
    %cst_42 = arith.constant dense<0.000000e+00> : vector<80x16xf32>
    %47 = tpu.matmul %44, %46, %cst_42 {dimension_numbers = #tpu.dot_dimension_numbers<[1], [0], [0], [1], [0, 0, 1, 1], [], []>} : vector<80x16xbf16>, vector<16x16xbf16>, vector<80x16xf32> -> vector<80x16xf32>
    %48 = arith.addf %42, %47 : vector<80x16xf32>
    %c0_43 = arith.constant 0 : index
    %c22 = arith.constant 22 : index
    %c0_44 = arith.constant 0 : index
    %49 = vector.load %arg1[%c0_43, %c22, %c0_44] : memref<1x102x16xbf16, #tpu.memory_space<vmem>>, vector<1x80x16xbf16>
    %50 = vector.shape_cast %49 : vector<1x80x16xbf16> to vector<80x16xbf16>
    %c8 = arith.constant 8 : index
    %c0_45 = arith.constant 0 : index
    %c0_46 = arith.constant 0 : index
    %51 = vector.load %arg2[%c8, %c0_45, %c0_46] : memref<9x16x16xbf16, #tpu.memory_space<vmem>>, vector<1x16x16xbf16>
    %52 = vector.shape_cast %51 : vector<1x16x16xbf16> to vector<16x16xbf16>
    %cst_47 = arith.constant dense<0.000000e+00> : vector<80x16xf32>
    %53 = tpu.matmul %50, %52, %cst_47 {dimension_numbers = #tpu.dot_dimension_numbers<[1], [0], [0], [1], [0, 0, 1, 1], [], []>} : vector<80x16xbf16>, vector<16x16xbf16>, vector<80x16xf32> -> vector<80x16xf32>
    %54 = arith.addf %48, %53 : vector<80x16xf32>
    %c0_48 = arith.constant 0 : index
    %c0_49 = arith.constant 0 : index
    %55 = vector.load %arg3[%c0_48, %c0_49] : memref<1x16xf32, #tpu.memory_space<vmem>>, vector<1x16xf32>
    %56 = vector.broadcast %55 : vector<1x16xf32> to vector<80x16xf32>
    %57 = arith.addf %54, %56 : vector<80x16xf32>
    %cst_50 = arith.constant 0.000000e+00 : f32
    %58 = vector.broadcast %cst_50 : f32 to vector<80x16xf32>
    %59 = arith.maximumf %57, %58 : vector<80x16xf32>
    %60 = arith.truncf %59 : vector<80x16xf32> to vector<80x16xbf16>
    %c0_51 = arith.constant 0 : index
    %c0_52 = arith.constant 0 : index
    %c0_53 = arith.constant 0 : index
    %61 = vector.load %arg4[%c0_51, %c0_52, %c0_53] : memref<1x80x16xbf16, #tpu.memory_space<vmem>>, vector<1x80x16xbf16>
    %62 = vector.shape_cast %61 : vector<1x80x16xbf16> to vector<80x16xbf16>
    %63 = vector.shape_cast %60 : vector<80x16xbf16> to vector<1x80x16xbf16>
    tpu.vector_store %arg4[%c0_51, %c0_52, %c0_53], %63 {strides = array<i32>} : memref<1x80x16xbf16, #tpu.memory_space<vmem>>, vector<1x80x16xbf16>,
    return
  }
  func.func @transform_0(%arg0: i32) -> (i32, i32, i32) {
    %c0_i32 = arith.constant 0 : i32
    %c0_i32_0 = arith.constant 0 : i32
    %c0_i32_1 = arith.constant 0 : i32
    return %arg0, %c0_i32, %c0_i32_0 : i32, i32, i32
  }
  func.func @transform_1(%arg0: i32) -> (i32, i32, i32) {
    %c0_i32 = arith.constant 0 : i32
    %c0_i32_0 = arith.constant 0 : i32
    %c0_i32_1 = arith.constant 0 : i32
    %c0_i32_2 = arith.constant 0 : i32
    return %c0_i32, %c0_i32_0, %c0_i32_1 : i32, i32, i32
  }
  func.func @transform_2(%arg0: i32) -> (i32, i32) {
    %c0_i32 = arith.constant 0 : i32
    %c0_i32_0 = arith.constant 0 : i32
    %c0_i32_1 = arith.constant 0 : i32
    return %c0_i32, %c0_i32_0 : i32, i32
  }
  func.func @transform_3(%arg0: i32) -> (i32, i32, i32) {
    %c0_i32 = arith.constant 0 : i32
    %c0_i32_0 = arith.constant 0 : i32
    %c0_i32_1 = arith.constant 0 : i32
    return %arg0, %c0_i32, %c0_i32_0 : i32, i32, i32
  }
}

module attributes {stable_mosaic.version = 11 : i64} {
  func.func @_pool2_kernel(%arg0: i32, %arg1: memref<4x2x4x32xbf16, #tpu.memory_space<vmem>>, %arg2: memref<4x4x16xbf16, #tpu.memory_space<vmem>>) attributes {dimension_semantics = [#tpu.dimension_semantics<parallel>], iteration_bounds = array<i64: 2>, scalar_prefetch = 0 : i64, scratch_operands = 0 : i64, tpu.core_type = #tpu.core_type<tc>, window_params = [{transform_indices = @transform_0, window_bounds = array<i64: 4, 2, 4, 32>}, {transform_indices = @transform_1, window_bounds = array<i64: 4, 4, 16>}]} {
    %c0 = arith.constant 0 : index
    %c0_0 = arith.constant 0 : index
    %c0_1 = arith.constant 0 : index
    %c0_2 = arith.constant 0 : index
    %0 = vector.load %arg1[%c0, %c0_0, %c0_1, %c0_2] : memref<4x2x4x32xbf16, #tpu.memory_space<vmem>>, vector<4x1x4x32xbf16>
    %1 = vector.shape_cast %0 : vector<4x1x4x32xbf16> to vector<4x4x32xbf16>
    %c0_3 = arith.constant 0 : index
    %c1 = arith.constant 1 : index
    %c0_4 = arith.constant 0 : index
    %c0_5 = arith.constant 0 : index
    %2 = vector.load %arg1[%c0_3, %c1, %c0_4, %c0_5] : memref<4x2x4x32xbf16, #tpu.memory_space<vmem>>, vector<4x1x4x32xbf16>
    %3 = vector.shape_cast %2 : vector<4x1x4x32xbf16> to vector<4x4x32xbf16>
    %4 = arith.maximumf %1, %3 : vector<4x4x32xbf16>
    %5 = vector.extract_strided_slice %4 {offsets = [0, 0, 0], sizes = [4, 4, 16], strides = [1, 1, 1]} : vector<4x4x32xbf16> to vector<4x4x16xbf16>
    %6 = vector.extract_strided_slice %4 {offsets = [0, 0, 16], sizes = [4, 4, 16], strides = [1, 1, 1]} : vector<4x4x32xbf16> to vector<4x4x16xbf16>
    %7 = arith.maximumf %5, %6 : vector<4x4x16xbf16>
    %c0_6 = arith.constant 0 : index
    %c0_7 = arith.constant 0 : index
    %c0_8 = arith.constant 0 : index
    %8 = vector.load %arg2[%c0_6, %c0_7, %c0_8] : memref<4x4x16xbf16, #tpu.memory_space<vmem>>, vector<4x4x16xbf16>
    tpu.vector_store %arg2[%c0_6, %c0_7, %c0_8], %7 {strides = array<i32>} : memref<4x4x16xbf16, #tpu.memory_space<vmem>>, vector<4x4x16xbf16>,
    return
  }
  func.func @transform_0(%arg0: i32) -> (i32, i32, i32, i32) {
    %c0_i32 = arith.constant 0 : i32
    %c0_i32_0 = arith.constant 0 : i32
    %c0_i32_1 = arith.constant 0 : i32
    %c0_i32_2 = arith.constant 0 : i32
    return %arg0, %c0_i32, %c0_i32_0, %c0_i32_1 : i32, i32, i32, i32
  }
  func.func @transform_1(%arg0: i32) -> (i32, i32, i32) {
    %c0_i32 = arith.constant 0 : i32
    %c0_i32_0 = arith.constant 0 : i32
    %c0_i32_1 = arith.constant 0 : i32
    return %arg0, %c0_i32, %c0_i32_0 : i32, i32, i32
  }
}

module attributes {stable_mosaic.version = 11 : i64} {
  func.func @_pool2_kernel(%arg0: i32, %arg1: memref<4x2x4x2xf32, #tpu.memory_space<vmem>>, %arg2: memref<4x4x1xf32, #tpu.memory_space<vmem>>) attributes {dimension_semantics = [#tpu.dimension_semantics<parallel>], iteration_bounds = array<i64: 2>, scalar_prefetch = 0 : i64, scratch_operands = 0 : i64, tpu.core_type = #tpu.core_type<tc>, window_params = [{transform_indices = @transform_0, window_bounds = array<i64: 4, 2, 4, 2>}, {transform_indices = @transform_1, window_bounds = array<i64: 4, 4, 1>}]} {
    %c0 = arith.constant 0 : index
    %c0_0 = arith.constant 0 : index
    %c0_1 = arith.constant 0 : index
    %c0_2 = arith.constant 0 : index
    %0 = vector.load %arg1[%c0, %c0_0, %c0_1, %c0_2] : memref<4x2x4x2xf32, #tpu.memory_space<vmem>>, vector<4x1x4x2xf32>
    %1 = vector.shape_cast %0 : vector<4x1x4x2xf32> to vector<4x4x2xf32>
    %c0_3 = arith.constant 0 : index
    %c1 = arith.constant 1 : index
    %c0_4 = arith.constant 0 : index
    %c0_5 = arith.constant 0 : index
    %2 = vector.load %arg1[%c0_3, %c1, %c0_4, %c0_5] : memref<4x2x4x2xf32, #tpu.memory_space<vmem>>, vector<4x1x4x2xf32>
    %3 = vector.shape_cast %2 : vector<4x1x4x2xf32> to vector<4x4x2xf32>
    %4 = arith.addf %1, %3 : vector<4x4x2xf32>
    %5 = vector.extract_strided_slice %4 {offsets = [0, 0, 0], sizes = [4, 4, 1], strides = [1, 1, 1]} : vector<4x4x2xf32> to vector<4x4x1xf32>
    %6 = vector.extract_strided_slice %4 {offsets = [0, 0, 1], sizes = [4, 4, 1], strides = [1, 1, 1]} : vector<4x4x2xf32> to vector<4x4x1xf32>
    %7 = arith.addf %5, %6 : vector<4x4x1xf32>
    %cst = arith.constant 2.500000e-01 : f32
    %8 = vector.broadcast %cst : f32 to vector<4x4x1xf32>
    %9 = arith.mulf %7, %8 : vector<4x4x1xf32>
    %c0_6 = arith.constant 0 : index
    %c0_7 = arith.constant 0 : index
    %c0_8 = arith.constant 0 : index
    %10 = vector.load %arg2[%c0_6, %c0_7, %c0_8] : memref<4x4x1xf32, #tpu.memory_space<vmem>>, vector<4x4x1xf32>
    tpu.vector_store %arg2[%c0_6, %c0_7, %c0_8], %9 {strides = array<i32>} : memref<4x4x1xf32, #tpu.memory_space<vmem>>, vector<4x4x1xf32>,
    return
  }
  func.func @transform_0(%arg0: i32) -> (i32, i32, i32, i32) {
    %c0_i32 = arith.constant 0 : i32
    %c0_i32_0 = arith.constant 0 : i32
    %c0_i32_1 = arith.constant 0 : i32
    %c0_i32_2 = arith.constant 0 : i32
    return %arg0, %c0_i32, %c0_i32_0, %c0_i32_1 : i32, i32, i32, i32
  }
  func.func @transform_1(%arg0: i32) -> (i32, i32, i32) {
    %c0_i32 = arith.constant 0 : i32
    %c0_i32_0 = arith.constant 0 : i32
    %c0_i32_1 = arith.constant 0 : i32
    return %arg0, %c0_i32, %c0_i32_0 : i32, i32, i32
  }
}

module attributes {stable_mosaic.version = 11 : i64} {
  func.func @_conv3x3_chain_kernel(%arg0: i32, %arg1: memref<1x38x8xbf16, #tpu.memory_space<vmem>>, %arg2: memref<9x8x16xbf16, #tpu.memory_space<vmem>>, %arg3: memref<1x16xf32, #tpu.memory_space<vmem>>, %arg4: memref<1x24x16xbf16, #tpu.memory_space<vmem>>) attributes {dimension_semantics = [#tpu.dimension_semantics<parallel>], iteration_bounds = array<i64: 2>, scalar_prefetch = 0 : i64, scratch_operands = 0 : i64, tpu.core_type = #tpu.core_type<tc>, window_params = [{transform_indices = @transform_0, window_bounds = array<i64: 1, 38, 8>}, {pipeline_mode = #tpu.pipeline_mode<synchronous>, transform_indices = @transform_1, window_bounds = array<i64: 9, 8, 16>}, {pipeline_mode = #tpu.pipeline_mode<synchronous>, transform_indices = @transform_2, window_bounds = array<i64: 1, 16>}, {transform_indices = @transform_3, window_bounds = array<i64: 1, 24, 16>}]} {
    %cst = arith.constant 0.000000e+00 : f32
    %0 = vector.broadcast %cst : f32 to vector<24x16xf32>
    %c0 = arith.constant 0 : index
    %c0_0 = arith.constant 0 : index
    %c0_1 = arith.constant 0 : index
    %1 = vector.load %arg1[%c0, %c0_0, %c0_1] : memref<1x38x8xbf16, #tpu.memory_space<vmem>>, vector<1x24x8xbf16>
    %2 = vector.shape_cast %1 : vector<1x24x8xbf16> to vector<24x8xbf16>
    %c0_2 = arith.constant 0 : index
    %c0_3 = arith.constant 0 : index
    %c0_4 = arith.constant 0 : index
    %3 = vector.load %arg2[%c0_2, %c0_3, %c0_4] : memref<9x8x16xbf16, #tpu.memory_space<vmem>>, vector<1x8x16xbf16>
    %4 = vector.shape_cast %3 : vector<1x8x16xbf16> to vector<8x16xbf16>
    %cst_5 = arith.constant dense<0.000000e+00> : vector<24x16xf32>
    %5 = tpu.matmul %2, %4, %cst_5 {dimension_numbers = #tpu.dot_dimension_numbers<[1], [0], [0], [1], [0, 0, 1, 1], [], []>} : vector<24x8xbf16>, vector<8x16xbf16>, vector<24x16xf32> -> vector<24x16xf32>
    %6 = arith.addf %0, %5 : vector<24x16xf32>
    %c0_6 = arith.constant 0 : index
    %c1 = arith.constant 1 : index
    %c0_7 = arith.constant 0 : index
    %7 = vector.load %arg1[%c0_6, %c1, %c0_7] : memref<1x38x8xbf16, #tpu.memory_space<vmem>>, vector<1x24x8xbf16>
    %8 = vector.shape_cast %7 : vector<1x24x8xbf16> to vector<24x8xbf16>
    %c1_8 = arith.constant 1 : index
    %c0_9 = arith.constant 0 : index
    %c0_10 = arith.constant 0 : index
    %9 = vector.load %arg2[%c1_8, %c0_9, %c0_10] : memref<9x8x16xbf16, #tpu.memory_space<vmem>>, vector<1x8x16xbf16>
    %10 = vector.shape_cast %9 : vector<1x8x16xbf16> to vector<8x16xbf16>
    %cst_11 = arith.constant dense<0.000000e+00> : vector<24x16xf32>
    %11 = tpu.matmul %8, %10, %cst_11 {dimension_numbers = #tpu.dot_dimension_numbers<[1], [0], [0], [1], [0, 0, 1, 1], [], []>} : vector<24x8xbf16>, vector<8x16xbf16>, vector<24x16xf32> -> vector<24x16xf32>
    %12 = arith.addf %6, %11 : vector<24x16xf32>
    %c0_12 = arith.constant 0 : index
    %c2 = arith.constant 2 : index
    %c0_13 = arith.constant 0 : index
    %13 = vector.load %arg1[%c0_12, %c2, %c0_13] : memref<1x38x8xbf16, #tpu.memory_space<vmem>>, vector<1x24x8xbf16>
    %14 = vector.shape_cast %13 : vector<1x24x8xbf16> to vector<24x8xbf16>
    %c2_14 = arith.constant 2 : index
    %c0_15 = arith.constant 0 : index
    %c0_16 = arith.constant 0 : index
    %15 = vector.load %arg2[%c2_14, %c0_15, %c0_16] : memref<9x8x16xbf16, #tpu.memory_space<vmem>>, vector<1x8x16xbf16>
    %16 = vector.shape_cast %15 : vector<1x8x16xbf16> to vector<8x16xbf16>
    %cst_17 = arith.constant dense<0.000000e+00> : vector<24x16xf32>
    %17 = tpu.matmul %14, %16, %cst_17 {dimension_numbers = #tpu.dot_dimension_numbers<[1], [0], [0], [1], [0, 0, 1, 1], [], []>} : vector<24x8xbf16>, vector<8x16xbf16>, vector<24x16xf32> -> vector<24x16xf32>
    %18 = arith.addf %12, %17 : vector<24x16xf32>
    %c0_18 = arith.constant 0 : index
    %c6 = arith.constant 6 : index
    %c0_19 = arith.constant 0 : index
    %19 = vector.load %arg1[%c0_18, %c6, %c0_19] : memref<1x38x8xbf16, #tpu.memory_space<vmem>>, vector<1x24x8xbf16>
    %20 = vector.shape_cast %19 : vector<1x24x8xbf16> to vector<24x8xbf16>
    %c3 = arith.constant 3 : index
    %c0_20 = arith.constant 0 : index
    %c0_21 = arith.constant 0 : index
    %21 = vector.load %arg2[%c3, %c0_20, %c0_21] : memref<9x8x16xbf16, #tpu.memory_space<vmem>>, vector<1x8x16xbf16>
    %22 = vector.shape_cast %21 : vector<1x8x16xbf16> to vector<8x16xbf16>
    %cst_22 = arith.constant dense<0.000000e+00> : vector<24x16xf32>
    %23 = tpu.matmul %20, %22, %cst_22 {dimension_numbers = #tpu.dot_dimension_numbers<[1], [0], [0], [1], [0, 0, 1, 1], [], []>} : vector<24x8xbf16>, vector<8x16xbf16>, vector<24x16xf32> -> vector<24x16xf32>
    %24 = arith.addf %18, %23 : vector<24x16xf32>
    %c0_23 = arith.constant 0 : index
    %c7 = arith.constant 7 : index
    %c0_24 = arith.constant 0 : index
    %25 = vector.load %arg1[%c0_23, %c7, %c0_24] : memref<1x38x8xbf16, #tpu.memory_space<vmem>>, vector<1x24x8xbf16>
    %26 = vector.shape_cast %25 : vector<1x24x8xbf16> to vector<24x8xbf16>
    %c4 = arith.constant 4 : index
    %c0_25 = arith.constant 0 : index
    %c0_26 = arith.constant 0 : index
    %27 = vector.load %arg2[%c4, %c0_25, %c0_26] : memref<9x8x16xbf16, #tpu.memory_space<vmem>>, vector<1x8x16xbf16>
    %28 = vector.shape_cast %27 : vector<1x8x16xbf16> to vector<8x16xbf16>
    %cst_27 = arith.constant dense<0.000000e+00> : vector<24x16xf32>
    %29 = tpu.matmul %26, %28, %cst_27 {dimension_numbers = #tpu.dot_dimension_numbers<[1], [0], [0], [1], [0, 0, 1, 1], [], []>} : vector<24x8xbf16>, vector<8x16xbf16>, vector<24x16xf32> -> vector<24x16xf32>
    %30 = arith.addf %24, %29 : vector<24x16xf32>
    %c0_28 = arith.constant 0 : index
    %c8 = arith.constant 8 : index
    %c0_29 = arith.constant 0 : index
    %31 = vector.load %arg1[%c0_28, %c8, %c0_29] : memref<1x38x8xbf16, #tpu.memory_space<vmem>>, vector<1x24x8xbf16>
    %32 = vector.shape_cast %31 : vector<1x24x8xbf16> to vector<24x8xbf16>
    %c5 = arith.constant 5 : index
    %c0_30 = arith.constant 0 : index
    %c0_31 = arith.constant 0 : index
    %33 = vector.load %arg2[%c5, %c0_30, %c0_31] : memref<9x8x16xbf16, #tpu.memory_space<vmem>>, vector<1x8x16xbf16>
    %34 = vector.shape_cast %33 : vector<1x8x16xbf16> to vector<8x16xbf16>
    %cst_32 = arith.constant dense<0.000000e+00> : vector<24x16xf32>
    %35 = tpu.matmul %32, %34, %cst_32 {dimension_numbers = #tpu.dot_dimension_numbers<[1], [0], [0], [1], [0, 0, 1, 1], [], []>} : vector<24x8xbf16>, vector<8x16xbf16>, vector<24x16xf32> -> vector<24x16xf32>
    %36 = arith.addf %30, %35 : vector<24x16xf32>
    %c0_33 = arith.constant 0 : index
    %c12 = arith.constant 12 : index
    %c0_34 = arith.constant 0 : index
    %37 = vector.load %arg1[%c0_33, %c12, %c0_34] : memref<1x38x8xbf16, #tpu.memory_space<vmem>>, vector<1x24x8xbf16>
    %38 = vector.shape_cast %37 : vector<1x24x8xbf16> to vector<24x8xbf16>
    %c6_35 = arith.constant 6 : index
    %c0_36 = arith.constant 0 : index
    %c0_37 = arith.constant 0 : index
    %39 = vector.load %arg2[%c6_35, %c0_36, %c0_37] : memref<9x8x16xbf16, #tpu.memory_space<vmem>>, vector<1x8x16xbf16>
    %40 = vector.shape_cast %39 : vector<1x8x16xbf16> to vector<8x16xbf16>
    %cst_38 = arith.constant dense<0.000000e+00> : vector<24x16xf32>
    %41 = tpu.matmul %38, %40, %cst_38 {dimension_numbers = #tpu.dot_dimension_numbers<[1], [0], [0], [1], [0, 0, 1, 1], [], []>} : vector<24x8xbf16>, vector<8x16xbf16>, vector<24x16xf32> -> vector<24x16xf32>
    %42 = arith.addf %36, %41 : vector<24x16xf32>
    %c0_39 = arith.constant 0 : index
    %c13 = arith.constant 13 : index
    %c0_40 = arith.constant 0 : index
    %43 = vector.load %arg1[%c0_39, %c13, %c0_40] : memref<1x38x8xbf16, #tpu.memory_space<vmem>>, vector<1x24x8xbf16>
    %44 = vector.shape_cast %43 : vector<1x24x8xbf16> to vector<24x8xbf16>
    %c7_41 = arith.constant 7 : index
    %c0_42 = arith.constant 0 : index
    %c0_43 = arith.constant 0 : index
    %45 = vector.load %arg2[%c7_41, %c0_42, %c0_43] : memref<9x8x16xbf16, #tpu.memory_space<vmem>>, vector<1x8x16xbf16>
    %46 = vector.shape_cast %45 : vector<1x8x16xbf16> to vector<8x16xbf16>
    %cst_44 = arith.constant dense<0.000000e+00> : vector<24x16xf32>
    %47 = tpu.matmul %44, %46, %cst_44 {dimension_numbers = #tpu.dot_dimension_numbers<[1], [0], [0], [1], [0, 0, 1, 1], [], []>} : vector<24x8xbf16>, vector<8x16xbf16>, vector<24x16xf32> -> vector<24x16xf32>
    %48 = arith.addf %42, %47 : vector<24x16xf32>
    %c0_45 = arith.constant 0 : index
    %c14 = arith.constant 14 : index
    %c0_46 = arith.constant 0 : index
    %49 = vector.load %arg1[%c0_45, %c14, %c0_46] : memref<1x38x8xbf16, #tpu.memory_space<vmem>>, vector<1x24x8xbf16>
    %50 = vector.shape_cast %49 : vector<1x24x8xbf16> to vector<24x8xbf16>
    %c8_47 = arith.constant 8 : index
    %c0_48 = arith.constant 0 : index
    %c0_49 = arith.constant 0 : index
    %51 = vector.load %arg2[%c8_47, %c0_48, %c0_49] : memref<9x8x16xbf16, #tpu.memory_space<vmem>>, vector<1x8x16xbf16>
    %52 = vector.shape_cast %51 : vector<1x8x16xbf16> to vector<8x16xbf16>
    %cst_50 = arith.constant dense<0.000000e+00> : vector<24x16xf32>
    %53 = tpu.matmul %50, %52, %cst_50 {dimension_numbers = #tpu.dot_dimension_numbers<[1], [0], [0], [1], [0, 0, 1, 1], [], []>} : vector<24x8xbf16>, vector<8x16xbf16>, vector<24x16xf32> -> vector<24x16xf32>
    %54 = arith.addf %48, %53 : vector<24x16xf32>
    %c0_51 = arith.constant 0 : index
    %c0_52 = arith.constant 0 : index
    %55 = vector.load %arg3[%c0_51, %c0_52] : memref<1x16xf32, #tpu.memory_space<vmem>>, vector<1x16xf32>
    %56 = vector.broadcast %55 : vector<1x16xf32> to vector<24x16xf32>
    %57 = arith.addf %54, %56 : vector<24x16xf32>
    %cst_53 = arith.constant 0.000000e+00 : f32
    %58 = vector.broadcast %cst_53 : f32 to vector<24x16xf32>
    %59 = arith.maximumf %57, %58 : vector<24x16xf32>
    %60 = arith.truncf %59 : vector<24x16xf32> to vector<24x16xbf16>
    %c0_54 = arith.constant 0 : index
    %c0_55 = arith.constant 0 : index
    %c0_56 = arith.constant 0 : index
    %61 = vector.load %arg4[%c0_54, %c0_55, %c0_56] : memref<1x24x16xbf16, #tpu.memory_space<vmem>>, vector<1x24x16xbf16>
    %62 = vector.shape_cast %61 : vector<1x24x16xbf16> to vector<24x16xbf16>
    %63 = vector.shape_cast %60 : vector<24x16xbf16> to vector<1x24x16xbf16>
    tpu.vector_store %arg4[%c0_54, %c0_55, %c0_56], %63 {strides = array<i32>} : memref<1x24x16xbf16, #tpu.memory_space<vmem>>, vector<1x24x16xbf16>,
    return
  }
  func.func @transform_0(%arg0: i32) -> (i32, i32, i32) {
    %c0_i32 = arith.constant 0 : i32
    %c0_i32_0 = arith.constant 0 : i32
    %c0_i32_1 = arith.constant 0 : i32
    return %arg0, %c0_i32, %c0_i32_0 : i32, i32, i32
  }
  func.func @transform_1(%arg0: i32) -> (i32, i32, i32) {
    %c0_i32 = arith.constant 0 : i32
    %c0_i32_0 = arith.constant 0 : i32
    %c0_i32_1 = arith.constant 0 : i32
    %c0_i32_2 = arith.constant 0 : i32
    return %c0_i32, %c0_i32_0, %c0_i32_1 : i32, i32, i32
  }
  func.func @transform_2(%arg0: i32) -> (i32, i32) {
    %c0_i32 = arith.constant 0 : i32
    %c0_i32_0 = arith.constant 0 : i32
    %c0_i32_1 = arith.constant 0 : i32
    return %c0_i32, %c0_i32_0 : i32, i32
  }
  func.func @transform_3(%arg0: i32) -> (i32, i32, i32) {
    %c0_i32 = arith.constant 0 : i32
    %c0_i32_0 = arith.constant 0 : i32
    %c0_i32_1 = arith.constant 0 : i32
    return %arg0, %c0_i32, %c0_i32_0 : i32, i32, i32
  }
}

module attributes {stable_mosaic.version = 11 : i64} {
  func.func @_conv3x3_chain_kernel(%arg0: i32, %arg1: memref<1x38x32xbf16, #tpu.memory_space<vmem>>, %arg2: memref<9x32x32xbf16, #tpu.memory_space<vmem>>, %arg3: memref<1x32xf32, #tpu.memory_space<vmem>>, %arg4: memref<1x24x32xbf16, #tpu.memory_space<vmem>>) attributes {dimension_semantics = [#tpu.dimension_semantics<parallel>], iteration_bounds = array<i64: 2>, scalar_prefetch = 0 : i64, scratch_operands = 0 : i64, tpu.core_type = #tpu.core_type<tc>, window_params = [{transform_indices = @transform_0, window_bounds = array<i64: 1, 38, 32>}, {pipeline_mode = #tpu.pipeline_mode<synchronous>, transform_indices = @transform_1, window_bounds = array<i64: 9, 32, 32>}, {pipeline_mode = #tpu.pipeline_mode<synchronous>, transform_indices = @transform_2, window_bounds = array<i64: 1, 32>}, {transform_indices = @transform_3, window_bounds = array<i64: 1, 24, 32>}]} {
    %cst = arith.constant 0.000000e+00 : f32
    %0 = vector.broadcast %cst : f32 to vector<24x32xf32>
    %c0 = arith.constant 0 : index
    %c0_0 = arith.constant 0 : index
    %c0_1 = arith.constant 0 : index
    %1 = vector.load %arg1[%c0, %c0_0, %c0_1] : memref<1x38x32xbf16, #tpu.memory_space<vmem>>, vector<1x24x32xbf16>
    %2 = vector.shape_cast %1 : vector<1x24x32xbf16> to vector<24x32xbf16>
    %c0_2 = arith.constant 0 : index
    %c0_3 = arith.constant 0 : index
    %c0_4 = arith.constant 0 : index
    %3 = vector.load %arg2[%c0_2, %c0_3, %c0_4] : memref<9x32x32xbf16, #tpu.memory_space<vmem>>, vector<1x32x32xbf16>
    %4 = vector.shape_cast %3 : vector<1x32x32xbf16> to vector<32x32xbf16>
    %cst_5 = arith.constant dense<0.000000e+00> : vector<24x32xf32>
    %5 = tpu.matmul %2, %4, %cst_5 {dimension_numbers = #tpu.dot_dimension_numbers<[1], [0], [0], [1], [0, 0, 1, 1], [], []>} : vector<24x32xbf16>, vector<32x32xbf16>, vector<24x32xf32> -> vector<24x32xf32>
    %6 = arith.addf %0, %5 : vector<24x32xf32>
    %c0_6 = arith.constant 0 : index
    %c1 = arith.constant 1 : index
    %c0_7 = arith.constant 0 : index
    %7 = vector.load %arg1[%c0_6, %c1, %c0_7] : memref<1x38x32xbf16, #tpu.memory_space<vmem>>, vector<1x24x32xbf16>
    %8 = vector.shape_cast %7 : vector<1x24x32xbf16> to vector<24x32xbf16>
    %c1_8 = arith.constant 1 : index
    %c0_9 = arith.constant 0 : index
    %c0_10 = arith.constant 0 : index
    %9 = vector.load %arg2[%c1_8, %c0_9, %c0_10] : memref<9x32x32xbf16, #tpu.memory_space<vmem>>, vector<1x32x32xbf16>
    %10 = vector.shape_cast %9 : vector<1x32x32xbf16> to vector<32x32xbf16>
    %cst_11 = arith.constant dense<0.000000e+00> : vector<24x32xf32>
    %11 = tpu.matmul %8, %10, %cst_11 {dimension_numbers = #tpu.dot_dimension_numbers<[1], [0], [0], [1], [0, 0, 1, 1], [], []>} : vector<24x32xbf16>, vector<32x32xbf16>, vector<24x32xf32> -> vector<24x32xf32>
    %12 = arith.addf %6, %11 : vector<24x32xf32>
    %c0_12 = arith.constant 0 : index
    %c2 = arith.constant 2 : index
    %c0_13 = arith.constant 0 : index
    %13 = vector.load %arg1[%c0_12, %c2, %c0_13] : memref<1x38x32xbf16, #tpu.memory_space<vmem>>, vector<1x24x32xbf16>
    %14 = vector.shape_cast %13 : vector<1x24x32xbf16> to vector<24x32xbf16>
    %c2_14 = arith.constant 2 : index
    %c0_15 = arith.constant 0 : index
    %c0_16 = arith.constant 0 : index
    %15 = vector.load %arg2[%c2_14, %c0_15, %c0_16] : memref<9x32x32xbf16, #tpu.memory_space<vmem>>, vector<1x32x32xbf16>
    %16 = vector.shape_cast %15 : vector<1x32x32xbf16> to vector<32x32xbf16>
    %cst_17 = arith.constant dense<0.000000e+00> : vector<24x32xf32>
    %17 = tpu.matmul %14, %16, %cst_17 {dimension_numbers = #tpu.dot_dimension_numbers<[1], [0], [0], [1], [0, 0, 1, 1], [], []>} : vector<24x32xbf16>, vector<32x32xbf16>, vector<24x32xf32> -> vector<24x32xf32>
    %18 = arith.addf %12, %17 : vector<24x32xf32>
    %c0_18 = arith.constant 0 : index
    %c6 = arith.constant 6 : index
    %c0_19 = arith.constant 0 : index
    %19 = vector.load %arg1[%c0_18, %c6, %c0_19] : memref<1x38x32xbf16, #tpu.memory_space<vmem>>, vector<1x24x32xbf16>
    %20 = vector.shape_cast %19 : vector<1x24x32xbf16> to vector<24x32xbf16>
    %c3 = arith.constant 3 : index
    %c0_20 = arith.constant 0 : index
    %c0_21 = arith.constant 0 : index
    %21 = vector.load %arg2[%c3, %c0_20, %c0_21] : memref<9x32x32xbf16, #tpu.memory_space<vmem>>, vector<1x32x32xbf16>
    %22 = vector.shape_cast %21 : vector<1x32x32xbf16> to vector<32x32xbf16>
    %cst_22 = arith.constant dense<0.000000e+00> : vector<24x32xf32>
    %23 = tpu.matmul %20, %22, %cst_22 {dimension_numbers = #tpu.dot_dimension_numbers<[1], [0], [0], [1], [0, 0, 1, 1], [], []>} : vector<24x32xbf16>, vector<32x32xbf16>, vector<24x32xf32> -> vector<24x32xf32>
    %24 = arith.addf %18, %23 : vector<24x32xf32>
    %c0_23 = arith.constant 0 : index
    %c7 = arith.constant 7 : index
    %c0_24 = arith.constant 0 : index
    %25 = vector.load %arg1[%c0_23, %c7, %c0_24] : memref<1x38x32xbf16, #tpu.memory_space<vmem>>, vector<1x24x32xbf16>
    %26 = vector.shape_cast %25 : vector<1x24x32xbf16> to vector<24x32xbf16>
    %c4 = arith.constant 4 : index
    %c0_25 = arith.constant 0 : index
    %c0_26 = arith.constant 0 : index
    %27 = vector.load %arg2[%c4, %c0_25, %c0_26] : memref<9x32x32xbf16, #tpu.memory_space<vmem>>, vector<1x32x32xbf16>
    %28 = vector.shape_cast %27 : vector<1x32x32xbf16> to vector<32x32xbf16>
    %cst_27 = arith.constant dense<0.000000e+00> : vector<24x32xf32>
    %29 = tpu.matmul %26, %28, %cst_27 {dimension_numbers = #tpu.dot_dimension_numbers<[1], [0], [0], [1], [0, 0, 1, 1], [], []>} : vector<24x32xbf16>, vector<32x32xbf16>, vector<24x32xf32> -> vector<24x32xf32>
    %30 = arith.addf %24, %29 : vector<24x32xf32>
    %c0_28 = arith.constant 0 : index
    %c8 = arith.constant 8 : index
    %c0_29 = arith.constant 0 : index
    %31 = vector.load %arg1[%c0_28, %c8, %c0_29] : memref<1x38x32xbf16, #tpu.memory_space<vmem>>, vector<1x24x32xbf16>
    %32 = vector.shape_cast %31 : vector<1x24x32xbf16> to vector<24x32xbf16>
    %c5 = arith.constant 5 : index
    %c0_30 = arith.constant 0 : index
    %c0_31 = arith.constant 0 : index
    %33 = vector.load %arg2[%c5, %c0_30, %c0_31] : memref<9x32x32xbf16, #tpu.memory_space<vmem>>, vector<1x32x32xbf16>
    %34 = vector.shape_cast %33 : vector<1x32x32xbf16> to vector<32x32xbf16>
    %cst_32 = arith.constant dense<0.000000e+00> : vector<24x32xf32>
    %35 = tpu.matmul %32, %34, %cst_32 {dimension_numbers = #tpu.dot_dimension_numbers<[1], [0], [0], [1], [0, 0, 1, 1], [], []>} : vector<24x32xbf16>, vector<32x32xbf16>, vector<24x32xf32> -> vector<24x32xf32>
    %36 = arith.addf %30, %35 : vector<24x32xf32>
    %c0_33 = arith.constant 0 : index
    %c12 = arith.constant 12 : index
    %c0_34 = arith.constant 0 : index
    %37 = vector.load %arg1[%c0_33, %c12, %c0_34] : memref<1x38x32xbf16, #tpu.memory_space<vmem>>, vector<1x24x32xbf16>
    %38 = vector.shape_cast %37 : vector<1x24x32xbf16> to vector<24x32xbf16>
    %c6_35 = arith.constant 6 : index
    %c0_36 = arith.constant 0 : index
    %c0_37 = arith.constant 0 : index
    %39 = vector.load %arg2[%c6_35, %c0_36, %c0_37] : memref<9x32x32xbf16, #tpu.memory_space<vmem>>, vector<1x32x32xbf16>
    %40 = vector.shape_cast %39 : vector<1x32x32xbf16> to vector<32x32xbf16>
    %cst_38 = arith.constant dense<0.000000e+00> : vector<24x32xf32>
    %41 = tpu.matmul %38, %40, %cst_38 {dimension_numbers = #tpu.dot_dimension_numbers<[1], [0], [0], [1], [0, 0, 1, 1], [], []>} : vector<24x32xbf16>, vector<32x32xbf16>, vector<24x32xf32> -> vector<24x32xf32>
    %42 = arith.addf %36, %41 : vector<24x32xf32>
    %c0_39 = arith.constant 0 : index
    %c13 = arith.constant 13 : index
    %c0_40 = arith.constant 0 : index
    %43 = vector.load %arg1[%c0_39, %c13, %c0_40] : memref<1x38x32xbf16, #tpu.memory_space<vmem>>, vector<1x24x32xbf16>
    %44 = vector.shape_cast %43 : vector<1x24x32xbf16> to vector<24x32xbf16>
    %c7_41 = arith.constant 7 : index
    %c0_42 = arith.constant 0 : index
    %c0_43 = arith.constant 0 : index
    %45 = vector.load %arg2[%c7_41, %c0_42, %c0_43] : memref<9x32x32xbf16, #tpu.memory_space<vmem>>, vector<1x32x32xbf16>
    %46 = vector.shape_cast %45 : vector<1x32x32xbf16> to vector<32x32xbf16>
    %cst_44 = arith.constant dense<0.000000e+00> : vector<24x32xf32>
    %47 = tpu.matmul %44, %46, %cst_44 {dimension_numbers = #tpu.dot_dimension_numbers<[1], [0], [0], [1], [0, 0, 1, 1], [], []>} : vector<24x32xbf16>, vector<32x32xbf16>, vector<24x32xf32> -> vector<24x32xf32>
    %48 = arith.addf %42, %47 : vector<24x32xf32>
    %c0_45 = arith.constant 0 : index
    %c14 = arith.constant 14 : index
    %c0_46 = arith.constant 0 : index
    %49 = vector.load %arg1[%c0_45, %c14, %c0_46] : memref<1x38x32xbf16, #tpu.memory_space<vmem>>, vector<1x24x32xbf16>
    %50 = vector.shape_cast %49 : vector<1x24x32xbf16> to vector<24x32xbf16>
    %c8_47 = arith.constant 8 : index
    %c0_48 = arith.constant 0 : index
    %c0_49 = arith.constant 0 : index
    %51 = vector.load %arg2[%c8_47, %c0_48, %c0_49] : memref<9x32x32xbf16, #tpu.memory_space<vmem>>, vector<1x32x32xbf16>
    %52 = vector.shape_cast %51 : vector<1x32x32xbf16> to vector<32x32xbf16>
    %cst_50 = arith.constant dense<0.000000e+00> : vector<24x32xf32>
    %53 = tpu.matmul %50, %52, %cst_50 {dimension_numbers = #tpu.dot_dimension_numbers<[1], [0], [0], [1], [0, 0, 1, 1], [], []>} : vector<24x32xbf16>, vector<32x32xbf16>, vector<24x32xf32> -> vector<24x32xf32>
    %54 = arith.addf %48, %53 : vector<24x32xf32>
    %c0_51 = arith.constant 0 : index
    %c0_52 = arith.constant 0 : index
    %55 = vector.load %arg3[%c0_51, %c0_52] : memref<1x32xf32, #tpu.memory_space<vmem>>, vector<1x32xf32>
    %56 = vector.broadcast %55 : vector<1x32xf32> to vector<24x32xf32>
    %57 = arith.addf %54, %56 : vector<24x32xf32>
    %cst_53 = arith.constant 0.000000e+00 : f32
    %58 = vector.broadcast %cst_53 : f32 to vector<24x32xf32>
    %59 = arith.maximumf %57, %58 : vector<24x32xf32>
    %60 = arith.truncf %59 : vector<24x32xf32> to vector<24x32xbf16>
    %c0_54 = arith.constant 0 : index
    %c0_55 = arith.constant 0 : index
    %c0_56 = arith.constant 0 : index
    %61 = vector.load %arg4[%c0_54, %c0_55, %c0_56] : memref<1x24x32xbf16, #tpu.memory_space<vmem>>, vector<1x24x32xbf16>
    %62 = vector.shape_cast %61 : vector<1x24x32xbf16> to vector<24x32xbf16>
    %63 = vector.shape_cast %60 : vector<24x32xbf16> to vector<1x24x32xbf16>
    tpu.vector_store %arg4[%c0_54, %c0_55, %c0_56], %63 {strides = array<i32>} : memref<1x24x32xbf16, #tpu.memory_space<vmem>>, vector<1x24x32xbf16>,
    return
  }
  func.func @transform_0(%arg0: i32) -> (i32, i32, i32) {
    %c0_i32 = arith.constant 0 : i32
    %c0_i32_0 = arith.constant 0 : i32
    %c0_i32_1 = arith.constant 0 : i32
    return %arg0, %c0_i32, %c0_i32_0 : i32, i32, i32
  }
  func.func @transform_1(%arg0: i32) -> (i32, i32, i32) {
    %c0_i32 = arith.constant 0 : i32
    %c0_i32_0 = arith.constant 0 : i32
    %c0_i32_1 = arith.constant 0 : i32
    %c0_i32_2 = arith.constant 0 : i32
    return %c0_i32, %c0_i32_0, %c0_i32_1 : i32, i32, i32
  }
  func.func @transform_2(%arg0: i32) -> (i32, i32) {
    %c0_i32 = arith.constant 0 : i32
    %c0_i32_0 = arith.constant 0 : i32
    %c0_i32_1 = arith.constant 0 : i32
    return %c0_i32, %c0_i32_0 : i32, i32
  }
  func.func @transform_3(%arg0: i32) -> (i32, i32, i32) {
    %c0_i32 = arith.constant 0 : i32
    %c0_i32_0 = arith.constant 0 : i32
    %c0_i32_1 = arith.constant 0 : i32
    return %arg0, %c0_i32, %c0_i32_0 : i32, i32, i32
  }
}

module attributes {stable_mosaic.version = 11 : i64} {
  func.func @_pool2_kernel(%arg0: i32, %arg1: memref<2x2x2x64xbf16, #tpu.memory_space<vmem>>, %arg2: memref<2x2x32xbf16, #tpu.memory_space<vmem>>) attributes {dimension_semantics = [#tpu.dimension_semantics<parallel>], iteration_bounds = array<i64: 2>, scalar_prefetch = 0 : i64, scratch_operands = 0 : i64, tpu.core_type = #tpu.core_type<tc>, window_params = [{transform_indices = @transform_0, window_bounds = array<i64: 2, 2, 2, 64>}, {transform_indices = @transform_1, window_bounds = array<i64: 2, 2, 32>}]} {
    %c0 = arith.constant 0 : index
    %c0_0 = arith.constant 0 : index
    %c0_1 = arith.constant 0 : index
    %c0_2 = arith.constant 0 : index
    %0 = vector.load %arg1[%c0, %c0_0, %c0_1, %c0_2] : memref<2x2x2x64xbf16, #tpu.memory_space<vmem>>, vector<2x1x2x64xbf16>
    %1 = vector.shape_cast %0 : vector<2x1x2x64xbf16> to vector<2x2x64xbf16>
    %c0_3 = arith.constant 0 : index
    %c1 = arith.constant 1 : index
    %c0_4 = arith.constant 0 : index
    %c0_5 = arith.constant 0 : index
    %2 = vector.load %arg1[%c0_3, %c1, %c0_4, %c0_5] : memref<2x2x2x64xbf16, #tpu.memory_space<vmem>>, vector<2x1x2x64xbf16>
    %3 = vector.shape_cast %2 : vector<2x1x2x64xbf16> to vector<2x2x64xbf16>
    %4 = arith.maximumf %1, %3 : vector<2x2x64xbf16>
    %5 = vector.extract_strided_slice %4 {offsets = [0, 0, 0], sizes = [2, 2, 32], strides = [1, 1, 1]} : vector<2x2x64xbf16> to vector<2x2x32xbf16>
    %6 = vector.extract_strided_slice %4 {offsets = [0, 0, 32], sizes = [2, 2, 32], strides = [1, 1, 1]} : vector<2x2x64xbf16> to vector<2x2x32xbf16>
    %7 = arith.maximumf %5, %6 : vector<2x2x32xbf16>
    %c0_6 = arith.constant 0 : index
    %c0_7 = arith.constant 0 : index
    %c0_8 = arith.constant 0 : index
    %8 = vector.load %arg2[%c0_6, %c0_7, %c0_8] : memref<2x2x32xbf16, #tpu.memory_space<vmem>>, vector<2x2x32xbf16>
    tpu.vector_store %arg2[%c0_6, %c0_7, %c0_8], %7 {strides = array<i32>} : memref<2x2x32xbf16, #tpu.memory_space<vmem>>, vector<2x2x32xbf16>,
    return
  }
  func.func @transform_0(%arg0: i32) -> (i32, i32, i32, i32) {
    %c0_i32 = arith.constant 0 : i32
    %c0_i32_0 = arith.constant 0 : i32
    %c0_i32_1 = arith.constant 0 : i32
    %c0_i32_2 = arith.constant 0 : i32
    return %arg0, %c0_i32, %c0_i32_0, %c0_i32_1 : i32, i32, i32, i32
  }
  func.func @transform_1(%arg0: i32) -> (i32, i32, i32) {
    %c0_i32 = arith.constant 0 : i32
    %c0_i32_0 = arith.constant 0 : i32
    %c0_i32_1 = arith.constant 0 : i32
    return %arg0, %c0_i32, %c0_i32_0 : i32, i32, i32
  }
}

module attributes {stable_mosaic.version = 11 : i64} {
  func.func @_conv3x3_chain_kernel(%arg0: i32, %arg1: memref<1x38x64xbf16, #tpu.memory_space<vmem>>, %arg2: memref<9x64x16xbf16, #tpu.memory_space<vmem>>, %arg3: memref<1x16xf32, #tpu.memory_space<vmem>>, %arg4: memref<16x16xbf16, #tpu.memory_space<vmem>>, %arg5: memref<1x16xf32, #tpu.memory_space<vmem>>, %arg6: memref<16x16xbf16, #tpu.memory_space<vmem>>, %arg7: memref<1x16xf32, #tpu.memory_space<vmem>>, %arg8: memref<1x24x16xbf16, #tpu.memory_space<vmem>>) attributes {dimension_semantics = [#tpu.dimension_semantics<parallel>], iteration_bounds = array<i64: 2>, scalar_prefetch = 0 : i64, scratch_operands = 0 : i64, tpu.core_type = #tpu.core_type<tc>, window_params = [{transform_indices = @transform_0, window_bounds = array<i64: 1, 38, 64>}, {pipeline_mode = #tpu.pipeline_mode<synchronous>, transform_indices = @transform_1, window_bounds = array<i64: 9, 64, 16>}, {pipeline_mode = #tpu.pipeline_mode<synchronous>, transform_indices = @transform_2, window_bounds = array<i64: 1, 16>}, {pipeline_mode = #tpu.pipeline_mode<synchronous>, transform_indices = @transform_3, window_bounds = array<i64: 16, 16>}, {pipeline_mode = #tpu.pipeline_mode<synchronous>, transform_indices = @transform_4, window_bounds = array<i64: 1, 16>}, {pipeline_mode = #tpu.pipeline_mode<synchronous>, transform_indices = @transform_5, window_bounds = array<i64: 16, 16>}, {pipeline_mode = #tpu.pipeline_mode<synchronous>, transform_indices = @transform_6, window_bounds = array<i64: 1, 16>}, {transform_indices = @transform_7, window_bounds = array<i64: 1, 24, 16>}]} {
    %cst = arith.constant 0.000000e+00 : f32
    %0 = vector.broadcast %cst : f32 to vector<24x16xf32>
    %c0 = arith.constant 0 : index
    %c0_0 = arith.constant 0 : index
    %c0_1 = arith.constant 0 : index
    %1 = vector.load %arg1[%c0, %c0_0, %c0_1] : memref<1x38x64xbf16, #tpu.memory_space<vmem>>, vector<1x24x64xbf16>
    %2 = vector.shape_cast %1 : vector<1x24x64xbf16> to vector<24x64xbf16>
    %c0_2 = arith.constant 0 : index
    %c0_3 = arith.constant 0 : index
    %c0_4 = arith.constant 0 : index
    %3 = vector.load %arg2[%c0_2, %c0_3, %c0_4] : memref<9x64x16xbf16, #tpu.memory_space<vmem>>, vector<1x64x16xbf16>
    %4 = vector.shape_cast %3 : vector<1x64x16xbf16> to vector<64x16xbf16>
    %cst_5 = arith.constant dense<0.000000e+00> : vector<24x16xf32>
    %5 = tpu.matmul %2, %4, %cst_5 {dimension_numbers = #tpu.dot_dimension_numbers<[1], [0], [0], [1], [0, 0, 1, 1], [], []>} : vector<24x64xbf16>, vector<64x16xbf16>, vector<24x16xf32> -> vector<24x16xf32>
    %6 = arith.addf %0, %5 : vector<24x16xf32>
    %c0_6 = arith.constant 0 : index
    %c1 = arith.constant 1 : index
    %c0_7 = arith.constant 0 : index
    %7 = vector.load %arg1[%c0_6, %c1, %c0_7] : memref<1x38x64xbf16, #tpu.memory_space<vmem>>, vector<1x24x64xbf16>
    %8 = vector.shape_cast %7 : vector<1x24x64xbf16> to vector<24x64xbf16>
    %c1_8 = arith.constant 1 : index
    %c0_9 = arith.constant 0 : index
    %c0_10 = arith.constant 0 : index
    %9 = vector.load %arg2[%c1_8, %c0_9, %c0_10] : memref<9x64x16xbf16, #tpu.memory_space<vmem>>, vector<1x64x16xbf16>
    %10 = vector.shape_cast %9 : vector<1x64x16xbf16> to vector<64x16xbf16>
    %cst_11 = arith.constant dense<0.000000e+00> : vector<24x16xf32>
    %11 = tpu.matmul %8, %10, %cst_11 {dimension_numbers = #tpu.dot_dimension_numbers<[1], [0], [0], [1], [0, 0, 1, 1], [], []>} : vector<24x64xbf16>, vector<64x16xbf16>, vector<24x16xf32> -> vector<24x16xf32>
    %12 = arith.addf %6, %11 : vector<24x16xf32>
    %c0_12 = arith.constant 0 : index
    %c2 = arith.constant 2 : index
    %c0_13 = arith.constant 0 : index
    %13 = vector.load %arg1[%c0_12, %c2, %c0_13] : memref<1x38x64xbf16, #tpu.memory_space<vmem>>, vector<1x24x64xbf16>
    %14 = vector.shape_cast %13 : vector<1x24x64xbf16> to vector<24x64xbf16>
    %c2_14 = arith.constant 2 : index
    %c0_15 = arith.constant 0 : index
    %c0_16 = arith.constant 0 : index
    %15 = vector.load %arg2[%c2_14, %c0_15, %c0_16] : memref<9x64x16xbf16, #tpu.memory_space<vmem>>, vector<1x64x16xbf16>
    %16 = vector.shape_cast %15 : vector<1x64x16xbf16> to vector<64x16xbf16>
    %cst_17 = arith.constant dense<0.000000e+00> : vector<24x16xf32>
    %17 = tpu.matmul %14, %16, %cst_17 {dimension_numbers = #tpu.dot_dimension_numbers<[1], [0], [0], [1], [0, 0, 1, 1], [], []>} : vector<24x64xbf16>, vector<64x16xbf16>, vector<24x16xf32> -> vector<24x16xf32>
    %18 = arith.addf %12, %17 : vector<24x16xf32>
    %c0_18 = arith.constant 0 : index
    %c6 = arith.constant 6 : index
    %c0_19 = arith.constant 0 : index
    %19 = vector.load %arg1[%c0_18, %c6, %c0_19] : memref<1x38x64xbf16, #tpu.memory_space<vmem>>, vector<1x24x64xbf16>
    %20 = vector.shape_cast %19 : vector<1x24x64xbf16> to vector<24x64xbf16>
    %c3 = arith.constant 3 : index
    %c0_20 = arith.constant 0 : index
    %c0_21 = arith.constant 0 : index
    %21 = vector.load %arg2[%c3, %c0_20, %c0_21] : memref<9x64x16xbf16, #tpu.memory_space<vmem>>, vector<1x64x16xbf16>
    %22 = vector.shape_cast %21 : vector<1x64x16xbf16> to vector<64x16xbf16>
    %cst_22 = arith.constant dense<0.000000e+00> : vector<24x16xf32>
    %23 = tpu.matmul %20, %22, %cst_22 {dimension_numbers = #tpu.dot_dimension_numbers<[1], [0], [0], [1], [0, 0, 1, 1], [], []>} : vector<24x64xbf16>, vector<64x16xbf16>, vector<24x16xf32> -> vector<24x16xf32>
    %24 = arith.addf %18, %23 : vector<24x16xf32>
    %c0_23 = arith.constant 0 : index
    %c7 = arith.constant 7 : index
    %c0_24 = arith.constant 0 : index
    %25 = vector.load %arg1[%c0_23, %c7, %c0_24] : memref<1x38x64xbf16, #tpu.memory_space<vmem>>, vector<1x24x64xbf16>
    %26 = vector.shape_cast %25 : vector<1x24x64xbf16> to vector<24x64xbf16>
    %c4 = arith.constant 4 : index
    %c0_25 = arith.constant 0 : index
    %c0_26 = arith.constant 0 : index
    %27 = vector.load %arg2[%c4, %c0_25, %c0_26] : memref<9x64x16xbf16, #tpu.memory_space<vmem>>, vector<1x64x16xbf16>
    %28 = vector.shape_cast %27 : vector<1x64x16xbf16> to vector<64x16xbf16>
    %cst_27 = arith.constant dense<0.000000e+00> : vector<24x16xf32>
    %29 = tpu.matmul %26, %28, %cst_27 {dimension_numbers = #tpu.dot_dimension_numbers<[1], [0], [0], [1], [0, 0, 1, 1], [], []>} : vector<24x64xbf16>, vector<64x16xbf16>, vector<24x16xf32> -> vector<24x16xf32>
    %30 = arith.addf %24, %29 : vector<24x16xf32>
    %c0_28 = arith.constant 0 : index
    %c8 = arith.constant 8 : index
    %c0_29 = arith.constant 0 : index
    %31 = vector.load %arg1[%c0_28, %c8, %c0_29] : memref<1x38x64xbf16, #tpu.memory_space<vmem>>, vector<1x24x64xbf16>
    %32 = vector.shape_cast %31 : vector<1x24x64xbf16> to vector<24x64xbf16>
    %c5 = arith.constant 5 : index
    %c0_30 = arith.constant 0 : index
    %c0_31 = arith.constant 0 : index
    %33 = vector.load %arg2[%c5, %c0_30, %c0_31] : memref<9x64x16xbf16, #tpu.memory_space<vmem>>, vector<1x64x16xbf16>
    %34 = vector.shape_cast %33 : vector<1x64x16xbf16> to vector<64x16xbf16>
    %cst_32 = arith.constant dense<0.000000e+00> : vector<24x16xf32>
    %35 = tpu.matmul %32, %34, %cst_32 {dimension_numbers = #tpu.dot_dimension_numbers<[1], [0], [0], [1], [0, 0, 1, 1], [], []>} : vector<24x64xbf16>, vector<64x16xbf16>, vector<24x16xf32> -> vector<24x16xf32>
    %36 = arith.addf %30, %35 : vector<24x16xf32>
    %c0_33 = arith.constant 0 : index
    %c12 = arith.constant 12 : index
    %c0_34 = arith.constant 0 : index
    %37 = vector.load %arg1[%c0_33, %c12, %c0_34] : memref<1x38x64xbf16, #tpu.memory_space<vmem>>, vector<1x24x64xbf16>
    %38 = vector.shape_cast %37 : vector<1x24x64xbf16> to vector<24x64xbf16>
    %c6_35 = arith.constant 6 : index
    %c0_36 = arith.constant 0 : index
    %c0_37 = arith.constant 0 : index
    %39 = vector.load %arg2[%c6_35, %c0_36, %c0_37] : memref<9x64x16xbf16, #tpu.memory_space<vmem>>, vector<1x64x16xbf16>
    %40 = vector.shape_cast %39 : vector<1x64x16xbf16> to vector<64x16xbf16>
    %cst_38 = arith.constant dense<0.000000e+00> : vector<24x16xf32>
    %41 = tpu.matmul %38, %40, %cst_38 {dimension_numbers = #tpu.dot_dimension_numbers<[1], [0], [0], [1], [0, 0, 1, 1], [], []>} : vector<24x64xbf16>, vector<64x16xbf16>, vector<24x16xf32> -> vector<24x16xf32>
    %42 = arith.addf %36, %41 : vector<24x16xf32>
    %c0_39 = arith.constant 0 : index
    %c13 = arith.constant 13 : index
    %c0_40 = arith.constant 0 : index
    %43 = vector.load %arg1[%c0_39, %c13, %c0_40] : memref<1x38x64xbf16, #tpu.memory_space<vmem>>, vector<1x24x64xbf16>
    %44 = vector.shape_cast %43 : vector<1x24x64xbf16> to vector<24x64xbf16>
    %c7_41 = arith.constant 7 : index
    %c0_42 = arith.constant 0 : index
    %c0_43 = arith.constant 0 : index
    %45 = vector.load %arg2[%c7_41, %c0_42, %c0_43] : memref<9x64x16xbf16, #tpu.memory_space<vmem>>, vector<1x64x16xbf16>
    %46 = vector.shape_cast %45 : vector<1x64x16xbf16> to vector<64x16xbf16>
    %cst_44 = arith.constant dense<0.000000e+00> : vector<24x16xf32>
    %47 = tpu.matmul %44, %46, %cst_44 {dimension_numbers = #tpu.dot_dimension_numbers<[1], [0], [0], [1], [0, 0, 1, 1], [], []>} : vector<24x64xbf16>, vector<64x16xbf16>, vector<24x16xf32> -> vector<24x16xf32>
    %48 = arith.addf %42, %47 : vector<24x16xf32>
    %c0_45 = arith.constant 0 : index
    %c14 = arith.constant 14 : index
    %c0_46 = arith.constant 0 : index
    %49 = vector.load %arg1[%c0_45, %c14, %c0_46] : memref<1x38x64xbf16, #tpu.memory_space<vmem>>, vector<1x24x64xbf16>
    %50 = vector.shape_cast %49 : vector<1x24x64xbf16> to vector<24x64xbf16>
    %c8_47 = arith.constant 8 : index
    %c0_48 = arith.constant 0 : index
    %c0_49 = arith.constant 0 : index
    %51 = vector.load %arg2[%c8_47, %c0_48, %c0_49] : memref<9x64x16xbf16, #tpu.memory_space<vmem>>, vector<1x64x16xbf16>
    %52 = vector.shape_cast %51 : vector<1x64x16xbf16> to vector<64x16xbf16>
    %cst_50 = arith.constant dense<0.000000e+00> : vector<24x16xf32>
    %53 = tpu.matmul %50, %52, %cst_50 {dimension_numbers = #tpu.dot_dimension_numbers<[1], [0], [0], [1], [0, 0, 1, 1], [], []>} : vector<24x64xbf16>, vector<64x16xbf16>, vector<24x16xf32> -> vector<24x16xf32>
    %54 = arith.addf %48, %53 : vector<24x16xf32>
    %c0_51 = arith.constant 0 : index
    %c0_52 = arith.constant 0 : index
    %55 = vector.load %arg3[%c0_51, %c0_52] : memref<1x16xf32, #tpu.memory_space<vmem>>, vector<1x16xf32>
    %56 = vector.broadcast %55 : vector<1x16xf32> to vector<24x16xf32>
    %57 = arith.addf %54, %56 : vector<24x16xf32>
    %cst_53 = arith.constant 0.000000e+00 : f32
    %58 = vector.broadcast %cst_53 : f32 to vector<24x16xf32>
    %59 = arith.maximumf %57, %58 : vector<24x16xf32>
    %c0_54 = arith.constant 0 : index
    %c0_55 = arith.constant 0 : index
    %60 = vector.load %arg4[%c0_54, %c0_55] : memref<16x16xbf16, #tpu.memory_space<vmem>>, vector<16x16xbf16>
    %c0_56 = arith.constant 0 : index
    %c0_57 = arith.constant 0 : index
    %61 = vector.load %arg5[%c0_56, %c0_57] : memref<1x16xf32, #tpu.memory_space<vmem>>, vector<1x16xf32>
    %62 = arith.truncf %59 : vector<24x16xf32> to vector<24x16xbf16>
    %cst_58 = arith.constant dense<0.000000e+00> : vector<24x16xf32>
    %63 = tpu.matmul %62, %60, %cst_58 {dimension_numbers = #tpu.dot_dimension_numbers<[1], [0], [0], [1], [0, 0, 1, 1], [], []>} : vector<24x16xbf16>, vector<16x16xbf16>, vector<24x16xf32> -> vector<24x16xf32>
    %64 = vector.broadcast %61 : vector<1x16xf32> to vector<24x16xf32>
    %65 = arith.addf %63, %64 : vector<24x16xf32>
    %cst_59 = arith.constant 0.000000e+00 : f32
    %66 = vector.broadcast %cst_59 : f32 to vector<24x16xf32>
    %67 = arith.maximumf %65, %66 : vector<24x16xf32>
    %c0_60 = arith.constant 0 : index
    %c0_61 = arith.constant 0 : index
    %68 = vector.load %arg6[%c0_60, %c0_61] : memref<16x16xbf16, #tpu.memory_space<vmem>>, vector<16x16xbf16>
    %c0_62 = arith.constant 0 : index
    %c0_63 = arith.constant 0 : index
    %69 = vector.load %arg7[%c0_62, %c0_63] : memref<1x16xf32, #tpu.memory_space<vmem>>, vector<1x16xf32>
    %70 = arith.truncf %67 : vector<24x16xf32> to vector<24x16xbf16>
    %cst_64 = arith.constant dense<0.000000e+00> : vector<24x16xf32>
    %71 = tpu.matmul %70, %68, %cst_64 {dimension_numbers = #tpu.dot_dimension_numbers<[1], [0], [0], [1], [0, 0, 1, 1], [], []>} : vector<24x16xbf16>, vector<16x16xbf16>, vector<24x16xf32> -> vector<24x16xf32>
    %72 = vector.broadcast %69 : vector<1x16xf32> to vector<24x16xf32>
    %73 = arith.addf %71, %72 : vector<24x16xf32>
    %cst_65 = arith.constant 0.000000e+00 : f32
    %74 = vector.broadcast %cst_65 : f32 to vector<24x16xf32>
    %75 = arith.maximumf %73, %74 : vector<24x16xf32>
    %76 = arith.truncf %75 : vector<24x16xf32> to vector<24x16xbf16>
    %c0_66 = arith.constant 0 : index
    %c0_67 = arith.constant 0 : index
    %c0_68 = arith.constant 0 : index
    %77 = vector.load %arg8[%c0_66, %c0_67, %c0_68] : memref<1x24x16xbf16, #tpu.memory_space<vmem>>, vector<1x24x16xbf16>
    %78 = vector.shape_cast %77 : vector<1x24x16xbf16> to vector<24x16xbf16>
    %79 = vector.shape_cast %76 : vector<24x16xbf16> to vector<1x24x16xbf16>
    tpu.vector_store %arg8[%c0_66, %c0_67, %c0_68], %79 {strides = array<i32>} : memref<1x24x16xbf16, #tpu.memory_space<vmem>>, vector<1x24x16xbf16>,
    return
  }
  func.func @transform_0(%arg0: i32) -> (i32, i32, i32) {
    %c0_i32 = arith.constant 0 : i32
    %c0_i32_0 = arith.constant 0 : i32
    %c0_i32_1 = arith.constant 0 : i32
    return %arg0, %c0_i32, %c0_i32_0 : i32, i32, i32
  }
  func.func @transform_1(%arg0: i32) -> (i32, i32, i32) {
    %c0_i32 = arith.constant 0 : i32
    %c0_i32_0 = arith.constant 0 : i32
    %c0_i32_1 = arith.constant 0 : i32
    %c0_i32_2 = arith.constant 0 : i32
    return %c0_i32, %c0_i32_0, %c0_i32_1 : i32, i32, i32
  }
  func.func @transform_2(%arg0: i32) -> (i32, i32) {
    %c0_i32 = arith.constant 0 : i32
    %c0_i32_0 = arith.constant 0 : i32
    %c0_i32_1 = arith.constant 0 : i32
    return %c0_i32, %c0_i32_0 : i32, i32
  }
  func.func @transform_3(%arg0: i32) -> (i32, i32) {
    %c0_i32 = arith.constant 0 : i32
    %c0_i32_0 = arith.constant 0 : i32
    %c0_i32_1 = arith.constant 0 : i32
    return %c0_i32, %c0_i32_0 : i32, i32
  }
  func.func @transform_4(%arg0: i32) -> (i32, i32) {
    %c0_i32 = arith.constant 0 : i32
    %c0_i32_0 = arith.constant 0 : i32
    %c0_i32_1 = arith.constant 0 : i32
    return %c0_i32, %c0_i32_0 : i32, i32
  }
  func.func @transform_5(%arg0: i32) -> (i32, i32) {
    %c0_i32 = arith.constant 0 : i32
    %c0_i32_0 = arith.constant 0 : i32
    %c0_i32_1 = arith.constant 0 : i32
    return %c0_i32, %c0_i32_0 : i32, i32
  }
  func.func @transform_6(%arg0: i32) -> (i32, i32) {
    %c0_i32 = arith.constant 0 : i32
    %c0_i32_0 = arith.constant 0 : i32
    %c0_i32_1 = arith.constant 0 : i32
    return %c0_i32, %c0_i32_0 : i32, i32
  }
  func.func @transform_7(%arg0: i32) -> (i32, i32, i32) {
    %c0_i32 = arith.constant 0 : i32
    %c0_i32_0 = arith.constant 0 : i32
    %c0_i32_1 = arith.constant 0 : i32
    return %arg0, %c0_i32, %c0_i32_0 : i32, i32, i32
  }
}

module attributes {stable_mosaic.version = 11 : i64} {
  func.func @_conv3x3_chain_kernel(%arg0: i32, %arg1: memref<1x102x32xbf16, #tpu.memory_space<vmem>>, %arg2: memref<9x32x8xbf16, #tpu.memory_space<vmem>>, %arg3: memref<1x8xf32, #tpu.memory_space<vmem>>, %arg4: memref<8x8xbf16, #tpu.memory_space<vmem>>, %arg5: memref<1x8xf32, #tpu.memory_space<vmem>>, %arg6: memref<8x8xbf16, #tpu.memory_space<vmem>>, %arg7: memref<1x8xf32, #tpu.memory_space<vmem>>, %arg8: memref<8x1xbf16, #tpu.memory_space<vmem>>, %arg9: memref<1x1xf32, #tpu.memory_space<vmem>>, %arg10: memref<1x80x1xf32, #tpu.memory_space<vmem>>) attributes {dimension_semantics = [#tpu.dimension_semantics<parallel>], iteration_bounds = array<i64: 2>, scalar_prefetch = 0 : i64, scratch_operands = 0 : i64, tpu.core_type = #tpu.core_type<tc>, window_params = [{transform_indices = @transform_0, window_bounds = array<i64: 1, 102, 32>}, {pipeline_mode = #tpu.pipeline_mode<synchronous>, transform_indices = @transform_1, window_bounds = array<i64: 9, 32, 8>}, {pipeline_mode = #tpu.pipeline_mode<synchronous>, transform_indices = @transform_2, window_bounds = array<i64: 1, 8>}, {pipeline_mode = #tpu.pipeline_mode<synchronous>, transform_indices = @transform_3, window_bounds = array<i64: 8, 8>}, {pipeline_mode = #tpu.pipeline_mode<synchronous>, transform_indices = @transform_4, window_bounds = array<i64: 1, 8>}, {pipeline_mode = #tpu.pipeline_mode<synchronous>, transform_indices = @transform_5, window_bounds = array<i64: 8, 8>}, {pipeline_mode = #tpu.pipeline_mode<synchronous>, transform_indices = @transform_6, window_bounds = array<i64: 1, 8>}, {pipeline_mode = #tpu.pipeline_mode<synchronous>, transform_indices = @transform_7, window_bounds = array<i64: 8, 1>}, {pipeline_mode = #tpu.pipeline_mode<synchronous>, transform_indices = @transform_8, window_bounds = array<i64: 1, 1>}, {transform_indices = @transform_9, window_bounds = array<i64: 1, 80, 1>}]} {
    %cst = arith.constant 0.000000e+00 : f32
    %0 = vector.broadcast %cst : f32 to vector<80x8xf32>
    %c0 = arith.constant 0 : index
    %c0_0 = arith.constant 0 : index
    %c0_1 = arith.constant 0 : index
    %1 = vector.load %arg1[%c0, %c0_0, %c0_1] : memref<1x102x32xbf16, #tpu.memory_space<vmem>>, vector<1x80x32xbf16>
    %2 = vector.shape_cast %1 : vector<1x80x32xbf16> to vector<80x32xbf16>
    %c0_2 = arith.constant 0 : index
    %c0_3 = arith.constant 0 : index
    %c0_4 = arith.constant 0 : index
    %3 = vector.load %arg2[%c0_2, %c0_3, %c0_4] : memref<9x32x8xbf16, #tpu.memory_space<vmem>>, vector<1x32x8xbf16>
    %4 = vector.shape_cast %3 : vector<1x32x8xbf16> to vector<32x8xbf16>
    %cst_5 = arith.constant dense<0.000000e+00> : vector<80x8xf32>
    %5 = tpu.matmul %2, %4, %cst_5 {dimension_numbers = #tpu.dot_dimension_numbers<[1], [0], [0], [1], [0, 0, 1, 1], [], []>} : vector<80x32xbf16>, vector<32x8xbf16>, vector<80x8xf32> -> vector<80x8xf32>
    %6 = arith.addf %0, %5 : vector<80x8xf32>
    %c0_6 = arith.constant 0 : index
    %c1 = arith.constant 1 : index
    %c0_7 = arith.constant 0 : index
    %7 = vector.load %arg1[%c0_6, %c1, %c0_7] : memref<1x102x32xbf16, #tpu.memory_space<vmem>>, vector<1x80x32xbf16>
    %8 = vector.shape_cast %7 : vector<1x80x32xbf16> to vector<80x32xbf16>
    %c1_8 = arith.constant 1 : index
    %c0_9 = arith.constant 0 : index
    %c0_10 = arith.constant 0 : index
    %9 = vector.load %arg2[%c1_8, %c0_9, %c0_10] : memref<9x32x8xbf16, #tpu.memory_space<vmem>>, vector<1x32x8xbf16>
    %10 = vector.shape_cast %9 : vector<1x32x8xbf16> to vector<32x8xbf16>
    %cst_11 = arith.constant dense<0.000000e+00> : vector<80x8xf32>
    %11 = tpu.matmul %8, %10, %cst_11 {dimension_numbers = #tpu.dot_dimension_numbers<[1], [0], [0], [1], [0, 0, 1, 1], [], []>} : vector<80x32xbf16>, vector<32x8xbf16>, vector<80x8xf32> -> vector<80x8xf32>
    %12 = arith.addf %6, %11 : vector<80x8xf32>
    %c0_12 = arith.constant 0 : index
    %c2 = arith.constant 2 : index
    %c0_13 = arith.constant 0 : index
    %13 = vector.load %arg1[%c0_12, %c2, %c0_13] : memref<1x102x32xbf16, #tpu.memory_space<vmem>>, vector<1x80x32xbf16>
    %14 = vector.shape_cast %13 : vector<1x80x32xbf16> to vector<80x32xbf16>
    %c2_14 = arith.constant 2 : index
    %c0_15 = arith.constant 0 : index
    %c0_16 = arith.constant 0 : index
    %15 = vector.load %arg2[%c2_14, %c0_15, %c0_16] : memref<9x32x8xbf16, #tpu.memory_space<vmem>>, vector<1x32x8xbf16>
    %16 = vector.shape_cast %15 : vector<1x32x8xbf16> to vector<32x8xbf16>
    %cst_17 = arith.constant dense<0.000000e+00> : vector<80x8xf32>
    %17 = tpu.matmul %14, %16, %cst_17 {dimension_numbers = #tpu.dot_dimension_numbers<[1], [0], [0], [1], [0, 0, 1, 1], [], []>} : vector<80x32xbf16>, vector<32x8xbf16>, vector<80x8xf32> -> vector<80x8xf32>
    %18 = arith.addf %12, %17 : vector<80x8xf32>
    %c0_18 = arith.constant 0 : index
    %c10 = arith.constant 10 : index
    %c0_19 = arith.constant 0 : index
    %19 = vector.load %arg1[%c0_18, %c10, %c0_19] : memref<1x102x32xbf16, #tpu.memory_space<vmem>>, vector<1x80x32xbf16>
    %20 = vector.shape_cast %19 : vector<1x80x32xbf16> to vector<80x32xbf16>
    %c3 = arith.constant 3 : index
    %c0_20 = arith.constant 0 : index
    %c0_21 = arith.constant 0 : index
    %21 = vector.load %arg2[%c3, %c0_20, %c0_21] : memref<9x32x8xbf16, #tpu.memory_space<vmem>>, vector<1x32x8xbf16>
    %22 = vector.shape_cast %21 : vector<1x32x8xbf16> to vector<32x8xbf16>
    %cst_22 = arith.constant dense<0.000000e+00> : vector<80x8xf32>
    %23 = tpu.matmul %20, %22, %cst_22 {dimension_numbers = #tpu.dot_dimension_numbers<[1], [0], [0], [1], [0, 0, 1, 1], [], []>} : vector<80x32xbf16>, vector<32x8xbf16>, vector<80x8xf32> -> vector<80x8xf32>
    %24 = arith.addf %18, %23 : vector<80x8xf32>
    %c0_23 = arith.constant 0 : index
    %c11 = arith.constant 11 : index
    %c0_24 = arith.constant 0 : index
    %25 = vector.load %arg1[%c0_23, %c11, %c0_24] : memref<1x102x32xbf16, #tpu.memory_space<vmem>>, vector<1x80x32xbf16>
    %26 = vector.shape_cast %25 : vector<1x80x32xbf16> to vector<80x32xbf16>
    %c4 = arith.constant 4 : index
    %c0_25 = arith.constant 0 : index
    %c0_26 = arith.constant 0 : index
    %27 = vector.load %arg2[%c4, %c0_25, %c0_26] : memref<9x32x8xbf16, #tpu.memory_space<vmem>>, vector<1x32x8xbf16>
    %28 = vector.shape_cast %27 : vector<1x32x8xbf16> to vector<32x8xbf16>
    %cst_27 = arith.constant dense<0.000000e+00> : vector<80x8xf32>
    %29 = tpu.matmul %26, %28, %cst_27 {dimension_numbers = #tpu.dot_dimension_numbers<[1], [0], [0], [1], [0, 0, 1, 1], [], []>} : vector<80x32xbf16>, vector<32x8xbf16>, vector<80x8xf32> -> vector<80x8xf32>
    %30 = arith.addf %24, %29 : vector<80x8xf32>
    %c0_28 = arith.constant 0 : index
    %c12 = arith.constant 12 : index
    %c0_29 = arith.constant 0 : index
    %31 = vector.load %arg1[%c0_28, %c12, %c0_29] : memref<1x102x32xbf16, #tpu.memory_space<vmem>>, vector<1x80x32xbf16>
    %32 = vector.shape_cast %31 : vector<1x80x32xbf16> to vector<80x32xbf16>
    %c5 = arith.constant 5 : index
    %c0_30 = arith.constant 0 : index
    %c0_31 = arith.constant 0 : index
    %33 = vector.load %arg2[%c5, %c0_30, %c0_31] : memref<9x32x8xbf16, #tpu.memory_space<vmem>>, vector<1x32x8xbf16>
    %34 = vector.shape_cast %33 : vector<1x32x8xbf16> to vector<32x8xbf16>
    %cst_32 = arith.constant dense<0.000000e+00> : vector<80x8xf32>
    %35 = tpu.matmul %32, %34, %cst_32 {dimension_numbers = #tpu.dot_dimension_numbers<[1], [0], [0], [1], [0, 0, 1, 1], [], []>} : vector<80x32xbf16>, vector<32x8xbf16>, vector<80x8xf32> -> vector<80x8xf32>
    %36 = arith.addf %30, %35 : vector<80x8xf32>
    %c0_33 = arith.constant 0 : index
    %c20 = arith.constant 20 : index
    %c0_34 = arith.constant 0 : index
    %37 = vector.load %arg1[%c0_33, %c20, %c0_34] : memref<1x102x32xbf16, #tpu.memory_space<vmem>>, vector<1x80x32xbf16>
    %38 = vector.shape_cast %37 : vector<1x80x32xbf16> to vector<80x32xbf16>
    %c6 = arith.constant 6 : index
    %c0_35 = arith.constant 0 : index
    %c0_36 = arith.constant 0 : index
    %39 = vector.load %arg2[%c6, %c0_35, %c0_36] : memref<9x32x8xbf16, #tpu.memory_space<vmem>>, vector<1x32x8xbf16>
    %40 = vector.shape_cast %39 : vector<1x32x8xbf16> to vector<32x8xbf16>
    %cst_37 = arith.constant dense<0.000000e+00> : vector<80x8xf32>
    %41 = tpu.matmul %38, %40, %cst_37 {dimension_numbers = #tpu.dot_dimension_numbers<[1], [0], [0], [1], [0, 0, 1, 1], [], []>} : vector<80x32xbf16>, vector<32x8xbf16>, vector<80x8xf32> -> vector<80x8xf32>
    %42 = arith.addf %36, %41 : vector<80x8xf32>
    %c0_38 = arith.constant 0 : index
    %c21 = arith.constant 21 : index
    %c0_39 = arith.constant 0 : index
    %43 = vector.load %arg1[%c0_38, %c21, %c0_39] : memref<1x102x32xbf16, #tpu.memory_space<vmem>>, vector<1x80x32xbf16>
    %44 = vector.shape_cast %43 : vector<1x80x32xbf16> to vector<80x32xbf16>
    %c7 = arith.constant 7 : index
    %c0_40 = arith.constant 0 : index
    %c0_41 = arith.constant 0 : index
    %45 = vector.load %arg2[%c7, %c0_40, %c0_41] : memref<9x32x8xbf16, #tpu.memory_space<vmem>>, vector<1x32x8xbf16>
    %46 = vector.shape_cast %45 : vector<1x32x8xbf16> to vector<32x8xbf16>
    %cst_42 = arith.constant dense<0.000000e+00> : vector<80x8xf32>
    %47 = tpu.matmul %44, %46, %cst_42 {dimension_numbers = #tpu.dot_dimension_numbers<[1], [0], [0], [1], [0, 0, 1, 1], [], []>} : vector<80x32xbf16>, vector<32x8xbf16>, vector<80x8xf32> -> vector<80x8xf32>
    %48 = arith.addf %42, %47 : vector<80x8xf32>
    %c0_43 = arith.constant 0 : index
    %c22 = arith.constant 22 : index
    %c0_44 = arith.constant 0 : index
    %49 = vector.load %arg1[%c0_43, %c22, %c0_44] : memref<1x102x32xbf16, #tpu.memory_space<vmem>>, vector<1x80x32xbf16>
    %50 = vector.shape_cast %49 : vector<1x80x32xbf16> to vector<80x32xbf16>
    %c8 = arith.constant 8 : index
    %c0_45 = arith.constant 0 : index
    %c0_46 = arith.constant 0 : index
    %51 = vector.load %arg2[%c8, %c0_45, %c0_46] : memref<9x32x8xbf16, #tpu.memory_space<vmem>>, vector<1x32x8xbf16>
    %52 = vector.shape_cast %51 : vector<1x32x8xbf16> to vector<32x8xbf16>
    %cst_47 = arith.constant dense<0.000000e+00> : vector<80x8xf32>
    %53 = tpu.matmul %50, %52, %cst_47 {dimension_numbers = #tpu.dot_dimension_numbers<[1], [0], [0], [1], [0, 0, 1, 1], [], []>} : vector<80x32xbf16>, vector<32x8xbf16>, vector<80x8xf32> -> vector<80x8xf32>
    %54 = arith.addf %48, %53 : vector<80x8xf32>
    %c0_48 = arith.constant 0 : index
    %c0_49 = arith.constant 0 : index
    %55 = vector.load %arg3[%c0_48, %c0_49] : memref<1x8xf32, #tpu.memory_space<vmem>>, vector<1x8xf32>
    %56 = vector.broadcast %55 : vector<1x8xf32> to vector<80x8xf32>
    %57 = arith.addf %54, %56 : vector<80x8xf32>
    %cst_50 = arith.constant 0.000000e+00 : f32
    %58 = vector.broadcast %cst_50 : f32 to vector<80x8xf32>
    %59 = arith.maximumf %57, %58 : vector<80x8xf32>
    %c0_51 = arith.constant 0 : index
    %c0_52 = arith.constant 0 : index
    %60 = vector.load %arg4[%c0_51, %c0_52] : memref<8x8xbf16, #tpu.memory_space<vmem>>, vector<8x8xbf16>
    %c0_53 = arith.constant 0 : index
    %c0_54 = arith.constant 0 : index
    %61 = vector.load %arg5[%c0_53, %c0_54] : memref<1x8xf32, #tpu.memory_space<vmem>>, vector<1x8xf32>
    %62 = arith.truncf %59 : vector<80x8xf32> to vector<80x8xbf16>
    %cst_55 = arith.constant dense<0.000000e+00> : vector<80x8xf32>
    %63 = tpu.matmul %62, %60, %cst_55 {dimension_numbers = #tpu.dot_dimension_numbers<[1], [0], [0], [1], [0, 0, 1, 1], [], []>} : vector<80x8xbf16>, vector<8x8xbf16>, vector<80x8xf32> -> vector<80x8xf32>
    %64 = vector.broadcast %61 : vector<1x8xf32> to vector<80x8xf32>
    %65 = arith.addf %63, %64 : vector<80x8xf32>
    %cst_56 = arith.constant 0.000000e+00 : f32
    %66 = vector.broadcast %cst_56 : f32 to vector<80x8xf32>
    %67 = arith.maximumf %65, %66 : vector<80x8xf32>
    %c0_57 = arith.constant 0 : index
    %c0_58 = arith.constant 0 : index
    %68 = vector.load %arg6[%c0_57, %c0_58] : memref<8x8xbf16, #tpu.memory_space<vmem>>, vector<8x8xbf16>
    %c0_59 = arith.constant 0 : index
    %c0_60 = arith.constant 0 : index
    %69 = vector.load %arg7[%c0_59, %c0_60] : memref<1x8xf32, #tpu.memory_space<vmem>>, vector<1x8xf32>
    %70 = arith.truncf %67 : vector<80x8xf32> to vector<80x8xbf16>
    %cst_61 = arith.constant dense<0.000000e+00> : vector<80x8xf32>
    %71 = tpu.matmul %70, %68, %cst_61 {dimension_numbers = #tpu.dot_dimension_numbers<[1], [0], [0], [1], [0, 0, 1, 1], [], []>} : vector<80x8xbf16>, vector<8x8xbf16>, vector<80x8xf32> -> vector<80x8xf32>
    %72 = vector.broadcast %69 : vector<1x8xf32> to vector<80x8xf32>
    %73 = arith.addf %71, %72 : vector<80x8xf32>
    %cst_62 = arith.constant 0.000000e+00 : f32
    %74 = vector.broadcast %cst_62 : f32 to vector<80x8xf32>
    %75 = arith.maximumf %73, %74 : vector<80x8xf32>
    %c0_63 = arith.constant 0 : index
    %c0_64 = arith.constant 0 : index
    %76 = vector.load %arg8[%c0_63, %c0_64] : memref<8x1xbf16, #tpu.memory_space<vmem>>, vector<8x1xbf16>
    %c0_65 = arith.constant 0 : index
    %c0_66 = arith.constant 0 : index
    %77 = vector.load %arg9[%c0_65, %c0_66] : memref<1x1xf32, #tpu.memory_space<vmem>>, vector<1x1xf32>
    %78 = arith.truncf %75 : vector<80x8xf32> to vector<80x8xbf16>
    %cst_67 = arith.constant dense<0.000000e+00> : vector<80x1xf32>
    %79 = tpu.matmul %78, %76, %cst_67 {dimension_numbers = #tpu.dot_dimension_numbers<[1], [0], [0], [1], [0, 0, 1, 1], [], []>} : vector<80x8xbf16>, vector<8x1xbf16>, vector<80x1xf32> -> vector<80x1xf32>
    %80 = vector.broadcast %77 : vector<1x1xf32> to vector<80x1xf32>
    %81 = arith.addf %79, %80 : vector<80x1xf32>
    %c0_68 = arith.constant 0 : index
    %c0_69 = arith.constant 0 : index
    %c0_70 = arith.constant 0 : index
    %82 = vector.load %arg10[%c0_68, %c0_69, %c0_70] : memref<1x80x1xf32, #tpu.memory_space<vmem>>, vector<1x80x1xf32>
    %83 = vector.shape_cast %82 : vector<1x80x1xf32> to vector<80x1xf32>
    %84 = vector.shape_cast %81 : vector<80x1xf32> to vector<1x80x1xf32>
    tpu.vector_store %arg10[%c0_68, %c0_69, %c0_70], %84 {strides = array<i32>} : memref<1x80x1xf32, #tpu.memory_space<vmem>>, vector<1x80x1xf32>,
    return
  }
  func.func @transform_0(%arg0: i32) -> (i32, i32, i32) {
    %c0_i32 = arith.constant 0 : i32
    %c0_i32_0 = arith.constant 0 : i32
    %c0_i32_1 = arith.constant 0 : i32
    return %arg0, %c0_i32, %c0_i32_0 : i32, i32, i32
  }
  func.func @transform_1(%arg0: i32) -> (i32, i32, i32) {
    %c0_i32 = arith.constant 0 : i32
    %c0_i32_0 = arith.constant 0 : i32
    %c0_i32_1 = arith.constant 0 : i32
    %c0_i32_2 = arith.constant 0 : i32
    return %c0_i32, %c0_i32_0, %c0_i32_1 : i32, i32, i32
  }
  func.func @transform_2(%arg0: i32) -> (i32, i32) {
    %c0_i32 = arith.constant 0 : i32
    %c0_i32_0 = arith.constant 0 : i32
    %c0_i32_1 = arith.constant 0 : i32
    return %c0_i32, %c0_i32_0 : i32, i32
  }
  func.func @transform_3(%arg0: i32) -> (i32, i32) {
    %c0_i32 = arith.constant 0 : i32
    %c0_i32_0 = arith.constant 0 : i32
    %c0_i32_1 = arith.constant 0 : i32
    return %c0_i32, %c0_i32_0 : i32, i32
  }
  func.func @transform_4(%arg0: i32) -> (i32, i32) {
    %c0_i32 = arith.constant 0 : i32
    %c0_i32_0 = arith.constant 0 : i32
    %c0_i32_1 = arith.constant 0 : i32
    return %c0_i32, %c0_i32_0 : i32, i32
  }
  func.func @transform_5(%arg0: i32) -> (i32, i32) {
    %c0_i32 = arith.constant 0 : i32
    %c0_i32_0 = arith.constant 0 : i32
    %c0_i32_1 = arith.constant 0 : i32
    return %c0_i32, %c0_i32_0 : i32, i32
  }
  func.func @transform_6(%arg0: i32) -> (i32, i32) {
    %c0_i32 = arith.constant 0 : i32
    %c0_i32_0 = arith.constant 0 : i32
    %c0_i32_1 = arith.constant 0 : i32
    return %c0_i32, %c0_i32_0 : i32, i32
  }
  func.func @transform_7(%arg0: i32) -> (i32, i32) {
    %c0_i32 = arith.constant 0 : i32
    %c0_i32_0 = arith.constant 0 : i32
    %c0_i32_1 = arith.constant 0 : i32
    return %c0_i32, %c0_i32_0 : i32, i32
  }
  func.func @transform_8(%arg0: i32) -> (i32, i32) {
    %c0_i32 = arith.constant 0 : i32
    %c0_i32_0 = arith.constant 0 : i32
    %c0_i32_1 = arith.constant 0 : i32
    return %c0_i32, %c0_i32_0 : i32, i32
  }
  func.func @transform_9(%arg0: i32) -> (i32, i32, i32) {
    %c0_i32 = arith.constant 0 : i32
    %c0_i32_0 = arith.constant 0 : i32
    %c0_i32_1 = arith.constant 0 : i32
    return %arg0, %c0_i32, %c0_i32_0 : i32, i32, i32
  }
}

</mosaic_0001>

<bundles_post_ra>
// kernel: _lambda_.19
= control target key start
LH: loop header
LB: loop body
LE: loop exit
PB: predicated region body
PF: predicated region fallthrough
CT: control target
= control target key end

     0   :  { %s302_s6 = smov 0   ;;  %s331_s0 = inlined_call_operand.vmem [shape: bf16[16,2,8,16], index: 0, kind: input, shape index: {}]   ;;  %s332_s1 = inlined_call_operand.vmem [shape: bf16[16,8,8], index: 1, kind: output, shape index: {}]  }
   0x1 LB: > { %s253_s7 = sadd.s32 4294967295, %s289_s6   ;;  %p257_p0 = scmp.ge.s32.totalorder %s289_s6, 1  ;;  %s289_s6 = sphi %s302_s6, %s11_s6  }
   0x2   : > { %p89_p1 = scmp.lt.s32.totalorder %s289_s6, 3 }
   0x4   : > { %p90_p2 = pnand %p257_p0, %p89_p1 }
   0x5   : > { %s258_s8 = sshll.u32 (!%p90_p2), %s253_s7, 3  ;;  %s291_s13 = smov (!%p90_p2), 120  }
   0x6   : > { %93 = sbr.rel (%p90_p2) target bundleno = 148 (0x94), region = 24  ;;  %p111_p3 = scmp.lt.s32.totalorder (!%p90_p2), %s258_s8, 15 }
   0xb   : > { %s334_s8 = smov (!%p111_p3, %s258_s8), 15  ;;  %vm188_vm0 = vcmask 60416  }
   0xc   : > { %s273_s9 = sshll.u32 %s334_s8, 3  ;;  %s262_s14 = sshll.u32 %s334_s8, 2 }
   0xd   : > { %s115_s12 = scalar_lea.vmem %s331_s0, %s273_s9  ;;  %s121_s17 = scalar_lea.vmem %s332_s1, %s262_s14 }
   0xe   : > { %v125_v0 = vld [vmem:[%s115_s12 + $0x10] sm:$0xf]  ;;  %v265_v1 = vld [vmem:[%s115_s12 + $0x14] sm:$0xf]  ;;  %v123_v2 = vld [vmem:[%s115_s12] sm:$0xf] }
   0xf   : > { %v142_v3 = vmax.bf16 %v265_v1, %v125_v0  ;;  %v263_v4 = vld [vmem:[%s115_s12 + $0x4] sm:$0xf]  ;;  %v126_v5 = vld [vmem:[%s115_s12 + $0x18] sm:$0xf]  ;;  %v266_v6 = vld [vmem:[%s115_s12 + $0x1c] sm:$0xf] }
  0x10   : > { %v140_v7 = vmax.bf16 %v263_v4, %v123_v2  ;;  %v124_v8 = vld [vmem:[%s115_s12 + $0x8] sm:$0xf]  ;;  %v264_v9 = vld [vmem:[%s115_s12 + $0xc] sm:$0xf]  ;;  %v143_v10 = vmax.bf16 %v266_v6, %v126_v5  ;;  %v127_v14 = vld [vmem:[%s115_s12 + $0x20] sm:$0xf] }
  0x11   : > { %160 = vrot.lane.b32.xlu1 %v142_v3, %s291_s13  ;;  %v141_v11 = vmax.bf16 %v264_v9, %v124_v8  ;;  %v128_v12 = vld [vmem:[%s115_s12 + $0x28] sm:$0xf]  ;;  %v268_v13 = vld [vmem:[%s115_s12 + $0x2c] sm:$0xf]  ;;  %v267_v15 = vld [vmem:[%s115_s12 + $0x24] sm:$0xf] }
  0x12   : > { %156 = vrot.lane.b32.xlu0 %v140_v7, %s291_s13  ;;  %v145_v16 = vmax.bf16 %v268_v13, %v128_v12  ;;  %v144_v17 = vmax.bf16 %v267_v15, %v127_v14  ;;  %v130_v18 = vld [vmem:[%s115_s12 + $0x38] sm:$0xf]  ;;  %v270_v19 = vld [vmem:[%s115_s12 + $0x3c] sm:$0xf]  ;;  %v129_v20 = vld [vmem:[%s115_s12 + $0x30] sm:$0xf] }
  0x13   : > { %v269_v21 = vld [vmem:[%s115_s12 + $0x34] sm:$0xf]  ;;  %v147_v22 = vmax.bf16 %v270_v19, %v130_v18 }
  0x14   : > { %v146_v23 = vmax.bf16 %v269_v21, %v129_v20 }
  0x15   : > { %162 = vrot.lane.b32.xlu1 %v143_v10, %s291_s13 }
  0x16   : > { %158 = vrot.lane.b32.xlu0 %v141_v11, %s291_s13 }
  0x19   : > { %166 = vrot.lane.b32.xlu1 %v145_v16, %s291_s13 }
  0x1a   : > { %164 = vrot.lane.b32.xlu0 %v144_v17, %s291_s13 }
  0x1d   : > { %170 = vrot.lane.b32.xlu1 %v147_v22, %s291_s13 }
  0x1e   : > { %168 = vrot.lane.b32.xlu0 %v146_v23, %s291_s13 }
  0x83   : > { %v161_v24 = vpop.permute.xlu1 %160 }
  0x84   : > { %v182_v25 = vmax.bf16 %v161_v24, %v142_v3  ;;  %v157_v26 = vpop.permute.xlu0 %156 }
  0x85   : > { %v180_v27 = vmax.bf16 %v157_v26, %v140_v7 }
  0x86   : > { %191 = vst.msk [vmem:[%s121_s17 + $0x8] sm:$0xf] %vm188_vm0, %v182_v25 }
  0x87   : > { %189 = vst.msk [vmem:[%s121_s17] sm:$0xf] %vm188_vm0, %v180_v27  ;;  %v163_v28 = vpop.permute.xlu1 %162 }
  0x88   : > { %v183_v29 = vmax.bf16 %v163_v28, %v143_v10  ;;  %v159_v30 = vpop.permute.xlu0 %158 }
  0x89   : > { %v181_v31 = vmax.bf16 %v159_v30, %v141_v11 }
  0x8a   : > { %192 = vst.msk [vmem:[%s121_s17 + $0xc] sm:$0xf] %vm188_vm0, %v183_v29 }
  0x8b   : > { %190 = vst.msk [vmem:[%s121_s17 + $0x4] sm:$0xf] %vm188_vm0, %v181_v31  ;;  %v167_v32 = vpop.permute.xlu1 %166 }
  0x8c   : > { %v185_v33 = vmax.bf16 %v167_v32, %v145_v16  ;;  %v165_v34 = vpop.permute.xlu0 %164 }
  0x8d   : > { %v184_v35 = vmax.bf16 %v165_v34, %v144_v17 }
  0x8e   : > { %194 = vst.msk [vmem:[%s121_s17 + $0x14] sm:$0xf] %vm188_vm0, %v185_v33 }
  0x8f   : > { %193 = vst.msk [vmem:[%s121_s17 + $0x10] sm:$0xf] %vm188_vm0, %v184_v35  ;;  %v171_v36 = vpop.permute.xlu1 %170 }
  0x90   : > { %v187_v37 = vmax.bf16 %v171_v36, %v147_v22  ;;  %v169_v38 = vpop.permute.xlu0 %168 }
  0x91   : > { %v186_v39 = vmax.bf16 %v169_v38, %v146_v23 }
  0x92   : > { %196 = vst.msk [vmem:[%s121_s17 + $0x1c] sm:$0xf] %vm188_vm0, %v187_v37 }
  0x93   : > { %195 = vst.msk [vmem:[%s121_s17 + $0x18] sm:$0xf] %vm188_vm0, %v186_v39 }
  0x94 PF: > { %s11_s6 = sadd.s32 1, %s289_s6  }
  0x95   : > { %p8_p4 = scmp.ge.s32.totalorder %s11_s6, 4  }
  0x97   :  { %10 = sbr.rel (!%p8_p4) target bundleno = 1 (0x1), region = 55 }

// kernel: _lambda_.14
= control target key start
LH: loop header
LB: loop body
LE: loop exit
PB: predicated region body
PF: predicated region fallthrough
CT: control target
= control target key end

     0   :  { %s310_s6 = smov 0   ;;  %s339_s0 = inlined_call_operand.vmem [shape: f32[16,2,8,2], index: 0, kind: input, shape index: {}]   ;;  %s340_s1 = inlined_call_operand.vmem [shape: f32[16,8,1], index: 1, kind: output, shape index: {}]  }
   0x1 LB: > { %s261_s7 = sadd.s32 4294967295, %s297_s6   ;;  %p265_p0 = scmp.ge.s32.totalorder %s297_s6, 1  ;;  %s297_s6 = sphi %s310_s6, %s11_s6  }
   0x2   : > { %p89_p1 = scmp.lt.s32.totalorder %s297_s6, 3 }
   0x4   : > { %p90_p2 = pnand %p265_p0, %p89_p1 }
   0x5   : > { %s266_s8 = sshll.u32 (!%p90_p2), %s261_s7, 3  ;;  %s299_s13 = smov (!%p90_p2), 127  }
   0x6   : > { %93 = sbr.rel (%p90_p2) target bundleno = 150 (0x96), region = 24  ;;  %p111_p3 = scmp.lt.s32.totalorder (!%p90_p2), %s266_s8, 15 }
   0xb   : > { %s342_s8 = smov (!%p111_p3, %s266_s8), 15  ;;  %vm196_vm0 = vcmask 7168  }
   0xc   : > { %s281_s9 = sshll.u32 %s342_s8, 4  ;;  %s270_s14 = sshll.u32 %s342_s8, 3 }
   0xd   : > { %s115_s12 = scalar_lea.vmem %s339_s0, %s281_s9  ;;  %s121_s17 = scalar_lea.vmem %s340_s1, %s270_s14 }
   0xe   : > { %v125_v0 = vld [vmem:[%s115_s12 + $0x20] sm:$0xff]  ;;  %v273_v1 = vld [vmem:[%s115_s12 + $0x28] sm:$0xff]  ;;  %v126_v5 = vld [vmem:[%s115_s12 + $0x30] sm:$0xff] }
   0xf   : > { %v123_v2 = vld [vmem:[%s115_s12] sm:$0xff]  ;;  %v142_v3 = vadd.f32 %v273_v1, %v125_v0  ;;  %v271_v4 = vld [vmem:[%s115_s12 + $0x8] sm:$0xff]  ;;  %v274_v6 = vld [vmem:[%s115_s12 + $0x38] sm:$0xff] }
  0x10   : > { %v140_v7 = vadd.f32 %v271_v4, %v123_v2  ;;  %v124_v8 = vld [vmem:[%s115_s12 + $0x10] sm:$0xff]  ;;  %v272_v9 = vld [vmem:[%s115_s12 + $0x18] sm:$0xff]  ;;  %v143_v10 = vadd.f32 %v274_v6, %v126_v5  ;;  %v127_v14 = vld [vmem:[%s115_s12 + $0x40] sm:$0xff] }
  0x11   : > { %160 = vrot.lane.b32.xlu1 %v142_v3, %s299_s13  ;;  %v141_v11 = vadd.f32 %v272_v9, %v124_v8  ;;  %v128_v12 = vld [vmem:[%s115_s12 + $0x50] sm:$0xff]  ;;  %v276_v13 = vld [vmem:[%s115_s12 + $0x58] sm:$0xff]  ;;  %v275_v15 = vld [vmem:[%s115_s12 + $0x48] sm:$0xff] }
  0x12   : > { %156 = vrot.lane.b32.xlu0 %v140_v7, %s299_s13  ;;  %v145_v16 = vadd.f32 %v276_v13, %v128_v12  ;;  %v144_v17 = vadd.f32 %v275_v15, %v127_v14  ;;  %v130_v18 = vld [vmem:[%s115_s12 + $0x70] sm:$0xff]  ;;  %v278_v19 = vld [vmem:[%s115_s12 + $0x78] sm:$0xff]  ;;  %v129_v20 = vld [vmem:[%s115_s12 + $0x60] sm:$0xff] }
  0x13   : > { %v277_v21 = vld [vmem:[%s115_s12 + $0x68] sm:$0xff]  ;;  %v147_v22 = vadd.f32 %v278_v19, %v130_v18 }
  0x14   : > { %v146_v23 = vadd.f32 %v277_v21, %v129_v20 }
  0x15   : > { %162 = vrot.lane.b32.xlu1 %v143_v10, %s299_s13 }
  0x16   : > { %158 = vrot.lane.b32.xlu0 %v141_v11, %s299_s13 }
  0x19   : > { %166 = vrot.lane.b32.xlu1 %v145_v16, %s299_s13 }
  0x1a   : > { %164 = vrot.lane.b32.xlu0 %v144_v17, %s299_s13 }
  0x1d   : > { %170 = vrot.lane.b32.xlu1 %v147_v22, %s299_s13 }
  0x1e   : > { %168 = vrot.lane.b32.xlu0 %v146_v23, %s299_s13 }
  0x83   : > { %v161_v24 = vpop.permute.xlu1 %160 }
  0x84   : > { %v182_v25 = vadd.f32 %v161_v24, %v142_v3  ;;  %v157_v26 = vpop.permute.xlu0 %156 }
  0x85   : > { %v180_v27 = vadd.f32 %v157_v26, %v140_v7 }
  0x86   : > { %v190_v28 = vmul.f32 0.25, %v182_v25 }
  0x87   : > { %v188_v29 = vmul.f32 0.25, %v180_v27  ;;  %v163_v30 = vpop.permute.xlu1 %162 }
  0x88   : > { %199 = vst.msk [vmem:[%s121_s17 + $0x10] sm:$0xff] %vm196_vm0, %v190_v28  ;;  %v183_v31 = vadd.f32 %v163_v30, %v143_v10  ;;  %v159_v32 = vpop.permute.xlu0 %158 }
  0x89   : > { %197 = vst.msk [vmem:[%s121_s17] sm:$0xff] %vm196_vm0, %v188_v29  ;;  %v181_v33 = vadd.f32 %v159_v32, %v141_v11 }
  0x8a   : > { %v191_v34 = vmul.f32 0.25, %v183_v31 }
  0x8b   : > { %v189_v35 = vmul.f32 0.25, %v181_v33  ;;  %v167_v36 = vpop.permute.xlu1 %166 }
  0x8c   : > { %200 = vst.msk [vmem:[%s121_s17 + $0x18] sm:$0xff] %vm196_vm0, %v191_v34  ;;  %v185_v37 = vadd.f32 %v167_v36, %v145_v16  ;;  %v165_v38 = vpop.permute.xlu0 %164 }
  0x8d   : > { %198 = vst.msk [vmem:[%s121_s17 + $0x8] sm:$0xff] %vm196_vm0, %v189_v35  ;;  %v184_v39 = vadd.f32 %v165_v38, %v144_v17 }
  0x8e   : > { %v193_v40 = vmul.f32 0.25, %v185_v37 }
  0x8f   : > { %v192_v41 = vmul.f32 0.25, %v184_v39  ;;  %v171_v42 = vpop.permute.xlu1 %170 }
  0x90   : > { %202 = vst.msk [vmem:[%s121_s17 + $0x28] sm:$0xff] %vm196_vm0, %v193_v40  ;;  %v187_v43 = vadd.f32 %v171_v42, %v147_v22  ;;  %v169_v44 = vpop.permute.xlu0 %168 }
  0x91   : > { %201 = vst.msk [vmem:[%s121_s17 + $0x20] sm:$0xff] %vm196_vm0, %v192_v41  ;;  %v186_v45 = vadd.f32 %v169_v44, %v146_v23 }
  0x92   : > { %v195_v46 = vmul.f32 0.25, %v187_v43 }
  0x93   : > { %v194_v47 = vmul.f32 0.25, %v186_v45 }
  0x94   : > { %204 = vst.msk [vmem:[%s121_s17 + $0x38] sm:$0xff] %vm196_vm0, %v195_v46 }
  0x95   : > { %203 = vst.msk [vmem:[%s121_s17 + $0x30] sm:$0xff] %vm196_vm0, %v194_v47 }
  0x96 PF: > { %s11_s6 = sadd.s32 1, %s297_s6  }
  0x97   : > { %p8_p4 = scmp.ge.s32.totalorder %s11_s6, 4  }
  0x99   :  { %10 = sbr.rel (!%p8_p4) target bundleno = 1 (0x1), region = 55 }

// kernel: _lambda_.16
= control target key start
LH: loop header
LB: loop body
LE: loop exit
PB: predicated region body
PF: predicated region fallthrough
CT: control target
= control target key end

     0   :  { %s1981_s12 = smov 0   ;;  %s2459_s0 = inlined_call_operand.vmem [shape: bf16[2,102,8], index: 0, kind: input, shape index: {}]   ;;  %s2460_s1 = inlined_call_operand.vmem [shape: bf16[9,8,8], index: 1, kind: input, shape index: {}]   ;;  %s2461_s2 = inlined_call_operand.vmem [shape: f32[1,8], index: 2, kind: input, shape index: {}]   ;;  %s2462_s3 = inlined_call_operand.vmem [shape: bf16[2,80,8], index: 3, kind: output, shape index: {}]  }
   0x1 LB: > { %s1556_s13 = sadd.s32 4294967295, %s1957_s12   ;;  %p1560_p0 = scmp.ge.s32.totalorder %s1957_s12, 1  ;;  %s1957_s12 = sphi %s1981_s12, %s13_s12  }
   0x2   : > { %p137_p1 = scmp.lt.s32.totalorder %s1957_s12, 3 }
   0x4   : > { %p138_p2 = pnand %p1560_p0, %p137_p1 }
   0x5   : > { %p161_p3 = scmp.lt.s32.totalorder (!%p138_p2), %s1556_s13, 1 }
   0x6   : > { %141 = sbr.rel (%p138_p2) target bundleno = 407 (0x197), region = 32 }
   0xb   : > { %v1563_v0 = vld [vmem:[%s2460_s1 + $0x4] sm:$0xf]  ;;  %vm275_vm0 = vcmask 1043456   ;;  %v1959_v1 = vmov 0.0   ;;  %s2464_s13 = smov (!%p161_p3, %s1556_s13), 1  ;;  %vm1960_vm1 = vmmov 0  }
   0xc   : > { %1716 = vmatprep.subr.bf16.mxu0 %v1959_v1  ;;  %1914 = vmatprep.subr.bf16.mxu1 %v1959_v1  ;;  %v277_v2 = vsel %vm275_vm0, %v1563_v0, 0  ;;  %s1916_s16 = smul.u32 52, %s2464_s13  ;;  %vm214_vm2 = vsmask.f32 7424  ;;  %v1580_v13 = vld [vmem:[%s2460_s1 + $0x8] sm:$0xf] }
   0xd   : > { %1717 = vmatpush3.bf16.msra.mxu0 %v277_v2  ;;  %1915 = vmatpush3.bf16.msra.mxu1 %v277_v2  ;;  %vm259_vm3 = vcmask 64512   ;;  %v182_v22 = vld [vmem:[%s2460_s1] sm:$0xf]  ;;  %v472_v26 = vsel %vm275_vm0, %v1580_v13, 0  ;;  %vm444_vm4 = vcmask 1046528   ;;  %vm877_vm6 = vcmask 1045504  }
   0xe   : > { %1718 = vmatprep.mubr.msk.bf16.mxu0 %vm1960_vm1, %v1959_v1  ;;  %1730 = vmatprep.mubr.msk.bf16.mxu1 %vm1960_vm1, %v1959_v1  ;;  %s2007_s19 = scalar_lea.vmem %s2459_s0, %s1916_s16  ;;  %v363_v31 = vsel %vm275_vm0, %v182_v22, 0  ;;  %v1587_v48 = vld [vmem:[%s2460_s1 + $0xc] sm:$0xf]  ;;  %v1599_v53 = vld [vmem:[%s2460_s1 + $0x10] sm:$0xf]  ;;  %vm1310_vm8 = vcmask 1044480  }
   0xf   : > { %1760 = vmatprep.subr.bf16.mxu0 %v1959_v1  ;;  %1738 = vmatprep.subr.bf16.mxu1 %v1959_v1  ;;  %v172_v3 = vld [vmem:[%s2007_s19] sm:$0xf]  ;;  %v2011_v4 = vld [vmem:[%s2007_s19 + $0x4] sm:$0xf]  ;;  %v2017_v6 = vld [vmem:[%s2007_s19 + $0x8] sm:$0xff]   ;;  %v625_v50 = vsel %vm275_vm0, %v1587_v48, 0 }
  0x10   : > { %v2014_v5 = vcombine.low %v172_v3, %v2011_v4  ;;  %v223_v9 = vshll.u32 %v2017_v6, 16  ;;  %v2023_v10 = vld [vmem:[%s2007_s19 + $0x18] sm:$0xff]   ;;  %v2026_v11 = vld [vmem:[%s2007_s19 + $0x20] sm:$0xff]   ;;  %v2029_v12 = vld [vmem:[%s2007_s19 + $0x10] sm:$0xff]   ;;  %v227_v23 = vshrl.u32 %v2017_v6, 16  ;;  %v446_v52 = vrot.slane %v2017_v6, 1 }
  0x11   : > { %v239_v16 = vshll.u32 %v2023_v10, 16  ;;  %v243_v17 = vshrl.u32 %v2023_v10, 16  ;;  %v247_v18 = vshll.u32 %v2026_v11, 16  ;;  %v2038_v19 = vld [vmem:[%s2007_s19 + $0x28] ss:$0 sps:$4 sm:$0x11]  }
  0x12   : > { %v216_v7 = vshrl.u32 %v2014_v5, 16  ;;  %v218_v8 = vshll.u32 %v2014_v5, 16  ;;  %v225_v15 = vrot.slane %v223_v9, 1  ;;  %v231_v24 = vshll.u32 %v2029_v12, 16  ;;  %v2062_v39 = vld [vmem:[%s2007_s19 + $0x24] sm:$0xff]   ;;  %v2133_v2 = vld [vmem:[%s2007_s19 + $0xc] sm:$0xff]  }
  0x13   : > { %v241_v21 = vrot.slane %v239_v16, 1  ;;  %v249_v25 = vrot.slane %v247_v18, 1  ;;  %v251_v29 = vshrl.u32 %v2026_v11, 16  ;;  %v255_v30 = vshll.u32 %v2038_v19, 16  ;;  %v438_v43 = vld [vmem:[%s2007_s19] sm:$0xe] }
  0x14   : > { %v220_v14 = vrot.slane %v218_v8, 1  ;;  %v229_v33 = vor.u32 %v227_v23, %v225_v15  ;;  %v233_v34 = vrot.slane %v231_v24, 1  ;;  %v235_v38 = vshrl.u32 %v2029_v12, 16  ;;  %v1940_v40 = vld [vmem:[%s2007_s19 + $0x2c] ss:$0 sps:$4 sm:$0x11]  }
  0x15   : > { %v245_v28 = vor.u32 %v243_v17, %v241_v21  ;;  %v253_v35 = vor.u32 %v251_v29, %v249_v25  ;;  %v257_v36 = vrot.slane %v255_v30, 1  ;;  %v605_v44 = vrot.slane %v2062_v39, 1  ;;  %v557_v61 = vld [vmem:[%s2007_s19 + $0x4] sm:$0xe]  ;;  %v2128_v62 = vld [vmem:[%s2007_s19 + $0x8] sm:$0xf] }
  0x16   : > { %v221_v20 = vor.u32 %v220_v14, %v216_v7  ;;  %v234_v37 = vsel %vm214_vm2, %v229_v33, %v233_v34  ;;  %v237_v42 = vor.u32 %v235_v38, %v233_v34  ;;  %v607_v45 = vrot.slane %v1940_v40, 1  ;;  %v2152_v18 = vld [vmem:[%s2007_s19 + $0x14] sm:$0xff]   ;;  %v2172_v30 = vld [vmem:[%s2007_s19 + $0x1c] sm:$0xff]   ;;  %v2196_v48 = vld [vmem:[%s2007_s19 + $0x2c] ss:$0 sps:$4 sm:$0x33]  }
  0x17   : > { %v250_v32 = vsel %vm214_vm2, %v245_v28, %v249_v25  ;;  %v258_v41 = vsel %vm214_vm2, %v253_v35, %v257_v36  ;;  %v1581_v49 = vcombine.low %v438_v43, %v2011_v4  ;;  %v786_v55 = vsel %vm275_vm0, %v1599_v53, 0  ;;  %v1613_v24 = vld [vmem:[%s2460_s1 + $0x18] sm:$0xf]  ;;  %v871_v53 = vld [vmem:[%s2007_s19 + $0x4] sm:$0xc]  ;;  %s1917_s11 = smul.u32 40, %s2464_s13 }
  0x18   : > { %v226_v27 = vsel %vm214_vm2, %v221_v20, %v225_v15  ;;  %1731 = vmatmul.mubr.msk.bf16.vlgmr.msra.gmra.mxu1 %vm259_vm3, %v250_v32  ;;  %v2077_v46 = vsel %vm444_vm4, %v605_v44, %v607_v45  ;;  %v242_v47 = vsel %vm214_vm2, %v237_v42, %v241_v21  ;;  %v448_v56 = vrot.slane %v2029_v12, 1 }
  0x19   : > { %1719 = vmatmul.mubr.msk.bf16.vlgmr.msra.gmra.mxu0 %vm259_vm3, %v226_v27  ;;  %1739 = vmatpush3.bf16.msra.mxu1 %v363_v31  ;;  %v445_v51 = vrot.slane %v1581_v49, 1  ;;  %v450_v58 = vrot.slane %v2023_v10, 1  ;;  %v452_v60 = vrot.slane %v2026_v11, 1  ;;  %v1588_v0 = vcombine.low %v557_v61, %v2128_v62  ;;  %s2406_s16 = scalar_lea.vmem %s2462_s3, %s1917_s11 }
  0x1a   : > { %1761 = vmatpush3.bf16.msra.mxu0 %v472_v26  ;;  %1722 = vmatprep.mubr.msk.bf16.mxu0 %vm1960_vm1, %v1959_v1  ;;  %v449_v57 = vsel %vm444_vm4, %v446_v52, %v448_v56  ;;  %v454_v3 = vrot.slane %v2038_v19, 1  ;;  %v729_v7 = vshll.u32 %v2133_v2, 16  ;;  %v599_v9 = vrot.slane %v2133_v2, 1 }
  0x1b   : > { %1804 = vmatprep.subr.bf16.mxu0 %v1959_v1  ;;  %1734 = vmatprep.mubr.msk.bf16.mxu1 %vm1960_vm1, %v1959_v1  ;;  %v447_v54 = vsel %vm444_vm4, %v445_v51, %v446_v52  ;;  %v451_v59 = vsel %vm444_vm4, %v448_v56, %v450_v58  ;;  %v453_v63 = vsel %vm444_vm4, %v450_v58, %v452_v60  ;;  %v718_v4 = vshrl.u32 %v1588_v0, 16  ;;  %v990_v58 = vld [vmem:[%s2007_s19 + $0x8] sm:$0xc] }
  0x1c   : > { %1782 = vmatprep.subr.bf16.mxu1 %v1959_v1  ;;  %v598_v8 = vrot.slane %v1588_v0, 1  ;;  %v731_v16 = vrot.slane %v729_v7, 2  ;;  %v735_v21 = vshrl.u32 %v2152_v18, 16  ;;  %v738_v22 = vshll.u32 %v2152_v18, 16  ;;  %v1632_v7 = vld [vmem:[%s2460_s1 + $0x20] sm:$0xf] }
  0x1d   : > { %v720_v13 = vrot.slane %v718_v4, 1  ;;  %vm716_vm5 = vsmask.f32 6400  ;;  %v601_v23 = vrot.slane %v2152_v18, 1  ;;  %v1058_v28 = vsel %vm275_vm0, %v1613_v24, 0 }
  0x1e   : > { %v600_v17 = vsel %vm444_vm4, %v598_v8, %v599_v9  ;;  %v737_v26 = vrot.slane %v735_v21, 1  ;;  %v740_v27 = vrot.slane %v738_v22, 2  ;;  %v744_v32 = vshrl.u32 %v2172_v30, 16 }
  0x1f   : > { %v602_v29 = vsel %vm444_vm4, %v599_v9, %v601_v23  ;;  %v747_v33 = vshll.u32 %v2172_v30, 16  ;;  %v603_v34 = vrot.slane %v2172_v30, 1  ;;  %v756_v42 = vshll.u32 %v2062_v39, 16  ;;  %v2247_v9 = vld [vmem:[%s2007_s19 + $0x18] sm:$0xff]  }
  0x20   : > { %1735 = vmatmul.mubr.msk.bf16.gmra.mxu1 %vm259_vm3, %v258_v41  ;;  %v741_v31 = vor.u32 %v740_v27, %v737_v26  ;;  %v746_v36 = vrot.slane %v744_v32, 1  ;;  %v753_v41 = vshrl.u32 %v2062_v39, 16  ;;  %v762_v51 = vshrl.u32 %v2196_v48, 16 }
  0x21   : > { %1723 = vmatmul.mubr.msk.bf16.gmra.mxu0 %vm259_vm3, %v234_v37  ;;  %1740 = vmatprep.mubr.msk.bf16.mxu1 %vm1960_vm1, %v1959_v1  ;;  %v749_v37 = vrot.slane %v747_v33, 2  ;;  %v604_v38 = vsel %vm444_vm4, %v601_v23, %v603_v34  ;;  %v606_v49 = vsel %vm444_vm4, %v603_v34, %v605_v44  ;;  %v765_v52 = vshll.u32 %v2196_v48, 16 }
  0x22   : > { %1726 = vmatprep.mubr.msk.bf16.mxu0 %vm1960_vm1, %v1959_v1  ;;  %v755_v45 = vrot.slane %v753_v41, 1  ;;  %v1607_v56 = vcombine.low %v871_v53, %v2128_v62  ;;  %v879_v61 = vrot.slane %v2133_v2, 2  ;;  %v887_v23 = vrot.slane %v2196_v48, 2 }
  0x23   : > { %v750_v40 = vor.u32 %v749_v37, %v746_v36  ;;  %vm1149_vm7 = vsmask.f32 5376  ;;  %vm1490_vm9 = vcmask 60416  }
  0x25   : > { %v751_v43 = vsel %vm716_vm5, %v741_v31, %v750_v40 }
  0x28   : > { %1741 = vmatmul.mubr.msk.bf16.vlgmr.msra.gmra.mxu1 %vm259_vm3, %v2014_v5  ;;  %v721_v5 = vshll.u32 %v1588_v0, 16 }
  0x29   : > { %1727 = vmatmul.mubr.msk.bf16.gmra.mxu0 %vm259_vm3, %v242_v47  ;;  %1783 = vmatpush3.bf16.msra.mxu1 %v625_v50  ;;  %v758_v47 = vrot.slane %v756_v42, 2 }
  0x2a   : > { %1762 = vmatprep.mubr.msk.bf16.mxu0 %vm1960_vm1, %v1959_v1  ;;  %1744 = vmatprep.mubr.msk.bf16.mxu1 %vm1960_vm1, %v1959_v1  ;;  %v723_v14 = vrot.slane %v721_v5, 2 }
  0x2b   : > { %1826 = vmatprep.subr.bf16.mxu1 %v1959_v1  ;;  %v759_v50 = vor.u32 %v758_v47, %v755_v45 }
  0x2c   : > { %v724_v19 = vor.u32 %v723_v14, %v720_v13  ;;  %v1034_v13 = vrot.slane %v2247_v9, 2  ;;  %v883_v14 = vrot.slane %v2172_v30, 2 }
  0x2d   : > { %v760_v44 = vsel %vm716_vm5, %v750_v40, %v759_v50  ;;  %v1171_v40 = vshll.u32 %v2247_v9, 16 }
  0x2f   : > { %v1173_v47 = vrot.slane %v1171_v40, 3 }
  0x30   : > { %1745 = vmatmul.mubr.msk.bf16.gmra.mxu1 %vm259_vm3, %v2017_v6  ;;  %v726_v6 = vshrl.u32 %v2133_v2, 16 }
  0x31   : > { %1763 = vmatmul.mubr.msk.bf16.vlgmr.msra.gmra.mxu0 %vm259_vm3, %v447_v54  ;;  %1748 = vmatprep.mubr.msk.bf16.mxu1 %vm1960_vm1, %v1959_v1  ;;  %v764_v54 = vrot.slane %v762_v51, 1 }
  0x32   : > { %1805 = vmatpush3.bf16.msra.mxu0 %v786_v55  ;;  %1766 = vmatprep.mubr.msk.bf16.mxu0 %vm1960_vm1, %v1959_v1  ;;  %v728_v15 = vrot.slane %v726_v6, 1  ;;  %v767_v55 = vrot.slane %v765_v52, 2  ;;  %v881_v6 = vrot.slane %v2152_v18, 2 }
  0x33   : > { %1848 = vmatprep.subr.bf16.mxu0 %v1959_v1 }
  0x34   : > { %v732_v20 = vor.u32 %v731_v16, %v728_v15  ;;  %v2261_v16 = vld [vmem:[%s2007_s19 + $0x20] sm:$0xff]  }
  0x35   : > { %v1036_v18 = vrot.slane %v2261_v16, 2  ;;  %v1177_v51 = vshrl.u32 %v2261_v16, 16  ;;  %v1180_v52 = vshll.u32 %v2261_v16, 16 }
  0x36   : > { %v733_v25 = vsel %vm716_vm5, %v724_v19, %v732_v20  ;;  %v742_v35 = vsel %vm716_vm5, %v732_v20, %v741_v31  ;;  %v2274_v20 = vld [vmem:[%s2007_s19 + $0x28] sm:$0xff]  }
  0x37   : > { %v1037_v19 = vsel %vm877_vm6, %v1034_v13, %v1036_v18  ;;  %v1038_v22 = vrot.slane %v2274_v20, 2 }
  0x38   : > { %1749 = vmatmul.mubr.msk.bf16.gmra.mxu1 %vm259_vm3, %v2029_v12  ;;  %v1606_v12 = vld [vmem:[%s2460_s1 + $0x14] sm:$0xf] }
  0x39   : > { %1767 = vmatmul.mubr.msk.bf16.gmra.mxu0 %vm259_vm3, %v449_v57  ;;  %1752 = vmatprep.mubr.msk.bf16.mxu1 %vm1960_vm1, %v1959_v1  ;;  %v768_v57 = vor.u32 %v767_v55, %v764_v54  ;;  %v1039_v27 = vsel %vm877_vm6, %v1036_v18, %v1038_v22  ;;  %v1179_v54 = vrot.slane %v1177_v51, 2  ;;  %v1182_v55 = vrot.slane %v1180_v52, 3 }
  0x3a   : > { %1770 = vmatprep.mubr.msk.bf16.mxu0 %vm1960_vm1, %v1959_v1 }
  0x3b   : > { %v769_v62 = vsel %vm716_vm5, %v759_v50, %v768_v57  ;;  %v1183_v57 = vor.u32 %v1182_v55, %v1179_v54 }
  0x40   : > { %1753 = vmatmul.mubr.msk.bf16.gmra.mxu1 %vm259_vm3, %v2023_v10  ;;  %v455_v10 = vsel %vm444_vm4, %v452_v60, %v454_v3  ;;  %v878_v60 = vrot.slane %v1607_v56, 2  ;;  %v1314_v56 = vrot.slane %v2247_v9, 3 }
  0x41   : > { %1771 = vmatmul.mubr.msk.bf16.gmra.mxu0 %vm259_vm3, %v451_v59  ;;  %1756 = vmatprep.mubr.msk.bf16.mxu1 %vm1960_vm1, %v1959_v1  ;;  %v2219_v59 = vld [vmem:[%s2007_s19 + $0xc] sm:$0xf] }
  0x42   : > { %1774 = vmatprep.mubr.msk.bf16.mxu0 %vm1960_vm1, %v1959_v1  ;;  %v1614_v0 = vcombine.low %v990_v58, %v2219_v59  ;;  %v880_v3 = vsel %vm877_vm6, %v878_v60, %v879_v61  ;;  %v1186_v58 = vshrl.u32 %v2274_v20, 16 }
  0x44   : > { %v1031_v2 = vrot.slane %v1614_v0, 2  ;;  %v1154_v24 = vshll.u32 %v1614_v0, 16 }
  0x46   : > { %v1156_v31 = vrot.slane %v1154_v24, 3 }
  0x48   : > { %1757 = vmatmul.mubr.msk.bf16.gmra.mxu1 %vm259_vm3, %v2026_v11  ;;  %v905_v11 = vsel %vm275_vm0, %v1606_v12, 0  ;;  %v882_v12 = vsel %vm877_vm6, %v879_v61, %v881_v6 }
  0x49   : > { %1775 = vmatmul.mubr.msk.bf16.gmra.mxu0 %vm259_vm3, %v453_v63  ;;  %1784 = vmatprep.mubr.msk.bf16.mxu1 %vm1960_vm1, %v1959_v1  ;;  %v1625_v63 = vld [vmem:[%s2460_s1 + $0x1c] sm:$0xf] }
  0x4a   : > { %1778 = vmatprep.mubr.msk.bf16.mxu0 %vm1960_vm1, %v1959_v1  ;;  %v1219_v4 = vsel %vm275_vm0, %v1625_v63, 0 }
  0x50   : > { %1785 = vmatmul.mubr.msk.bf16.vlgmr.msra.gmra.mxu1 %vm259_vm3, %v600_v17  ;;  %v884_v17 = vsel %vm877_vm6, %v881_v6, %v883_v14 }
  0x51   : > { %1779 = vmatmul.mubr.msk.bf16.gmra.mxu0 %vm259_vm3, %v455_v10  ;;  %1827 = vmatpush3.bf16.msra.mxu1 %v905_v11  ;;  %v1338_v10 = vsel %vm275_vm0, %v1632_v7, 0  ;;  %v885_v11 = vrot.slane %v2062_v39, 2  ;;  %v1151_v39 = vshrl.u32 %v1614_v0, 16  ;;  %v1950_v0 = vld [vmem:[%s2007_s19 + $0x30] ss:$0 sps:$4 sm:$0x77]  }
  0x52   : > { %1806 = vmatprep.mubr.msk.bf16.mxu0 %vm1960_vm1, %v1959_v1  ;;  %1788 = vmatprep.mubr.msk.bf16.mxu1 %vm1960_vm1, %v1959_v1 }
  0x53   : > { %1870 = vmatprep.subr.bf16.mxu1 %v1959_v1  ;;  %v886_v21 = vsel %vm877_vm6, %v883_v14, %v885_v11  ;;  %v1153_v30 = vrot.slane %v1151_v39, 2  ;;  %v1320_v14 = vrot.slane %v1950_v0, 3 }
  0x55   : > { %v1157_v36 = vor.u32 %v1156_v31, %v1153_v30 }
  0x58   : > { %1789 = vmatmul.mubr.msk.bf16.gmra.mxu1 %vm259_vm3, %v602_v29  ;;  %v888_v29 = vsel %vm877_vm6, %v885_v11, %v887_v23 }
  0x59   : > { %1807 = vmatmul.mubr.msk.bf16.vlgmr.msra.gmra.mxu0 %vm259_vm3, %v733_v25  ;;  %1792 = vmatprep.mubr.msk.bf16.mxu1 %vm1960_vm1, %v1959_v1 }
  0x5a   : > { %1849 = vmatpush3.bf16.msra.mxu0 %v1058_v28  ;;  %1810 = vmatprep.mubr.msk.bf16.mxu0 %vm1960_vm1, %v1959_v1  ;;  %v1948_v28 = vld [vmem:[%s2007_s19 + $0x30] ss:$0 sps:$4 sm:$0x33]  }
  0x5b   : > { %1892 = vmatprep.subr.bf16.mxu0 %v1959_v1  ;;  %v1040_v34 = vrot.slane %v1948_v28, 2 }
  0x5d   : > { %v1041_v41 = vsel %vm877_vm6, %v1038_v22, %v1040_v34 }
  0x60   : > { %1793 = vmatmul.mubr.msk.bf16.gmra.mxu1 %vm259_vm3, %v604_v38  ;;  %v1168_v38 = vshrl.u32 %v2247_v9, 16  ;;  %v1318_v9 = vrot.slane %v2274_v20, 3 }
  0x61   : > { %1811 = vmatmul.mubr.msk.bf16.gmra.mxu0 %vm259_vm3, %v742_v35  ;;  %1796 = vmatprep.mubr.msk.bf16.mxu1 %vm1960_vm1, %v1959_v1  ;;  %v1304_v35 = vld [vmem:[%s2007_s19 + $0x8] sm:$0x8] }
  0x62   : > { %1814 = vmatprep.mubr.msk.bf16.mxu0 %vm1960_vm1, %v1959_v1  ;;  %v1633_v42 = vcombine.low %v1304_v35, %v2219_v59  ;;  %v1170_v45 = vrot.slane %v1168_v38, 2  ;;  %v1189_v59 = vshll.u32 %v2274_v20, 16 }
  0x64   : > { %v1311_v48 = vrot.slane %v1633_v42, 3  ;;  %v1174_v50 = vor.u32 %v1173_v47, %v1170_v45  ;;  %v1191_v63 = vrot.slane %v1189_v59, 3 }
  0x66   : > { %v1184_v61 = vsel %vm1149_vm7, %v1174_v50, %v1183_v57 }
  0x68   : > { %1797 = vmatmul.mubr.msk.bf16.gmra.mxu1 %vm259_vm3, %v606_v49 }
  0x69   : > { %1815 = vmatmul.mubr.msk.bf16.gmra.mxu0 %vm259_vm3, %v751_v43  ;;  %1800 = vmatprep.mubr.msk.bf16.mxu1 %vm1960_vm1, %v1959_v1 }
  0x6a   : > { %1818 = vmatprep.mubr.msk.bf16.mxu0 %vm1960_vm1, %v1959_v1 }
  0x70   : > { %1801 = vmatmul.mubr.msk.bf16.gmra.mxu1 %vm259_vm3, %v2077_v46  ;;  %v2230_v46 = vld [vmem:[%s2007_s19 + $0x10] sm:$0xff]  }
  0x71   : > { %1819 = vmatmul.mubr.msk.bf16.gmra.mxu0 %vm259_vm3, %v760_v44  ;;  %1828 = vmatprep.mubr.msk.bf16.mxu1 %vm1960_vm1, %v1959_v1  ;;  %v1032_v5 = vrot.slane %v2230_v46, 2  ;;  %v1159_v25 = vshrl.u32 %v2230_v46, 16  ;;  %v1162_v26 = vshll.u32 %v2230_v46, 16  ;;  %v1312_v49 = vrot.slane %v2230_v46, 3 }
  0x72   : > { %1822 = vmatprep.mubr.msk.bf16.mxu0 %vm1960_vm1, %v1959_v1  ;;  %v1316_v46 = vrot.slane %v2261_v16, 3 }
  0x73   : > { %v1033_v8 = vsel %vm877_vm6, %v1031_v2, %v1032_v5  ;;  %v1035_v15 = vsel %vm877_vm6, %v1032_v5, %v1034_v13  ;;  %v1161_v32 = vrot.slane %v1159_v25, 2  ;;  %v1164_v33 = vrot.slane %v1162_v26, 3 }
  0x74   : > { %v1313_v53 = vsel %vm1310_vm8, %v1311_v48, %v1312_v49  ;;  %v1315_v60 = vsel %vm1310_vm8, %v1312_v49, %v1314_v56  ;;  %v1198_v2 = vshll.u32 %v1950_v0, 16  ;;  %v1317_v5 = vsel %vm1310_vm8, %v1314_v56, %v1316_v46 }
  0x75   : > { %v1165_v37 = vor.u32 %v1164_v33, %v1161_v32 }
  0x77   : > { %v1166_v43 = vsel %vm1149_vm7, %v1157_v36, %v1165_v37  ;;  %v1175_v44 = vsel %vm1149_vm7, %v1165_v37, %v1174_v50 }
  0x78   : > { %1829 = vmatmul.mubr.msk.bf16.vlgmr.msra.gmra.mxu1 %vm259_vm3, %v880_v3 }
  0x79   : > { %1823 = vmatmul.mubr.msk.bf16.gmra.mxu0 %vm259_vm3, %v769_v62  ;;  %1871 = vmatpush3.bf16.msra.mxu1 %v1219_v4  ;;  %v1188_v62 = vrot.slane %v1186_v58, 2  ;;  %v1195_v4 = vshrl.u32 %v1950_v0, 16 }
  0x7a   : > { %1850 = vmatprep.mubr.msk.bf16.mxu0 %vm1960_vm1, %v1959_v1  ;;  %1832 = vmatprep.mubr.msk.bf16.mxu1 %vm1960_vm1, %v1959_v1 }
  0x7b   : > { %v1192_v3 = vor.u32 %v1191_v63, %v1188_v62  ;;  %v1197_v7 = vrot.slane %v1195_v4, 2 }
  0x7d   : > { %v1193_v6 = vsel %vm1149_vm7, %v1183_v57, %v1192_v3 }
  0x80   : > { %1833 = vmatmul.mubr.msk.bf16.gmra.mxu1 %vm259_vm3, %v882_v12  ;;  %v1319_v12 = vsel %vm1310_vm8, %v1316_v46, %v1318_v9 }
  0x81   : > { %1851 = vmatmul.mubr.msk.bf16.vlgmr.msra.gmra.mxu0 %vm259_vm3, %v1033_v8  ;;  %1836 = vmatprep.mubr.msk.bf16.mxu1 %vm1960_vm1, %v1959_v1  ;;  %v1200_v8 = vrot.slane %v1198_v2, 3 }
  0x82   : > { %1893 = vmatpush3.bf16.msra.mxu0 %v1338_v10  ;;  %1854 = vmatprep.mubr.msk.bf16.mxu0 %vm1960_vm1, %v1959_v1 }
  0x83   : > { %v1201_v10 = vor.u32 %v1200_v8, %v1197_v7 }
  0x85   : > { %v1202_v13 = vsel %vm1149_vm7, %v1192_v3, %v1201_v10 }
  0x88   : > { %1837 = vmatmul.mubr.msk.bf16.gmra.mxu1 %vm259_vm3, %v884_v17 }
  0x89   : > { %1855 = vmatmul.mubr.msk.bf16.gmra.mxu0 %vm259_vm3, %v1035_v15  ;;  %1840 = vmatprep.mubr.msk.bf16.mxu1 %vm1960_vm1, %v1959_v1  ;;  %v1321_v15 = vsel %vm1310_vm8, %v1318_v9, %v1320_v14 }
  0x8a   : > { %1858 = vmatprep.mubr.msk.bf16.mxu0 %vm1960_vm1, %v1959_v1 }
  0x90   : > { %1841 = vmatmul.mubr.msk.bf16.gmra.mxu1 %vm259_vm3, %v886_v21 }
  0x91   : > { %1859 = vmatmul.mubr.msk.bf16.gmra.mxu0 %vm259_vm3, %v1037_v19  ;;  %1844 = vmatprep.mubr.msk.bf16.mxu1 %vm1960_vm1, %v1959_v1 }
  0x92   : > { %1862 = vmatprep.mubr.msk.bf16.mxu0 %vm1960_vm1, %v1959_v1 }
  0x98   : > { %1845 = vmatmul.mubr.msk.bf16.gmra.mxu1 %vm259_vm3, %v888_v29 }
  0x99   : > { %1863 = vmatmul.mubr.msk.bf16.gmra.mxu0 %vm259_vm3, %v1039_v27  ;;  %1872 = vmatprep.mubr.msk.bf16.mxu1 %vm1960_vm1, %v1959_v1 }
  0x9a   : > { %1866 = vmatprep.mubr.msk.bf16.mxu0 %vm1960_vm1, %v1959_v1 }
  0xa0   : > { %1873 = vmatmul.mubr.msk.bf16.vlgmr.msra.gmra.mxu1 %vm259_vm3, %v1166_v43 }
  0xa1   : > { %1867 = vmatmul.mubr.msk.bf16.gmra.mxu0 %vm259_vm3, %v1041_v41  ;;  %1876 = vmatprep.mubr.msk.bf16.mxu1 %vm1960_vm1, %v1959_v1 }
  0xa2   : > { %1894 = vmatprep.mubr.msk.bf16.mxu0 %vm1960_vm1, %v1959_v1 }
  0xa8   : > { %1877 = vmatmul.mubr.msk.bf16.gmra.mxu1 %vm259_vm3, %v1175_v44 }
  0xa9   : > { %1895 = vmatmul.mubr.msk.bf16.vlgmr.msra.gmra.mxu0 %vm259_vm3, %v1313_v53  ;;  %1880 = vmatprep.mubr.msk.bf16.mxu1 %vm1960_vm1, %v1959_v1 }
  0xaa   : > { %1898 = vmatprep.mubr.msk.bf16.mxu0 %vm1960_vm1, %v1959_v1 }
  0xb0   : > { %1881 = vmatmul.mubr.msk.bf16.gmra.mxu1 %vm259_vm3, %v1184_v61 }
  0xb1   : > { %1899 = vmatmul.mubr.msk.bf16.gmra.mxu0 %vm259_vm3, %v1315_v60  ;;  %1884 = vmatprep.mubr.msk.bf16.mxu1 %vm1960_vm1, %v1959_v1 }
  0xb2   : > { %1902 = vmatprep.mubr.msk.bf16.mxu0 %vm1960_vm1, %v1959_v1 }
  0xb8   : > { %1885 = vmatmul.mubr.msk.bf16.gmra.mxu1 %vm259_vm3, %v1193_v6 }
  0xb9   : > { %1903 = vmatmul.mubr.msk.bf16.gmra.mxu0 %vm259_vm3, %v1317_v5  ;;  %1888 = vmatprep.mubr.msk.bf16.mxu1 %vm1960_vm1, %v1959_v1 }
  0xba   : > { %1906 = vmatprep.mubr.msk.bf16.mxu0 %vm1960_vm1, %v1959_v1 }
  0xc0   : > { %1889 = vmatmul.mubr.msk.bf16.gmra.mxu1 %vm259_vm3, %v1202_v13 }
  0xc1   : > { %1907 = vmatmul.mubr.msk.bf16.gmra.mxu0 %vm259_vm3, %v1319_v12 }
  0xc2   : > { %1910 = vmatprep.mubr.msk.bf16.mxu0 %vm1960_vm1, %v1959_v1 }
  0xc9   : > { %1911 = vmatmul.mubr.msk.bf16.gmra.mxu0 %vm259_vm3, %v1321_v15 }
  0xd8   : > { %v337_v17 = vpop.f32.mrf.mxu1 }
  0xd9   : > { %v313_v16 = vpop.f32.mrf.mxu0 }
  0xda   : > { %v1732_v11 = vpop.f32.mrf.mxu1 }
  0xdb   : > { %v1720_v18 = vpop.f32.mrf.mxu0 }
  0xdc   : > { %v340_v20 = vpop.f32.mrf.mxu1 }
  0xdd   : > { %v316_v19 = vpop.f32.mrf.mxu0 }
  0xde   : > { %v1733_v22 = vpop.f32.mrf.mxu1 }
  0xdf   : > { %v1721_v21 = vpop.f32.mrf.mxu0 }
  0xe0   : > { %v345_v39 = vpop.f32.mrf.mxu1 }
  0xe1   : > { %v321_v23 = vpop.f32.mrf.mxu0 }
  0xe2   : > { %v1736_v25 = vpop.f32.mrf.mxu1 }
  0xe3   : > { %v1724_v24 = vpop.f32.mrf.mxu0 }
  0xe4   : > { %v348_v26 = vpop.f32.mrf.mxu1 }
  0xe5   : > { %v324_v1 = vpop.f32.mrf.mxu0 }
  0xe6   : > { %v1737_v28 = vpop.f32.mrf.mxu1 }
  0xe7   : > { %v1725_v27 = vpop.f32.mrf.mxu0 }
  0xe8   : > { %v399_v30 = vpop.f32.mrf.mxu1 }
  0xe9   : > { %v329_v29 = vpop.f32.mrf.mxu0  ;;  %v400_v32 = vadd.f32 %v399_v30, %v313_v16 }
  0xea   : > { %v1742_v33 = vpop.f32.mrf.mxu1 }
  0xeb   : > { %v1728_v31 = vpop.f32.mrf.mxu0 }
  0xec   : > { %v402_v35 = vpop.f32.mrf.mxu1 }
  0xed   : > { %v332_v34 = vpop.f32.mrf.mxu0  ;;  %v403_v37 = vadd.f32 %v402_v35, %v316_v19 }
  0xee   : > { %v1743_v38 = vpop.f32.mrf.mxu1 }
  0xef   : > { %v1729_v36 = vpop.f32.mrf.mxu0 }
  0xf0   : > { %v407_v42 = vpop.f32.mrf.mxu1 }
  0xf1   : > { %v508_v40 = vpop.f32.mrf.mxu0  ;;  %v408_v45 = vadd.f32 %v407_v42, %v321_v23 }
  0xf2   : > { %v547_v41 = vadd.f32 %v508_v40, %v400_v32  ;;  %v1746_v47 = vpop.f32.mrf.mxu1 }
  0xf3   : > { %v1764_v43 = vpop.f32.mrf.mxu0 }
  0xf4   : > { %v410_v50 = vpop.f32.mrf.mxu1 }
  0xf5   : > { %v511_v48 = vpop.f32.mrf.mxu0  ;;  %v411_v52 = vadd.f32 %v410_v50, %v324_v1 }
  0xf6   : > { %v548_v49 = vadd.f32 %v511_v48, %v403_v37  ;;  %v1747_v53 = vpop.f32.mrf.mxu1 }
  0xf7   : > { %v1765_v51 = vpop.f32.mrf.mxu0 }
  0xf8   : > { %v415_v55 = vpop.f32.mrf.mxu1 }
  0xf9   : > { %v516_v44 = vpop.f32.mrf.mxu0  ;;  %v416_v57 = vadd.f32 %v415_v55, %v329_v29 }
  0xfa   : > { %v549_v54 = vadd.f32 %v516_v44, %v408_v45  ;;  %v1750_v58 = vpop.f32.mrf.mxu1 }
  0xfb   : > { %v1768_v56 = vpop.f32.mrf.mxu0 }
  0xfc   : > { %v418_v61 = vpop.f32.mrf.mxu1 }
  0xfd   : > { %v519_v59 = vpop.f32.mrf.mxu0  ;;  %v419_v63 = vadd.f32 %v418_v61, %v332_v34 }
  0xfe   : > { %v550_v60 = vadd.f32 %v519_v59, %v411_v52  ;;  %v1751_v0 = vpop.f32.mrf.mxu1 }
  0xff   : > { %v1769_v62 = vpop.f32.mrf.mxu0 }
 0x100   : > { %v423_v4 = vpop.f32.mrf.mxu1 }
 0x101   : > { %v524_v46 = vpop.f32.mrf.mxu0  ;;  %v424_v5 = vadd.f32 %v423_v4, %v337_v17 }
 0x102   : > { %v551_v3 = vadd.f32 %v524_v46, %v416_v57  ;;  %v1754_v6 = vpop.f32.mrf.mxu1 }
 0x103   : > { %v1772_v2 = vpop.f32.mrf.mxu0 }
 0x104   : > { %v426_v9 = vpop.f32.mrf.mxu1 }
 0x105   : > { %v527_v7 = vpop.f32.mrf.mxu0  ;;  %v427_v12 = vadd.f32 %v426_v9, %v340_v20 }
 0x106   : > { %v552_v8 = vadd.f32 %v527_v7, %v419_v63  ;;  %v1755_v13 = vpop.f32.mrf.mxu1 }
 0x107   : > { %v1773_v10 = vpop.f32.mrf.mxu0 }
 0x108   : > { %v431_v16 = vpop.f32.mrf.mxu1 }
 0x109   : > { %v532_v14 = vpop.f32.mrf.mxu0  ;;  %v432_v11 = vadd.f32 %v431_v16, %v345_v39 }
 0x10a   : > { %v553_v15 = vadd.f32 %v532_v14, %v424_v5  ;;  %v1758_v19 = vpop.f32.mrf.mxu1 }
 0x10b   : > { %v1776_v18 = vpop.f32.mrf.mxu0 }
 0x10c   : > { %v434_v23 = vpop.f32.mrf.mxu1 }
 0x10d   : > { %v535_v21 = vpop.f32.mrf.mxu0  ;;  %v435_v25 = vadd.f32 %v434_v23, %v348_v26 }
 0x10e   : > { %v554_v22 = vadd.f32 %v535_v21, %v427_v12  ;;  %v1759_v1 = vpop.f32.mrf.mxu1 }
 0x10f   : > { %v1777_v24 = vpop.f32.mrf.mxu0 }
 0x110   : > { %v661_v28 = vpop.f32.mrf.mxu1 }
 0x111   : > { %v540_v17 = vpop.f32.mrf.mxu0  ;;  %v700_v30 = vadd.f32 %v661_v28, %v547_v41 }
 0x112   : > { %v555_v27 = vadd.f32 %v540_v17, %v432_v11  ;;  %v1786_v31 = vpop.f32.mrf.mxu1 }
 0x113   : > { %v1780_v29 = vpop.f32.mrf.mxu0 }
 0x114   : > { %v664_v33 = vpop.f32.mrf.mxu1 }
 0x115   : > { %v543_v20 = vpop.f32.mrf.mxu0  ;;  %v701_v35 = vadd.f32 %v664_v33, %v548_v49 }
 0x116   : > { %v556_v32 = vadd.f32 %v543_v20, %v435_v25  ;;  %v1787_v36 = vpop.f32.mrf.mxu1 }
 0x117   : > { %v1781_v34 = vpop.f32.mrf.mxu0 }
 0x118   : > { %v669_v38 = vpop.f32.mrf.mxu1 }
 0x119   : > { %v822_v39 = vpop.f32.mrf.mxu0  ;;  %v702_v42 = vadd.f32 %v669_v38, %v549_v54 }
 0x11a   : > { %v2349_v37 = vadd.f32 %v822_v39, %v700_v30  ;;  %v1790_v26 = vpop.f32.mrf.mxu1 }
 0x11b   : > { %v1808_v40 = vpop.f32.mrf.mxu0 }
 0x11c   : > { %v672_v47 = vpop.f32.mrf.mxu1 }
 0x11d   : > { %v825_v43 = vpop.f32.mrf.mxu0  ;;  %v703_v41 = vadd.f32 %v672_v47, %v550_v60 }
 0x11e   : > { %v2351_v45 = vadd.f32 %v825_v43, %v701_v35  ;;  %v1791_v50 = vpop.f32.mrf.mxu1 }
 0x11f   : > { %v1809_v48 = vpop.f32.mrf.mxu0 }
 0x120   : > { %v677_v53 = vpop.f32.mrf.mxu1 }
 0x121   : > { %v830_v51 = vpop.f32.mrf.mxu0  ;;  %v704_v44 = vadd.f32 %v677_v53, %v551_v3 }
 0x122   : > { %v2353_v52 = vadd.f32 %v830_v51, %v702_v42  ;;  %v1794_v55 = vpop.f32.mrf.mxu1 }
 0x123   : > { %v1812_v49 = vpop.f32.mrf.mxu0 }
 0x124   : > { %v680_v58 = vpop.f32.mrf.mxu1 }
 0x125   : > { %v833_v56 = vpop.f32.mrf.mxu0  ;;  %v705_v59 = vadd.f32 %v680_v58, %v552_v8 }
 0x126   : > { %v2355_v57 = vadd.f32 %v833_v56, %v703_v41  ;;  %v1795_v61 = vpop.f32.mrf.mxu1 }
 0x127   : > { %v1813_v54 = vpop.f32.mrf.mxu0 }
 0x128   : > { %v685_v0 = vpop.f32.mrf.mxu1 }
 0x129   : > { %v838_v62 = vpop.f32.mrf.mxu0  ;;  %v706_v46 = vadd.f32 %v685_v0, %v553_v15 }
 0x12a   : > { %v2357_v63 = vadd.f32 %v838_v62, %v704_v44  ;;  %v1798_v4 = vpop.f32.mrf.mxu1 }
 0x12b   : > { %v1816_v60 = vpop.f32.mrf.mxu0 }
 0x12c   : > { %v688_v6 = vpop.f32.mrf.mxu1 }
 0x12d   : > { %v841_v2 = vpop.f32.mrf.mxu0  ;;  %v707_v7 = vadd.f32 %v688_v6, %v554_v22 }
 0x12e   : > { %v2359_v5 = vadd.f32 %v841_v2, %v705_v59  ;;  %v1799_v9 = vpop.f32.mrf.mxu1 }
 0x12f   : > { %v1817_v3 = vpop.f32.mrf.mxu0 }
 0x130   : > { %v693_v13 = vpop.f32.mrf.mxu1 }
 0x131   : > { %v846_v10 = vpop.f32.mrf.mxu0  ;;  %v708_v14 = vadd.f32 %v693_v13, %v555_v27 }
 0x132   : > { %v2361_v12 = vadd.f32 %v846_v10, %v706_v46  ;;  %v1802_v16 = vpop.f32.mrf.mxu1 }
 0x133   : > { %v1820_v8 = vpop.f32.mrf.mxu0 }
 0x134   : > { %v696_v19 = vpop.f32.mrf.mxu1 }
 0x135   : > { %v849_v18 = vpop.f32.mrf.mxu0  ;;  %v709_v21 = vadd.f32 %v696_v19, %v556_v32 }
 0x136   : > { %v2363_v11 = vadd.f32 %v849_v18, %v707_v7  ;;  %v1803_v23 = vpop.f32.mrf.mxu1 }
 0x137   : > { %v1821_v15 = vpop.f32.mrf.mxu0  ;;  %v2398_v23 = vld [vmem:[%s2461_s2] ss:$0 sm:$0xff] }
 0x138   : > { %v941_v1 = vpop.f32.mrf.mxu1 }
 0x139   : > { %v854_v24 = vpop.f32.mrf.mxu0  ;;  %v980_v9 = vadd.f32 %v941_v1, %v2349_v37 }
 0x13a   : > { %v2365_v25 = vadd.f32 %v854_v24, %v708_v14  ;;  %v1830_v17 = vpop.f32.mrf.mxu1 }
 0x13b   : > { %v1824_v22 = vpop.f32.mrf.mxu0 }
 0x13c   : > { %v944_v30 = vpop.f32.mrf.mxu1 }
 0x13d   : > { %v857_v28 = vpop.f32.mrf.mxu0  ;;  %v981_v18 = vadd.f32 %v944_v30, %v2351_v45 }
 0x13e   : > { %v2367_v29 = vadd.f32 %v857_v28, %v709_v21  ;;  %v1831_v27 = vpop.f32.mrf.mxu1 }
 0x13f   : > { %v1825_v31 = vpop.f32.mrf.mxu0 }
 0x140   : > { %v949_v33 = vpop.f32.mrf.mxu1 }
 0x141   : > { %v1094_v20 = vpop.f32.mrf.mxu0  ;;  %v982_v1 = vadd.f32 %v949_v33, %v2353_v52 }
 0x142   : > { %v1834_v35 = vpop.f32.mrf.mxu1  ;;  %v1133_v8 = vadd.f32 %v1094_v20, %v980_v9 }
 0x143   : > { %v1852_v34 = vpop.f32.mrf.mxu0 }
 0x144   : > { %v952_v39 = vpop.f32.mrf.mxu1 }
 0x145   : > { %v1097_v36 = vpop.f32.mrf.mxu0 }
 0x146   : > { %v1835_v38 = vpop.f32.mrf.mxu1  ;;  %v1134_v24 = vadd.f32 %v1097_v36, %v981_v18 }
 0x147   : > { %v1853_v32 = vpop.f32.mrf.mxu0 }
 0x148   : > { %v2369_v42 = vpop.f32.mrf.mxu1  ;;  %v983_v32 = vadd.f32 %v952_v39, %v2355_v57 }
 0x149   : > { %v1102_v40 = vpop.f32.mrf.mxu0 }
 0x14a   : > { %v1838_v43 = vpop.f32.mrf.mxu1  ;;  %v1135_v30 = vadd.f32 %v1102_v40, %v982_v1 }
 0x14b   : > { %v1856_v26 = vpop.f32.mrf.mxu0 }
 0x14c   : > { %v2371_v48 = vpop.f32.mrf.mxu1 }
 0x14d   : > { %v1105_v47 = vpop.f32.mrf.mxu0  ;;  %v985_v9 = vadd.f32 %v2371_v48, %v2359_v5 }
 0x14e   : > { %v1839_v50 = vpop.f32.mrf.mxu1  ;;  %v1136_v43 = vadd.f32 %v1105_v47, %v983_v32 }
 0x14f   : > { %v1857_v41 = vpop.f32.mrf.mxu0 }
 0x150   : > { %v2375_v53 = vpop.f32.mrf.mxu1 }
 0x151   : > { %v2373_v51 = vpop.f32.mrf.mxu0 }
 0x152   : > { %v1842_v44 = vpop.f32.mrf.mxu1 }
 0x153   : > { %v1860_v49 = vpop.f32.mrf.mxu0 }
 0x154   : > { %v2379_v56 = vpop.f32.mrf.mxu1 }
 0x155   : > { %v2377_v55 = vpop.f32.mrf.mxu0 }
 0x156   : > { %v1843_v54 = vpop.f32.mrf.mxu1 }
 0x157   : > { %v1861_v58 = vpop.f32.mrf.mxu0 }
 0x158   : > { %v2383_v61 = vpop.f32.mrf.mxu1  ;;  %v984_v58 = vadd.f32 %v2369_v42, %v2357_v63 }
 0x159   : > { %v2381_v59 = vpop.f32.mrf.mxu0 }
 0x15a   : > { %v1846_v0 = vpop.f32.mrf.mxu1 }
 0x15b   : > { %v1864_v62 = vpop.f32.mrf.mxu0 }
 0x15c   : > { %v2387_v46 = vpop.f32.mrf.mxu1 }
 0x15d   : > { %v2385_v60 = vpop.f32.mrf.mxu0 }
 0x15e   : > { %v1847_v2 = vpop.f32.mrf.mxu1 }
 0x15f   : > { %v1865_v4 = vpop.f32.mrf.mxu0 }
 0x160   : > { %v1255_v3 = vpop.f32.mrf.mxu1  ;;  %v1137_v4 = vadd.f32 %v2373_v51, %v984_v58 }
 0x161   : > { %v2389_v6 = vpop.f32.mrf.mxu0  ;;  %v1294_v19 = vadd.f32 %v1255_v3, %v1133_v8 }
 0x162   : > { %v1874_v10 = vpop.f32.mrf.mxu1 }
 0x163   : > { %v1868_v7 = vpop.f32.mrf.mxu0 }
 0x164   : > { %v1258_v14 = vpop.f32.mrf.mxu1 }
 0x165   : > { %v2392_v13 = vpop.f32.mrf.mxu0  ;;  %v1295_v28 = vadd.f32 %v1258_v14, %v1134_v24 }
 0x166   : > { %v1875_v15 = vpop.f32.mrf.mxu1 }
 0x167   : > { %v1869_v16 = vpop.f32.mrf.mxu0 }
 0x168   : > { %v1263_v17 = vpop.f32.mrf.mxu1  ;;  %v1138_v16 = vadd.f32 %v2377_v55, %v985_v9 }
 0x169   : > { %v1374_v21 = vpop.f32.mrf.mxu0  ;;  %v1296_v52 = vadd.f32 %v1263_v17, %v1135_v30 }
 0x16a   : > { %v1413_v22 = vadd.f32 %v1374_v21, %v1294_v19  ;;  %v1878_v27 = vpop.f32.mrf.mxu1  ;;  %v986_v21 = vadd.f32 %v2375_v53, %v2361_v12 }
 0x16b   : > { %v1896_v37 = vpop.f32.mrf.mxu0  ;;  %v987_v27 = vadd.f32 %v2379_v56, %v2363_v11 }
 0x16c   : > { %v1430_v31 = vadd.f32 %v2398_v23, %v1413_v22  ;;  %v1266_v35 = vpop.f32.mrf.mxu1  ;;  %v1139_v37 = vadd.f32 %v2381_v59, %v986_v21 }
 0x16d   : > { %v1377_v45 = vpop.f32.mrf.mxu0  ;;  %v1297_v54 = vadd.f32 %v1266_v35, %v1136_v43 }
 0x16e   : > { %v1440_v20 = vmax.f32 %v1430_v31, 0.0  ;;  %v1414_v34 = vadd.f32 %v1377_v45, %v1295_v28  ;;  %v1879_v26 = vpop.f32.mrf.mxu1 }
 0x16f   : > { %v1897_v36 = vpop.f32.mrf.mxu0 }
 0x170   : > { %v1652_v33 = vpack.c.bf16 %v1440_v20, %v1440_v20  ;;  %v1431_v38 = vadd.f32 %v2398_v23, %v1414_v34  ;;  %v1271_v49 = vpop.f32.mrf.mxu1  ;;  %v1140_v34 = vadd.f32 %v2385_v60, %v987_v27 }
 0x171   : > { %v1382_v40 = vpop.f32.mrf.mxu0  ;;  %v1298_v10 = vadd.f32 %v1271_v49, %v1137_v4  ;;  %v989_v49 = vadd.f32 %v2387_v46, %v2367_v29 }
 0x172   : > { %1491 = vst.msk [vmem:[%s2406_s16] sm:$0xf] %vm1490_vm9, %v1652_v33  ;;  %v1441_v41 = vmax.f32 %v1431_v38, 0.0  ;;  %v1415_v50 = vadd.f32 %v1382_v40, %v1296_v52  ;;  %v1882_v39 = vpop.f32.mrf.mxu1  ;;  %v988_v52 = vadd.f32 %v2383_v61, %v2365_v25 }
 0x173   : > { %v1900_v44 = vpop.f32.mrf.mxu0 }
 0x174   : > { %v1653_v62 = vpack.c.bf16 %v1441_v41, %v1441_v41  ;;  %v1432_v57 = vadd.f32 %v2398_v23, %v1415_v50  ;;  %v1274_v3 = vpop.f32.mrf.mxu1  ;;  %v1141_v40 = vadd.f32 %v2389_v6, %v988_v52 }
 0x175   : > { %v1385_v0 = vpop.f32.mrf.mxu0  ;;  %v1299_v24 = vadd.f32 %v1274_v3, %v1138_v16 }
 0x176   : > { %1492 = vst.msk [vmem:[%s2406_s16 + $0x4] sm:$0xf] %vm1490_vm9, %v1653_v62  ;;  %v1442_v47 = vmax.f32 %v1432_v57, 0.0  ;;  %v1416_v2 = vadd.f32 %v1385_v0, %v1297_v54  ;;  %v1883_v8 = vpop.f32.mrf.mxu1  ;;  %v1142_v62 = vadd.f32 %v2392_v13, %v989_v49 }
 0x177   : > { %v1901_v7 = vpop.f32.mrf.mxu0 }
 0x178   : > { %v1654_v63 = vpack.c.bf16 %v1442_v47, %v1442_v47  ;;  %v1433_v42 = vadd.f32 %v2398_v23, %v1416_v2  ;;  %v1279_v19 = vpop.f32.mrf.mxu1 }
 0x179   : > { %v1390_v14 = vpop.f32.mrf.mxu0  ;;  %v1300_v45 = vadd.f32 %v1279_v19, %v1139_v37 }
 0x17a   : > { %1493 = vst.msk [vmem:[%s2406_s16 + $0x8] sm:$0xf] %vm1490_vm9, %v1654_v63  ;;  %v1443_v51 = vmax.f32 %v1433_v42, 0.0  ;;  %v1417_v18 = vadd.f32 %v1390_v14, %v1298_v10  ;;  %v1886_v22 = vpop.f32.mrf.mxu1 }
 0x17b   : > { %v1904_v15 = vpop.f32.mrf.mxu0 }
 0x17c   : > { %v1655_v5 = vpack.c.bf16 %v1443_v51, %v1443_v51  ;;  %v1434_v48 = vadd.f32 %v2398_v23, %v1417_v18  ;;  %v1282_v28 = vpop.f32.mrf.mxu1 }
 0x17d   : > { %v1393_v17 = vpop.f32.mrf.mxu0  ;;  %v1301_v33 = vadd.f32 %v1282_v28, %v1140_v34 }
 0x17e   : > { %1494 = vst.msk [vmem:[%s2406_s16 + $0xc] sm:$0xf] %vm1490_vm9, %v1655_v5  ;;  %v1444_v55 = vmax.f32 %v1434_v48, 0.0  ;;  %v1418_v1 = vadd.f32 %v1393_v17, %v1299_v24  ;;  %v1887_v30 = vpop.f32.mrf.mxu1 }
 0x17f   : > { %v1905_v31 = vpop.f32.mrf.mxu0 }
 0x180   : > { %v1656_v12 = vpack.c.bf16 %v1444_v55, %v1444_v55  ;;  %v1435_v53 = vadd.f32 %v2398_v23, %v1418_v1  ;;  %v1287_v36 = vpop.f32.mrf.mxu1 }
 0x181   : > { %v1398_v20 = vpop.f32.mrf.mxu0  ;;  %v1302_v25 = vadd.f32 %v1287_v36, %v1141_v40 }
 0x182   : > { %1495 = vst.msk [vmem:[%s2406_s16 + $0x10] sm:$0xf] %vm1490_vm9, %v1656_v12  ;;  %v1445_v59 = vmax.f32 %v1435_v53, 0.0  ;;  %v1419_v35 = vadd.f32 %v1398_v20, %v1300_v45  ;;  %v1890_v38 = vpop.f32.mrf.mxu1 }
 0x183   : > { %v1908_v32 = vpop.f32.mrf.mxu0 }
 0x184   : > { %v1657_v11 = vpack.c.bf16 %v1445_v59, %v1445_v59  ;;  %v1436_v56 = vadd.f32 %v2398_v23, %v1419_v35  ;;  %v1290_v41 = vpop.f32.mrf.mxu1 }
 0x185   : > { %v1401_v26 = vpop.f32.mrf.mxu0  ;;  %v1303_v0 = vadd.f32 %v1290_v41, %v1142_v62 }
 0x186   : > { %1496 = vst.msk [vmem:[%s2406_s16 + $0x14] sm:$0xf] %vm1490_vm9, %v1657_v11  ;;  %v1446_v60 = vmax.f32 %v1436_v56, 0.0  ;;  %v1420_v43 = vadd.f32 %v1401_v26, %v1301_v33  ;;  %v1891_v58 = vpop.f32.mrf.mxu1 }
 0x187   : > { %v1909_v50 = vpop.f32.mrf.mxu0 }
 0x188   : > { %v1658_v61 = vpack.c.bf16 %v1446_v60, %v1446_v60  ;;  %v1437_v44 = vadd.f32 %v2398_v23, %v1420_v43 }
 0x189   : > { %v1406_v54 = vpop.f32.mrf.mxu0 }
 0x18a   : > { %1497 = vst.msk [vmem:[%s2406_s16 + $0x18] sm:$0xf] %vm1490_vm9, %v1658_v61  ;;  %v1447_v6 = vmax.f32 %v1437_v44, 0.0  ;;  %v1421_v57 = vadd.f32 %v1406_v54, %v1302_v25 }
 0x18b   : > { %v1912_v39 = vpop.f32.mrf.mxu0 }
 0x18c   : > { %v1659_v4 = vpack.c.bf16 %v1447_v6, %v1447_v6  ;;  %v1438_v47 = vadd.f32 %v2398_v23, %v1421_v57 }
 0x18d   : > { %v1409_v29 = vpop.f32.mrf.mxu0 }
 0x18e   : > { %1498 = vst.msk [vmem:[%s2406_s16 + $0x1c] sm:$0xf] %vm1490_vm9, %v1659_v4  ;;  %v1448_v46 = vmax.f32 %v1438_v47, 0.0  ;;  %v1422_v2 = vadd.f32 %v1409_v29, %v1303_v0 }
 0x18f   : > { %v1913_v3 = vpop.f32.mrf.mxu0 }
 0x190   : > { %v1660_v7 = vpack.c.bf16 %v1448_v46, %v1448_v46  ;;  %v1439_v9 = vadd.f32 %v2398_v23, %v1422_v2 }
 0x192   : > { %1499 = vst.msk [vmem:[%s2406_s16 + $0x20] sm:$0xf] %vm1490_vm9, %v1660_v7  ;;  %v1449_v13 = vmax.f32 %v1439_v9, 0.0 }
 0x194   : > { %v1661_v10 = vpack.c.bf16 %v1449_v13, %v1449_v13 }
 0x196   : > { %1500 = vst.msk [vmem:[%s2406_s16 + $0x24] sm:$0xf] %vm1490_vm9, %v1661_v10 }
 0x197 PF: > { %s13_s12 = sadd.s32 1, %s1957_s12  }
 0x198   : > { %p10_p4 = scmp.ge.s32.totalorder %s13_s12, 4  }
 0x19a   :  { %12 = sbr.rel (!%p10_p4) target bundleno = 1 (0x1), region = 70 }

// kernel: _lambda_.18
= control target key start
LH: loop header
LB: loop body
LE: loop exit
PB: predicated region body
PF: predicated region fallthrough
CT: control target
= control target key end

     0   :  { %s4874_s12 = smov 0   ;;  %s6298_s0 = inlined_call_operand.vmem [shape: bf16[2,326,8], index: 0, kind: input, shape index: {}]   ;;  %s6299_s1 = inlined_call_operand.vmem [shape: bf16[9,8,8], index: 1, kind: input, shape index: {}]   ;;  %s6300_s2 = inlined_call_operand.vmem [shape: f32[1,8], index: 2, kind: input, shape index: {}]   ;;  %s6301_s3 = inlined_call_operand.vmem [shape: bf16[2,288,8], index: 3, kind: output, shape index: {}]  }
   0x1 LB: > { %s3935_s13 = sadd.s32 4294967295, %s4852_s12   ;;  %p3939_p0 = scmp.ge.s32.totalorder %s4852_s12, 1  ;;  %s4852_s12 = sphi %s4874_s12, %s13_s12  }
   0x2   : > { %p137_p1 = scmp.lt.s32.totalorder %s4852_s12, 3 }
   0x4   : > { %p138_p2 = pnand %p3939_p0, %p137_p1 }
   0x6   : > { %141 = sbr.rel (%p138_p2) target bundleno = 556 (0x22c), region = 32 }
   0xb   : > { %v3942_v0 = vld [vmem:[%s6299_s1 + $0x4] sm:$0xf]  ;;  %vm509_vm0 = vcmask 1043456   ;;  %p161_p3 = scmp.lt.s32.totalorder %s3935_s13, 1  ;;  %v3998_v2 = vld [vmem:[%s6299_s1 + $0x8] sm:$0xf] }
   0xc   : > { %4764 = vmatprep.subr.msk.bf16.mxu0 %vm509_vm0, %v3942_v0  ;;  %4765 = vmatprep.subr.msk.bf16.mxu1 %vm509_vm0, %v3942_v0  ;;  %v511_v1 = vsel %vm509_vm0, %v3942_v0, 0  ;;  %v208_v3 = vld [vmem:[%s6299_s1] sm:$0xf]  ;;  %vm305_vm1 = vsmask.f32 7424  ;;  %vm454_vm2 = vcmask 64512  }
   0xd   : > { %4421 = vmatpush3.bf16.msra.mxu0 %v511_v1  ;;  %4763 = vmatpush3.bf16.msra.mxu1 %v511_v1  ;;  %s6341_s13 = smov (!%p161_p3, %s3935_s13), 1  ;;  %v1005_v8 = vsel %vm509_vm0, %v3998_v2, 0  ;;  %v727_v16 = vsel %vm509_vm0, %v208_v3, 0  ;;  %v4947_v33 = vld [vmem:[%s6299_s1 + $0x10] sm:$0xf]  ;;  %vm912_vm3 = vcmask 1046528  }
   0xe   : > { %4767 = vmatprep.subr.msk.bf16.mxu0 %vm509_vm0, %v3998_v2  ;;  %4766 = vmatprep.subr.msk.bf16.mxu1 %vm509_vm0, %v208_v3  ;;  %s4774_s20 = smul.u32 164, %s6341_s13  ;;  %v4967_v45 = vld [vmem:[%s6299_s1 + $0xc] sm:$0xf]  ;;  %vm2112_vm4 = vcmask 1045504   ;;  %vm1665_vm5 = vsmask.f32 6400 }
   0xf   : > { %vm3312_vm6 = vcmask 1044480   ;;  %vm2865_vm7 = vsmask.f32 5376  ;;  %s4775_s11 = smul.u32 144, %s6341_s13  ;;  %vm3843_vm8 = vcmask 60416  }
  0x10   : > { %s4902_s23 = scalar_lea.vmem %s6298_s0, %s4774_s20 }
  0x11   : > { %v172_v4 = vld [vmem:[%s4902_s23] sm:$0xf]  ;;  %v4906_v5 = vld [vmem:[%s4902_s23 + $0x4] sm:$0xf]  ;;  %v4912_v7 = vld [vmem:[%s4902_s23 + $0x8] sm:$0xff]   ;;  %s6155_s16 = scalar_lea.vmem %s6301_s3, %s4775_s11 }
  0x12   : > { %v4909_v6 = vcombine.low %v172_v4, %v4906_v5  ;;  %v314_v11 = vshll.u32 %v4912_v7, 16  ;;  %v318_v12 = vshrl.u32 %v4912_v7, 16  ;;  %v4920_v13 = vld [vmem:[%s4902_s23 + $0x50] sm:$0xff]   ;;  %v4923_v14 = vld [vmem:[%s4902_s23 + $0x58] sm:$0xff]   ;;  %v4935_v24 = vld [vmem:[%s4902_s23 + $0x60] sm:$0xff]  }
  0x13   : > { %v4926_v15 = vld [vmem:[%s4902_s23 + $0x10] sm:$0xff]   ;;  %v386_v19 = vshll.u32 %v4920_v13, 16  ;;  %v390_v20 = vshrl.u32 %v4920_v13, 16  ;;  %v394_v21 = vshll.u32 %v4923_v14, 16  ;;  %v398_v22 = vshrl.u32 %v4923_v14, 16  ;;  %v4940_v28 = vld [vmem:[%s4902_s23 + $0x18] sm:$0xff]  }
  0x14   : > { %v307_v9 = vshrl.u32 %v4909_v6, 16  ;;  %v309_v10 = vshll.u32 %v4909_v6, 16  ;;  %v316_v18 = vrot.slane %v314_v11, 1  ;;  %v322_v23 = vshll.u32 %v4926_v15, 16  ;;  %v4953_v37 = vld [vmem:[%s4902_s23 + $0x68] sm:$0xff]   ;;  %v4957_v39 = vld [vmem:[%s4902_s23 + $0x20] sm:$0xff]  }
  0x15   : > { %v4937_v27 = vrot.slane %v386_v19, 1  ;;  %v396_v29 = vrot.slane %v394_v21, 1  ;;  %v402_v31 = vshll.u32 %v4935_v24, 16  ;;  %v326_v32 = vshrl.u32 %v4926_v15, 16  ;;  %v4962_v44 = vld [vmem:[%s4902_s23 + $0x70] sm:$0xff]   ;;  %v4974_v50 = vld [vmem:[%s4902_s23 + $0x28] sm:$0xff]  }
  0x16   : > { %v311_v17 = vrot.slane %v309_v10, 1  ;;  %v320_v26 = vor.u32 %v318_v12, %v316_v18  ;;  %v324_v30 = vrot.slane %v322_v23, 1  ;;  %v330_v36 = vshll.u32 %v4940_v28, 16  ;;  %v4989_v62 = vld [vmem:[%s4902_s23 + $0x78] sm:$0xff]   ;;  %v4999_v10 = vld [vmem:[%s4902_s23 + $0x30] sm:$0xff]   ;;  %v5002_v11 = vld [vmem:[%s4902_s23 + $0x80] sm:$0xff]  }
  0x17   : > { %v392_v35 = vor.u32 %v390_v20, %v4937_v27  ;;  %v406_v38 = vshrl.u32 %v4935_v24, 16  ;;  %v400_v40 = vor.u32 %v398_v22, %v396_v29  ;;  %v404_v42 = vrot.slane %v402_v31, 1  ;;  %v5011_v23 = vld [vmem:[%s4902_s23 + $0x38] sm:$0xff]  }
  0x18   : > { %v312_v25 = vor.u32 %v311_v17, %v307_v9  ;;  %v325_v41 = vsel %vm305_vm1, %v320_v26, %v324_v30  ;;  %v328_v43 = vor.u32 %v326_v32, %v324_v30  ;;  %v332_v47 = vrot.slane %v330_v36, 1  ;;  %v5016_v26 = vld [vmem:[%s4902_s23 + $0x88] sm:$0xff]  }
  0x19   : > { %v397_v46 = vsel %vm305_vm1, %v392_v35, %v396_v29  ;;  %v410_v48 = vshll.u32 %v4953_v37, 16  ;;  %v334_v49 = vshrl.u32 %v4940_v28, 16  ;;  %v405_v51 = vsel %vm305_vm1, %v400_v40, %v404_v42  ;;  %v5028_v40 = vld [vmem:[%s4902_s23 + $0x48] sm:$0xff]  }
  0x1a   : > { %v317_v34 = vsel %vm305_vm1, %v312_v25, %v316_v18  ;;  %4442 = vmatprep.mubr.msk.bf16.mxu1 %vm454_vm2, %v397_v46  ;;  %v408_v52 = vor.u32 %v406_v38, %v404_v42  ;;  %v338_v53 = vshll.u32 %v4957_v39, 16  ;;  %v414_v54 = vshrl.u32 %v4953_v37, 16  ;;  %v5025_v38 = vld [vmem:[%s4902_s23 + $0x40] sm:$0xff]  }
  0x1b   : > { %4422 = vmatprep.mubr.msk.bf16.mxu0 %vm454_vm2, %v317_v34  ;;  %4443 = vmatmul.mubr.msk.bf16.vlgmr.msra.gmra.mxu1 %vm454_vm2, %v405_v51  ;;  %v333_v55 = vsel %vm305_vm1, %v328_v43, %v332_v47  ;;  %v412_v56 = vrot.slane %v410_v48, 1  ;;  %v336_v57 = vor.u32 %v334_v49, %v332_v47  ;;  %v418_v58 = vshll.u32 %v4962_v44, 16  ;;  %v4801_v43 = vld [vmem:[%s4902_s23 + $0x90] ss:$0 sps:$4 sm:$0x11]  }
  0x1c   : > { %4423 = vmatmul.mubr.msk.bf16.vlgmr.msra.gmra.mxu0 %vm454_vm2, %v325_v41  ;;  %4459 = vmatpush3.bf16.msra.mxu1 %v727_v16  ;;  %v340_v59 = vrot.slane %v338_v53, 1  ;;  %v342_v60 = vshrl.u32 %v4957_v39, 16  ;;  %v346_v61 = vshll.u32 %v4974_v50, 16  ;;  %v422_v2 = vshrl.u32 %v4962_v44, 16 }
  0x1d   : > { %4497 = vmatpush3.bf16.msra.mxu0 %v1005_v8  ;;  %4426 = vmatprep.mubr.msk.bf16.mxu0 %vm454_vm2, %v333_v55  ;;  %v413_v63 = vsel %vm305_vm1, %v408_v52, %v412_v56  ;;  %v416_v0 = vor.u32 %v414_v54, %v412_v56  ;;  %v420_v1 = vrot.slane %v418_v58, 1  ;;  %v426_v9 = vshll.u32 %v4989_v62, 16 }
  0x1e   : > { %4769 = vmatprep.subr.msk.bf16.mxu0 %vm509_vm0, %v4947_v33  ;;  %4768 = vmatprep.subr.msk.bf16.mxu1 %vm509_vm0, %v4967_v45  ;;  %v341_v3 = vsel %vm305_vm1, %v336_v57, %v340_v59  ;;  %v344_v4 = vor.u32 %v342_v60, %v340_v59  ;;  %v348_v8 = vrot.slane %v346_v61, 1  ;;  %v350_v17 = vshrl.u32 %v4974_v50, 16 }
  0x1f   : > { %4446 = vmatprep.mubr.msk.bf16.mxu1 %vm454_vm2, %v413_v63  ;;  %v421_v12 = vsel %vm305_vm1, %v416_v0, %v420_v1  ;;  %v424_v16 = vor.u32 %v422_v2, %v420_v1  ;;  %v430_v18 = vshrl.u32 %v4989_v62, 16  ;;  %v428_v20 = vrot.slane %v426_v9, 1  ;;  %v906_v63 = vld [vmem:[%s4902_s23] sm:$0xe] }
  0x20   : > { %v349_v19 = vsel %vm305_vm1, %v344_v4, %v348_v8  ;;  %v354_v21 = vshll.u32 %v4999_v10, 16  ;;  %v434_v22 = vshll.u32 %v5002_v11, 16  ;;  %v358_v25 = vshrl.u32 %v4999_v10, 16 }
  0x21   : > { %v429_v29 = vsel %vm305_vm1, %v424_v16, %v428_v20  ;;  %v352_v30 = vor.u32 %v350_v17, %v348_v8  ;;  %v362_v34 = vshll.u32 %v5011_v23, 16  ;;  %v438_v35 = vshrl.u32 %v5002_v11, 16 }
  0x22   : > { %v356_v31 = vrot.slane %v354_v21, 1  ;;  %v436_v32 = vrot.slane %v434_v22, 1  ;;  %v442_v36 = vshll.u32 %v5016_v26, 16  ;;  %v432_v41 = vor.u32 %v430_v18, %v428_v20 }
  0x23   : > { %4447 = vmatmul.mubr.msk.bf16.gmra.mxu1 %vm454_vm2, %v421_v12  ;;  %v364_v46 = vrot.slane %v362_v34, 1  ;;  %v370_v49 = vshll.u32 %v5025_v38, 16  ;;  %v366_v52 = vshrl.u32 %v5011_v23, 16  ;;  %v374_v54 = vshrl.u32 %v5025_v38, 16 }
  0x24   : > { %4427 = vmatmul.mubr.msk.bf16.gmra.mxu0 %vm454_vm2, %v341_v3  ;;  %4450 = vmatprep.mubr.msk.bf16.mxu1 %vm454_vm2, %v429_v29  ;;  %v360_v42 = vor.u32 %v358_v25, %v356_v31  ;;  %v440_v47 = vor.u32 %v438_v35, %v436_v32  ;;  %v444_v48 = vrot.slane %v442_v36, 1  ;;  %v357_v51 = vsel %vm305_vm1, %v352_v30, %v356_v31 }
  0x25   : > { %4430 = vmatprep.mubr.msk.bf16.mxu0 %vm454_vm2, %v349_v19  ;;  %v378_v55 = vshll.u32 %v5028_v40, 16  ;;  %v437_v56 = vsel %vm305_vm1, %v432_v41, %v436_v32  ;;  %v446_v57 = vshrl.u32 %v5016_v26, 16  ;;  %v450_v58 = vshll.u32 %v4801_v43, 16 }
  0x26   : > { %v365_v53 = vsel %vm305_vm1, %v360_v42, %v364_v46  ;;  %v445_v59 = vsel %vm305_vm1, %v440_v47, %v444_v48  ;;  %v372_v60 = vrot.slane %v370_v49, 1  ;;  %v368_v61 = vor.u32 %v366_v52, %v364_v46  ;;  %v5127_v46 = vld [vmem:[%s4902_s23 + $0x10] sm:$0xff]   ;;  %v5132_v49 = vld [vmem:[%s4902_s23 + $0x18] sm:$0xff]  }
  0x27   : > { %v380_v1 = vrot.slane %v378_v55, 1  ;;  %v448_v2 = vor.u32 %v446_v57, %v444_v48  ;;  %v452_v3 = vrot.slane %v450_v58, 1  ;;  %v382_v8 = vshrl.u32 %v5028_v40, 16  ;;  %v5145_v55 = vld [vmem:[%s4902_s23 + $0x30] sm:$0xff]  }
  0x28   : > { %v376_v0 = vor.u32 %v374_v54, %v372_v60  ;;  %v373_v4 = vsel %vm305_vm1, %v368_v61, %v372_v60  ;;  %v3999_v12 = vcombine.low %v906_v63, %v4906_v5  ;;  %v946_v17 = vrot.slane %v5016_v26, 1  ;;  %v5160_v61 = vld [vmem:[%s4902_s23 + $0x38] sm:$0xff]  }
  0x29   : > { %v453_v16 = vsel %vm305_vm1, %v448_v2, %v452_v3  ;;  %v384_v18 = vor.u32 %v382_v8, %v380_v1  ;;  %v948_v19 = vrot.slane %v4801_v43, 1  ;;  %v914_v21 = vrot.slane %v4912_v7, 1  ;;  %v2106_v43 = vld [vmem:[%s4902_s23 + $0x8] sm:$0xc]  ;;  %v5170_v2 = vld [vmem:[%s4902_s23 + $0x40] sm:$0xff]  }
  0x2a   : > { %v381_v9 = vsel %vm305_vm1, %v376_v0, %v380_v1  ;;  %v913_v20 = vrot.slane %v3999_v12, 1  ;;  %v1444_v29 = vsel %vm509_vm0, %v4967_v45, 0  ;;  %v916_v30 = vrot.slane %v4926_v15, 1  ;;  %v5178_v8 = vld [vmem:[%s4902_s23 + $0x48] sm:$0xff]  }
  0x2b   : > { %4451 = vmatmul.mubr.msk.bf16.gmra.mxu1 %vm454_vm2, %v437_v56  ;;  %v5061_v5 = vsel %vm912_vm3, %v946_v17, %v948_v19  ;;  %v389_v22 = vsel %vm305_vm1, %v384_v18, %v4937_v27  ;;  %v918_v27 = vrot.slane %v4940_v28, 1  ;;  %v1891_v31 = vsel %vm509_vm0, %v4947_v33, 0 }
  0x2c   : > { %4431 = vmatmul.mubr.msk.bf16.gmra.mxu0 %vm454_vm2, %v357_v51  ;;  %4454 = vmatprep.mubr.msk.bf16.mxu1 %vm454_vm2, %v445_v59  ;;  %v915_v25 = vsel %vm912_vm3, %v913_v20, %v914_v21  ;;  %v917_v45 = vsel %vm912_vm3, %v914_v21, %v916_v30  ;;  %v922_v34 = vrot.slane %v4974_v50, 1  ;;  %v926_v36 = vrot.slane %v5011_v23, 1  ;;  %v5136_v51 = vld [vmem:[%s4902_s23 + $0x20] sm:$0xff]  }
  0x2d   : > { %4434 = vmatprep.mubr.msk.bf16.mxu0 %vm454_vm2, %v365_v53  ;;  %v919_v32 = vsel %vm912_vm3, %v916_v30, %v918_v27  ;;  %v928_v42 = vrot.slane %v5025_v38, 1  ;;  %v2114_v53 = vrot.slane %v5127_v46, 2  ;;  %v2116_v54 = vrot.slane %v5132_v49, 2  ;;  %v5208_v30 = vld [vmem:[%s4902_s23 + $0x58] sm:$0xff]  }
  0x2e   : > { %v2118_v57 = vrot.slane %v5136_v51, 2  ;;  %v932_v58 = vrot.slane %v4920_v13, 1  ;;  %v934_v59 = vrot.slane %v4923_v14, 1  ;;  %v2122_v1 = vrot.slane %v5145_v55, 2 }
  0x2f   : > { %v929_v48 = vsel %vm912_vm3, %v926_v36, %v928_v42  ;;  %v5155_v60 = vsel %vm2112_vm4, %v2114_v53, %v2116_v54  ;;  %v2128_v18 = vrot.slane %v5178_v8, 2  ;;  %v936_v20 = vrot.slane %v4935_v24, 1 }
  0x30   : > { %v5163_v63 = vsel %vm2112_vm4, %v2116_v54, %v2118_v57 }
  0x33   : > { %4455 = vmatmul.mubr.msk.bf16.gmra.mxu1 %vm454_vm2, %v453_v16  ;;  %v2126_v16 = vrot.slane %v5170_v2, 2 }
  0x34   : > { %4435 = vmatmul.mubr.msk.bf16.gmra.mxu0 %vm454_vm2, %v373_v4  ;;  %4460 = vmatprep.mubr.msk.bf16.mxu1 %vm454_vm2, %v4909_v6  ;;  %v5074_v6 = vld [vmem:[%s6299_s1 + $0x14] sm:$0xf]  ;;  %v2124_v4 = vrot.slane %v5160_v61, 2 }
  0x35   : > { %4438 = vmatprep.mubr.msk.bf16.mxu0 %vm454_vm2, %v381_v9  ;;  %v5196_v21 = vsel %vm2112_vm4, %v2126_v16, %v2128_v18 }
  0x36   : > { %v5185_v12 = vsel %vm2112_vm4, %v2122_v1, %v2124_v4  ;;  %v5191_v19 = vsel %vm2112_vm4, %v2124_v4, %v2126_v16 }
  0x3b   : > { %4461 = vmatmul.mubr.msk.bf16.vlgmr.msra.gmra.mxu1 %vm454_vm2, %v4912_v7  ;;  %v5090_v7 = vld [vmem:[%s6299_s1 + $0x18] sm:$0xf] }
  0x3c   : > { %4439 = vmatmul.mubr.msk.bf16.gmra.mxu0 %vm454_vm2, %v389_v22  ;;  %4535 = vmatpush3.bf16.msra.mxu1 %v1444_v29  ;;  %v938_v22 = vrot.slane %v4953_v37, 1  ;;  %v937_v29 = vsel %vm912_vm3, %v934_v59, %v936_v20 }
  0x3d   : > { %4498 = vmatprep.mubr.msk.bf16.mxu0 %vm454_vm2, %v915_v25  ;;  %4464 = vmatprep.mubr.msk.bf16.mxu1 %vm454_vm2, %v4926_v15  ;;  %v920_v15 = vrot.slane %v4957_v39, 1  ;;  %v5204_v25 = vld [vmem:[%s4902_s23 + $0x50] sm:$0xff]  }
  0x3e   : > { %4770 = vmatprep.subr.msk.bf16.mxu1 %vm509_vm0, %v5074_v6 }
  0x3f   : > { %v921_v33 = vsel %vm912_vm3, %v918_v27, %v920_v15  ;;  %v923_v35 = vsel %vm912_vm3, %v920_v15, %v922_v34  ;;  %v939_v27 = vsel %vm912_vm3, %v936_v20, %v938_v22  ;;  %v942_v15 = vrot.slane %v4989_v62, 1 }
  0x43   : > { %4465 = vmatmul.mubr.msk.bf16.gmra.mxu1 %vm454_vm2, %v4940_v28  ;;  %v924_v28 = vrot.slane %v4999_v10, 1 }
  0x44   : > { %4499 = vmatmul.mubr.msk.bf16.vlgmr.msra.gmra.mxu0 %vm454_vm2, %v917_v45  ;;  %4468 = vmatprep.mubr.msk.bf16.mxu1 %vm454_vm2, %v4957_v39  ;;  %v2130_v45 = vrot.slane %v5204_v25, 2 }
  0x45   : > { %4573 = vmatpush3.bf16.msra.mxu0 %v1891_v31  ;;  %4502 = vmatprep.mubr.msk.bf16.mxu0 %vm454_vm2, %v919_v32  ;;  %v925_v39 = vsel %vm912_vm3, %v922_v34, %v924_v28  ;;  %v927_v41 = vsel %vm912_vm3, %v924_v28, %v926_v36  ;;  %v1220_v34 = vld [vmem:[%s4902_s23 + $0x8] sm:$0xe] }
  0x46   : > { %4771 = vmatprep.subr.msk.bf16.mxu0 %vm509_vm0, %v5090_v7  ;;  %v5215_v31 = vsel %vm2112_vm4, %v2128_v18, %v2130_v45  ;;  %v5233_v28 = vld [vmem:[%s4902_s23 + $0x68] sm:$0xff]  }
  0x4b   : > { %4469 = vmatmul.mubr.msk.bf16.gmra.mxu1 %vm454_vm2, %v4974_v50  ;;  %v930_v50 = vrot.slane %v5028_v40, 1 }
  0x4c   : > { %4503 = vmatmul.mubr.msk.bf16.gmra.mxu0 %vm454_vm2, %v921_v33  ;;  %4472 = vmatprep.mubr.msk.bf16.mxu1 %vm454_vm2, %v4999_v10  ;;  %v5124_v10 = vld [vmem:[%s4902_s23 + $0xc] sm:$0xf]  ;;  %v5229_v33 = vld [vmem:[%s4902_s23 + $0x60] sm:$0xff]  }
  0x4d   : > { %4506 = vmatprep.mubr.msk.bf16.mxu0 %vm454_vm2, %v923_v35  ;;  %v4077_v47 = vcombine.low %v2106_v43, %v5124_v10 }
  0x4f   : > { %v2113_v52 = vrot.slane %v4077_v47, 2  ;;  %v1675_v47 = vshrl.u32 %v5127_v46, 16 }
  0x51   : > { %v5148_v56 = vsel %vm2112_vm4, %v2113_v52, %v2114_v53  ;;  %v1353_v52 = vrot.slane %v5127_v46, 1  ;;  %v5256_v53 = vld [vmem:[%s4902_s23 + $0x70] sm:$0xff]  }
  0x52   : > { %v2138_v4 = vrot.slane %v5256_v53, 2 }
  0x53   : > { %4473 = vmatmul.mubr.msk.bf16.gmra.mxu1 %vm454_vm2, %v5011_v23  ;;  %v931_v23 = vsel %vm912_vm3, %v928_v42, %v930_v50  ;;  %v944_v42 = vrot.slane %v5002_v11, 1 }
  0x54   : > { %4507 = vmatmul.mubr.msk.bf16.gmra.mxu0 %vm454_vm2, %v925_v39  ;;  %4476 = vmatprep.mubr.msk.bf16.mxu1 %vm454_vm2, %v5025_v38  ;;  %v5140_v38 = vld [vmem:[%s4902_s23 + $0x28] sm:$0xff]   ;;  %v2134_v39 = vrot.slane %v5229_v33, 2 }
  0x55   : > { %4510 = vmatprep.mubr.msk.bf16.mxu0 %vm454_vm2, %v927_v41  ;;  %v2120_v0 = vrot.slane %v5140_v38, 2  ;;  %v4019_v41 = vcombine.low %v1220_v34, %v5124_v10  ;;  %v945_v54 = vsel %vm912_vm3, %v942_v15, %v944_v42  ;;  %v5289_v34 = vld [vmem:[%s4902_s23 + $0x88] sm:$0xff]  }
  0x57   : > { %v5173_v3 = vsel %vm2112_vm4, %v2118_v57, %v2120_v0  ;;  %v5181_v9 = vsel %vm2112_vm4, %v2120_v0, %v2122_v1  ;;  %v1667_v43 = vshrl.u32 %v4019_v41, 16  ;;  %v1670_v10 = vshll.u32 %v4019_v41, 16 }
  0x58   : > { %v947_v57 = vsel %vm912_vm3, %v944_v42, %v946_v17  ;;  %v1677_v0 = vrot.slane %v1675_v47, 1  ;;  %v1684_v17 = vshrl.u32 %v5132_v49, 16  ;;  %v1705_v47 = vshll.u32 %v5140_v38, 16 }
  0x5b   : > { %4477 = vmatmul.mubr.msk.bf16.gmra.mxu1 %vm454_vm2, %v5028_v40  ;;  %v933_v40 = vsel %vm912_vm3, %v930_v50, %v932_v58 }
  0x5c   : > { %4511 = vmatmul.mubr.msk.bf16.gmra.mxu0 %vm454_vm2, %v929_v48  ;;  %4480 = vmatprep.mubr.msk.bf16.mxu1 %vm454_vm2, %v4920_v13  ;;  %v935_v13 = vsel %vm912_vm3, %v932_v58, %v934_v59  ;;  %v1678_v48 = vshll.u32 %v5127_v46, 16  ;;  %v5263_v58 = vld [vmem:[%s4902_s23 + $0x78] sm:$0xff]   ;;  %v1672_v59 = vrot.slane %v1670_v10, 2  ;;  %v1702_v10 = vshrl.u32 %v5140_v38, 16 }
  0x5d   : > { %4514 = vmatprep.mubr.msk.bf16.mxu0 %vm454_vm2, %v931_v23  ;;  %v1352_v23 = vrot.slane %v4019_v41, 1 }
  0x5e   : > { %v1680_v1 = vrot.slane %v1678_v48, 2 }
  0x5f   : > { %v1354_v46 = vsel %vm912_vm3, %v1352_v23, %v1353_v52  ;;  %v1711_v23 = vshrl.u32 %v5145_v55, 16 }
  0x60   : > { %v1681_v20 = vor.u32 %v1680_v1, %v1677_v0  ;;  %v2644_v0 = vsel %vm509_vm0, %v5090_v7, 0  ;;  %v1704_v1 = vrot.slane %v1702_v10, 1 }
  0x63   : > { %4481 = vmatmul.mubr.msk.bf16.gmra.mxu1 %vm454_vm2, %v4923_v14  ;;  %v2132_v14 = vrot.slane %v5208_v30, 2 }
  0x64   : > { %4515 = vmatmul.mubr.msk.bf16.gmra.mxu0 %vm454_vm2, %v933_v40  ;;  %4484 = vmatprep.mubr.msk.bf16.mxu1 %vm454_vm2, %v4935_v24  ;;  %v940_v24 = vrot.slane %v4962_v44, 1 }
  0x65   : > { %4518 = vmatprep.mubr.msk.bf16.mxu0 %vm454_vm2, %v935_v13  ;;  %v5220_v32 = vsel %vm2112_vm4, %v2130_v45, %v2132_v14  ;;  %v1687_v13 = vshll.u32 %v5132_v49, 16  ;;  %v1357_v45 = vrot.slane %v5136_v51, 1 }
  0x66   : > { %v941_v35 = vsel %vm912_vm3, %v938_v22, %v940_v24  ;;  %v943_v36 = vsel %vm912_vm3, %v940_v24, %v942_v15  ;;  %v1693_v22 = vshrl.u32 %v5136_v51, 16  ;;  %v1686_v24 = vrot.slane %v1684_v17, 1 }
  0x67   : > { %v1689_v15 = vrot.slane %v1687_v13, 2  ;;  %v1713_v17 = vrot.slane %v1711_v23, 1 }
  0x6b   : > { %4485 = vmatmul.mubr.msk.bf16.gmra.mxu1 %vm454_vm2, %v4953_v37  ;;  %v2136_v37 = vrot.slane %v5233_v28, 2 }
  0x6c   : > { %4519 = vmatmul.mubr.msk.bf16.gmra.mxu0 %vm454_vm2, %v937_v29  ;;  %4488 = vmatprep.mubr.msk.bf16.mxu1 %vm454_vm2, %v4962_v44  ;;  %v5241_v44 = vsel %vm2112_vm4, %v2132_v14, %v2134_v39  ;;  %v1696_v29 = vshll.u32 %v5136_v51, 16  ;;  %v5286_v14 = vld [vmem:[%s4902_s23 + $0x80] sm:$0xff]  }
  0x6d   : > { %4522 = vmatprep.mubr.msk.bf16.mxu0 %vm454_vm2, %v939_v27  ;;  %v5246_v50 = vsel %vm2112_vm4, %v2134_v39, %v2136_v37  ;;  %v5270_v40 = vsel %vm2112_vm4, %v2136_v37, %v2138_v4  ;;  %v1355_v27 = vrot.slane %v5132_v49, 1  ;;  %v2142_v39 = vrot.slane %v5286_v14, 2 }
  0x6e   : > { %v2144_v37 = vrot.slane %v5289_v34, 2  ;;  %v2205_v49 = vsel %vm509_vm0, %v5074_v6, 0 }
  0x6f   : > { %v1356_v41 = vsel %vm912_vm3, %v1353_v52, %v1355_v27  ;;  %v1358_v51 = vsel %vm912_vm3, %v1355_v27, %v1357_v45  ;;  %v1714_v52 = vshll.u32 %v5145_v55, 16  ;;  %v1720_v27 = vshrl.u32 %v5160_v61, 16 }
  0x70   : > { %v5312_v6 = vsel %vm2112_vm4, %v2142_v39, %v2144_v37 }
  0x73   : > { %4489 = vmatmul.mubr.msk.bf16.gmra.mxu1 %vm454_vm2, %v4989_v62  ;;  %v1669_v62 = vrot.slane %v1667_v43, 1  ;;  %v1690_v43 = vor.u32 %v1689_v15, %v1686_v24 }
  0x74   : > { %4523 = vmatmul.mubr.msk.bf16.gmra.mxu0 %vm454_vm2, %v941_v35  ;;  %4492 = vmatprep.mubr.msk.bf16.mxu1 %vm454_vm2, %v5002_v11  ;;  %v2140_v11 = vrot.slane %v5263_v58, 2  ;;  %v1695_v35 = vrot.slane %v1693_v22, 1 }
  0x75   : > { %4526 = vmatprep.mubr.msk.bf16.mxu0 %vm454_vm2, %v943_v36  ;;  %v1673_v18 = vor.u32 %v1672_v59, %v1669_v62  ;;  %v1698_v36 = vrot.slane %v1696_v29, 2  ;;  %v5321_v62 = vld [vmem:[%s4902_s23 + $0x90] sm:$0xff]   ;;  %v1691_v59 = vsel %vm1665_vm5, %v1681_v20, %v1690_v43 }
  0x76   : > { %v5276_v16 = vsel %vm2112_vm4, %v2138_v4, %v2140_v11  ;;  %v5301_v42 = vsel %vm2112_vm4, %v2140_v11, %v2142_v39  ;;  %v1707_v4 = vrot.slane %v1705_v47, 2  ;;  %v5329_v11 = vld [vmem:[%s4902_s23 + $0x98] ss:$0 sps:$4 sm:$0x33]   ;;  %v1365_v39 = vrot.slane %v5170_v2, 1 }
  0x77   : > { %v1699_v48 = vor.u32 %v1698_v36, %v1695_v35  ;;  %v1732_v35 = vshll.u32 %v5170_v2, 16  ;;  %v1363_v36 = vrot.slane %v5160_v61, 1 }
  0x78   : > { %v1708_v29 = vor.u32 %v1707_v4, %v1704_v1  ;;  %v5374_v1 = vld [vmem:[%s4902_s23 + $0x14] sm:$0xf]  ;;  %v3306_v4 = vld [vmem:[%s4902_s23 + $0x10] sm:$0x8] }
  0x79   : > { %v1734_v10 = vrot.slane %v1732_v35, 2  ;;  %v1366_v23 = vsel %vm912_vm3, %v1363_v36, %v1365_v39 }
  0x7b   : > { %4493 = vmatmul.mubr.msk.bf16.gmra.mxu1 %vm454_vm2, %v5016_v26  ;;  %v1682_v26 = vsel %vm1665_vm5, %v1673_v18, %v1681_v20  ;;  %v5337_v18 = vld [vmem:[%s6299_s1 + $0x20] sm:$0xf]  ;;  %v2148_v20 = vrot.slane %v5329_v11, 2 }
  0x7c   : > { %4527 = vmatmul.mubr.msk.bf16.gmra.mxu0 %vm454_vm2, %v945_v54  ;;  %4536 = vmatprep.mubr.msk.bf16.mxu1 %vm454_vm2, %v1354_v46  ;;  %v1359_v54 = vrot.slane %v5140_v38, 1  ;;  %v1700_v46 = vsel %vm1665_vm5, %v1690_v43, %v1699_v48  ;;  %v1716_v38 = vrot.slane %v1714_v52, 2 }
  0x7d   : > { %4530 = vmatprep.mubr.msk.bf16.mxu0 %vm454_vm2, %v947_v57  ;;  %v1361_v57 = vrot.slane %v5145_v55, 1  ;;  %v2146_v55 = vrot.slane %v5321_v62, 2 }
  0x7e   : > { %v1360_v13 = vsel %vm912_vm3, %v1357_v45, %v1359_v54  ;;  %v1723_v45 = vshll.u32 %v5160_v61, 16  ;;  %v1717_v15 = vor.u32 %v1716_v38, %v1713_v17 }
  0x7f   : > { %v1362_v7 = vsel %vm912_vm3, %v1359_v54, %v1361_v57  ;;  %v5343_v22 = vsel %vm2112_vm4, %v2144_v37, %v2146_v55  ;;  %v5349_v24 = vsel %vm2112_vm4, %v2146_v55, %v2148_v20  ;;  %v1722_v37 = vrot.slane %v1720_v27, 1  ;;  %v5379_v55 = vld [vmem:[%s4902_s23 + $0x18] sm:$0xff]   ;;  %v5384_v27 = vld [vmem:[%s4902_s23 + $0x20] sm:$0xff]  }
  0x80   : > { %v1364_v47 = vsel %vm912_vm3, %v1361_v57, %v1363_v36  ;;  %v1747_v54 = vshrl.u32 %v5204_v25, 16  ;;  %v1750_v57 = vshll.u32 %v5204_v25, 16  ;;  %v1756_v36 = vshrl.u32 %v5208_v30, 16 }
  0x83   : > { %4537 = vmatmul.mubr.msk.bf16.vlgmr.msra.gmra.mxu1 %vm454_vm2, %v1356_v41  ;;  %v1709_v41 = vsel %vm1665_vm5, %v1699_v48, %v1708_v29  ;;  %v1741_v48 = vshll.u32 %v5178_v8, 16 }
  0x84   : > { %4531 = vmatmul.mubr.msk.bf16.gmra.mxu0 %vm454_vm2, %v5061_v5  ;;  %v5309_v5 = vld [vmem:[%s6299_s1 + $0x1c] sm:$0xf]  ;;  %4611 = vmatpush3.bf16.msra.mxu1 %v2205_v49  ;;  %v1725_v49 = vrot.slane %v1723_v45, 2  ;;  %v3314_v45 = vrot.slane %v5379_v55, 3 }
  0x85   : > { %4574 = vmatprep.mubr.msk.bf16.mxu0 %vm454_vm2, %v1682_v26  ;;  %4540 = vmatprep.mubr.msk.bf16.mxu1 %vm454_vm2, %v1358_v51  ;;  %v1729_v26 = vshrl.u32 %v5170_v2, 16  ;;  %v1718_v51 = vsel %vm1665_vm5, %v1708_v29, %v1717_v15  ;;  %v1738_v2 = vshrl.u32 %v5178_v8, 16  ;;  %v1743_v38 = vrot.slane %v1741_v48, 2 }
  0x86   : > { %4772 = vmatprep.subr.msk.bf16.mxu1 %vm509_vm0, %v5309_v5  ;;  %v1726_v61 = vor.u32 %v1725_v49, %v1722_v37  ;;  %v1752_v29 = vrot.slane %v1750_v57, 2  ;;  %v1765_v49 = vshrl.u32 %v5229_v33, 16 }
  0x87   : > { %v1731_v43 = vrot.slane %v1729_v26, 1  ;;  %v1740_v17 = vrot.slane %v1738_v2, 1  ;;  %v6302_v26 = vrot.slane %v5384_v27, 3 }
  0x89   : > { %v1735_v52 = vor.u32 %v1734_v10, %v1731_v43  ;;  %v1744_v35 = vor.u32 %v1743_v38, %v1740_v17  ;;  %v5403_v43 = vsel %vm3312_vm6, %v3314_v45, %v6302_v26  ;;  %v1371_v10 = vrot.slane %v5208_v30, 1 }
  0x8a   : > { %v1783_v17 = vshrl.u32 %v5256_v53, 16  ;;  %v1786_v38 = vshll.u32 %v5256_v53, 16 }
  0x8b   : > { %4541 = vmatmul.mubr.msk.bf16.gmra.mxu1 %vm454_vm2, %v1360_v13  ;;  %v4155_v13 = vcombine.low %v3306_v4, %v5374_v1  ;;  %v1736_v20 = vsel %vm1665_vm5, %v1726_v61, %v1735_v52 }
  0x8c   : > { %4575 = vmatmul.mubr.msk.bf16.vlgmr.msra.gmra.mxu0 %vm454_vm2, %v1691_v59  ;;  %4544 = vmatprep.mubr.msk.bf16.mxu1 %vm454_vm2, %v1362_v7  ;;  %v1367_v59 = vrot.slane %v5178_v8, 1  ;;  %v1749_v7 = vrot.slane %v1747_v54, 1  ;;  %v1767_v54 = vrot.slane %v1765_v49, 1  ;;  %v1804_v49 = vshll.u32 %v5286_v14, 16 }
  0x8d   : > { %4649 = vmatpush3.bf16.msra.mxu0 %v2644_v0  ;;  %4578 = vmatprep.mubr.msk.bf16.mxu0 %vm454_vm2, %v1700_v46  ;;  %v1369_v0 = vrot.slane %v5204_v25, 1  ;;  %v1727_v46 = vsel %vm1665_vm5, %v1717_v15, %v1726_v61  ;;  %v3313_v25 = vrot.slane %v4155_v13, 3  ;;  %v1758_v61 = vrot.slane %v1756_v36, 1 }
  0x8e   : > { %4773 = vmatprep.subr.msk.bf16.mxu0 %vm509_vm0, %v5337_v18  ;;  %v1368_v8 = vsel %vm912_vm3, %v1365_v39, %v1367_v59  ;;  %v1753_v39 = vor.u32 %v1752_v29, %v1749_v7  ;;  %v1377_v13 = vrot.slane %v5256_v53, 1  ;;  %v1795_v53 = vshll.u32 %v5263_v58, 16 }
  0x8f   : > { %v1370_v15 = vsel %vm912_vm3, %v1367_v59, %v1369_v0  ;;  %v5395_v37 = vsel %vm3312_vm6, %v3313_v25, %v3314_v45  ;;  %v1372_v59 = vsel %vm912_vm3, %v1369_v0, %v1371_v10  ;;  %v1375_v0 = vrot.slane %v5233_v28, 1 }
  0x90   : > { %v1754_v48 = vsel %vm1665_vm5, %v1744_v35, %v1753_v39  ;;  %v1785_v25 = vrot.slane %v1783_v17, 1  ;;  %v1788_v45 = vrot.slane %v1786_v38, 2  ;;  %v1385_v17 = vrot.slane %v5321_v62, 1 }
  0x93   : > { %4545 = vmatmul.mubr.msk.bf16.gmra.mxu1 %vm454_vm2, %v1364_v47  ;;  %v1373_v47 = vrot.slane %v5229_v33, 1 }
  0x94   : > { %4579 = vmatmul.mubr.msk.bf16.gmra.mxu0 %vm454_vm2, %v1709_v41  ;;  %4548 = vmatprep.mubr.msk.bf16.mxu1 %vm454_vm2, %v1366_v23  ;;  %v1759_v41 = vshll.u32 %v5208_v30, 16  ;;  %v1745_v23 = vsel %vm1665_vm5, %v1735_v52, %v1744_v35  ;;  %v1774_v30 = vshrl.u32 %v5233_v28, 16  ;;  %v1378_v35 = vsel %vm912_vm3, %v1375_v0, %v1377_v13 }
  0x95   : > { %4582 = vmatprep.mubr.msk.bf16.mxu0 %vm454_vm2, %v1718_v51  ;;  %v1768_v51 = vshll.u32 %v5229_v33, 16  ;;  %v1374_v4 = vsel %vm912_vm3, %v1371_v10, %v1373_v47  ;;  %v1777_v33 = vshll.u32 %v5233_v28, 16  ;;  %v1792_v28 = vshrl.u32 %v5263_v58, 16 }
  0x96   : > { %v1761_v2 = vrot.slane %v1759_v41, 2  ;;  %v1776_v7 = vrot.slane %v1774_v30, 1  ;;  %v1789_v41 = vor.u32 %v1788_v45, %v1785_v25  ;;  %v1381_v10 = vrot.slane %v5286_v14, 1  ;;  %v4822_v25 = vld [vmem:[%s4902_s23 + $0x98] ss:$0 sps:$4 sm:$0x11]  }
  0x97   : > { %v1770_v57 = vrot.slane %v1768_v51, 2  ;;  %v1779_v29 = vrot.slane %v1777_v33, 2  ;;  %v1379_v51 = vrot.slane %v5263_v58, 1  ;;  %v1810_v58 = vshrl.u32 %v5289_v34, 16 }
  0x98   : > { %v1819_v30 = vshrl.u32 %v5321_v62, 16  ;;  %v1822_v33 = vshll.u32 %v5321_v62, 16  ;;  %v1828_v62 = vshrl.u32 %v5329_v11, 16 }
  0x99   : > { %v1771_v52 = vor.u32 %v1770_v57, %v1767_v54  ;;  %v1780_v36 = vor.u32 %v1779_v29, %v1776_v7  ;;  %v1806_v54 = vrot.slane %v1804_v49, 2  ;;  %v1380_v57 = vsel %vm912_vm3, %v1377_v13, %v1379_v51 }
  0x9a   : > { %v1821_v7 = vrot.slane %v1819_v30, 1  ;;  %v1824_v29 = vrot.slane %v1822_v33, 2  ;;  %v5514_v30 = vld [vmem:[%s4902_s23 + $0x48] sm:$0xff]  }
  0x9b   : > { %4549 = vmatmul.mubr.msk.bf16.gmra.mxu1 %vm454_vm2, %v1368_v8 }
  0x9c   : > { %4583 = vmatmul.mubr.msk.bf16.gmra.mxu0 %vm454_vm2, %v1727_v46  ;;  %4552 = vmatprep.mubr.msk.bf16.mxu1 %vm454_vm2, %v1370_v15  ;;  %v1762_v46 = vor.u32 %v1761_v2, %v1758_v61  ;;  %v1376_v15 = vsel %vm912_vm3, %v1373_v47, %v1375_v0  ;;  %v1781_v47 = vsel %vm1665_vm5, %v1771_v52, %v1780_v36  ;;  %v1797_v61 = vrot.slane %v1795_v53, 2 }
  0x9d   : > { %4586 = vmatprep.mubr.msk.bf16.mxu0 %vm454_vm2, %v1736_v20  ;;  %v1790_v2 = vsel %vm1665_vm5, %v1780_v36, %v1789_v41  ;;  %v1812_v0 = vrot.slane %v1810_v58, 1  ;;  %v1387_v36 = vrot.slane %v4822_v25, 1  ;;  %v5498_v58 = vld [vmem:[%s4902_s23 + $0x38] sm:$0xff]  }
  0x9e   : > { %v1763_v20 = vsel %vm1665_vm5, %v1753_v39, %v1762_v46  ;;  %v1772_v8 = vsel %vm1665_vm5, %v1762_v46, %v1771_v52  ;;  %v1801_v39 = vshrl.u32 %v5286_v14, 16  ;;  %v1813_v14 = vshll.u32 %v5289_v34, 16 }
  0x9f   : > { %v1383_v52 = vrot.slane %v5289_v34, 1 }
  0xa0   : > { %v1815_v13 = vrot.slane %v1813_v14, 2  ;;  %v5510_v14 = vld [vmem:[%s4902_s23 + $0x40] sm:$0xff]  }
  0xa1   : > { %v1386_v45 = vsel %vm912_vm3, %v1383_v52, %v1385_v17 }
  0xa2   : > { %v1816_v34 = vor.u32 %v1815_v13, %v1812_v0 }
  0xa3   : > { %4553 = vmatmul.mubr.msk.bf16.gmra.mxu1 %vm454_vm2, %v1372_v59  ;;  %v1382_v59 = vsel %vm912_vm3, %v1379_v51, %v1381_v10 }
  0xa4   : > { %4587 = vmatmul.mubr.msk.bf16.gmra.mxu0 %vm454_vm2, %v1745_v23  ;;  %4556 = vmatprep.mubr.msk.bf16.mxu1 %vm454_vm2, %v1374_v4  ;;  %v1794_v23 = vrot.slane %v1792_v28, 1  ;;  %v2420_v28 = vld [vmem:[%s4902_s23 + $0x10] sm:$0xc] }
  0xa5   : > { %4590 = vmatprep.mubr.msk.bf16.mxu0 %vm454_vm2, %v1754_v48  ;;  %v1803_v48 = vrot.slane %v1801_v39, 1  ;;  %v5465_v51 = vcombine.low %v2420_v28, %v5374_v1 }
  0xa6   : > { %v1798_v4 = vor.u32 %v1797_v61, %v1794_v23  ;;  %v2553_v23 = vrot.slane %v5379_v55, 2 }
  0xa7   : > { %v1807_v46 = vor.u32 %v1806_v54, %v1803_v48  ;;  %v3091_v48 = vsel %vm509_vm0, %v5309_v5, 0  ;;  %v2555_v54 = vrot.slane %v5384_v27, 2  ;;  %v3405_v5 = vsel %vm509_vm0, %v5337_v18, 0 }
  0xa8   : > { %v1799_v38 = vsel %vm1665_vm5, %v1789_v41, %v1798_v4  ;;  %v1830_v41 = vrot.slane %v1828_v62, 1 }
  0xa9   : > { %v1817_v53 = vsel %vm1665_vm5, %v1807_v46, %v1816_v34 }
  0xab   : > { %4557 = vmatmul.mubr.msk.bf16.gmra.mxu1 %vm454_vm2, %v1376_v15  ;;  %v1831_v15 = vshll.u32 %v5329_v11, 16 }
  0xac   : > { %4591 = vmatmul.mubr.msk.bf16.gmra.mxu0 %vm454_vm2, %v1763_v20  ;;  %4560 = vmatprep.mubr.msk.bf16.mxu1 %vm454_vm2, %v1378_v35  ;;  %v1808_v20 = vsel %vm1665_vm5, %v1798_v4, %v1807_v46  ;;  %v1825_v35 = vor.u32 %v1824_v29, %v1821_v7 }
  0xad   : > { %4594 = vmatprep.mubr.msk.bf16.mxu0 %vm454_vm2, %v1772_v8  ;;  %v1384_v8 = vsel %vm912_vm3, %v1381_v10, %v1383_v52  ;;  %v1833_v39 = vrot.slane %v1831_v15, 2  ;;  %v1388_v10 = vsel %vm912_vm3, %v1385_v17, %v1387_v36  ;;  %v2565_v17 = vrot.slane %v5514_v30, 2 }
  0xae   : > { %v1826_v49 = vsel %vm1665_vm5, %v1816_v34, %v1825_v35 }
  0xaf   : > { %v1834_v11 = vor.u32 %v1833_v39, %v1830_v41 }
  0xb1   : > { %v1835_v1 = vsel %vm1665_vm5, %v1825_v35, %v1834_v11 }
  0xb3   : > { %4561 = vmatmul.mubr.msk.bf16.gmra.mxu1 %vm454_vm2, %v1380_v57  ;;  %v2556_v57 = vsel %vm2112_vm4, %v2553_v23, %v2555_v54 }
  0xb4   : > { %4595 = vmatmul.mubr.msk.bf16.gmra.mxu0 %vm454_vm2, %v1781_v47  ;;  %4564 = vmatprep.mubr.msk.bf16.mxu1 %vm454_vm2, %v1382_v59  ;;  %v2552_v47 = vrot.slane %v5465_v51, 2  ;;  %v5492_v59 = vld [vmem:[%s4902_s23 + $0x30] sm:$0xff]  }
  0xb5   : > { %4598 = vmatprep.mubr.msk.bf16.mxu0 %vm454_vm2, %v1790_v2  ;;  %v5478_v2 = vld [vmem:[%s4902_s23 + $0x28] sm:$0xff]  }
  0xb6   : > { %v2554_v61 = vsel %vm2112_vm4, %v2552_v47, %v2553_v23 }
  0xbb   : > { %4565 = vmatmul.mubr.msk.bf16.gmra.mxu1 %vm454_vm2, %v1384_v8  ;;  %v5544_v8 = vld [vmem:[%s4902_s23 + $0x58] sm:$0xff]  }
  0xbc   : > { %4599 = vmatmul.mubr.msk.bf16.gmra.mxu0 %vm454_vm2, %v1799_v38  ;;  %4568 = vmatprep.mubr.msk.bf16.mxu1 %vm454_vm2, %v1386_v45  ;;  %v2569_v15 = vrot.slane %v5544_v8, 2 }
  0xbd   : > { %4602 = vmatprep.mubr.msk.bf16.mxu0 %vm454_vm2, %v1808_v20  ;;  %v5536_v20 = vld [vmem:[%s4902_s23 + $0x50] sm:$0xff]  }
  0xbe   : > { %v2567_v45 = vrot.slane %v5536_v20, 2 }
  0xc0   : > { %v2568_v28 = vsel %vm2112_vm4, %v2565_v17, %v2567_v45 }
  0xc3   : > { %4569 = vmatmul.mubr.msk.bf16.gmra.mxu1 %vm454_vm2, %v1388_v10 }
  0xc4   : > { %4603 = vmatmul.mubr.msk.bf16.gmra.mxu0 %vm454_vm2, %v1817_v53  ;;  %4612 = vmatprep.mubr.msk.bf16.mxu1 %vm454_vm2, %v5148_v56  ;;  %v2557_v56 = vrot.slane %v5478_v2, 2  ;;  %v5568_v53 = vld [vmem:[%s4902_s23 + $0x60] sm:$0xff]  }
  0xc5   : > { %4606 = vmatprep.mubr.msk.bf16.mxu0 %vm454_vm2, %v1826_v49  ;;  %v5576_v49 = vld [vmem:[%s4902_s23 + $0x68] sm:$0xff]   ;;  %v2571_v11 = vrot.slane %v5568_v53, 2 }
  0xc6   : > { %v2558_v4 = vsel %vm2112_vm4, %v2555_v54, %v2557_v56 }
  0xc7   : > { %v2572_v54 = vsel %vm2112_vm4, %v2569_v15, %v2571_v11 }
  0xcb   : > { %4613 = vmatmul.mubr.msk.bf16.vlgmr.msra.gmra.mxu1 %vm454_vm2, %v5155_v60  ;;  %v2559_v60 = vrot.slane %v5492_v59, 2 }
  0xcc   : > { %4607 = vmatmul.mubr.msk.bf16.gmra.mxu0 %vm454_vm2, %v1835_v1  ;;  %4687 = vmatpush3.bf16.msra.mxu1 %v3091_v48  ;;  %v2573_v1 = vrot.slane %v5576_v49, 2 }
  0xcd   : > { %4650 = vmatprep.mubr.msk.bf16.mxu0 %vm454_vm2, %v2554_v61  ;;  %4616 = vmatprep.mubr.msk.bf16.mxu1 %vm454_vm2, %v5163_v63  ;;  %v2561_v63 = vrot.slane %v5498_v58, 2  ;;  %v2560_v18 = vsel %vm2112_vm4, %v2557_v56, %v2559_v60  ;;  %v5600_v56 = vld [vmem:[%s4902_s23 + $0x70] sm:$0xff]  }
  0xcf   : > { %v2562_v46 = vsel %vm2112_vm4, %v2559_v60, %v2561_v63 }
  0xd3   : > { %4617 = vmatmul.mubr.msk.bf16.gmra.mxu1 %vm454_vm2, %v5173_v3  ;;  %v2563_v3 = vrot.slane %v5510_v14, 2 }
  0xd4   : > { %4651 = vmatmul.mubr.msk.bf16.vlgmr.msra.gmra.mxu0 %vm454_vm2, %v2556_v57  ;;  %4620 = vmatprep.mubr.msk.bf16.mxu1 %vm454_vm2, %v5181_v9 }
  0xd5   : > { %4725 = vmatpush3.bf16.msra.mxu0 %v3405_v5  ;;  %4654 = vmatprep.mubr.msk.bf16.mxu0 %vm454_vm2, %v2558_v4  ;;  %v2564_v13 = vsel %vm2112_vm4, %v2561_v63, %v2563_v3  ;;  %v5608_v4 = vld [vmem:[%s4902_s23 + $0x78] sm:$0xff]   ;;  %v2575_v63 = vrot.slane %v5600_v56, 2 }
  0xdb   : > { %v5521_v52 = vpop.f32.mrf.mxu1  ;;  %4621 = vmatmul.mubr.msk.bf16.gmra.mxu1 %vm454_vm2, %v5185_v12  ;;  %v2566_v12 = vsel %vm2112_vm4, %v2563_v3, %v2565_v17  ;;  %v2577_v3 = vrot.slane %v5608_v4, 2 }
  0xdc   : > { %v5516_v33 = vpop.f32.mrf.mxu0  ;;  %4655 = vmatmul.mubr.msk.bf16.gmra.mxu0 %vm454_vm2, %v2560_v18  ;;  %4624 = vmatprep.mubr.msk.bf16.mxu1 %vm454_vm2, %v5191_v19 }
  0xdd   : > { %4658 = vmatprep.mubr.msk.bf16.mxu0 %vm454_vm2, %v2562_v46  ;;  %v5530_v38 = vpop.f32.mrf.mxu1 }
  0xde   : > { %v5525_v9 = vpop.f32.mrf.mxu0 }
  0xdf   : > { %v5538_v7 = vpop.f32.mrf.mxu1 }
  0xe0   : > { %v5532_v0 = vpop.f32.mrf.mxu0 }
  0xe1   : > { %v5546_v25 = vpop.f32.mrf.mxu1 }
  0xe2   : > { %v5540_v29 = vpop.f32.mrf.mxu0 }
  0xe3   : > { %v5553_v34 = vpop.f32.mrf.mxu1  ;;  %4625 = vmatmul.mubr.msk.bf16.gmra.mxu1 %vm454_vm2, %v5196_v21  ;;  %v2570_v21 = vsel %vm2112_vm4, %v2567_v45, %v2569_v15  ;;  %v5632_v45 = vld [vmem:[%s4902_s23 + $0x80] sm:$0xff]  }
  0xe4   : > { %v5548_v19 = vpop.f32.mrf.mxu0  ;;  %4659 = vmatmul.mubr.msk.bf16.gmra.mxu0 %vm454_vm2, %v2564_v13  ;;  %4628 = vmatprep.mubr.msk.bf16.mxu1 %vm454_vm2, %v5215_v31  ;;  %6317 = vst [vmem:[#allocation10_spill] sm:$0xff] %v5632_v45 }
  0xe5   : > { %4662 = vmatprep.mubr.msk.bf16.mxu0 %vm454_vm2, %v2566_v12  ;;  %v5562_v35 = vpop.f32.mrf.mxu1  ;;  %v2576_v12 = vsel %vm2112_vm4, %v2573_v1, %v2575_v63 }
  0xe6   : > { %v5557_v62 = vpop.f32.mrf.mxu0 }
  0xe7   : > { %v5570_v41 = vpop.f32.mrf.mxu1 }
  0xe8   : > { %v5564_v36 = vpop.f32.mrf.mxu0  ;;  %6309 = vst [vmem:[#allocation2_spill] sm:$0xff] %v5570_v41 }
  0xe9   : > { %v5578_v10 = vpop.f32.mrf.mxu1 }
  0xea   : > { %v5572_v39 = vpop.f32.mrf.mxu0  ;;  %6310 = vst [vmem:[#allocation3_spill] sm:$0xff] %v5578_v10 }
  0xeb   : > { %v5585_v47 = vpop.f32.mrf.mxu1  ;;  %4629 = vmatmul.mubr.msk.bf16.gmra.mxu1 %vm454_vm2, %v5220_v32  ;;  %v2574_v32 = vsel %vm2112_vm4, %v2571_v11, %v2573_v1 }
  0xec   : > { %v5580_v31 = vpop.f32.mrf.mxu0  ;;  %4663 = vmatmul.mubr.msk.bf16.gmra.mxu0 %vm454_vm2, %v2568_v28  ;;  %6311 = vst [vmem:[#allocation4_spill] sm:$0xff] %v5585_v47  ;;  %4632 = vmatprep.mubr.msk.bf16.mxu1 %vm454_vm2, %v5241_v44 }
  0xed   : > { %4666 = vmatprep.mubr.msk.bf16.mxu0 %vm454_vm2, %v2570_v21  ;;  %v5594_v61 = vpop.f32.mrf.mxu1  ;;  %v5640_v21 = vld [vmem:[%s4902_s23 + $0x88] sm:$0xff]  }
  0xee   : > { %v5589_v23 = vpop.f32.mrf.mxu0  ;;  %6312 = vst [vmem:[#allocation5_spill] sm:$0xff] %v5594_v61  ;;  %6319 = vst [vmem:[#allocation12_spill] sm:$0xff] %v5640_v21  ;;  %v5672_v61 = vld [vmem:[%s4902_s23 + $0x98] sm:$0xff]  }
  0xef   : > { %v5602_v57 = vpop.f32.mrf.mxu1  ;;  %6321 = vst [vmem:[#allocation14_spill] sm:$0xff] %v5672_v61 }
  0xf0   : > { %v5596_v48 = vpop.f32.mrf.mxu0  ;;  %6313 = vst [vmem:[#allocation6_spill] sm:$0xff] %v5602_v57  ;;  %v5666_v57 = vld [vmem:[%s4902_s23 + $0x90] sm:$0xff]  }
  0xf1   : > { %v5610_v60 = vpop.f32.mrf.mxu1 }
  0xf2   : > { %v5604_v5 = vpop.f32.mrf.mxu0  ;;  %6314 = vst [vmem:[#allocation7_spill] sm:$0xff] %v5610_v60 }
  0xf3   : > { %v5617_v18 = vpop.f32.mrf.mxu1  ;;  %4633 = vmatmul.mubr.msk.bf16.gmra.mxu1 %vm454_vm2, %v5246_v50  ;;  %v2578_v50 = vsel %vm2112_vm4, %v2575_v63, %v2577_v3  ;;  %v2581_v63 = vrot.slane %v5640_v21, 2 }
  0xf4   : > { %v5612_v44 = vpop.f32.mrf.mxu0  ;;  %4667 = vmatmul.mubr.msk.bf16.gmra.mxu0 %vm454_vm2, %v2572_v54  ;;  %6315 = vst [vmem:[#allocation8_spill] sm:$0xff] %v5617_v18  ;;  %4636 = vmatprep.mubr.msk.bf16.mxu1 %vm454_vm2, %v5270_v40  ;;  %v2579_v40 = vrot.slane %v5632_v45, 2 }
  0xf5   : > { %4670 = vmatprep.mubr.msk.bf16.mxu0 %vm454_vm2, %v2574_v32  ;;  %v5626_v17 = vpop.f32.mrf.mxu1 }
  0xf6   : > { %v5621_v46 = vpop.f32.mrf.mxu0  ;;  %6316 = vst [vmem:[#allocation9_spill] sm:$0xff] %v5626_v17  ;;  %v2875_v17 = vshrl.u32 %v5379_v55, 16  ;;  %v2580_v60 = vsel %vm2112_vm4, %v2577_v3, %v2579_v40 }
  0xf7   : > { %v5634_v15 = vpop.f32.mrf.mxu1 }
  0xf8   : > { %v5628_v13 = vpop.f32.mrf.mxu0  ;;  %6318 = vst [vmem:[#allocation11_spill] sm:$0xff] %v5634_v15  ;;  %v2870_v15 = vshll.u32 %v5465_v51, 16 }
  0xf9   : > { %v5642_v11 = vpop.f32.mrf.mxu1 }
  0xfa   : > { %v5636_v28 = vpop.f32.mrf.mxu0  ;;  %6320 = vst [vmem:[#allocation13_spill] sm:$0xff] %v5642_v11  ;;  %v2872_v21 = vrot.slane %v2870_v15, 3 }
  0xfb   : > { %v4462_v1 = vpop.f32.mrf.mxu1  ;;  %4637 = vmatmul.mubr.msk.bf16.gmra.mxu1 %vm454_vm2, %v5276_v16  ;;  %v2878_v16 = vshll.u32 %v5379_v55, 16 }
  0xfc   : > { %v5644_v54 = vpop.f32.mrf.mxu0  ;;  %4671 = vmatmul.mubr.msk.bf16.gmra.mxu0 %vm454_vm2, %v2576_v12  ;;  %v772_v26 = vadd.f32 %v4462_v1, %v5516_v33  ;;  %4640 = vmatprep.mubr.msk.bf16.mxu1 %vm454_vm2, %v5301_v42  ;;  %v2582_v42 = vsel %vm2112_vm4, %v2579_v40, %v2581_v63  ;;  %v2583_v40 = vrot.slane %v5666_v57, 2 }
  0xfd   : > { %4674 = vmatprep.mubr.msk.bf16.mxu0 %vm454_vm2, %v2578_v50  ;;  %v763_v12 = vpop.f32.mrf.mxu1  ;;  %v2867_v50 = vshrl.u32 %v5465_v51, 16 }
  0xfe   : > { %v5651_v32 = vpop.f32.mrf.mxu0  ;;  %v764_v18 = vadd.f32 %v763_v12, %v5525_v9  ;;  %v2877_v9 = vrot.slane %v2875_v17, 2  ;;  %v2880_v12 = vrot.slane %v2878_v16, 3 }
  0xff   : > { %v4463_v33 = vpop.f32.mrf.mxu1  ;;  %v2869_v55 = vrot.slane %v2867_v50, 2 }
 0x100   : > { %v5657_v11 = vpop.f32.mrf.mxu0  ;;  %v775_v47 = vadd.f32 %v4463_v33, %v5532_v0  ;;  %v2585_v33 = vrot.slane %v5672_v61, 2  ;;  %v2881_v16 = vor.u32 %v2880_v12, %v2877_v9 }
 0x101   : > { %v766_v51 = vpop.f32.mrf.mxu1  ;;  %v2873_v50 = vor.u32 %v2872_v21, %v2869_v55 }
 0x102   : > { %v5668_v1 = vpop.f32.mrf.mxu0  ;;  %v767_v3 = vadd.f32 %v766_v51, %v5540_v29  ;;  %v2887_v29 = vshll.u32 %v5384_v27, 16 }
 0x103   : > { %v4466_v41 = vpop.f32.mrf.mxu1  ;;  %4641 = vmatmul.mubr.msk.bf16.gmra.mxu1 %vm454_vm2, %v5312_v6  ;;  %v2893_v6 = vshrl.u32 %v5478_v2, 16 }
 0x104   : > { %v4500_v10 = vpop.f32.mrf.mxu0  ;;  %4675 = vmatmul.mubr.msk.bf16.gmra.mxu0 %vm454_vm2, %v2580_v60  ;;  %v788_v60 = vadd.f32 %v4466_v41, %v5548_v19  ;;  %4644 = vmatprep.mubr.msk.bf16.mxu1 %vm454_vm2, %v5343_v22  ;;  %v2584_v41 = vsel %vm2112_vm4, %v2581_v63, %v2583_v40  ;;  %v4843_v22 = vld [vmem:[%s4902_s23 + $0xa0] ss:$0 sps:$4 sm:$0x33]   ;;  %v2889_v9 = vrot.slane %v2887_v29, 3  ;;  %v2905_v29 = vshll.u32 %v5492_v59, 16 }
 0x105   : > { %v5677_v45 = vadd.f32 %v4500_v10, %v772_v26  ;;  %4678 = vmatprep.mubr.msk.bf16.mxu0 %vm454_vm2, %v2582_v42  ;;  %v2884_v26 = vshrl.u32 %v5384_v27, 16  ;;  %v779_v10 = vpop.f32.mrf.mxu1  ;;  %v2896_v42 = vshll.u32 %v5478_v2, 16 }
 0x106   : > { %v1041_v0 = vpop.f32.mrf.mxu0  ;;  %v780_v51 = vadd.f32 %v779_v10, %v5557_v62  ;;  %v2882_v62 = vsel %vm2865_vm7, %v2873_v50, %v2881_v16 }
 0x107   : > { %6322 = vst [vmem:[#allocation15_spill] sm:$0xff] %v5677_v45  ;;  %v5685_v17 = vadd.f32 %v1041_v0, %v764_v18  ;;  %v4467_v18 = vpop.f32.mrf.mxu1  ;;  %v2886_v55 = vrot.slane %v2884_v26, 2  ;;  %v2898_v63 = vrot.slane %v2896_v42, 3  ;;  %v2902_v26 = vshrl.u32 %v5492_v59, 16 }
 0x108   : > { %v4501_v15 = vpop.f32.mrf.mxu0  ;;  %v791_v45 = vadd.f32 %v4467_v18, %v5564_v36  ;;  %v2911_v42 = vshrl.u32 %v5498_v58, 16 }
 0x109   : > { %6323 = vst [vmem:[#allocation16_spill] sm:$0xff] %v5685_v17  ;;  %v5694_v19 = vadd.f32 %v4501_v15, %v775_v47  ;;  %v2586_v17 = vsel %vm2112_vm4, %v2583_v40, %v2585_v33  ;;  %v782_v12 = vpop.f32.mrf.mxu1  ;;  %v2895_v47 = vrot.slane %v2893_v6, 2  ;;  %v2587_v40 = vrot.slane %v4843_v22, 2 }
 0x10a   : > { %v1044_v0 = vpop.f32.mrf.mxu0  ;;  %v783_v10 = vadd.f32 %v782_v12, %v5572_v39  ;;  %v2890_v39 = vor.u32 %v2889_v9, %v2886_v55  ;;  %v2907_v12 = vrot.slane %v2905_v29, 3 }
 0x10b   : > { %v5700_v21 = vadd.f32 %v1044_v0, %v767_v3  ;;  %v4470_v36 = vpop.f32.mrf.mxu1  ;;  %4645 = vmatmul.mubr.msk.bf16.gmra.mxu1 %vm454_vm2, %v5349_v24  ;;  %v2588_v18 = vsel %vm2112_vm4, %v2585_v33, %v2587_v40 }
 0x10c   : > { %v4504_v61 = vpop.f32.mrf.mxu0  ;;  %4679 = vmatmul.mubr.msk.bf16.gmra.mxu0 %vm454_vm2, %v2584_v41  ;;  %v804_v50 = vadd.f32 %v4470_v36, %v5580_v31  ;;  %4688 = vmatprep.mubr.msk.bf16.mxu1 %vm454_vm2, %v2882_v62  ;;  %v2914_v41 = vshll.u32 %v5498_v58, 16  ;;  %v2891_v9 = vsel %vm2865_vm7, %v2881_v16, %v2890_v39 }
 0x10d   : > { %v5705_v15 = vadd.f32 %v4504_v61, %v788_v60  ;;  %4682 = vmatprep.mubr.msk.bf16.mxu0 %vm454_vm2, %v2586_v17  ;;  %v795_v61 = vpop.f32.mrf.mxu1  ;;  %v2899_v17 = vor.u32 %v2898_v63, %v2895_v47 }
 0x10e   : > { %v1057_v3 = vpop.f32.mrf.mxu0  ;;  %v796_v24 = vadd.f32 %v795_v61, %v5589_v23  ;;  %v2916_v36 = vrot.slane %v2914_v41, 3 }
 0x10f   : > { %v5713_v6 = vadd.f32 %v1057_v3, %v780_v51  ;;  %v4471_v0 = vpop.f32.mrf.mxu1  ;;  %v2904_v51 = vrot.slane %v2902_v26, 2  ;;  %v2900_v23 = vsel %vm2865_vm7, %v2890_v39, %v2899_v17  ;;  %v3318_v3 = vrot.slane %v5478_v2, 3 }
 0x110   : > { %v4505_v60 = vpop.f32.mrf.mxu0  ;;  %v807_v62 = vadd.f32 %v4471_v0, %v5596_v48  ;;  %v6324_v0 = vrot.slane %v5384_v27, 3 }
 0x111   : > { %v5719_v22 = vadd.f32 %v4505_v60, %v791_v45  ;;  %v798_v47 = vpop.f32.mrf.mxu1  ;;  %v2913_v45 = vrot.slane %v2911_v42, 2  ;;  %v2908_v16 = vor.u32 %v2907_v12, %v2904_v51  ;;  %v2929_v60 = vshrl.u32 %v5514_v30, 16 }
 0x112   : > { %v1060_v31 = vpop.f32.mrf.mxu0  ;;  %v799_v33 = vadd.f32 %v798_v47, %v5604_v5  ;;  %v2920_v5 = vshrl.u32 %v5510_v14, 16  ;;  %v2932_v42 = vshll.u32 %v5514_v30, 16 }
 0x113   : > { %v5723_v55 = vadd.f32 %v1060_v31, %v783_v10  ;;  %v4474_v48 = vpop.f32.mrf.mxu1  ;;  %4689 = vmatmul.mubr.msk.bf16.vlgmr.msra.gmra.mxu1 %vm454_vm2, %v2891_v9  ;;  %v3319_v31 = vsel %vm3312_vm6, %v6324_v0, %v3318_v3 }
 0x114   : > { %v4508_v63 = vpop.f32.mrf.mxu0  ;;  %4683 = vmatmul.mubr.msk.bf16.gmra.mxu0 %vm454_vm2, %v2588_v18  ;;  %v820_v26 = vadd.f32 %v4474_v48, %v5612_v44  ;;  %4692 = vmatprep.mubr.msk.bf16.mxu1 %vm454_vm2, %v2900_v23  ;;  %v2909_v18 = vsel %vm2865_vm7, %v2899_v17, %v2908_v16  ;;  %v2922_v9 = vrot.slane %v2920_v5, 2  ;;  %v3322_v48 = vrot.slane %v5498_v58, 3 }
 0x115   : > { %v5729_v40 = vadd.f32 %v4508_v63, %v804_v50  ;;  %4726 = vmatprep.mubr.msk.bf16.mxu0 %vm454_vm2, %v5395_v37  ;;  %v2923_v50 = vshll.u32 %v5510_v14, 16  ;;  %v811_v39 = vpop.f32.mrf.mxu1  ;;  %v2917_v37 = vor.u32 %v2916_v36, %v2913_v45  ;;  %v2934_v45 = vrot.slane %v2932_v42, 3 }
 0x116   : > { %v1073_v10 = vpop.f32.mrf.mxu0  ;;  %v812_v41 = vadd.f32 %v811_v39, %v5621_v46  ;;  %v2947_v39 = vshrl.u32 %v5544_v8, 16 }
 0x117   : > { %v5736_v29 = vadd.f32 %v1073_v10, %v796_v24  ;;  %v4475_v44 = vpop.f32.mrf.mxu1  ;;  %v2925_v47 = vrot.slane %v2923_v50, 3  ;;  %v2918_v46 = vsel %vm2865_vm7, %v2908_v16, %v2917_v37  ;;  %v2941_v10 = vshll.u32 %v5536_v20, 16 }
 0x118   : > { %v4509_v61 = vpop.f32.mrf.mxu0  ;;  %v823_v51 = vadd.f32 %v4475_v44, %v5628_v13  ;;  %v3320_v13 = vrot.slane %v5492_v59, 3 }
 0x119   : > { %v5744_v2 = vadd.f32 %v4509_v61, %v807_v62  ;;  %v814_v63 = vpop.f32.mrf.mxu1  ;;  %v2931_v62 = vrot.slane %v2929_v60, 2  ;;  %v2950_v61 = vshll.u32 %v5544_v8, 16 }
 0x11a   : > { %v1076_v24 = vpop.f32.mrf.mxu0  ;;  %v815_v17 = vadd.f32 %v814_v63, %v5636_v28  ;;  %v2926_v28 = vor.u32 %v2925_v47, %v2922_v9  ;;  %v3321_v42 = vsel %vm3312_vm6, %v3318_v3, %v3320_v13 }
 0x11b   : > { %v5751_v12 = vadd.f32 %v1076_v24, %v799_v33  ;;  %v4478_v36 = vpop.f32.mrf.mxu1  ;;  %4693 = vmatmul.mubr.msk.bf16.gmra.mxu1 %vm454_vm2, %v2909_v18  ;;  %v2935_v59 = vor.u32 %v2934_v45, %v2931_v62  ;;  %v2943_v18 = vrot.slane %v2941_v10, 3  ;;  %v2952_v3 = vrot.slane %v2950_v61, 3 }
 0x11c   : > { %v4512_v23 = vpop.f32.mrf.mxu0  ;;  %4727 = vmatmul.mubr.msk.bf16.vlgmr.msra.gmra.mxu0 %vm454_vm2, %v5403_v43  ;;  %v2938_v43 = vshrl.u32 %v5536_v20, 16  ;;  %v836_v16 = vadd.f32 %v4478_v36, %v5644_v54  ;;  %4696 = vmatprep.mubr.msk.bf16.mxu1 %vm454_vm2, %v2918_v46  ;;  %v2927_v9 = vsel %vm2865_vm7, %v2917_v37, %v2926_v28  ;;  %v2956_v36 = vshrl.u32 %v5568_v53, 16 }
 0x11d   : > { %v5757_v27 = vadd.f32 %v4512_v23, %v820_v26  ;;  %4730 = vmatprep.mubr.msk.bf16.mxu0 %vm454_vm2, %v3319_v31  ;;  %v827_v26 = vpop.f32.mrf.mxu1 }
 0x11e   : > { %v1089_v33 = vpop.f32.mrf.mxu0  ;;  %v828_v58 = vadd.f32 %v827_v26, %v5651_v32  ;;  %v2940_v24 = vrot.slane %v2938_v43, 2  ;;  %v2936_v32 = vsel %vm2865_vm7, %v2926_v28, %v2935_v59 }
 0x11f   : > { %v5766_v5 = vadd.f32 %v1089_v33, %v812_v41  ;;  %v4479_v44 = vpop.f32.mrf.mxu1  ;;  %v3323_v41 = vsel %vm3312_vm6, %v3320_v13, %v3322_v48 }
 0x120   : > { %v4513_v50 = vpop.f32.mrf.mxu0  ;;  %v839_v0 = vadd.f32 %v4479_v44, %v5657_v11  ;;  %v3324_v11 = vrot.slane %v5510_v14, 3  ;;  %v2944_v45 = vor.u32 %v2943_v18, %v2940_v24  ;;  %v2965_v14 = vshrl.u32 %v5576_v49, 16 }
 0x121   : > { %v5772_v60 = vadd.f32 %v4513_v50, %v823_v51  ;;  %v830_v47 = vpop.f32.mrf.mxu1  ;;  %v2949_v51 = vrot.slane %v2947_v39, 2  ;;  %v2958_v44 = vrot.slane %v2956_v36, 2  ;;  %v2986_v36 = vshll.u32 %v5608_v4, 16 }
 0x122   : > { %v1092_v54 = vpop.f32.mrf.mxu0  ;;  %v831_v23 = vadd.f32 %v830_v47, %v5668_v1  ;;  %v2959_v1 = vshll.u32 %v5568_v53, 16  ;;  %v3325_v26 = vsel %vm3312_vm6, %v3322_v48, %v3324_v11  ;;  %v2945_v39 = vsel %vm2865_vm7, %v2935_v59, %v2944_v45 }
 0x123   : > { %v5777_v31 = vadd.f32 %v1092_v54, %v815_v17  ;;  %v4482_v62 = vpop.f32.mrf.mxu1  ;;  %4697 = vmatmul.mubr.msk.bf16.gmra.mxu1 %vm454_vm2, %v2927_v9  ;;  %v3326_v17 = vrot.slane %v5514_v30, 3  ;;  %v2953_v10 = vor.u32 %v2952_v3, %v2949_v51  ;;  %v2974_v51 = vshrl.u32 %v5600_v56, 16 }
 0x124   : > { %v4516_v63 = vpop.f32.mrf.mxu0  ;;  %4731 = vmatmul.mubr.msk.bf16.gmra.mxu0 %vm454_vm2, %v3321_v42  ;;  %4700 = vmatprep.mubr.msk.bf16.mxu1 %vm454_vm2, %v2936_v32  ;;  %v2961_v54 = vrot.slane %v2959_v1, 3  ;;  %v3330_v32 = vrot.slane %v5544_v8, 3  ;;  %v2977_v3 = vshll.u32 %v5600_v56, 16 }
 0x125   : > { %v5783_v46 = vadd.f32 %v4516_v63, %v836_v16  ;;  %4734 = vmatprep.mubr.msk.bf16.mxu0 %vm454_vm2, %v3323_v41  ;;  %v843_v33 = vpop.f32.mrf.mxu1  ;;  %v2968_v16 = vshll.u32 %v5576_v49, 16  ;;  %v3327_v61 = vsel %vm3312_vm6, %v3324_v11, %v3326_v17  ;;  %v2954_v18 = vsel %vm2865_vm7, %v2944_v45, %v2953_v10 }
 0x126   : > { %v1105_v37 = vpop.f32.mrf.mxu0  ;;  %v844_v9 = vadd.f32 %v843_v33, %v5530_v38  ;;  %v2962_v38 = vor.u32 %v2961_v54, %v2958_v44  ;;  %v2983_v45 = vshrl.u32 %v5608_v4, 16 }
 0x127   : > { %v5789_v13 = vadd.f32 %v1105_v37, %v828_v58  ;;  %v4483_v30 = vpop.f32.mrf.mxu1  ;;  %v852_v58 = vadd.f32 %v4482_v62, %v5521_v52  ;;  %v2970_v48 = vrot.slane %v2968_v16, 3  ;;  %v3328_v52 = vrot.slane %v5536_v20, 3 }
 0x128   : > { %v4517_v43 = vpop.f32.mrf.mxu0  ;;  %v2976_v16 = vrot.slane %v2974_v51, 2  ;;  %v2985_v44 = vrot.slane %v2983_v45, 2 }
 0x129   : > { %v5796_v28 = vadd.f32 %v4517_v43, %v839_v0  ;;  %v846_v41 = vpop.f32.mrf.mxu1  ;;  %v2967_v0 = vrot.slane %v2965_v14, 2  ;;  %v3329_v33 = vsel %vm3312_vm6, %v3326_v17, %v3328_v52  ;;  %v3331_v14 = vsel %vm3312_vm6, %v3328_v52, %v3330_v32 }
 0x12a   : > { %v1108_v50 = vpop.f32.mrf.mxu0  ;;  %v847_v8 = vadd.f32 %v846_v41, %v5546_v25  ;;  %v2988_v17 = vrot.slane %v2986_v36, 3 }
 0x12b   : > { %v5802_v42 = vadd.f32 %v1108_v50, %v831_v23  ;;  %v4486_v59 = vpop.f32.mrf.mxu1  ;;  %4701 = vmatmul.mubr.msk.bf16.gmra.mxu1 %vm454_vm2, %v2945_v39  ;;  %v855_v23 = vadd.f32 %v4483_v30, %v5538_v7  ;;  %v2971_v20 = vor.u32 %v2970_v48, %v2967_v0  ;;  %v2963_v39 = vsel %vm2865_vm7, %v2953_v10, %v2962_v38  ;;  %v6325_v48 = vld [vmem:[#allocation2_spill] sm:$0xff] }
 0x12c   : > { %v4520_v24 = vpop.f32.mrf.mxu0  ;;  %4735 = vmatmul.mubr.msk.bf16.gmra.mxu0 %vm454_vm2, %v3325_v26  ;;  %4704 = vmatprep.mubr.msk.bf16.mxu1 %vm454_vm2, %v2954_v18  ;;  %v2979_v26 = vrot.slane %v2977_v3, 3  ;;  %v868_v30 = vadd.f32 %v4486_v59, %v5553_v34  ;;  %v3332_v34 = vrot.slane %v5568_v53, 3  ;;  %v3334_v0 = vrot.slane %v5576_v49, 3 }
 0x12d   : > { %v5807_v47 = vadd.f32 %v4520_v24, %v852_v58  ;;  %4738 = vmatprep.mubr.msk.bf16.mxu0 %vm454_vm2, %v3327_v61  ;;  %v859_v62 = vpop.f32.mrf.mxu1  ;;  %v2972_v25 = vsel %vm2865_vm7, %v2962_v38, %v2971_v20  ;;  %v2989_v53 = vor.u32 %v2988_v17, %v2985_v44  ;;  %v6330_v17 = vld [vmem:[#allocation5_spill] sm:$0xff] }
 0x12e   : > { %v1121_v63 = vpop.f32.mrf.mxu0  ;;  %v860_v54 = vadd.f32 %v859_v62, %v5562_v35  ;;  %v2980_v18 = vor.u32 %v2979_v26, %v2976_v16  ;;  %v6326_v35 = vld [vmem:[#allocation10_spill] sm:$0xff]  ;;  %v3333_v36 = vsel %vm3312_vm6, %v3330_v32, %v3332_v34 }
 0x12f   : > { %v5816_v11 = vadd.f32 %v1121_v63, %v844_v9  ;;  %v4487_v43 = vpop.f32.mrf.mxu1  ;;  %v2992_v59 = vshrl.u32 %v6326_v35, 16  ;;  %v2995_v63 = vshll.u32 %v6326_v35, 16 }
 0x130   : > { %v4521_v37 = vpop.f32.mrf.mxu0  ;;  %v871_v9 = vadd.f32 %v4487_v43, %v6325_v48  ;;  %v2981_v43 = vsel %vm2865_vm7, %v2971_v20, %v2980_v18  ;;  %v3336_v20 = vrot.slane %v5600_v56, 3  ;;  %v3338_v48 = vrot.slane %v5608_v4, 3  ;;  %v6333_v4 = vld [vmem:[#allocation7_spill] sm:$0xff] }
 0x131   : > { %v5822_v1 = vadd.f32 %v4521_v37, %v855_v23  ;;  %v862_v61 = vpop.f32.mrf.mxu1  ;;  %v6327_v23 = vld [vmem:[#allocation12_spill] sm:$0xff]  ;;  %v6328_v37 = vld [vmem:[#allocation3_spill] sm:$0xff] }
 0x132   : > { %v1124_v7 = vpop.f32.mrf.mxu0  ;;  %v3001_v38 = vshrl.u32 %v6327_v23, 16  ;;  %v3004_v62 = vshll.u32 %v6327_v23, 16  ;;  %v863_v45 = vadd.f32 %v862_v61, %v6328_v37  ;;  %v2990_v61 = vsel %vm2865_vm7, %v2980_v18, %v2989_v53  ;;  %v6332_v37 = vld [vmem:[#allocation14_spill] sm:$0xff] }
 0x133   : > { %v5827_v50 = vadd.f32 %v1124_v7, %v847_v8  ;;  %v4490_v24 = vpop.f32.mrf.mxu1  ;;  %4705 = vmatmul.mubr.msk.bf16.gmra.mxu1 %vm454_vm2, %v2963_v39  ;;  %v3335_v7 = vsel %vm3312_vm6, %v3332_v34, %v3334_v0  ;;  %v2997_v39 = vrot.slane %v2995_v63, 3  ;;  %v3013_v18 = vshll.u32 %v5666_v57, 16 }
 0x134   : > { %v4524_v58 = vpop.f32.mrf.mxu0  ;;  %4739 = vmatmul.mubr.msk.bf16.gmra.mxu0 %vm454_vm2, %v3329_v33  ;;  %4708 = vmatprep.mubr.msk.bf16.mxu1 %vm454_vm2, %v2972_v25  ;;  %v3003_v44 = vrot.slane %v3001_v38, 2  ;;  %v3006_v32 = vrot.slane %v3004_v62, 3 }
 0x135   : > { %v5833_v41 = vadd.f32 %v4524_v58, %v868_v30  ;;  %4742 = vmatprep.mubr.msk.bf16.mxu0 %vm454_vm2, %v3331_v14  ;;  %v875_v51 = vpop.f32.mrf.mxu1  ;;  %v6329_v14 = vld [vmem:[#allocation4_spill] sm:$0xff]  ;;  %v2994_v30 = vrot.slane %v2992_v59, 2  ;;  %v6331_v59 = vld [vmem:[#allocation6_spill] sm:$0xff] }
 0x136   : > { %v1137_v10 = vpop.f32.mrf.mxu0  ;;  %v884_v16 = vadd.f32 %v4490_v24, %v6329_v14  ;;  %v3007_v62 = vor.u32 %v3006_v32, %v3003_v44 }
 0x137   : > { %v5840_v52 = vadd.f32 %v1137_v10, %v860_v54  ;;  %v4491_v8 = vpop.f32.mrf.mxu1  ;;  %v876_v54 = vadd.f32 %v875_v51, %v6330_v17  ;;  %v2998_v51 = vor.u32 %v2997_v39, %v2994_v30  ;;  %v5879_v30 = vld [vmem:[%s4902_s23 + $0xa0] ss:$0 sps:$4 sm:$0x77]   ;;  %v6334_v39 = vld [vmem:[#allocation8_spill] sm:$0xff] }
 0x138   : > { %v4525_v3 = vpop.f32.mrf.mxu0  ;;  %v887_v63 = vadd.f32 %v4491_v8, %v6331_v59 }
 0x139   : > { %v5848_v49 = vadd.f32 %v4525_v3, %v871_v9  ;;  %v878_v58 = vpop.f32.mrf.mxu1  ;;  %v3010_v9 = vshrl.u32 %v5666_v57, 16  ;;  %v2999_v17 = vsel %vm2865_vm7, %v2989_v53, %v2998_v51 }
 0x13a   : > { %v1140_v33 = vpop.f32.mrf.mxu0 }
 0x13b   : > { %v5854_v26 = vadd.f32 %v1140_v33, %v863_v45  ;;  %v4494_v34 = vpop.f32.mrf.mxu1  ;;  %4709 = vmatmul.mubr.msk.bf16.gmra.mxu1 %vm454_vm2, %v2981_v43  ;;  %v3019_v45 = vshrl.u32 %v6332_v37, 16  ;;  %v879_v33 = vadd.f32 %v878_v58, %v6333_v4  ;;  %v3342_v4 = vrot.slane %v6327_v23, 3 }
 0x13c   : > { %v4528_v25 = vpop.f32.mrf.mxu0  ;;  %4743 = vmatmul.mubr.msk.bf16.gmra.mxu0 %vm454_vm2, %v3333_v36  ;;  %4712 = vmatprep.mubr.msk.bf16.mxu1 %vm454_vm2, %v2990_v61  ;;  %v3022_v36 = vshll.u32 %v6332_v37, 16  ;;  %v3015_v61 = vrot.slane %v3013_v18, 3  ;;  %v900_v44 = vadd.f32 %v4494_v34, %v6334_v39  ;;  %v3340_v34 = vrot.slane %v6326_v35, 3 }
 0x13d   : > { %v5859_v10 = vadd.f32 %v4528_v25, %v884_v16  ;;  %4746 = vmatprep.mubr.msk.bf16.mxu0 %vm454_vm2, %v3335_v7  ;;  %v891_v38 = vpop.f32.mrf.mxu1  ;;  %v3337_v7 = vsel %vm3312_vm6, %v3334_v0, %v3336_v20  ;;  %v3339_v16 = vsel %vm3312_vm6, %v3336_v20, %v3338_v48  ;;  %v3012_v25 = vrot.slane %v3010_v9, 2 }
 0x13e   : > { %v1153_v24 = vpop.f32.mrf.mxu0  ;;  %v3008_v0 = vsel %vm2865_vm7, %v2998_v51, %v3007_v62  ;;  %v3024_v59 = vrot.slane %v3022_v36, 3  ;;  %v6336_v51 = vld [vmem:[#allocation11_spill] sm:$0xff] }
 0x13f   : > { %v5868_v3 = vadd.f32 %v1153_v24, %v876_v54  ;;  %v4495_v8 = vpop.f32.mrf.mxu1  ;;  %v3021_v24 = vrot.slane %v3019_v45, 2  ;;  %v6337_v36 = vld [vmem:[#allocation15_spill] sm:$0xff] }
 0x140   : > { %v4529_v56 = vpop.f32.mrf.mxu0  ;;  %v903_v45 = vadd.f32 %v4495_v8, %v6336_v51 }
 0x141   : > { %v5874_v43 = vadd.f32 %v4529_v56, %v887_v63  ;;  %v894_v54 = vpop.f32.mrf.mxu1  ;;  %v6335_v63 = vld [vmem:[#allocation9_spill] sm:$0xff]  ;;  %v3016_v56 = vor.u32 %v3015_v61, %v3012_v25  ;;  %v3025_v39 = vor.u32 %v3024_v59, %v3021_v24  ;;  %v6339_v25 = vld [vmem:[#allocation16_spill] sm:$0xff] }
 0x142   : > { %v1156_v14 = vpop.f32.mrf.mxu0  ;;  %v892_v20 = vadd.f32 %v891_v38, %v6335_v63 }
 0x143   : > { %v5882_v32 = vadd.f32 %v1156_v14, %v879_v33  ;;  %v4538_v18 = vpop.f32.mrf.mxu1  ;;  %4713 = vmatmul.mubr.msk.bf16.gmra.mxu1 %vm454_vm2, %v2999_v17  ;;  %v3028_v33 = vshrl.u32 %v5879_v30, 16  ;;  %v3031_v14 = vshll.u32 %v5879_v30, 16 }
 0x144   : > { %v4532_v58 = vpop.f32.mrf.mxu0  ;;  %4747 = vmatmul.mubr.msk.bf16.gmra.mxu0 %vm454_vm2, %v3337_v7  ;;  %v1625_v7 = vadd.f32 %v4538_v18, %v6337_v36  ;;  %4716 = vmatprep.mubr.msk.bf16.mxu1 %vm454_vm2, %v3008_v0  ;;  %v3343_v18 = vsel %vm3312_vm6, %v3340_v34, %v3342_v4 }
 0x145   : > { %v5888_v9 = vadd.f32 %v4532_v58, %v900_v44  ;;  %4750 = vmatprep.mubr.msk.bf16.mxu0 %vm454_vm2, %v3339_v16  ;;  %v1480_v35 = vpop.f32.mrf.mxu1  ;;  %v6338_v44 = vld [vmem:[#allocation13_spill] sm:$0xff]  ;;  %v3341_v58 = vsel %vm3312_vm6, %v3338_v48, %v3340_v34  ;;  %v3030_v51 = vrot.slane %v3028_v33, 2  ;;  %v3033_v24 = vrot.slane %v3031_v14, 3 }
 0x146   : > { %v1169_v53 = vpop.f32.mrf.mxu0  ;;  %v895_v17 = vadd.f32 %v894_v54, %v6338_v44  ;;  %v1623_v61 = vadd.f32 %v1480_v35, %v6339_v25  ;;  %v3346_v33 = vrot.slane %v6332_v37, 3 }
 0x147   : > { %v5897_v38 = vadd.f32 %v1169_v53, %v892_v20  ;;  %v4539_v8 = vpop.f32.mrf.mxu1  ;;  %v3017_v20 = vsel %vm2865_vm7, %v3007_v62, %v3016_v56  ;;  %v3344_v62 = vrot.slane %v5666_v57, 3 }
 0x148   : > { %v4533_v16 = vpop.f32.mrf.mxu0  ;;  %v1626_v0 = vadd.f32 %v4539_v8, %v5694_v19 }
 0x149   : > { %v5903_v23 = vadd.f32 %v4533_v16, %v903_v45  ;;  %v1483_v59 = vpop.f32.mrf.mxu1  ;;  %v3026_v45 = vsel %vm2865_vm7, %v3016_v56, %v3025_v39  ;;  %v3034_v56 = vor.u32 %v3033_v24, %v3030_v51  ;;  %v3345_v57 = vsel %vm3312_vm6, %v3342_v4, %v3344_v62 }
 0x14a   : > { %v1172_v63 = vpop.f32.mrf.mxu0  ;;  %v1624_v48 = vadd.f32 %v1483_v59, %v5700_v21  ;;  %v3348_v4 = vrot.slane %v5879_v30, 3 }
 0x14b   : > { %v5909_v53 = vadd.f32 %v1172_v63, %v895_v17  ;;  %v4542_v34 = vpop.f32.mrf.mxu1  ;;  %4717 = vmatmul.mubr.msk.bf16.gmra.mxu1 %vm454_vm2, %v3017_v20 }
 0x14c   : > { %v4576_v54 = vpop.f32.mrf.mxu0  ;;  %4751 = vmatmul.mubr.msk.bf16.gmra.mxu0 %vm454_vm2, %v3341_v58  ;;  %v1629_v14 = vadd.f32 %v4542_v34, %v5705_v15  ;;  %4720 = vmatprep.mubr.msk.bf16.mxu1 %vm454_vm2, %v3026_v45  ;;  %v3347_v58 = vsel %vm3312_vm6, %v3344_v62, %v3346_v33 }
 0x14d   : > { %v5914_v36 = vadd.f32 %v4576_v54, %v1625_v7  ;;  %4754 = vmatprep.mubr.msk.bf16.mxu0 %vm454_vm2, %v3343_v18  ;;  %v1496_v21 = vpop.f32.mrf.mxu1 }
 0x14e   : > { %v1927_v19 = vpop.f32.mrf.mxu0  ;;  %v1627_v16 = vadd.f32 %v1496_v21, %v5713_v6 }
 0x14f   : > { %v5921_v35 = vadd.f32 %v1927_v19, %v1623_v61  ;;  %v4543_v17 = vpop.f32.mrf.mxu1  ;;  %v3035_v61 = vsel %vm2865_vm7, %v3025_v39, %v3034_v56 }
 0x150   : > { %v4577_v7 = vpop.f32.mrf.mxu0  ;;  %v1630_v37 = vadd.f32 %v4543_v17, %v5719_v22 }
 0x151   : > { %v5925_v44 = vadd.f32 %v4577_v7, %v1626_v0  ;;  %v1499_v8 = vpop.f32.mrf.mxu1 }
 0x152   : > { %v1930_v25 = vpop.f32.mrf.mxu0  ;;  %v1628_v6 = vadd.f32 %v1499_v8, %v5723_v55  ;;  %v3349_v55 = vsel %vm3312_vm6, %v3346_v33, %v3348_v4 }
 0x153   : > { %v5930_v15 = vadd.f32 %v1930_v25, %v1624_v48  ;;  %v4546_v18 = vpop.f32.mrf.mxu1  ;;  %4721 = vmatmul.mubr.msk.bf16.gmra.mxu1 %vm454_vm2, %v3035_v61 }
 0x154   : > { %v4580_v63 = vpop.f32.mrf.mxu0  ;;  %4755 = vmatmul.mubr.msk.bf16.gmra.mxu0 %vm454_vm2, %v3345_v57  ;;  %v1633_v0 = vadd.f32 %v4546_v18, %v5729_v40 }
 0x155   : > { %v5935_v20 = vadd.f32 %v4580_v63, %v1629_v14  ;;  %4758 = vmatprep.mubr.msk.bf16.mxu0 %vm454_vm2, %v3347_v58  ;;  %v1512_v39 = vpop.f32.mrf.mxu1 }
 0x156   : > { %v1943_v22 = vpop.f32.mrf.mxu0  ;;  %v1631_v59 = vadd.f32 %v1512_v39, %v5736_v29 }
 0x157   : > { %v5941_v51 = vadd.f32 %v1943_v22, %v1627_v16  ;;  %v4547_v45 = vpop.f32.mrf.mxu1 }
 0x158   : > { %v4581_v24 = vpop.f32.mrf.mxu0  ;;  %v1634_v30 = vadd.f32 %v4547_v45, %v5744_v2 }
 0x159   : > { %v5944_v54 = vadd.f32 %v4581_v24, %v1630_v37  ;;  %v1515_v34 = vpop.f32.mrf.mxu1 }
 0x15a   : > { %v1946_v48 = vpop.f32.mrf.mxu0  ;;  %v1632_v40 = vadd.f32 %v1515_v34, %v5751_v12 }
 0x15b   : > { %v5948_v62 = vadd.f32 %v1946_v48, %v1628_v6  ;;  %v4550_v56 = vpop.f32.mrf.mxu1 }
 0x15c   : > { %v4584_v19 = vpop.f32.mrf.mxu0  ;;  %4759 = vmatmul.mubr.msk.bf16.gmra.mxu0 %vm454_vm2, %v3349_v55  ;;  %v1637_v21 = vadd.f32 %v4550_v56, %v5757_v27 }
 0x15d   : > { %v5952_v14 = vadd.f32 %v4584_v19, %v1633_v0  ;;  %v1528_v33 = vpop.f32.mrf.mxu1 }
 0x15e   : > { %v1959_v29 = vpop.f32.mrf.mxu0  ;;  %v1635_v2 = vadd.f32 %v1528_v33, %v5766_v5 }
 0x15f   : > { %v5955_v7 = vadd.f32 %v1959_v29, %v1631_v59  ;;  %v4551_v17 = vpop.f32.mrf.mxu1 }
 0x160   : > { %v4585_v16 = vpop.f32.mrf.mxu0  ;;  %v1638_v58 = vadd.f32 %v4551_v17, %v5772_v60 }
 0x161   : > { %v5958_v57 = vadd.f32 %v4585_v16, %v1634_v30  ;;  %v1531_v12 = vpop.f32.mrf.mxu1 }
 0x162   : > { %v1962_v25 = vpop.f32.mrf.mxu0  ;;  %v1636_v8 = vadd.f32 %v1531_v12, %v5777_v31 }
 0x163   : > { %v5961_v37 = vadd.f32 %v1962_v25, %v1632_v40  ;;  %v4554_v27 = vpop.f32.mrf.mxu1 }
 0x164   : > { %v4588_v61 = vpop.f32.mrf.mxu0  ;;  %v1641_v4 = vadd.f32 %v4554_v27, %v5783_v46 }
 0x165   : > { %v5964_v63 = vadd.f32 %v4588_v61, %v1637_v21  ;;  %v1544_v5 = vpop.f32.mrf.mxu1 }
 0x166   : > { %v1975_v6 = vpop.f32.mrf.mxu0  ;;  %v1639_v0 = vadd.f32 %v1544_v5, %v5789_v13 }
 0x167   : > { %v5967_v18 = vadd.f32 %v1975_v6, %v1635_v2  ;;  %v4555_v60 = vpop.f32.mrf.mxu1 }
 0x168   : > { %v4589_v22 = vpop.f32.mrf.mxu0  ;;  %v1642_v59 = vadd.f32 %v4555_v60, %v5796_v28 }
 0x169   : > { %v5970_v39 = vadd.f32 %v4589_v22, %v1638_v58  ;;  %v1547_v31 = vpop.f32.mrf.mxu1 }
 0x16a   : > { %v1978_v24 = vpop.f32.mrf.mxu0  ;;  %v1640_v48 = vadd.f32 %v1547_v31, %v5802_v42 }
 0x16b   : > { %v5973_v55 = vadd.f32 %v1978_v24, %v1636_v8  ;;  %v4558_v46 = vpop.f32.mrf.mxu1 }
 0x16c   : > { %v4592_v45 = vpop.f32.mrf.mxu0  ;;  %v1645_v19 = vadd.f32 %v4558_v46, %v5807_v47 }
 0x16d   : > { %v5976_v30 = vadd.f32 %v4592_v45, %v1641_v4  ;;  %v1560_v13 = vpop.f32.mrf.mxu1 }
 0x16e   : > { %v1991_v34 = vpop.f32.mrf.mxu0  ;;  %v1643_v29 = vadd.f32 %v1560_v13, %v5816_v11 }
 0x16f   : > { %v5979_v40 = vadd.f32 %v1991_v34, %v1639_v0  ;;  %v4559_v28 = vpop.f32.mrf.mxu1 }
 0x170   : > { %v4593_v56 = vpop.f32.mrf.mxu0  ;;  %v1646_v16 = vadd.f32 %v4559_v28, %v5822_v1 }
 0x171   : > { %v5982_v21 = vadd.f32 %v4593_v56, %v1642_v59  ;;  %v1563_v42 = vpop.f32.mrf.mxu1 }
 0x172   : > { %v1994_v33 = vpop.f32.mrf.mxu0  ;;  %v1644_v25 = vadd.f32 %v1563_v42, %v5827_v50 }
 0x173   : > { %v5985_v2 = vadd.f32 %v1994_v33, %v1640_v48  ;;  %v4562_v47 = vpop.f32.mrf.mxu1 }
 0x174   : > { %v4596_v17 = vpop.f32.mrf.mxu0  ;;  %v1649_v61 = vadd.f32 %v4562_v47, %v5833_v41 }
 0x175   : > { %v5988_v58 = vadd.f32 %v4596_v17, %v1645_v19  ;;  %v1576_v11 = vpop.f32.mrf.mxu1 }
 0x176   : > { %v2007_v12 = vpop.f32.mrf.mxu0  ;;  %v1647_v6 = vadd.f32 %v1576_v11, %v5840_v52 }
 0x177   : > { %v5991_v8 = vadd.f32 %v2007_v12, %v1643_v29  ;;  %v4563_v1 = vpop.f32.mrf.mxu1 }
 0x178   : > { %v4597_v27 = vpop.f32.mrf.mxu0  ;;  %v1650_v22 = vadd.f32 %v4563_v1, %v5848_v49 }
 0x179   : > { %v5994_v4 = vadd.f32 %v4597_v27, %v1646_v16  ;;  %v1579_v50 = vpop.f32.mrf.mxu1 }
 0x17a   : > { %v2010_v5 = vpop.f32.mrf.mxu0  ;;  %v1648_v24 = vadd.f32 %v1579_v50, %v5854_v26 }
 0x17b   : > { %v5997_v0 = vadd.f32 %v2010_v5, %v1644_v25  ;;  %v4566_v41 = vpop.f32.mrf.mxu1 }
 0x17c   : > { %v4600_v60 = vpop.f32.mrf.mxu0  ;;  %v1653_v45 = vadd.f32 %v4566_v41, %v5859_v10 }
 0x17d   : > { %v6000_v59 = vadd.f32 %v4600_v60, %v1649_v61  ;;  %v1592_v52 = vpop.f32.mrf.mxu1 }
 0x17e   : > { %v2023_v31 = vpop.f32.mrf.mxu0  ;;  %v1651_v34 = vadd.f32 %v1592_v52, %v5868_v3 }
 0x17f   : > { %v6003_v48 = vadd.f32 %v2023_v31, %v1647_v6  ;;  %v4567_v49 = vpop.f32.mrf.mxu1 }
 0x180   : > { %v4601_v46 = vpop.f32.mrf.mxu0  ;;  %v1654_v56 = vadd.f32 %v4567_v49, %v5874_v43 }
 0x181   : > { %v6006_v19 = vadd.f32 %v4601_v46, %v1650_v22  ;;  %v1595_v26 = vpop.f32.mrf.mxu1 }
 0x182   : > { %v2026_v13 = vpop.f32.mrf.mxu0  ;;  %v1652_v33 = vadd.f32 %v1595_v26, %v5882_v32 }
 0x183   : > { %v6009_v29 = vadd.f32 %v2026_v13, %v1648_v24  ;;  %v4570_v10 = vpop.f32.mrf.mxu1 }
 0x184   : > { %v4604_v28 = vpop.f32.mrf.mxu0  ;;  %v1657_v17 = vadd.f32 %v4570_v10, %v5888_v9 }
 0x185   : > { %v6012_v16 = vadd.f32 %v4604_v28, %v1653_v45  ;;  %v1608_v3 = vpop.f32.mrf.mxu1 }
 0x186   : > { %v2039_v42 = vpop.f32.mrf.mxu0  ;;  %v1655_v12 = vadd.f32 %v1608_v3, %v5897_v38 }
 0x187   : > { %v6015_v25 = vadd.f32 %v2039_v42, %v1651_v34  ;;  %v4571_v43 = vpop.f32.mrf.mxu1 }
 0x188   : > { %v4605_v47 = vpop.f32.mrf.mxu0  ;;  %v1658_v27 = vadd.f32 %v4571_v43, %v5903_v23 }
 0x189   : > { %v6018_v61 = vadd.f32 %v4605_v47, %v1654_v56  ;;  %v1611_v32 = vpop.f32.mrf.mxu1 }
 0x18a   : > { %v2042_v11 = vpop.f32.mrf.mxu0  ;;  %v1656_v5 = vadd.f32 %v1611_v32, %v5909_v53 }
 0x18b   : > { %v6021_v6 = vadd.f32 %v2042_v11, %v1652_v33  ;;  %v4614_v9 = vpop.f32.mrf.mxu1 }
 0x18c   : > { %v4608_v1 = vpop.f32.mrf.mxu0  ;;  %v2386_v60 = vadd.f32 %v4614_v9, %v5914_v36 }
 0x18d   : > { %v6024_v22 = vadd.f32 %v4608_v1, %v1657_v17  ;;  %v2241_v38 = vpop.f32.mrf.mxu1 }
 0x18e   : > { %v2055_v50 = vpop.f32.mrf.mxu0  ;;  %v2384_v31 = vadd.f32 %v2241_v38, %v5921_v35 }
 0x18f   : > { %v6027_v24 = vadd.f32 %v2055_v50, %v1655_v12  ;;  %v4615_v23 = vpop.f32.mrf.mxu1 }
 0x190   : > { %v4609_v41 = vpop.f32.mrf.mxu0  ;;  %v2387_v46 = vadd.f32 %v4615_v23, %v5925_v44 }
 0x191   : > { %v6030_v45 = vadd.f32 %v4609_v41, %v1658_v27  ;;  %v2244_v53 = vpop.f32.mrf.mxu1 }
 0x192   : > { %v2058_v52 = vpop.f32.mrf.mxu0  ;;  %v2385_v13 = vadd.f32 %v2244_v53, %v5930_v15 }
 0x193   : > { %v6033_v34 = vadd.f32 %v2058_v52, %v1656_v5  ;;  %v4618_v36 = vpop.f32.mrf.mxu1 }
 0x194   : > { %v4652_v49 = vpop.f32.mrf.mxu0  ;;  %v2390_v28 = vadd.f32 %v4618_v36, %v5935_v20 }
 0x195   : > { %v6036_v56 = vadd.f32 %v4652_v49, %v2386_v60  ;;  %v2257_v35 = vpop.f32.mrf.mxu1 }
 0x196   : > { %v2680_v26 = vpop.f32.mrf.mxu0  ;;  %v2388_v42 = vadd.f32 %v2257_v35, %v5941_v51 }
 0x197   : > { %v6039_v33 = vadd.f32 %v2680_v26, %v2384_v31  ;;  %v4619_v44 = vpop.f32.mrf.mxu1 }
 0x198   : > { %v4653_v10 = vpop.f32.mrf.mxu0  ;;  %v2391_v47 = vadd.f32 %v4619_v44, %v5944_v54 }
 0x199   : > { %v6042_v17 = vadd.f32 %v4653_v10, %v2387_v46  ;;  %v2260_v15 = vpop.f32.mrf.mxu1 }
 0x19a   : > { %v2683_v3 = vpop.f32.mrf.mxu0  ;;  %v2389_v11 = vadd.f32 %v2260_v15, %v5948_v62 }
 0x19b   : > { %v6045_v12 = vadd.f32 %v2683_v3, %v2385_v13  ;;  %v4622_v20 = vpop.f32.mrf.mxu1 }
 0x19c   : > { %v4656_v43 = vpop.f32.mrf.mxu0  ;;  %v2394_v1 = vadd.f32 %v4622_v20, %v5952_v14 }
 0x19d   : > { %v6048_v27 = vadd.f32 %v4656_v43, %v2390_v28  ;;  %v2273_v51 = vpop.f32.mrf.mxu1 }
 0x19e   : > { %v2696_v32 = vpop.f32.mrf.mxu0  ;;  %v2392_v50 = vadd.f32 %v2273_v51, %v5955_v7 }
 0x19f   : > { %v6051_v5 = vadd.f32 %v2696_v32, %v2388_v42  ;;  %v4623_v54 = vpop.f32.mrf.mxu1 }
 0x1a0   : > { %v4657_v9 = vpop.f32.mrf.mxu0  ;;  %v2395_v41 = vadd.f32 %v4623_v54, %v5958_v57 }
 0x1a1   : > { %v6054_v60 = vadd.f32 %v4657_v9, %v2391_v47  ;;  %v2276_v62 = vpop.f32.mrf.mxu1 }
 0x1a2   : > { %v2699_v38 = vpop.f32.mrf.mxu0  ;;  %v2393_v52 = vadd.f32 %v2276_v62, %v5961_v37 }
 0x1a3   : > { %v6057_v31 = vadd.f32 %v2699_v38, %v2389_v11  ;;  %v4626_v14 = vpop.f32.mrf.mxu1 }
 0x1a4   : > { %v4660_v23 = vpop.f32.mrf.mxu0  ;;  %v2398_v49 = vadd.f32 %v4626_v14, %v5964_v63 }
 0x1a5   : > { %v6060_v46 = vadd.f32 %v4660_v23, %v2394_v1  ;;  %v2289_v7 = vpop.f32.mrf.mxu1 }
 0x1a6   : > { %v2712_v53 = vpop.f32.mrf.mxu0  ;;  %v2396_v26 = vadd.f32 %v2289_v7, %v5967_v18 }
 0x1a7   : > { %v6063_v13 = vadd.f32 %v2712_v53, %v2392_v50  ;;  %v4627_v57 = vpop.f32.mrf.mxu1 }
 0x1a8   : > { %v4661_v36 = vpop.f32.mrf.mxu0  ;;  %v2399_v10 = vadd.f32 %v4627_v57, %v5970_v39 }
 0x1a9   : > { %v6066_v28 = vadd.f32 %v4661_v36, %v2395_v41  ;;  %v2292_v37 = vpop.f32.mrf.mxu1 }
 0x1aa   : > { %v2715_v35 = vpop.f32.mrf.mxu0  ;;  %v2397_v3 = vadd.f32 %v2292_v37, %v5973_v55 }
 0x1ab   : > { %v6069_v42 = vadd.f32 %v2715_v35, %v2393_v52  ;;  %v4630_v63 = vpop.f32.mrf.mxu1 }
 0x1ac   : > { %v4664_v44 = vpop.f32.mrf.mxu0  ;;  %v2402_v43 = vadd.f32 %v4630_v63, %v5976_v30 }
 0x1ad   : > { %v6072_v47 = vadd.f32 %v4664_v44, %v2398_v49  ;;  %v2305_v18 = vpop.f32.mrf.mxu1 }
 0x1ae   : > { %v2728_v15 = vpop.f32.mrf.mxu0  ;;  %v2400_v32 = vadd.f32 %v2305_v18, %v5979_v40 }
 0x1af   : > { %v6075_v11 = vadd.f32 %v2728_v15, %v2396_v26  ;;  %v4631_v39 = vpop.f32.mrf.mxu1 }
 0x1b0   : > { %v4665_v20 = vpop.f32.mrf.mxu0  ;;  %v2403_v9 = vadd.f32 %v4631_v39, %v5982_v21 }
 0x1b1   : > { %v6078_v1 = vadd.f32 %v4665_v20, %v2399_v10  ;;  %v2308_v55 = vpop.f32.mrf.mxu1 }
 0x1b2   : > { %v2731_v51 = vpop.f32.mrf.mxu0  ;;  %v2401_v38 = vadd.f32 %v2308_v55, %v5985_v2 }
 0x1b3   : > { %v6081_v50 = vadd.f32 %v2731_v51, %v2397_v3  ;;  %v4634_v30 = vpop.f32.mrf.mxu1 }
 0x1b4   : > { %v4668_v54 = vpop.f32.mrf.mxu0  ;;  %v2406_v23 = vadd.f32 %v4634_v30, %v5988_v58 }
 0x1b5   : > { %v6084_v41 = vadd.f32 %v4668_v54, %v2402_v43  ;;  %v2321_v40 = vpop.f32.mrf.mxu1 }
 0x1b6   : > { %v2744_v62 = vpop.f32.mrf.mxu0  ;;  %v2404_v53 = vadd.f32 %v2321_v40, %v5991_v8 }
 0x1b7   : > { %v6087_v52 = vadd.f32 %v2744_v62, %v2400_v32  ;;  %v4635_v21 = vpop.f32.mrf.mxu1 }
 0x1b8   : > { %v4669_v14 = vpop.f32.mrf.mxu0  ;;  %v2407_v36 = vadd.f32 %v4635_v21, %v5994_v4 }
 0x1b9   : > { %v6090_v49 = vadd.f32 %v4669_v14, %v2403_v9  ;;  %v2324_v2 = vpop.f32.mrf.mxu1 }
 0x1ba   : > { %v2747_v7 = vpop.f32.mrf.mxu0  ;;  %v2405_v35 = vadd.f32 %v2324_v2, %v5997_v0 }
 0x1bb   : > { %v6093_v26 = vadd.f32 %v2747_v7, %v2401_v38  ;;  %v4638_v58 = vpop.f32.mrf.mxu1 }
 0x1bc   : > { %v4672_v57 = vpop.f32.mrf.mxu0  ;;  %v2410_v44 = vadd.f32 %v4638_v58, %v6000_v59 }
 0x1bd   : > { %v6096_v10 = vadd.f32 %v4672_v57, %v2406_v23  ;;  %v2337_v8 = vpop.f32.mrf.mxu1 }
 0x1be   : > { %v2760_v37 = vpop.f32.mrf.mxu0  ;;  %v2408_v15 = vadd.f32 %v2337_v8, %v6003_v48 }
 0x1bf   : > { %v6099_v3 = vadd.f32 %v2760_v37, %v2404_v53  ;;  %v4639_v4 = vpop.f32.mrf.mxu1 }
 0x1c0   : > { %v4673_v63 = vpop.f32.mrf.mxu0  ;;  %v2411_v20 = vadd.f32 %v4639_v4, %v6006_v19 }
 0x1c1   : > { %v6102_v43 = vadd.f32 %v4673_v63, %v2407_v36  ;;  %v2340_v0 = vpop.f32.mrf.mxu1 }
 0x1c2   : > { %v2763_v18 = vpop.f32.mrf.mxu0  ;;  %v2409_v51 = vadd.f32 %v2340_v0, %v6009_v29 }
 0x1c3   : > { %v6105_v32 = vadd.f32 %v2763_v18, %v2405_v35  ;;  %v4642_v59 = vpop.f32.mrf.mxu1 }
 0x1c4   : > { %v4676_v39 = vpop.f32.mrf.mxu0  ;;  %v2414_v54 = vadd.f32 %v4642_v59, %v6012_v16 }
 0x1c5   : > { %v6108_v9 = vadd.f32 %v4676_v39, %v2410_v44  ;;  %v2353_v48 = vpop.f32.mrf.mxu1 }
 0x1c6   : > { %v2776_v55 = vpop.f32.mrf.mxu0  ;;  %v2412_v62 = vadd.f32 %v2353_v48, %v6015_v25 }
 0x1c7   : > { %v6111_v38 = vadd.f32 %v2776_v55, %v2408_v15  ;;  %v4643_v19 = vpop.f32.mrf.mxu1 }
 0x1c8   : > { %v4677_v30 = vpop.f32.mrf.mxu0  ;;  %v2415_v14 = vadd.f32 %v4643_v19, %v6018_v61 }
 0x1c9   : > { %v6114_v23 = vadd.f32 %v4677_v30, %v2411_v20  ;;  %v2356_v29 = vpop.f32.mrf.mxu1 }
 0x1ca   : > { %v2779_v40 = vpop.f32.mrf.mxu0  ;;  %v2413_v7 = vadd.f32 %v2356_v29, %v6021_v6 }
 0x1cb   : > { %v6117_v53 = vadd.f32 %v2779_v40, %v2409_v51  ;;  %v4646_v16 = vpop.f32.mrf.mxu1 }
 0x1cc   : > { %v4680_v21 = vpop.f32.mrf.mxu0  ;;  %v2418_v57 = vadd.f32 %v4646_v16, %v6024_v22 }
 0x1cd   : > { %v6120_v36 = vadd.f32 %v4680_v21, %v2414_v54  ;;  %v2369_v25 = vpop.f32.mrf.mxu1 }
 0x1ce   : > { %v2792_v2 = vpop.f32.mrf.mxu0  ;;  %v2416_v37 = vadd.f32 %v2369_v25, %v6027_v24 }
 0x1cf   : > { %v6123_v35 = vadd.f32 %v2792_v2, %v2412_v62  ;;  %v4647_v61 = vpop.f32.mrf.mxu1 }
 0x1d0   : > { %v4681_v58 = vpop.f32.mrf.mxu0  ;;  %v2419_v63 = vadd.f32 %v4647_v61, %v6030_v45 }
 0x1d1   : > { %v6126_v44 = vadd.f32 %v4681_v58, %v2415_v14  ;;  %v2372_v6 = vpop.f32.mrf.mxu1 }
 0x1d2   : > { %v2795_v8 = vpop.f32.mrf.mxu0  ;;  %v2417_v18 = vadd.f32 %v2372_v6, %v6033_v34  ;;  %v6144_v34 = vld [vmem:[%s6300_s2] ss:$0 sm:$0xff] }
 0x1d3   : > { %v6129_v15 = vadd.f32 %v2795_v8, %v2413_v7  ;;  %v4690_v22 = vpop.f32.mrf.mxu1 }
 0x1d4   : > { %v4684_v4 = vpop.f32.mrf.mxu0  ;;  %v3272_v45 = vadd.f32 %v4690_v22, %v6036_v56 }
 0x1d5   : > { %v6132_v20 = vadd.f32 %v4684_v4, %v2418_v57  ;;  %v3127_v24 = vpop.f32.mrf.mxu1 }
 0x1d6   : > { %v2808_v0 = vpop.f32.mrf.mxu0  ;;  %v3270_v19 = vadd.f32 %v3127_v24, %v6039_v33 }
 0x1d7   : > { %v6134_v39 = vadd.f32 %v2808_v0, %v2416_v37  ;;  %v4691_v55 = vpop.f32.mrf.mxu1 }
 0x1d8   : > { %v4685_v51 = vpop.f32.mrf.mxu0  ;;  %v3273_v21 = vadd.f32 %v4691_v55, %v6042_v17 }
 0x1d9   : > { %v6136_v59 = vadd.f32 %v4685_v51, %v2419_v63  ;;  %v3130_v30 = vpop.f32.mrf.mxu1 }
 0x1da   : > { %v2811_v54 = vpop.f32.mrf.mxu0  ;;  %v3271_v37 = vadd.f32 %v3130_v30, %v6045_v12 }
 0x1db   : > { %v6139_v48 = vadd.f32 %v2811_v54, %v2417_v18  ;;  %v4694_v14 = vpop.f32.mrf.mxu1 }
 0x1dc   : > { %v4728_v62 = vpop.f32.mrf.mxu0  ;;  %v3276_v61 = vadd.f32 %v4694_v14, %v6048_v27 }
 0x1dd   : > { %v3586_v40 = vadd.f32 %v4728_v62, %v3272_v45  ;;  %v3143_v16 = vpop.f32.mrf.mxu1 }
 0x1de   : > { %v3441_v29 = vpop.f32.mrf.mxu0  ;;  %v3274_v12 = vadd.f32 %v3143_v16, %v6051_v5 }
 0x1df   : > { %v3629_v7 = vadd.f32 %v6144_v34, %v3586_v40  ;;  %v3584_v56 = vadd.f32 %v3441_v29, %v3270_v19  ;;  %v4695_v33 = vpop.f32.mrf.mxu1 }
 0x1e0   : > { %v4729_v2 = vpop.f32.mrf.mxu0  ;;  %v3277_v27 = vadd.f32 %v4695_v33, %v6054_v60 }
 0x1e1   : > { %v3665_v57 = vmax.f32 %v3629_v7, 0.0  ;;  %v3627_v25 = vadd.f32 %v6144_v34, %v3584_v56  ;;  %v3587_v58 = vadd.f32 %v4729_v2, %v3273_v21  ;;  %v3146_v4 = vpop.f32.mrf.mxu1 }
 0x1e2   : > { %v3444_v17 = vpop.f32.mrf.mxu0  ;;  %v3275_v56 = vadd.f32 %v3146_v4, %v6057_v31 }
 0x1e3   : > { %v4215_v8 = vpack.c.bf16 %v3665_v57, %v3665_v57  ;;  %v3663_v63 = vmax.f32 %v3627_v25, 0.0  ;;  %v3630_v6 = vadd.f32 %v6144_v34, %v3587_v58  ;;  %v3585_v18 = vadd.f32 %v3444_v17, %v3271_v37  ;;  %v4698_v54 = vpop.f32.mrf.mxu1 }
 0x1e4   : > { %v4732_v22 = vpop.f32.mrf.mxu0  ;;  %v3280_v57 = vadd.f32 %v4698_v54, %v6060_v46 }
 0x1e5   : > { %3846 = vst.msk [vmem:[%s6155_s16 + $0x8] sm:$0xf] %vm3843_vm8, %v4215_v8  ;;  %v4213_v0 = vpack.c.bf16 %v3663_v63, %v3663_v63  ;;  %v3666_v24 = vmax.f32 %v3630_v6, 0.0  ;;  %v3590_v51 = vadd.f32 %v4732_v22, %v3276_v61  ;;  %v3628_v55 = vadd.f32 %v6144_v34, %v3585_v18  ;;  %v3159_v14 = vpop.f32.mrf.mxu1 }
 0x1e6   : > { %v3457_v45 = vpop.f32.mrf.mxu0  ;;  %v3278_v31 = vadd.f32 %v3159_v14, %v6063_v13 }
 0x1e7   : > { %3844 = vst.msk [vmem:[%s6155_s16] sm:$0xf] %vm3843_vm8, %v4213_v0  ;;  %v4216_v30 = vpack.c.bf16 %v3666_v24, %v3666_v24  ;;  %v3633_v62 = vadd.f32 %v6144_v34, %v3590_v51  ;;  %v3588_v19 = vadd.f32 %v3457_v45, %v3274_v12  ;;  %v3664_v40 = vmax.f32 %v3628_v55, 0.0  ;;  %v4699_v2 = vpop.f32.mrf.mxu1 }
 0x1e8   : > { %v4733_v29 = vpop.f32.mrf.mxu0  ;;  %v3281_v22 = vadd.f32 %v4699_v2, %v6066_v28 }
 0x1e9   : > { %3847 = vst.msk [vmem:[%s6155_s16 + $0xc] sm:$0xf] %vm3843_vm8, %v4216_v30  ;;  %v3669_v5 = vmax.f32 %v3633_v62, 0.0  ;;  %v3631_v21 = vadd.f32 %v6144_v34, %v3588_v19  ;;  %v3591_v7 = vadd.f32 %v4733_v29, %v3277_v27  ;;  %v4214_v16 = vpack.c.bf16 %v3664_v40, %v3664_v40  ;;  %v3162_v33 = vpop.f32.mrf.mxu1 }
 0x1ea   : > { %v3460_v60 = vpop.f32.mrf.mxu0  ;;  %v3279_v30 = vadd.f32 %v3162_v33, %v6069_v42 }
 0x1eb   : > { %v4219_v25 = vpack.c.bf16 %v3669_v5, %v3669_v5  ;;  %v3667_v58 = vmax.f32 %v3631_v21, 0.0  ;;  %v3634_v37 = vadd.f32 %v6144_v34, %v3591_v7  ;;  %3845 = vst.msk [vmem:[%s6155_s16 + $0x4] sm:$0xf] %vm3843_vm8, %v4214_v16  ;;  %v3589_v17 = vadd.f32 %v3460_v60, %v3275_v56  ;;  %v4702_v4 = vpop.f32.mrf.mxu1 }
 0x1ec   : > { %v4736_v61 = vpop.f32.mrf.mxu0  ;;  %v3284_v40 = vadd.f32 %v4702_v4, %v6072_v47 }
 0x1ed   : > { %3850 = vst.msk [vmem:[%s6155_s16 + $0x18] sm:$0xf] %vm3843_vm8, %v4219_v25  ;;  %v4217_v8 = vpack.c.bf16 %v3667_v58, %v3667_v58  ;;  %v3670_v63 = vmax.f32 %v3634_v37, 0.0  ;;  %v3594_v6 = vadd.f32 %v4736_v61, %v3280_v57  ;;  %v3632_v46 = vadd.f32 %v6144_v34, %v3589_v17  ;;  %v3175_v55 = vpop.f32.mrf.mxu1 }
 0x1ee   : > { %v3473_v18 = vpop.f32.mrf.mxu0  ;;  %v3282_v42 = vadd.f32 %v3175_v55, %v6075_v11 }
 0x1ef   : > { %3848 = vst.msk [vmem:[%s6155_s16 + $0x10] sm:$0xf] %vm3843_vm8, %v4217_v8  ;;  %v4220_v12 = vpack.c.bf16 %v3670_v63, %v3670_v63  ;;  %v3637_v0 = vadd.f32 %v6144_v34, %v3594_v6  ;;  %v3592_v24 = vadd.f32 %v3473_v18, %v3278_v31  ;;  %v3668_v51 = vmax.f32 %v3632_v46, 0.0  ;;  %v4703_v19 = vpop.f32.mrf.mxu1 }
 0x1f0   : > { %v4737_v54 = vpop.f32.mrf.mxu0  ;;  %v3285_v58 = vadd.f32 %v4703_v19, %v6078_v1 }
 0x1f1   : > { %3851 = vst.msk [vmem:[%s6155_s16 + $0x1c] sm:$0xf] %vm3843_vm8, %v4220_v12  ;;  %v3673_v13 = vmax.f32 %v3637_v0, 0.0  ;;  %v3635_v45 = vadd.f32 %v6144_v34, %v3592_v24  ;;  %v3595_v27 = vadd.f32 %v4737_v54, %v3281_v22  ;;  %v4218_v62 = vpack.c.bf16 %v3668_v51, %v3668_v51  ;;  %v3178_v21 = vpop.f32.mrf.mxu1 }
 0x1f2   : > { %v3476_v28 = vpop.f32.mrf.mxu0  ;;  %v3283_v46 = vadd.f32 %v3178_v21, %v6081_v50 }
 0x1f3   : > { %v4223_v14 = vpack.c.bf16 %v3673_v13, %v3673_v13  ;;  %v3671_v29 = vmax.f32 %v3635_v45, 0.0  ;;  %v3638_v5 = vadd.f32 %v6144_v34, %v3595_v27  ;;  %3849 = vst.msk [vmem:[%s6155_s16 + $0x14] sm:$0xf] %vm3843_vm8, %v4218_v62  ;;  %v3593_v7 = vadd.f32 %v3476_v28, %v3279_v30  ;;  %v4706_v57 = vpop.f32.mrf.mxu1 }
 0x1f4   : > { %v4740_v56 = vpop.f32.mrf.mxu0  ;;  %v3288_v22 = vadd.f32 %v4706_v57, %v6084_v41 }
 0x1f5   : > { %3854 = vst.msk [vmem:[%s6155_s16 + $0x28] sm:$0xf] %vm3843_vm8, %v4223_v14  ;;  %v4221_v16 = vpack.c.bf16 %v3671_v29, %v3671_v29  ;;  %v3674_v2 = vmax.f32 %v3638_v5, 0.0  ;;  %v3598_v60 = vadd.f32 %v4740_v56, %v3284_v40  ;;  %v3636_v47 = vadd.f32 %v6144_v34, %v3593_v7  ;;  %v3191_v31 = vpop.f32.mrf.mxu1 }
 0x1f6   : > { %v3489_v25 = vpop.f32.mrf.mxu0  ;;  %v3286_v50 = vadd.f32 %v3191_v31, %v6087_v52 }
 0x1f7   : > { %3852 = vst.msk [vmem:[%s6155_s16 + $0x20] sm:$0xf] %vm3843_vm8, %v4221_v16  ;;  %v4224_v37 = vpack.c.bf16 %v3674_v2, %v3674_v2  ;;  %v3641_v33 = vadd.f32 %v6144_v34, %v3598_v60  ;;  %v3596_v17 = vadd.f32 %v3489_v25, %v3282_v42  ;;  %v3672_v61 = vmax.f32 %v3636_v47, 0.0  ;;  %v4707_v18 = vpop.f32.mrf.mxu1 }
 0x1f8   : > { %v4741_v8 = vpop.f32.mrf.mxu0  ;;  %v3289_v19 = vadd.f32 %v4707_v18, %v6090_v49 }
 0x1f9   : > { %3855 = vst.msk [vmem:[%s6155_s16 + $0x2c] sm:$0xf] %vm3843_vm8, %v4224_v37  ;;  %v3677_v11 = vmax.f32 %v3641_v33, 0.0  ;;  %v3639_v63 = vadd.f32 %v6144_v34, %v3596_v17  ;;  %v3599_v6 = vadd.f32 %v4741_v8, %v3285_v58  ;;  %v4222_v4 = vpack.c.bf16 %v3672_v61, %v3672_v61  ;;  %v3194_v51 = vpop.f32.mrf.mxu1 }
 0x1fa   : > { %v3492_v1 = vpop.f32.mrf.mxu0  ;;  %v3287_v42 = vadd.f32 %v3194_v51, %v6093_v26 }
 0x1fb   : > { %v4227_v12 = vpack.c.bf16 %v3677_v11, %v3677_v11  ;;  %v3675_v0 = vmax.f32 %v3639_v63, 0.0  ;;  %v3642_v24 = vadd.f32 %v6144_v34, %v3599_v6  ;;  %3853 = vst.msk [vmem:[%s6155_s16 + $0x24] sm:$0xf] %vm3843_vm8, %v4222_v4  ;;  %v3597_v55 = vadd.f32 %v3492_v1, %v3283_v46  ;;  %v4710_v30 = vpop.f32.mrf.mxu1 }
 0x1fc   : > { %v4744_v54 = vpop.f32.mrf.mxu0  ;;  %v3292_v60 = vadd.f32 %v4710_v30, %v6096_v10 }
 0x1fd   : > { %3858 = vst.msk [vmem:[%s6155_s16 + $0x38] sm:$0xf] %vm3843_vm8, %v4227_v12  ;;  %v4225_v13 = vpack.c.bf16 %v3675_v0, %v3675_v0  ;;  %v3678_v45 = vmax.f32 %v3642_v24, 0.0  ;;  %v3602_v27 = vadd.f32 %v4744_v54, %v3288_v22  ;;  %v3640_v41 = vadd.f32 %v6144_v34, %v3597_v55  ;;  %v3207_v5 = vpop.f32.mrf.mxu1 }
 0x1fe   : > { %v3505_v62 = vpop.f32.mrf.mxu0  ;;  %v3290_v26 = vadd.f32 %v3207_v5, %v6099_v3 }
 0x1ff   : > { %3856 = vst.msk [vmem:[%s6155_s16 + $0x30] sm:$0xf] %vm3843_vm8, %v4225_v13  ;;  %v4228_v28 = vpack.c.bf16 %v3678_v45, %v3678_v45  ;;  %v3645_v40 = vadd.f32 %v6144_v34, %v3602_v27  ;;  %v3600_v14 = vadd.f32 %v3505_v62, %v3286_v50  ;;  %v3676_v29 = vmax.f32 %v3640_v41, 0.0  ;;  %v4711_v2 = vpop.f32.mrf.mxu1 }
 0x200   : > { %v4745_v21 = vpop.f32.mrf.mxu0  ;;  %v3293_v63 = vadd.f32 %v4711_v2, %v6102_v43 }
 0x201   : > { %3859 = vst.msk [vmem:[%s6155_s16 + $0x3c] sm:$0xf] %vm3843_vm8, %v4228_v28  ;;  %v3681_v52 = vmax.f32 %v3645_v40, 0.0  ;;  %v3643_v7 = vadd.f32 %v6144_v34, %v3600_v14  ;;  %v3603_v56 = vadd.f32 %v4745_v21, %v3289_v19  ;;  %v4226_v16 = vpack.c.bf16 %v3676_v29, %v3676_v29  ;;  %v3210_v58 = vpop.f32.mrf.mxu1 }
 0x202   : > { %v3508_v49 = vpop.f32.mrf.mxu0  ;;  %v3291_v24 = vadd.f32 %v3210_v58, %v6105_v32 }
 0x203   : > { %v4231_v47 = vpack.c.bf16 %v3681_v52, %v3681_v52  ;;  %v3679_v57 = vmax.f32 %v3643_v7, 0.0  ;;  %v3646_v25 = vadd.f32 %v6144_v34, %v3603_v56  ;;  %3857 = vst.msk [vmem:[%s6155_s16 + $0x34] sm:$0xf] %vm3843_vm8, %v4226_v16  ;;  %v3601_v37 = vadd.f32 %v3508_v49, %v3287_v42  ;;  %v4714_v8 = vpop.f32.mrf.mxu1 }
 0x204   : > { %v4748_v33 = vpop.f32.mrf.mxu0  ;;  %v3296_v54 = vadd.f32 %v4714_v8, %v6108_v9 }
 0x205   : > { %3862 = vst.msk [vmem:[%s6155_s16 + $0x48] sm:$0xf] %vm3843_vm8, %v4231_v47  ;;  %v4229_v17 = vpack.c.bf16 %v3679_v57, %v3679_v57  ;;  %v3682_v61 = vmax.f32 %v3646_v25, 0.0  ;;  %v3606_v31 = vadd.f32 %v4748_v33, %v3292_v60  ;;  %v3644_v10 = vadd.f32 %v6144_v34, %v3601_v37  ;;  %v3223_v1 = vpop.f32.mrf.mxu1 }
 0x206   : > { %v3521_v11 = vpop.f32.mrf.mxu0  ;;  %v3294_v32 = vadd.f32 %v3223_v1, %v6111_v38 }
 0x207   : > { %3860 = vst.msk [vmem:[%s6155_s16 + $0x40] sm:$0xf] %vm3843_vm8, %v4229_v17  ;;  %v4232_v6 = vpack.c.bf16 %v3682_v61, %v3682_v61  ;;  %v3649_v46 = vadd.f32 %v6144_v34, %v3606_v31  ;;  %v3604_v4 = vadd.f32 %v3521_v11, %v3290_v26  ;;  %v3680_v18 = vmax.f32 %v3644_v10, 0.0  ;;  %v4715_v55 = vpop.f32.mrf.mxu1 }
 0x208   : > { %v4749_v22 = vpop.f32.mrf.mxu0  ;;  %v3297_v29 = vadd.f32 %v4715_v55, %v6114_v23 }
 0x209   : > { %3863 = vst.msk [vmem:[%s6155_s16 + $0x4c] sm:$0xf] %vm3843_vm8, %v4232_v6  ;;  %v3685_v3 = vmax.f32 %v3649_v46, 0.0  ;;  %v3647_v12 = vadd.f32 %v6144_v34, %v3604_v4  ;;  %v3607_v0 = vadd.f32 %v4749_v22, %v3293_v63  ;;  %v4230_v51 = vpack.c.bf16 %v3680_v18, %v3680_v18  ;;  %v3226_v27 = vpop.f32.mrf.mxu1 }
 0x20a   : > { %v3524_v43 = vpop.f32.mrf.mxu0  ;;  %v3295_v49 = vadd.f32 %v3226_v27, %v6117_v53 }
 0x20b   : > { %v4235_v50 = vpack.c.bf16 %v3685_v3, %v3685_v3  ;;  %v3683_v13 = vmax.f32 %v3647_v12, 0.0  ;;  %v3650_v45 = vadd.f32 %v6144_v34, %v3607_v0  ;;  %3861 = vst.msk [vmem:[%s6155_s16 + $0x44] sm:$0xf] %vm3843_vm8, %v4230_v51  ;;  %v3605_v41 = vadd.f32 %v3524_v43, %v3291_v24  ;;  %v4718_v40 = vpop.f32.mrf.mxu1 }
 0x20c   : > { %v4752_v30 = vpop.f32.mrf.mxu0  ;;  %v3300_v57 = vadd.f32 %v4718_v40, %v6120_v36 }
 0x20d   : > { %3866 = vst.msk [vmem:[%s6155_s16 + $0x58] sm:$0xf] %vm3843_vm8, %v4235_v50  ;;  %v4233_v62 = vpack.c.bf16 %v3683_v13, %v3683_v13  ;;  %v3686_v19 = vmax.f32 %v3650_v45, 0.0  ;;  %v3610_v28 = vadd.f32 %v4752_v30, %v3296_v54  ;;  %v3648_v9 = vadd.f32 %v6144_v34, %v3605_v41  ;;  %v3239_v56 = vpop.f32.mrf.mxu1 }
 0x20e   : > { %v3537_v14 = vpop.f32.mrf.mxu0  ;;  %v3298_v53 = vadd.f32 %v3239_v56, %v6123_v35 }
 0x20f   : > { %3864 = vst.msk [vmem:[%s6155_s16 + $0x50] sm:$0xf] %vm3843_vm8, %v4233_v62  ;;  %v4236_v5 = vpack.c.bf16 %v3686_v19, %v3686_v19  ;;  %v3653_v21 = vadd.f32 %v6144_v34, %v3610_v28  ;;  %v3608_v52 = vadd.f32 %v3537_v14, %v3294_v32  ;;  %v3684_v7 = vmax.f32 %v3648_v9, 0.0  ;;  %v4719_v47 = vpop.f32.mrf.mxu1 }
 0x210   : > { %v4753_v42 = vpop.f32.mrf.mxu0  ;;  %v3301_v63 = vadd.f32 %v4719_v47, %v6126_v44 }
 0x211   : > { %3867 = vst.msk [vmem:[%s6155_s16 + $0x5c] sm:$0xf] %vm3843_vm8, %v4236_v5  ;;  %v3689_v38 = vmax.f32 %v3653_v21, 0.0  ;;  %v3651_v16 = vadd.f32 %v6144_v34, %v3608_v52  ;;  %v3611_v2 = vadd.f32 %v4753_v42, %v3297_v29  ;;  %v4234_v60 = vpack.c.bf16 %v3684_v7, %v3684_v7  ;;  %v3242_v33 = vpop.f32.mrf.mxu1 }
 0x212   : > { %v3540_v23 = vpop.f32.mrf.mxu0  ;;  %v3299_v0 = vadd.f32 %v3242_v33, %v6129_v15 }
 0x213   : > { %v4239_v25 = vpack.c.bf16 %v3689_v38, %v3689_v38  ;;  %v3687_v58 = vmax.f32 %v3651_v16, 0.0  ;;  %v3654_v37 = vadd.f32 %v6144_v34, %v3611_v2  ;;  %3865 = vst.msk [vmem:[%s6155_s16 + $0x54] sm:$0xf] %vm3843_vm8, %v4234_v60  ;;  %v3609_v26 = vadd.f32 %v3540_v23, %v3295_v49  ;;  %v4722_v8 = vpop.f32.mrf.mxu1 }
 0x214   : > { %v4756_v17 = vpop.f32.mrf.mxu0  ;;  %v3304_v55 = vadd.f32 %v4722_v8, %v6132_v20 }
 0x215   : > { %3870 = vst.msk [vmem:[%s6155_s16 + $0x68] sm:$0xf] %vm3843_vm8, %v4239_v25  ;;  %v4237_v61 = vpack.c.bf16 %v3687_v58, %v3687_v58  ;;  %v3690_v31 = vmax.f32 %v3654_v37, 0.0  ;;  %v3614_v10 = vadd.f32 %v4756_v17, %v3300_v57  ;;  %v3652_v36 = vadd.f32 %v6144_v34, %v3609_v26  ;;  %v3255_v1 = vpop.f32.mrf.mxu1 }
 0x216   : > { %v3553_v11 = vpop.f32.mrf.mxu0  ;;  %v3302_v27 = vadd.f32 %v3255_v1, %v6134_v39 }
 0x217   : > { %3868 = vst.msk [vmem:[%s6155_s16 + $0x60] sm:$0xf] %vm3843_vm8, %v4237_v61  ;;  %v4240_v6 = vpack.c.bf16 %v3690_v31, %v3690_v31  ;;  %v3657_v46 = vadd.f32 %v6144_v34, %v3614_v10  ;;  %v3612_v4 = vadd.f32 %v3553_v11, %v3298_v53  ;;  %v3688_v18 = vmax.f32 %v3652_v36, 0.0  ;;  %v4723_v51 = vpop.f32.mrf.mxu1 }
 0x218   : > { %v4757_v22 = vpop.f32.mrf.mxu0  ;;  %v3305_v19 = vadd.f32 %v4723_v51, %v6136_v59 }
 0x219   : > { %3871 = vst.msk [vmem:[%s6155_s16 + $0x6c] sm:$0xf] %vm3843_vm8, %v4240_v6  ;;  %v3693_v35 = vmax.f32 %v3657_v46, 0.0  ;;  %v3655_v3 = vadd.f32 %v6144_v34, %v3612_v4  ;;  %v3615_v12 = vadd.f32 %v4757_v22, %v3301_v63  ;;  %v4238_v24 = vpack.c.bf16 %v3688_v18, %v3688_v18  ;;  %v3258_v32 = vpop.f32.mrf.mxu1 }
 0x21a   : > { %v3556_v44 = vpop.f32.mrf.mxu0  ;;  %v3303_v39 = vadd.f32 %v3258_v32, %v6139_v48 }
 0x21b   : > { %v4243_v43 = vpack.c.bf16 %v3693_v35, %v3693_v35  ;;  %v3691_v54 = vmax.f32 %v3655_v3, 0.0  ;;  %v3658_v50 = vadd.f32 %v6144_v34, %v3615_v12  ;;  %3869 = vst.msk [vmem:[%s6155_s16 + $0x64] sm:$0xf] %vm3843_vm8, %v4238_v24  ;;  %v3613_v13 = vadd.f32 %v3556_v44, %v3299_v0 }
 0x21c   : > { %v4760_v45 = vpop.f32.mrf.mxu0 }
 0x21d   : > { %3874 = vst.msk [vmem:[%s6155_s16 + $0x78] sm:$0xf] %vm3843_vm8, %v4243_v43  ;;  %v4241_v15 = vpack.c.bf16 %v3691_v54, %v3691_v54  ;;  %v3694_v41 = vmax.f32 %v3658_v50, 0.0  ;;  %v3618_v30 = vadd.f32 %v4760_v45, %v3304_v55  ;;  %v3656_v62 = vadd.f32 %v6144_v34, %v3613_v13 }
 0x21e   : > { %v3569_v20 = vpop.f32.mrf.mxu0 }
 0x21f   : > { %3872 = vst.msk [vmem:[%s6155_s16 + $0x70] sm:$0xf] %vm3843_vm8, %v4241_v15  ;;  %v4244_v28 = vpack.c.bf16 %v3694_v41, %v3694_v41  ;;  %v3661_v9 = vadd.f32 %v6144_v34, %v3618_v30  ;;  %v3616_v40 = vadd.f32 %v3569_v20, %v3302_v27  ;;  %v3692_v14 = vmax.f32 %v3656_v62, 0.0 }
 0x220   : > { %v4761_v29 = vpop.f32.mrf.mxu0 }
 0x221   : > { %3875 = vst.msk [vmem:[%s6155_s16 + $0x7c] sm:$0xf] %vm3843_vm8, %v4244_v28  ;;  %v3697_v5 = vmax.f32 %v3661_v9, 0.0  ;;  %v3659_v21 = vadd.f32 %v6144_v34, %v3616_v40  ;;  %v3619_v52 = vadd.f32 %v4761_v29, %v3305_v19  ;;  %v4242_v7 = vpack.c.bf16 %v3692_v14, %v3692_v14 }
 0x222   : > { %v3572_v59 = vpop.f32.mrf.mxu0 }
 0x223   : > { %v4247_v56 = vpack.c.bf16 %v3697_v5, %v3697_v5  ;;  %v3695_v42 = vmax.f32 %v3659_v21, 0.0  ;;  %v3662_v38 = vadd.f32 %v6144_v34, %v3619_v52  ;;  %v3617_v16 = vadd.f32 %v3572_v59, %v3303_v39  ;;  %3873 = vst.msk [vmem:[%s6155_s16 + $0x74] sm:$0xf] %vm3843_vm8, %v4242_v7 }
 0x225   : > { %3878 = vst.msk [vmem:[%s6155_s16 + $0x88] sm:$0xf] %vm3843_vm8, %v4247_v56  ;;  %v4245_v2 = vpack.c.bf16 %v3695_v42, %v3695_v42  ;;  %v3698_v49 = vmax.f32 %v3662_v38, 0.0  ;;  %v3660_v48 = vadd.f32 %v6144_v34, %v3617_v16 }
 0x227   : > { %3876 = vst.msk [vmem:[%s6155_s16 + $0x80] sm:$0xf] %vm3843_vm8, %v4245_v2  ;;  %v4248_v60 = vpack.c.bf16 %v3698_v49, %v3698_v49  ;;  %v3696_v47 = vmax.f32 %v3660_v48, 0.0 }
 0x229   : > { %3879 = vst.msk [vmem:[%s6155_s16 + $0x8c] sm:$0xf] %vm3843_vm8, %v4248_v60  ;;  %v4246_v23 = vpack.c.bf16 %v3696_v47, %v3696_v47 }
 0x22b   : > { %3877 = vst.msk [vmem:[%s6155_s16 + $0x84] sm:$0xf] %vm3843_vm8, %v4246_v23 }
 0x22c PF: > { %s13_s12 = sadd.s32 1, %s4852_s12  }
 0x22d   : > { %p10_p4 = scmp.ge.s32.totalorder %s13_s12, 4  }
 0x22f   :  { %12 = sbr.rel (!%p10_p4) target bundleno = 1 (0x1), region = 70 }

// kernel: _lambda_.21
= control target key start
LH: loop header
LB: loop body
LE: loop exit
PB: predicated region body
PF: predicated region fallthrough
CT: control target
= control target key end

     0   :  { %s262_s6 = smov 0   ;;  %s279_s0 = inlined_call_operand.vmem [shape: bf16[8,2,4,32], index: 0, kind: input, shape index: {}]   ;;  %s280_s1 = inlined_call_operand.vmem [shape: bf16[8,4,16], index: 1, kind: output, shape index: {}]  }
   0x1 LB: > { %s217_s7 = sadd.s32 4294967295, %s249_s6   ;;  %p221_p0 = scmp.ge.s32.totalorder %s249_s6, 1  ;;  %s249_s6 = sphi %s262_s6, %s11_s6  }
   0x2   : > { %p89_p1 = scmp.lt.s32.totalorder %s249_s6, 3 }
   0x4   : > { %p90_p2 = pnand %p221_p0, %p89_p1 }
   0x5   : > { %s222_s8 = sshll.u32 (!%p90_p2), %s217_s7, 2  ;;  %s251_s13 = smov (!%p90_p2), 112  }
   0x6   : > { %93 = sbr.rel (%p90_p2) target bundleno = 140 (0x8c), region = 24  ;;  %p111_p3 = scmp.lt.s32.totalorder (!%p90_p2), %s222_s8, 7 }
   0xb   : > { %s282_s8 = smov (!%p111_p3, %s222_s8), 7  ;;  %vm156_vm0 = vcmask 123904  }
   0xc   : > { %s233_s9 = sshll.u32 %s282_s8, 2  ;;  %s226_s14 = sshll.u32 %s282_s8, 1 }
   0xd   : > { %s115_s12 = scalar_lea.vmem %s279_s0, %s233_s9  ;;  %s121_s17 = scalar_lea.vmem %s280_s1, %s226_s14 }
   0xe   : > { %v123_v0 = vld [vmem:[%s115_s12] sm:$0x3]  ;;  %v227_v1 = vld [vmem:[%s115_s12 + $0x2] sm:$0x3]  ;;  %v125_v2 = vld [vmem:[%s115_s12 + $0x8] sm:$0x3] }
   0xf   : > { %v132_v3 = vmax.bf16 %v227_v1, %v123_v0  ;;  %v229_v4 = vld [vmem:[%s115_s12 + $0xa] sm:$0x3]  ;;  %v124_v5 = vld [vmem:[%s115_s12 + $0x4] sm:$0x3]  ;;  %v228_v6 = vld [vmem:[%s115_s12 + $0x6] sm:$0x3] }
  0x10   : > { %v134_v7 = vmax.bf16 %v229_v4, %v125_v2  ;;  %v126_v8 = vld [vmem:[%s115_s12 + $0xc] sm:$0x3]  ;;  %v230_v9 = vld [vmem:[%s115_s12 + $0xe] sm:$0x3]  ;;  %v133_v10 = vmax.bf16 %v228_v6, %v124_v5 }
  0x11   : > { %140 = vrot.lane.b32.xlu0 %v132_v3, %s251_s13  ;;  %v135_v11 = vmax.bf16 %v230_v9, %v126_v8 }
  0x12   : > { %144 = vrot.lane.b32.xlu1 %v134_v7, %s251_s13 }
  0x15   : > { %142 = vrot.lane.b32.xlu0 %v133_v10, %s251_s13 }
  0x16   : > { %146 = vrot.lane.b32.xlu1 %v135_v11, %s251_s13 }
  0x83   : > { %v141_v12 = vpop.permute.xlu0 %140 }
  0x84   : > { %v152_v13 = vmax.bf16 %v141_v12, %v132_v3  ;;  %v145_v14 = vpop.permute.xlu1 %144 }
  0x85   : > { %v154_v18 = vmax.bf16 %v145_v14, %v134_v7 }
  0x86   : > { %157 = vst.msk [vmem:[%s121_s17] sm:$0x3] %vm156_vm0, %v152_v13 }
  0x87   : > { %v143_v15 = vpop.permute.xlu0 %142  ;;  %159 = vst.msk [vmem:[%s121_s17 + $0x4] sm:$0x3] %vm156_vm0, %v154_v18 }
  0x88   : > { %v153_v16 = vmax.bf16 %v143_v15, %v133_v10  ;;  %v147_v17 = vpop.permute.xlu1 %146 }
  0x89   : > { %v155_v19 = vmax.bf16 %v147_v17, %v135_v11 }
  0x8a   : > { %158 = vst.msk [vmem:[%s121_s17 + $0x2] sm:$0x3] %vm156_vm0, %v153_v16 }
  0x8b   : > { %160 = vst.msk [vmem:[%s121_s17 + $0x6] sm:$0x3] %vm156_vm0, %v155_v19 }
  0x8c PF: > { %s11_s6 = sadd.s32 1, %s249_s6  }
  0x8d   : > { %p8_p4 = scmp.ge.s32.totalorder %s11_s6, 4  }
  0x8f   :  { %10 = sbr.rel (!%p8_p4) target bundleno = 1 (0x1), region = 55 }

// kernel: _lambda_.20
= control target key start
LH: loop header
LB: loop body
LE: loop exit
PB: predicated region body
PF: predicated region fallthrough
CT: control target
= control target key end

     0   :  { %s2042_s12 = smov 0   ;;  %s2502_s0 = inlined_call_operand.vmem [shape: bf16[2,102,16], index: 0, kind: input, shape index: {}]   ;;  %s2503_s1 = inlined_call_operand.vmem [shape: bf16[9,16,16], index: 1, kind: input, shape index: {}]   ;;  %s2504_s2 = inlined_call_operand.vmem [shape: f32[1,16], index: 2, kind: input, shape index: {}]   ;;  %s2505_s3 = inlined_call_operand.vmem [shape: bf16[2,80,16], index: 3, kind: output, shape index: {}]  }
   0x1 LB: > { %s1591_s13 = sadd.s32 4294967295, %s2018_s12   ;;  %p1595_p0 = scmp.ge.s32.totalorder %s2018_s12, 1  ;;  %s2018_s12 = sphi %s2042_s12, %s13_s12  }
   0x2   : > { %p137_p1 = scmp.lt.s32.totalorder %s2018_s12, 3 }
   0x4   : > { %p138_p2 = pnand %p1595_p0, %p137_p1 }
   0x5   : > { %p161_p3 = scmp.lt.s32.totalorder (!%p138_p2), %s1591_s13, 1 }
   0x6   : > { %141 = sbr.rel (%p138_p2) target bundleno = 407 (0x197), region = 32 }
   0xb   : > { %v1980_v0 = vld [vmem:[%s2503_s1 + $0x8] sm:$0xff]   ;;  %v2020_v1 = vmov 0.0   ;;  %vm2021_vm0 = vmmov 0   ;;  %s2507_s13 = smov (!%p161_p3, %s1591_s13), 1  ;;  %vm216_vm1 = vsmask.f32 7424 }
   0xc   : > { %1768 = vmatprep.subr.bf16.mxu0 %v2020_v1  ;;  %1966 = vmatprep.subr.bf16.mxu1 %v2020_v1  ;;  %s1968_s16 = smul.u32 52, %s2507_s13  ;;  %vm267_vm2 = vcmask 130048   ;;  %v1985_v20 = vld [vmem:[%s2503_s1 + $0x10] sm:$0xff]   ;;  %v1986_v24 = vld [vmem:[%s2503_s1] sm:$0xff]   ;;  %vm452_vm3 = vcmask 1046528   ;;  %v1989_v46 = vld [vmem:[%s2503_s1 + $0x18] sm:$0xff]  }
   0xd   : > { %1769 = vmatpush3.bf16.msra.mxu0 %v1980_v0  ;;  %1967 = vmatpush3.bf16.msra.mxu1 %v1980_v0  ;;  %v1991_v50 = vld [vmem:[%s2503_s1 + $0x20] sm:$0xff]   ;;  %vm732_vm4 = vsmask.f32 6400  ;;  %vm897_vm5 = vcmask 1045504   ;;  %vm1177_vm6 = vsmask.f32 5376 }
   0xe   : > { %1770 = vmatprep.mubr.msk.bf16.mxu0 %vm2021_vm0, %v2020_v1  ;;  %1782 = vmatprep.mubr.msk.bf16.mxu1 %vm2021_vm0, %v2020_v1  ;;  %s2067_s19 = scalar_lea.vmem %s2502_s0, %s1968_s16  ;;  %vm1342_vm7 = vcmask 1044480   ;;  %s1969_s11 = smul.u32 40, %s2507_s13  ;;  %vm1525_vm8 = vcmask 125952  }
   0xf   : > { %1812 = vmatprep.subr.bf16.mxu0 %v2020_v1  ;;  %1790 = vmatprep.subr.bf16.mxu1 %v2020_v1  ;;  %v172_v2 = vld [vmem:[%s2067_s19] sm:$0xf]  ;;  %v173_v3 = vld [vmem:[%s2067_s19 + $0x4] sm:$0xf]  ;;  %v2072_v5 = vld [vmem:[%s2067_s19 + $0x8] sm:$0xff]  }
  0x10   : > { %v1600_v4 = vcombine.low %v172_v2, %v173_v3  ;;  %v225_v8 = vshll.u32 %v2072_v5, 16  ;;  %v2076_v9 = vld [vmem:[%s2067_s19 + $0x18] sm:$0xff]   ;;  %v2079_v10 = vld [vmem:[%s2067_s19 + $0x20] sm:$0xff]   ;;  %v2082_v11 = vld [vmem:[%s2067_s19 + $0x10] sm:$0xff]   ;;  %v229_v21 = vshrl.u32 %v2072_v5, 16  ;;  %v454_v48 = vrot.slane %v2072_v5, 1  ;;  %s2449_s16 = scalar_lea.vmem %s2505_s3, %s1969_s11 }
  0x11   : > { %v241_v14 = vshll.u32 %v2076_v9, 16  ;;  %v245_v15 = vshrl.u32 %v2076_v9, 16  ;;  %v249_v16 = vshll.u32 %v2079_v10, 16  ;;  %v2088_v17 = vld [vmem:[%s2067_s19 + $0x28] ss:$0 sps:$4 sm:$0x11]  }
  0x12   : > { %v218_v6 = vshrl.u32 %v1600_v4, 16  ;;  %v220_v7 = vshll.u32 %v1600_v4, 16  ;;  %v227_v13 = vrot.slane %v225_v8, 1  ;;  %v233_v22 = vshll.u32 %v2082_v11, 16  ;;  %v2113_v36 = vld [vmem:[%s2067_s19 + $0x24] sm:$0xff]   ;;  %v2180_v60 = vld [vmem:[%s2067_s19 + $0xc] sm:$0xff]  }
  0x13   : > { %v243_v19 = vrot.slane %v241_v14, 1  ;;  %v251_v23 = vrot.slane %v249_v16, 1  ;;  %v253_v27 = vshrl.u32 %v2079_v10, 16  ;;  %v257_v28 = vshll.u32 %v2088_v17, 16  ;;  %v445_v40 = vld [vmem:[%s2067_s19] sm:$0xe] }
  0x14   : > { %v222_v12 = vrot.slane %v220_v7, 1  ;;  %v231_v30 = vor.u32 %v229_v21, %v227_v13  ;;  %v235_v31 = vrot.slane %v233_v22, 1  ;;  %v237_v35 = vshrl.u32 %v2082_v11, 16  ;;  %v1999_v37 = vld [vmem:[%s2067_s19 + $0x2c] ss:$0 sps:$4 sm:$0x11]  }
  0x15   : > { %v247_v26 = vor.u32 %v245_v15, %v243_v19  ;;  %v255_v32 = vor.u32 %v253_v27, %v251_v23  ;;  %v259_v33 = vrot.slane %v257_v28, 1  ;;  %v617_v41 = vrot.slane %v2113_v36, 1  ;;  %v568_v56 = vld [vmem:[%s2067_s19 + $0x4] sm:$0xe]  ;;  %v2175_v57 = vld [vmem:[%s2067_s19 + $0x8] sm:$0xf] }
  0x16   : > { %v223_v18 = vor.u32 %v222_v12, %v218_v6  ;;  %v236_v34 = vsel %vm216_vm1, %v231_v30, %v235_v31  ;;  %v239_v39 = vor.u32 %v237_v35, %v235_v31  ;;  %v619_v42 = vrot.slane %v1999_v37, 1  ;;  %v1994_v12 = vld [vmem:[%s2503_s1 + $0x28] sm:$0xff]  }
  0x17   : > { %v252_v29 = vsel %vm216_vm1, %v247_v26, %v251_v23  ;;  %v260_v38 = vsel %vm216_vm1, %v255_v32, %v259_v33  ;;  %v1620_v45 = vcombine.low %v445_v40, %v173_v3  ;;  %v456_v51 = vrot.slane %v2082_v11, 1  ;;  %v2217_v23 = vld [vmem:[%s2067_s19 + $0x1c] sm:$0xff]  }
  0x18   : > { %v228_v25 = vsel %vm216_vm1, %v223_v18, %v227_v13  ;;  %1783 = vmatmul.mubr.msk.bf16.vlgmr.msra.gmra.mxu1 %vm267_vm2, %v252_v29  ;;  %v2128_v43 = vsel %vm452_vm3, %v617_v41, %v619_v42  ;;  %v244_v44 = vsel %vm216_vm1, %v239_v39, %v243_v19  ;;  %v458_v53 = vrot.slane %v2076_v9, 1  ;;  %v2199_v13 = vld [vmem:[%s2067_s19 + $0x14] sm:$0xff]   ;;  %v2241_v39 = vld [vmem:[%s2067_s19 + $0x2c] ss:$0 sps:$4 sm:$0x33]  }
  0x19   : > { %1771 = vmatmul.mubr.msk.bf16.vlgmr.msra.gmra.mxu0 %vm267_vm2, %v228_v25  ;;  %1791 = vmatpush3.bf16.msra.mxu1 %v1986_v24  ;;  %v453_v47 = vrot.slane %v1620_v45, 1  ;;  %v457_v52 = vsel %vm452_vm3, %v454_v48, %v456_v51  ;;  %v460_v55 = vrot.slane %v2079_v10, 1  ;;  %v1629_v59 = vcombine.low %v568_v56, %v2175_v57  ;;  %v1996_v19 = vld [vmem:[%s2503_s1 + $0x30] sm:$0xff]  }
  0x1a   : > { %1813 = vmatpush3.bf16.msra.mxu0 %v1985_v20  ;;  %1774 = vmatprep.mubr.msk.bf16.mxu0 %vm2021_vm0, %v2020_v1  ;;  %v459_v54 = vsel %vm452_vm3, %v456_v51, %v458_v53  ;;  %v462_v61 = vrot.slane %v2088_v17, 1  ;;  %v742_v0 = vshrl.u32 %v2180_v60, 16  ;;  %v745_v2 = vshll.u32 %v2180_v60, 16  ;;  %v1013_v51 = vld [vmem:[%s2067_s19 + $0x8] sm:$0xc] }
  0x1b   : > { %1856 = vmatprep.subr.bf16.mxu0 %v2020_v1  ;;  %1786 = vmatprep.mubr.msk.bf16.mxu1 %vm2021_vm0, %v2020_v1  ;;  %v455_v49 = vsel %vm452_vm3, %v453_v47, %v454_v48  ;;  %v461_v58 = vsel %vm452_vm3, %v458_v53, %v460_v55  ;;  %v734_v62 = vshrl.u32 %v1629_v59, 16  ;;  %v737_v63 = vshll.u32 %v1629_v59, 16 }
  0x1c   : > { %1834 = vmatprep.subr.bf16.mxu1 %v2020_v1  ;;  %v610_v3 = vrot.slane %v1629_v59, 1  ;;  %v744_v8 = vrot.slane %v742_v0, 1  ;;  %v751_v15 = vshrl.u32 %v2199_v13, 16  ;;  %v754_v16 = vshll.u32 %v2199_v13, 16  ;;  %v2291_v0 = vld [vmem:[%s2067_s19 + $0x18] sm:$0xff]  }
  0x1d   : > { %v736_v6 = vrot.slane %v734_v62, 1  ;;  %v739_v7 = vrot.slane %v737_v63, 2  ;;  %v613_v17 = vrot.slane %v2199_v13, 1  ;;  %v760_v25 = vshrl.u32 %v2217_v23, 16  ;;  %v2005_v63 = vld [vmem:[%s2503_s1 + $0x40] sm:$0xff]  }
  0x1e   : > { %v753_v20 = vrot.slane %v751_v15, 1  ;;  %v756_v21 = vrot.slane %v754_v16, 2  ;;  %v763_v26 = vshll.u32 %v2217_v23, 16  ;;  %v615_v27 = vrot.slane %v2217_v23, 1 }
  0x1f   : > { %v762_v29 = vrot.slane %v760_v25, 1  ;;  %v769_v33 = vshrl.u32 %v2113_v36, 16  ;;  %v781_v45 = vshll.u32 %v2241_v39, 16 }
  0x20   : > { %1787 = vmatmul.mubr.msk.bf16.gmra.mxu1 %vm267_vm2, %v260_v38  ;;  %v757_v24 = vor.u32 %v756_v21, %v753_v20  ;;  %v765_v30 = vrot.slane %v763_v26, 2  ;;  %v616_v31 = vsel %vm452_vm3, %v613_v17, %v615_v27  ;;  %v618_v40 = vsel %vm452_vm3, %v615_v27, %v617_v41  ;;  %v1335_v26 = vld [vmem:[%s2067_s19 + $0x8] sm:$0x8] }
  0x21   : > { %1775 = vmatmul.mubr.msk.bf16.gmra.mxu0 %vm267_vm2, %v236_v34  ;;  %1792 = vmatprep.mubr.msk.bf16.mxu1 %vm2021_vm0, %v2020_v1  ;;  %v772_v34 = vshll.u32 %v2113_v36, 16  ;;  %v771_v37 = vrot.slane %v769_v33, 1  ;;  %v783_v48 = vrot.slane %v781_v45, 2 }
  0x22   : > { %1778 = vmatprep.mubr.msk.bf16.mxu0 %vm2021_vm0, %v2020_v1  ;;  %v766_v32 = vor.u32 %v765_v30, %v762_v29  ;;  %v1196_v29 = vshrl.u32 %v2291_v0, 16  ;;  %v1199_v30 = vshll.u32 %v2291_v0, 16 }
  0x23   : > { %v774_v38 = vrot.slane %v772_v34, 2 }
  0x24   : > { %v767_v35 = vsel %vm732_vm4, %v757_v24, %v766_v32  ;;  %v1198_v34 = vrot.slane %v1196_v29, 2 }
  0x25   : > { %v775_v42 = vor.u32 %v774_v38, %v771_v37 }
  0x27   : > { %v776_v41 = vsel %vm732_vm4, %v766_v32, %v775_v42 }
  0x28   : > { %1793 = vmatmul.mubr.msk.bf16.vlgmr.msra.gmra.mxu1 %vm267_vm2, %v1600_v4  ;;  %v611_v4 = vrot.slane %v2180_v60, 1 }
  0x29   : > { %1779 = vmatmul.mubr.msk.bf16.gmra.mxu0 %vm267_vm2, %v244_v44  ;;  %1835 = vmatpush3.bf16.msra.mxu1 %v1989_v46  ;;  %v778_v44 = vshrl.u32 %v2241_v39, 16  ;;  %v890_v46 = vld [vmem:[%s2067_s19 + $0x4] sm:$0xc] }
  0x2a   : > { %1814 = vmatprep.mubr.msk.bf16.mxu0 %vm2021_vm0, %v2020_v1  ;;  %1796 = vmatprep.mubr.msk.bf16.mxu1 %vm2021_vm0, %v2020_v1  ;;  %v614_v22 = vsel %vm452_vm3, %v611_v4, %v613_v17 }
  0x2b   : > { %1878 = vmatprep.subr.bf16.mxu1 %v2020_v1  ;;  %v780_v47 = vrot.slane %v778_v44, 1 }
  0x30   : > { %1797 = vmatmul.mubr.msk.bf16.gmra.mxu1 %vm267_vm2, %v2072_v5  ;;  %v463_v5 = vsel %vm452_vm3, %v460_v55, %v462_v61  ;;  %v901_v61 = vrot.slane %v2199_v13, 2 }
  0x31   : > { %1815 = vmatmul.mubr.msk.bf16.vlgmr.msra.gmra.mxu0 %vm267_vm2, %v455_v49  ;;  %1800 = vmatprep.mubr.msk.bf16.mxu1 %vm2021_vm0, %v2020_v1  ;;  %v1652_v49 = vcombine.low %v890_v46, %v2175_v57  ;;  %v2272_v57 = vld [vmem:[%s2067_s19 + $0x10] sm:$0xff]  }
  0x32   : > { %1857 = vmatpush3.bf16.msra.mxu0 %v1991_v50  ;;  %1818 = vmatprep.mubr.msk.bf16.mxu0 %vm2021_vm0, %v2020_v1  ;;  %v784_v50 = vor.u32 %v783_v48, %v780_v47  ;;  %v1187_v16 = vshrl.u32 %v2272_v57, 16  ;;  %v1190_v17 = vshll.u32 %v2272_v57, 16  ;;  %v1344_v38 = vrot.slane %v2272_v57, 3 }
  0x33   : > { %1900 = vmatprep.subr.bf16.mxu0 %v2020_v1  ;;  %v898_v53 = vrot.slane %v1652_v49, 2  ;;  %v1346_v47 = vrot.slane %v2291_v0, 3 }
  0x34   : > { %v785_v55 = vsel %vm732_vm4, %v775_v42, %v784_v50 }
  0x38   : > { %1801 = vmatmul.mubr.msk.bf16.gmra.mxu1 %vm267_vm2, %v2082_v11  ;;  %v612_v11 = vsel %vm452_vm3, %v610_v3, %v611_v4  ;;  %v1058_v3 = vrot.slane %v2291_v0, 2  ;;  %v903_v4 = vrot.slane %v2217_v23, 2  ;;  %v1189_v23 = vrot.slane %v1187_v16, 2 }
  0x39   : > { %1819 = vmatmul.mubr.msk.bf16.gmra.mxu0 %vm267_vm2, %v457_v52  ;;  %1804 = vmatprep.mubr.msk.bf16.mxu1 %vm2021_vm0, %v2020_v1  ;;  %v2264_v52 = vld [vmem:[%s2067_s19 + $0xc] sm:$0xf] }
  0x3a   : > { %1822 = vmatprep.mubr.msk.bf16.mxu0 %vm2021_vm0, %v2020_v1  ;;  %v1661_v56 = vcombine.low %v1013_v51, %v2264_v52  ;;  %v1684_v32 = vcombine.low %v1335_v26, %v2264_v52  ;;  %v1347_v51 = vsel %vm1342_vm7, %v1344_v38, %v1346_v47 }
  0x3c   : > { %v1055_v59 = vrot.slane %v1661_v56, 2  ;;  %v1182_v15 = vshll.u32 %v1661_v56, 16  ;;  %v1343_v37 = vrot.slane %v1684_v32, 3 }
  0x3e   : > { %v1345_v44 = vsel %vm1342_vm7, %v1343_v37, %v1344_v38 }
  0x40   : > { %1805 = vmatmul.mubr.msk.bf16.gmra.mxu1 %vm267_vm2, %v2076_v9  ;;  %v747_v9 = vrot.slane %v745_v2, 2 }
  0x41   : > { %1823 = vmatmul.mubr.msk.bf16.gmra.mxu0 %vm267_vm2, %v459_v54  ;;  %1808 = vmatprep.mubr.msk.bf16.mxu1 %vm2021_vm0, %v2020_v1  ;;  %v899_v54 = vrot.slane %v2180_v60, 2  ;;  %v1056_v60 = vrot.slane %v2272_v57, 2 }
  0x42   : > { %1826 = vmatprep.mubr.msk.bf16.mxu0 %vm2021_vm0, %v2020_v1  ;;  %v748_v14 = vor.u32 %v747_v9, %v744_v8  ;;  %v905_v9 = vrot.slane %v2113_v36, 2  ;;  %v1179_v36 = vshrl.u32 %v1661_v56, 16 }
  0x43   : > { %v1057_v62 = vsel %vm897_vm5, %v1055_v59, %v1056_v60  ;;  %v902_v2 = vsel %vm897_vm5, %v899_v54, %v901_v61 }
  0x44   : > { %v758_v28 = vsel %vm732_vm4, %v748_v14, %v757_v24  ;;  %v906_v13 = vsel %vm897_vm5, %v903_v4, %v905_v9  ;;  %v1181_v21 = vrot.slane %v1179_v36, 2  ;;  %v1192_v24 = vrot.slane %v1190_v17, 3 }
  0x48   : > { %1809 = vmatmul.mubr.msk.bf16.gmra.mxu1 %vm267_vm2, %v2079_v10  ;;  %v740_v10 = vor.u32 %v739_v7, %v736_v6  ;;  %v2304_v6 = vld [vmem:[%s2067_s19 + $0x20] sm:$0xff]   ;;  %v904_v7 = vsel %vm897_vm5, %v901_v61, %v903_v4 }
  0x49   : > { %1827 = vmatmul.mubr.msk.bf16.gmra.mxu0 %vm267_vm2, %v461_v58  ;;  %1836 = vmatprep.mubr.msk.bf16.mxu1 %vm2021_vm0, %v2020_v1  ;;  %v900_v58 = vsel %vm897_vm5, %v898_v53, %v899_v54  ;;  %v1060_v8 = vrot.slane %v2304_v6, 2  ;;  %v1208_v42 = vshll.u32 %v2304_v6, 16  ;;  %v1348_v56 = vrot.slane %v2304_v6, 3 }
  0x4a   : > { %1830 = vmatprep.mubr.msk.bf16.mxu0 %vm2021_vm0, %v2020_v1  ;;  %v749_v18 = vsel %vm732_vm4, %v740_v10, %v748_v14  ;;  %v907_v14 = vrot.slane %v2241_v39, 2 }
  0x4b   : > { %v1349_v59 = vsel %vm1342_vm7, %v1346_v47, %v1348_v56 }
  0x4c   : > { %v908_v20 = vsel %vm897_vm5, %v905_v9, %v907_v14 }
  0x50   : > { %1837 = vmatmul.mubr.msk.bf16.vlgmr.msra.gmra.mxu1 %vm267_vm2, %v612_v11  ;;  %v1061_v11 = vsel %vm897_vm5, %v1058_v3, %v1060_v8 }
  0x51   : > { %1831 = vmatmul.mubr.msk.bf16.gmra.mxu0 %vm267_vm2, %v463_v5  ;;  %1879 = vmatpush3.bf16.msra.mxu1 %v1994_v12  ;;  %v1059_v5 = vsel %vm897_vm5, %v1056_v60, %v1058_v3  ;;  %v2317_v12 = vld [vmem:[%s2067_s19 + $0x28] sm:$0xff]  }
  0x52   : > { %1858 = vmatprep.mubr.msk.bf16.mxu0 %vm2021_vm0, %v2020_v1  ;;  %1840 = vmatprep.mubr.msk.bf16.mxu1 %vm2021_vm0, %v2020_v1  ;;  %v1062_v10 = vrot.slane %v2317_v12, 2  ;;  %v1214_v49 = vshrl.u32 %v2317_v12, 16  ;;  %v1217_v50 = vshll.u32 %v2317_v12, 16 }
  0x53   : > { %1922 = vmatprep.subr.bf16.mxu1 %v2020_v1 }
  0x54   : > { %v1216_v53 = vrot.slane %v1214_v49, 2  ;;  %v1219_v54 = vrot.slane %v1217_v50, 3 }
  0x56   : > { %v1220_v57 = vor.u32 %v1219_v54, %v1216_v53 }
  0x58   : > { %1841 = vmatmul.mubr.msk.bf16.gmra.mxu1 %vm267_vm2, %v614_v22  ;;  %v1184_v22 = vrot.slane %v1182_v15, 3 }
  0x59   : > { %1859 = vmatmul.mubr.msk.bf16.vlgmr.msra.gmra.mxu0 %vm267_vm2, %v749_v18  ;;  %1844 = vmatprep.mubr.msk.bf16.mxu1 %vm2021_vm0, %v2020_v1  ;;  %v1063_v18 = vsel %vm897_vm5, %v1060_v8, %v1062_v10 }
  0x5a   : > { %1901 = vmatpush3.bf16.msra.mxu0 %v1996_v19  ;;  %1862 = vmatprep.mubr.msk.bf16.mxu0 %vm2021_vm0, %v2020_v1  ;;  %v2009_v19 = vld [vmem:[%s2067_s19 + $0x30] ss:$0 sps:$4 sm:$0x33]   ;;  %v1185_v27 = vor.u32 %v1184_v22, %v1181_v21 }
  0x5b   : > { %1944 = vmatprep.subr.bf16.mxu0 %v2020_v1  ;;  %v1064_v25 = vrot.slane %v2009_v19, 2 }
  0x60   : > { %1845 = vmatmul.mubr.msk.bf16.gmra.mxu1 %vm267_vm2, %v616_v31  ;;  %v1065_v31 = vsel %vm897_vm5, %v1062_v10, %v1064_v25 }
  0x61   : > { %1863 = vmatmul.mubr.msk.bf16.gmra.mxu0 %vm267_vm2, %v758_v28  ;;  %1848 = vmatprep.mubr.msk.bf16.mxu1 %vm2021_vm0, %v2020_v1  ;;  %v1193_v28 = vor.u32 %v1192_v24, %v1189_v23 }
  0x62   : > { %1866 = vmatprep.mubr.msk.bf16.mxu0 %vm2021_vm0, %v2020_v1 }
  0x63   : > { %v1194_v33 = vsel %vm1177_vm6, %v1185_v27, %v1193_v28 }
  0x68   : > { %1849 = vmatmul.mubr.msk.bf16.gmra.mxu1 %vm267_vm2, %v618_v40  ;;  %v1205_v40 = vshrl.u32 %v2304_v6, 16 }
  0x69   : > { %1867 = vmatmul.mubr.msk.bf16.gmra.mxu0 %vm267_vm2, %v767_v35  ;;  %1852 = vmatprep.mubr.msk.bf16.mxu1 %vm2021_vm0, %v2020_v1  ;;  %v1201_v35 = vrot.slane %v1199_v30, 3 }
  0x6a   : > { %1870 = vmatprep.mubr.msk.bf16.mxu0 %vm2021_vm0, %v2020_v1  ;;  %v1207_v46 = vrot.slane %v1205_v40, 2 }
  0x6b   : > { %v1202_v39 = vor.u32 %v1201_v35, %v1198_v34 }
  0x6d   : > { %v1203_v45 = vsel %vm1177_vm6, %v1193_v28, %v1202_v39 }
  0x70   : > { %1853 = vmatmul.mubr.msk.bf16.gmra.mxu1 %vm267_vm2, %v2128_v43  ;;  %v2002_v43 = vld [vmem:[%s2503_s1 + $0x38] sm:$0xff]  }
  0x71   : > { %1871 = vmatmul.mubr.msk.bf16.gmra.mxu0 %vm267_vm2, %v776_v41  ;;  %1880 = vmatprep.mubr.msk.bf16.mxu1 %vm2021_vm0, %v2020_v1  ;;  %v1210_v41 = vrot.slane %v1208_v42, 3 }
  0x72   : > { %1874 = vmatprep.mubr.msk.bf16.mxu0 %vm2021_vm0, %v2020_v1 }
  0x73   : > { %v1211_v48 = vor.u32 %v1210_v41, %v1207_v46 }
  0x75   : > { %v1212_v52 = vsel %vm1177_vm6, %v1202_v39, %v1211_v48  ;;  %v1221_v60 = vsel %vm1177_vm6, %v1211_v48, %v1220_v57 }
  0x78   : > { %1881 = vmatmul.mubr.msk.bf16.vlgmr.msra.gmra.mxu1 %vm267_vm2, %v900_v58 }
  0x79   : > { %1875 = vmatmul.mubr.msk.bf16.gmra.mxu0 %vm267_vm2, %v785_v55  ;;  %1923 = vmatpush3.bf16.msra.mxu1 %v2002_v43  ;;  %v2011_v55 = vld [vmem:[%s2067_s19 + $0x30] ss:$0 sps:$4 sm:$0x77]  }
  0x7a   : > { %1902 = vmatprep.mubr.msk.bf16.mxu0 %vm2021_vm0, %v2020_v1  ;;  %1884 = vmatprep.mubr.msk.bf16.mxu1 %vm2021_vm0, %v2020_v1  ;;  %v1223_v58 = vshrl.u32 %v2011_v55, 16  ;;  %v1226_v43 = vshll.u32 %v2011_v55, 16  ;;  %v1352_v4 = vrot.slane %v2011_v55, 3 }
  0x7c   : > { %v1225_v61 = vrot.slane %v1223_v58, 2 }
  0x80   : > { %1885 = vmatmul.mubr.msk.bf16.gmra.mxu1 %vm267_vm2, %v902_v2 }
  0x81   : > { %1903 = vmatmul.mubr.msk.bf16.vlgmr.msra.gmra.mxu0 %vm267_vm2, %v1057_v62  ;;  %1888 = vmatprep.mubr.msk.bf16.mxu1 %vm2021_vm0, %v2020_v1  ;;  %v1228_v62 = vrot.slane %v1226_v43, 3 }
  0x82   : > { %1945 = vmatpush3.bf16.msra.mxu0 %v2005_v63  ;;  %1906 = vmatprep.mubr.msk.bf16.mxu0 %vm2021_vm0, %v2020_v1  ;;  %v1350_v63 = vrot.slane %v2317_v12, 3 }
  0x83   : > { %v1229_v0 = vor.u32 %v1228_v62, %v1225_v61 }
  0x84   : > { %v1351_v2 = vsel %vm1342_vm7, %v1348_v56, %v1350_v63 }
  0x85   : > { %v1230_v3 = vsel %vm1177_vm6, %v1220_v57, %v1229_v0 }
  0x88   : > { %1889 = vmatmul.mubr.msk.bf16.gmra.mxu1 %vm267_vm2, %v904_v7 }
  0x89   : > { %1907 = vmatmul.mubr.msk.bf16.gmra.mxu0 %vm267_vm2, %v1059_v5  ;;  %1892 = vmatprep.mubr.msk.bf16.mxu1 %vm2021_vm0, %v2020_v1  ;;  %v1353_v5 = vsel %vm1342_vm7, %v1350_v63, %v1352_v4 }
  0x8a   : > { %1910 = vmatprep.mubr.msk.bf16.mxu0 %vm2021_vm0, %v2020_v1 }
  0x90   : > { %1893 = vmatmul.mubr.msk.bf16.gmra.mxu1 %vm267_vm2, %v906_v13 }
  0x91   : > { %1911 = vmatmul.mubr.msk.bf16.gmra.mxu0 %vm267_vm2, %v1061_v11  ;;  %1896 = vmatprep.mubr.msk.bf16.mxu1 %vm2021_vm0, %v2020_v1 }
  0x92   : > { %1914 = vmatprep.mubr.msk.bf16.mxu0 %vm2021_vm0, %v2020_v1 }
  0x98   : > { %1897 = vmatmul.mubr.msk.bf16.gmra.mxu1 %vm267_vm2, %v908_v20 }
  0x99   : > { %1915 = vmatmul.mubr.msk.bf16.gmra.mxu0 %vm267_vm2, %v1063_v18  ;;  %1924 = vmatprep.mubr.msk.bf16.mxu1 %vm2021_vm0, %v2020_v1 }
  0x9a   : > { %1918 = vmatprep.mubr.msk.bf16.mxu0 %vm2021_vm0, %v2020_v1 }
  0xa0   : > { %1925 = vmatmul.mubr.msk.bf16.vlgmr.msra.gmra.mxu1 %vm267_vm2, %v1194_v33 }
  0xa1   : > { %1919 = vmatmul.mubr.msk.bf16.gmra.mxu0 %vm267_vm2, %v1065_v31  ;;  %1928 = vmatprep.mubr.msk.bf16.mxu1 %vm2021_vm0, %v2020_v1 }
  0xa2   : > { %1946 = vmatprep.mubr.msk.bf16.mxu0 %vm2021_vm0, %v2020_v1 }
  0xa8   : > { %1929 = vmatmul.mubr.msk.bf16.gmra.mxu1 %vm267_vm2, %v1203_v45 }
  0xa9   : > { %1947 = vmatmul.mubr.msk.bf16.vlgmr.msra.gmra.mxu0 %vm267_vm2, %v1345_v44  ;;  %1932 = vmatprep.mubr.msk.bf16.mxu1 %vm2021_vm0, %v2020_v1 }
  0xaa   : > { %1950 = vmatprep.mubr.msk.bf16.mxu0 %vm2021_vm0, %v2020_v1 }
  0xb0   : > { %1933 = vmatmul.mubr.msk.bf16.gmra.mxu1 %vm267_vm2, %v1212_v52 }
  0xb1   : > { %1951 = vmatmul.mubr.msk.bf16.gmra.mxu0 %vm267_vm2, %v1347_v51  ;;  %1936 = vmatprep.mubr.msk.bf16.mxu1 %vm2021_vm0, %v2020_v1 }
  0xb2   : > { %1954 = vmatprep.mubr.msk.bf16.mxu0 %vm2021_vm0, %v2020_v1 }
  0xb8   : > { %1937 = vmatmul.mubr.msk.bf16.gmra.mxu1 %vm267_vm2, %v1221_v60 }
  0xb9   : > { %1955 = vmatmul.mubr.msk.bf16.gmra.mxu0 %vm267_vm2, %v1349_v59  ;;  %1940 = vmatprep.mubr.msk.bf16.mxu1 %vm2021_vm0, %v2020_v1 }
  0xba   : > { %1958 = vmatprep.mubr.msk.bf16.mxu0 %vm2021_vm0, %v2020_v1 }
  0xc0   : > { %1941 = vmatmul.mubr.msk.bf16.gmra.mxu1 %vm267_vm2, %v1230_v3 }
  0xc1   : > { %1959 = vmatmul.mubr.msk.bf16.gmra.mxu0 %vm267_vm2, %v1351_v2 }
  0xc2   : > { %1962 = vmatprep.mubr.msk.bf16.mxu0 %vm2021_vm0, %v2020_v1 }
  0xc9   : > { %1963 = vmatmul.mubr.msk.bf16.gmra.mxu0 %vm267_vm2, %v1353_v5 }
  0xd8   : > { %v341_v7 = vpop.f32.mrf.mxu1 }
  0xd9   : > { %v317_v6 = vpop.f32.mrf.mxu0 }
  0xda   : > { %v1784_v9 = vpop.f32.mrf.mxu1 }
  0xdb   : > { %v1772_v8 = vpop.f32.mrf.mxu0 }
  0xdc   : > { %v344_v12 = vpop.f32.mrf.mxu1 }
  0xdd   : > { %v320_v11 = vpop.f32.mrf.mxu0 }
  0xde   : > { %v1785_v10 = vpop.f32.mrf.mxu1 }
  0xdf   : > { %v1773_v13 = vpop.f32.mrf.mxu0 }
  0xe0   : > { %v349_v36 = vpop.f32.mrf.mxu1 }
  0xe1   : > { %v325_v14 = vpop.f32.mrf.mxu0 }
  0xe2   : > { %v1788_v16 = vpop.f32.mrf.mxu1 }
  0xe3   : > { %v1776_v15 = vpop.f32.mrf.mxu0 }
  0xe4   : > { %v352_v17 = vpop.f32.mrf.mxu1 }
  0xe5   : > { %v328_v1 = vpop.f32.mrf.mxu0 }
  0xe6   : > { %v1789_v19 = vpop.f32.mrf.mxu1 }
  0xe7   : > { %v1777_v18 = vpop.f32.mrf.mxu0 }
  0xe8   : > { %v406_v21 = vpop.f32.mrf.mxu1 }
  0xe9   : > { %v333_v20 = vpop.f32.mrf.mxu0  ;;  %v407_v23 = vadd.f32 %v406_v21, %v317_v6 }
  0xea   : > { %v1794_v24 = vpop.f32.mrf.mxu1 }
  0xeb   : > { %v1780_v22 = vpop.f32.mrf.mxu0 }
  0xec   : > { %v409_v26 = vpop.f32.mrf.mxu1 }
  0xed   : > { %v336_v25 = vpop.f32.mrf.mxu0  ;;  %v410_v28 = vadd.f32 %v409_v26, %v320_v11 }
  0xee   : > { %v1795_v29 = vpop.f32.mrf.mxu1 }
  0xef   : > { %v1781_v27 = vpop.f32.mrf.mxu0 }
  0xf0   : > { %v414_v32 = vpop.f32.mrf.mxu1 }
  0xf1   : > { %v519_v30 = vpop.f32.mrf.mxu0  ;;  %v415_v34 = vadd.f32 %v414_v32, %v325_v14 }
  0xf2   : > { %v558_v31 = vadd.f32 %v519_v30, %v407_v23  ;;  %v1798_v35 = vpop.f32.mrf.mxu1 }
  0xf3   : > { %v1816_v33 = vpop.f32.mrf.mxu0 }
  0xf4   : > { %v417_v39 = vpop.f32.mrf.mxu1 }
  0xf5   : > { %v522_v37 = vpop.f32.mrf.mxu0  ;;  %v418_v42 = vadd.f32 %v417_v39, %v328_v1 }
  0xf6   : > { %v559_v38 = vadd.f32 %v522_v37, %v410_v28  ;;  %v1799_v44 = vpop.f32.mrf.mxu1 }
  0xf7   : > { %v1817_v40 = vpop.f32.mrf.mxu0 }
  0xf8   : > { %v422_v41 = vpop.f32.mrf.mxu1 }
  0xf9   : > { %v527_v45 = vpop.f32.mrf.mxu0  ;;  %v423_v48 = vadd.f32 %v422_v41, %v333_v20 }
  0xfa   : > { %v560_v46 = vadd.f32 %v527_v45, %v415_v34  ;;  %v1802_v49 = vpop.f32.mrf.mxu1 }
  0xfb   : > { %v1820_v47 = vpop.f32.mrf.mxu0 }
  0xfc   : > { %v425_v52 = vpop.f32.mrf.mxu1 }
  0xfd   : > { %v530_v50 = vpop.f32.mrf.mxu0  ;;  %v426_v54 = vadd.f32 %v425_v52, %v336_v25 }
  0xfe   : > { %v561_v51 = vadd.f32 %v530_v50, %v418_v42  ;;  %v1803_v55 = vpop.f32.mrf.mxu1 }
  0xff   : > { %v1821_v53 = vpop.f32.mrf.mxu0 }
 0x100   : > { %v430_v58 = vpop.f32.mrf.mxu1 }
 0x101   : > { %v535_v56 = vpop.f32.mrf.mxu0  ;;  %v431_v59 = vadd.f32 %v430_v58, %v341_v7 }
 0x102   : > { %v562_v57 = vadd.f32 %v535_v56, %v423_v48  ;;  %v1806_v60 = vpop.f32.mrf.mxu1 }
 0x103   : > { %v1824_v43 = vpop.f32.mrf.mxu0 }
 0x104   : > { %v433_v63 = vpop.f32.mrf.mxu1 }
 0x105   : > { %v538_v61 = vpop.f32.mrf.mxu0  ;;  %v434_v2 = vadd.f32 %v433_v63, %v344_v12 }
 0x106   : > { %v563_v62 = vadd.f32 %v538_v61, %v426_v54  ;;  %v1807_v3 = vpop.f32.mrf.mxu1 }
 0x107   : > { %v1825_v0 = vpop.f32.mrf.mxu0 }
 0x108   : > { %v438_v6 = vpop.f32.mrf.mxu1 }
 0x109   : > { %v543_v4 = vpop.f32.mrf.mxu0  ;;  %v439_v9 = vadd.f32 %v438_v6, %v349_v36 }
 0x10a   : > { %v564_v5 = vadd.f32 %v543_v4, %v431_v59  ;;  %v1810_v11 = vpop.f32.mrf.mxu1 }
 0x10b   : > { %v1828_v8 = vpop.f32.mrf.mxu0 }
 0x10c   : > { %v441_v14 = vpop.f32.mrf.mxu1 }
 0x10d   : > { %v546_v13 = vpop.f32.mrf.mxu0  ;;  %v442_v16 = vadd.f32 %v441_v14, %v352_v17 }
 0x10e   : > { %v565_v10 = vadd.f32 %v546_v13, %v434_v2  ;;  %v1811_v1 = vpop.f32.mrf.mxu1 }
 0x10f   : > { %v1829_v15 = vpop.f32.mrf.mxu0 }
 0x110   : > { %v676_v19 = vpop.f32.mrf.mxu1 }
 0x111   : > { %v551_v7 = vpop.f32.mrf.mxu0  ;;  %v715_v21 = vadd.f32 %v676_v19, %v558_v31 }
 0x112   : > { %v566_v18 = vadd.f32 %v551_v7, %v439_v9  ;;  %v1838_v22 = vpop.f32.mrf.mxu1 }
 0x113   : > { %v1832_v20 = vpop.f32.mrf.mxu0 }
 0x114   : > { %v679_v24 = vpop.f32.mrf.mxu1 }
 0x115   : > { %v554_v12 = vpop.f32.mrf.mxu0  ;;  %v716_v26 = vadd.f32 %v679_v24, %v559_v38 }
 0x116   : > { %v567_v23 = vadd.f32 %v554_v12, %v442_v16  ;;  %v1839_v27 = vpop.f32.mrf.mxu1 }
 0x117   : > { %v1833_v25 = vpop.f32.mrf.mxu0 }
 0x118   : > { %v684_v29 = vpop.f32.mrf.mxu1 }
 0x119   : > { %v841_v36 = vpop.f32.mrf.mxu0  ;;  %v717_v32 = vadd.f32 %v684_v29, %v560_v46 }
 0x11a   : > { %v2392_v28 = vadd.f32 %v841_v36, %v715_v21  ;;  %v1842_v17 = vpop.f32.mrf.mxu1 }
 0x11b   : > { %v1860_v30 = vpop.f32.mrf.mxu0 }
 0x11c   : > { %v687_v35 = vpop.f32.mrf.mxu1 }
 0x11d   : > { %v844_v33 = vpop.f32.mrf.mxu0  ;;  %v718_v31 = vadd.f32 %v687_v35, %v561_v51 }
 0x11e   : > { %v2394_v34 = vadd.f32 %v844_v33, %v716_v26  ;;  %v1843_v39 = vpop.f32.mrf.mxu1 }
 0x11f   : > { %v1861_v37 = vpop.f32.mrf.mxu0 }
 0x120   : > { %v692_v44 = vpop.f32.mrf.mxu1 }
 0x121   : > { %v849_v40 = vpop.f32.mrf.mxu0  ;;  %v719_v45 = vadd.f32 %v692_v44, %v562_v57 }
 0x122   : > { %v2396_v42 = vadd.f32 %v849_v40, %v717_v32  ;;  %v1846_v41 = vpop.f32.mrf.mxu1 }
 0x123   : > { %v1864_v38 = vpop.f32.mrf.mxu0 }
 0x124   : > { %v695_v49 = vpop.f32.mrf.mxu1 }
 0x125   : > { %v852_v47 = vpop.f32.mrf.mxu0  ;;  %v720_v50 = vadd.f32 %v695_v49, %v563_v62 }
 0x126   : > { %v2398_v48 = vadd.f32 %v852_v47, %v718_v31  ;;  %v1847_v52 = vpop.f32.mrf.mxu1 }
 0x127   : > { %v1865_v46 = vpop.f32.mrf.mxu0 }
 0x128   : > { %v700_v55 = vpop.f32.mrf.mxu1 }
 0x129   : > { %v857_v53 = vpop.f32.mrf.mxu0  ;;  %v721_v56 = vadd.f32 %v700_v55, %v564_v5 }
 0x12a   : > { %v2400_v54 = vadd.f32 %v857_v53, %v719_v45  ;;  %v1850_v58 = vpop.f32.mrf.mxu1 }
 0x12b   : > { %v1868_v51 = vpop.f32.mrf.mxu0 }
 0x12c   : > { %v703_v60 = vpop.f32.mrf.mxu1 }
 0x12d   : > { %v860_v43 = vpop.f32.mrf.mxu0  ;;  %v722_v61 = vadd.f32 %v703_v60, %v565_v10 }
 0x12e   : > { %v2402_v59 = vadd.f32 %v860_v43, %v720_v50  ;;  %v1851_v63 = vpop.f32.mrf.mxu1 }
 0x12f   : > { %v1869_v57 = vpop.f32.mrf.mxu0 }
 0x130   : > { %v708_v3 = vpop.f32.mrf.mxu1 }
 0x131   : > { %v865_v0 = vpop.f32.mrf.mxu0  ;;  %v723_v4 = vadd.f32 %v708_v3, %v566_v18 }
 0x132   : > { %v2404_v2 = vadd.f32 %v865_v0, %v721_v56  ;;  %v1854_v6 = vpop.f32.mrf.mxu1 }
 0x133   : > { %v1872_v62 = vpop.f32.mrf.mxu0 }
 0x134   : > { %v711_v11 = vpop.f32.mrf.mxu1 }
 0x135   : > { %v868_v8 = vpop.f32.mrf.mxu0  ;;  %v724_v13 = vadd.f32 %v711_v11, %v567_v23 }
 0x136   : > { %v2406_v9 = vadd.f32 %v868_v8, %v722_v61  ;;  %v1855_v14 = vpop.f32.mrf.mxu1 }
 0x137   : > { %v1873_v5 = vpop.f32.mrf.mxu0  ;;  %v2441_v14 = vld [vmem:[%s2504_s2] ss:$0 sm:$0xff] }
 0x138   : > { %v964_v1 = vpop.f32.mrf.mxu1 }
 0x139   : > { %v873_v15 = vpop.f32.mrf.mxu0  ;;  %v1003_v63 = vadd.f32 %v964_v1, %v2392_v28 }
 0x13a   : > { %v2408_v16 = vadd.f32 %v873_v15, %v723_v4  ;;  %v1882_v7 = vpop.f32.mrf.mxu1 }
 0x13b   : > { %v1876_v10 = vpop.f32.mrf.mxu0 }
 0x13c   : > { %v967_v21 = vpop.f32.mrf.mxu1 }
 0x13d   : > { %v876_v19 = vpop.f32.mrf.mxu0  ;;  %v1004_v8 = vadd.f32 %v967_v21, %v2394_v34 }
 0x13e   : > { %v2410_v20 = vadd.f32 %v876_v19, %v724_v13  ;;  %v1883_v18 = vpop.f32.mrf.mxu1 }
 0x13f   : > { %v1877_v22 = vpop.f32.mrf.mxu0 }
 0x140   : > { %v972_v24 = vpop.f32.mrf.mxu1 }
 0x141   : > { %v1121_v12 = vpop.f32.mrf.mxu0  ;;  %v1005_v1 = vadd.f32 %v972_v24, %v2396_v42 }
 0x142   : > { %v1886_v26 = vpop.f32.mrf.mxu1  ;;  %v1160_v62 = vadd.f32 %v1121_v12, %v1003_v63 }
 0x143   : > { %v1904_v25 = vpop.f32.mrf.mxu0 }
 0x144   : > { %v975_v36 = vpop.f32.mrf.mxu1 }
 0x145   : > { %v1124_v27 = vpop.f32.mrf.mxu0 }
 0x146   : > { %v1887_v29 = vpop.f32.mrf.mxu1  ;;  %v1161_v15 = vadd.f32 %v1124_v27, %v1004_v8 }
 0x147   : > { %v1905_v23 = vpop.f32.mrf.mxu0 }
 0x148   : > { %v2412_v32 = vpop.f32.mrf.mxu1  ;;  %v1006_v23 = vadd.f32 %v975_v36, %v2398_v48 }
 0x149   : > { %v1129_v30 = vpop.f32.mrf.mxu0 }
 0x14a   : > { %v1890_v33 = vpop.f32.mrf.mxu1  ;;  %v1162_v21 = vadd.f32 %v1129_v30, %v1005_v1 }
 0x14b   : > { %v1908_v17 = vpop.f32.mrf.mxu0 }
 0x14c   : > { %v2414_v37 = vpop.f32.mrf.mxu1 }
 0x14d   : > { %v1132_v35 = vpop.f32.mrf.mxu0  ;;  %v1008_v63 = vadd.f32 %v2414_v37, %v2402_v59 }
 0x14e   : > { %v1891_v39 = vpop.f32.mrf.mxu1  ;;  %v1163_v33 = vadd.f32 %v1132_v35, %v1006_v23 }
 0x14f   : > { %v1909_v31 = vpop.f32.mrf.mxu0 }
 0x150   : > { %v2418_v44 = vpop.f32.mrf.mxu1 }
 0x151   : > { %v2416_v40 = vpop.f32.mrf.mxu0 }
 0x152   : > { %v1894_v45 = vpop.f32.mrf.mxu1 }
 0x153   : > { %v1912_v38 = vpop.f32.mrf.mxu0 }
 0x154   : > { %v2422_v47 = vpop.f32.mrf.mxu1 }
 0x155   : > { %v2420_v41 = vpop.f32.mrf.mxu0 }
 0x156   : > { %v1895_v46 = vpop.f32.mrf.mxu1 }
 0x157   : > { %v1913_v49 = vpop.f32.mrf.mxu0 }
 0x158   : > { %v2426_v52 = vpop.f32.mrf.mxu1  ;;  %v1007_v49 = vadd.f32 %v2412_v32, %v2400_v54 }
 0x159   : > { %v2424_v50 = vpop.f32.mrf.mxu0 }
 0x15a   : > { %v1898_v55 = vpop.f32.mrf.mxu1 }
 0x15b   : > { %v1916_v53 = vpop.f32.mrf.mxu0 }
 0x15c   : > { %v2430_v56 = vpop.f32.mrf.mxu1 }
 0x15d   : > { %v2428_v51 = vpop.f32.mrf.mxu0 }
 0x15e   : > { %v1899_v43 = vpop.f32.mrf.mxu1 }
 0x15f   : > { %v1917_v58 = vpop.f32.mrf.mxu0 }
 0x160   : > { %v1286_v57 = vpop.f32.mrf.mxu1  ;;  %v1164_v58 = vadd.f32 %v2416_v40, %v1007_v49 }
 0x161   : > { %v2432_v60 = vpop.f32.mrf.mxu0  ;;  %v1325_v11 = vadd.f32 %v1286_v57, %v1160_v62 }
 0x162   : > { %v1926_v0 = vpop.f32.mrf.mxu1 }
 0x163   : > { %v1920_v61 = vpop.f32.mrf.mxu0 }
 0x164   : > { %v1289_v4 = vpop.f32.mrf.mxu1 }
 0x165   : > { %v2435_v3 = vpop.f32.mrf.mxu0  ;;  %v1326_v19 = vadd.f32 %v1289_v4, %v1161_v15 }
 0x166   : > { %v1927_v5 = vpop.f32.mrf.mxu1 }
 0x167   : > { %v1921_v6 = vpop.f32.mrf.mxu0 }
 0x168   : > { %v1294_v7 = vpop.f32.mrf.mxu1  ;;  %v1165_v6 = vadd.f32 %v2420_v41, %v1008_v63 }
 0x169   : > { %v1409_v13 = vpop.f32.mrf.mxu0  ;;  %v1327_v42 = vadd.f32 %v1294_v7, %v1162_v21 }
 0x16a   : > { %v1448_v10 = vadd.f32 %v1409_v13, %v1325_v11  ;;  %v1930_v18 = vpop.f32.mrf.mxu1  ;;  %v1009_v13 = vadd.f32 %v2418_v44, %v2404_v2 }
 0x16b   : > { %v1948_v28 = vpop.f32.mrf.mxu0  ;;  %v1010_v18 = vadd.f32 %v2422_v47, %v2406_v9 }
 0x16c   : > { %v1465_v22 = vadd.f32 %v2441_v14, %v1448_v10  ;;  %v1297_v26 = vpop.f32.mrf.mxu1  ;;  %v1166_v28 = vadd.f32 %v2424_v50, %v1009_v13 }
 0x16d   : > { %v1412_v34 = vpop.f32.mrf.mxu0  ;;  %v1328_v46 = vadd.f32 %v1297_v26, %v1163_v33 }
 0x16e   : > { %v1475_v12 = vmax.f32 %v1465_v22, 0.0  ;;  %v1449_v25 = vadd.f32 %v1412_v34, %v1326_v19  ;;  %v1931_v17 = vpop.f32.mrf.mxu1 }
 0x16f   : > { %v1949_v27 = vpop.f32.mrf.mxu0 }
 0x170   : > { %v1704_v24 = vpack.c.bf16 %v1475_v12, %v1475_v12  ;;  %v1466_v29 = vadd.f32 %v2441_v14, %v1449_v25  ;;  %v1302_v38 = vpop.f32.mrf.mxu1  ;;  %v1167_v25 = vadd.f32 %v2428_v51, %v1010_v18 }
 0x171   : > { %v1417_v30 = vpop.f32.mrf.mxu0  ;;  %v1329_v0 = vadd.f32 %v1302_v38, %v1164_v58  ;;  %v1012_v38 = vadd.f32 %v2430_v56, %v2410_v20 }
 0x172   : > { %1526 = vst.msk [vmem:[%s2449_s16] sm:$0xf] %vm1525_vm8, %v1704_v24  ;;  %v1476_v31 = vmax.f32 %v1466_v29, 0.0  ;;  %v1450_v39 = vadd.f32 %v1417_v30, %v1327_v42  ;;  %v1934_v36 = vpop.f32.mrf.mxu1  ;;  %v1011_v42 = vadd.f32 %v2426_v52, %v2408_v16 }
 0x173   : > { %v1952_v45 = vpop.f32.mrf.mxu0 }
 0x174   : > { %v1705_v53 = vpack.c.bf16 %v1476_v31, %v1476_v31  ;;  %v1467_v48 = vadd.f32 %v2441_v14, %v1450_v39  ;;  %v1305_v57 = vpop.f32.mrf.mxu1  ;;  %v1168_v30 = vadd.f32 %v2432_v60, %v1011_v42 }
 0x175   : > { %v1420_v55 = vpop.f32.mrf.mxu0  ;;  %v1330_v15 = vadd.f32 %v1305_v57, %v1165_v6 }
 0x176   : > { %1527 = vst.msk [vmem:[%s2449_s16 + $0x4] sm:$0xf] %vm1525_vm8, %v1705_v53  ;;  %v1477_v35 = vmax.f32 %v1467_v48, 0.0  ;;  %v1451_v43 = vadd.f32 %v1420_v55, %v1328_v46  ;;  %v1935_v62 = vpop.f32.mrf.mxu1  ;;  %v1169_v53 = vadd.f32 %v2435_v3, %v1012_v38 }
 0x177   : > { %v1953_v61 = vpop.f32.mrf.mxu0 }
 0x178   : > { %v1706_v54 = vpack.c.bf16 %v1477_v35, %v1477_v35  ;;  %v1468_v32 = vadd.f32 %v2441_v14, %v1451_v43  ;;  %v1310_v11 = vpop.f32.mrf.mxu1 }
 0x179   : > { %v1425_v4 = vpop.f32.mrf.mxu0  ;;  %v1331_v34 = vadd.f32 %v1310_v11, %v1166_v28 }
 0x17a   : > { %1528 = vst.msk [vmem:[%s2449_s16 + $0x8] sm:$0xf] %vm1525_vm8, %v1706_v54  ;;  %v1478_v40 = vmax.f32 %v1468_v32, 0.0  ;;  %v1452_v8 = vadd.f32 %v1425_v4, %v1329_v0  ;;  %v1938_v10 = vpop.f32.mrf.mxu1 }
 0x17b   : > { %v1956_v5 = vpop.f32.mrf.mxu0 }
 0x17c   : > { %v1707_v59 = vpack.c.bf16 %v1478_v40, %v1478_v40  ;;  %v1469_v37 = vadd.f32 %v2441_v14, %v1452_v8  ;;  %v1313_v19 = vpop.f32.mrf.mxu1 }
 0x17d   : > { %v1428_v7 = vpop.f32.mrf.mxu0  ;;  %v1332_v24 = vadd.f32 %v1313_v19, %v1167_v25 }
 0x17e   : > { %1529 = vst.msk [vmem:[%s2449_s16 + $0xc] sm:$0xf] %vm1525_vm8, %v1707_v59  ;;  %v1479_v41 = vmax.f32 %v1469_v37, 0.0  ;;  %v1453_v1 = vadd.f32 %v1428_v7, %v1330_v15  ;;  %v1939_v21 = vpop.f32.mrf.mxu1 }
 0x17f   : > { %v1957_v22 = vpop.f32.mrf.mxu0 }
 0x180   : > { %v1708_v2 = vpack.c.bf16 %v1479_v41, %v1479_v41  ;;  %v1470_v44 = vadd.f32 %v2441_v14, %v1453_v1  ;;  %v1318_v27 = vpop.f32.mrf.mxu1 }
 0x181   : > { %v1433_v12 = vpop.f32.mrf.mxu0  ;;  %v1333_v16 = vadd.f32 %v1318_v27, %v1168_v30 }
 0x182   : > { %1530 = vst.msk [vmem:[%s2449_s16 + $0x10] sm:$0xf] %vm1525_vm8, %v1708_v2  ;;  %v1480_v50 = vmax.f32 %v1470_v44, 0.0  ;;  %v1454_v26 = vadd.f32 %v1433_v12, %v1331_v34  ;;  %v1942_v29 = vpop.f32.mrf.mxu1 }
 0x183   : > { %v1960_v23 = vpop.f32.mrf.mxu0 }
 0x184   : > { %v1709_v9 = vpack.c.bf16 %v1480_v50, %v1480_v50  ;;  %v1471_v47 = vadd.f32 %v2441_v14, %v1454_v26  ;;  %v1321_v31 = vpop.f32.mrf.mxu1 }
 0x185   : > { %v1436_v17 = vpop.f32.mrf.mxu0  ;;  %v1334_v55 = vadd.f32 %v1321_v31, %v1169_v53 }
 0x186   : > { %1531 = vst.msk [vmem:[%s2449_s16 + $0x14] sm:$0xf] %vm1525_vm8, %v1709_v9  ;;  %v1481_v51 = vmax.f32 %v1471_v47, 0.0  ;;  %v1455_v33 = vadd.f32 %v1436_v17, %v1332_v24  ;;  %v1943_v49 = vpop.f32.mrf.mxu1 }
 0x187   : > { %v1961_v39 = vpop.f32.mrf.mxu0 }
 0x188   : > { %v1710_v52 = vpack.c.bf16 %v1481_v51, %v1481_v51  ;;  %v1472_v45 = vadd.f32 %v2441_v14, %v1455_v33 }
 0x189   : > { %v1441_v46 = vpop.f32.mrf.mxu0 }
 0x18a   : > { %1532 = vst.msk [vmem:[%s2449_s16 + $0x18] sm:$0xf] %vm1525_vm8, %v1710_v52  ;;  %v1482_v60 = vmax.f32 %v1472_v45, 0.0  ;;  %v1456_v48 = vadd.f32 %v1441_v46, %v1333_v16 }
 0x18b   : > { %v1964_v36 = vpop.f32.mrf.mxu0 }
 0x18c   : > { %v1711_v58 = vpack.c.bf16 %v1482_v60, %v1482_v60  ;;  %v1473_v35 = vadd.f32 %v2441_v14, %v1456_v48 }
 0x18d   : > { %v1444_v20 = vpop.f32.mrf.mxu0 }
 0x18e   : > { %1533 = vst.msk [vmem:[%s2449_s16 + $0x1c] sm:$0xf] %vm1525_vm8, %v1711_v58  ;;  %v1483_v56 = vmax.f32 %v1473_v35, 0.0  ;;  %v1457_v43 = vadd.f32 %v1444_v20, %v1334_v55 }
 0x18f   : > { %v1965_v57 = vpop.f32.mrf.mxu0 }
 0x190   : > { %v1712_v61 = vpack.c.bf16 %v1483_v56, %v1483_v56  ;;  %v1474_v63 = vadd.f32 %v2441_v14, %v1457_v43 }
 0x192   : > { %1534 = vst.msk [vmem:[%s2449_s16 + $0x20] sm:$0xf] %vm1525_vm8, %v1712_v61  ;;  %v1484_v3 = vmax.f32 %v1474_v63, 0.0 }
 0x194   : > { %v1713_v0 = vpack.c.bf16 %v1484_v3, %v1484_v3 }
 0x196   : > { %1535 = vst.msk [vmem:[%s2449_s16 + $0x24] sm:$0xf] %vm1525_vm8, %v1713_v0 }
 0x197 PF: > { %s13_s12 = sadd.s32 1, %s2018_s12  }
 0x198   : > { %p10_p4 = scmp.ge.s32.totalorder %s13_s12, 4  }
 0x19a   :  { %12 = sbr.rel (!%p10_p4) target bundleno = 1 (0x1), region = 70 }

// kernel: _lambda_.15
= control target key start
LH: loop header
LB: loop body
LE: loop exit
PB: predicated region body
PF: predicated region fallthrough
CT: control target
= control target key end

     0   :  { %s266_s6 = smov 0   ;;  %s283_s0 = inlined_call_operand.vmem [shape: f32[8,2,4,2], index: 0, kind: input, shape index: {}]   ;;  %s284_s1 = inlined_call_operand.vmem [shape: f32[8,4,1], index: 1, kind: output, shape index: {}]  }
   0x1 LB: > { %s221_s7 = sadd.s32 4294967295, %s253_s6   ;;  %p225_p0 = scmp.ge.s32.totalorder %s253_s6, 1  ;;  %s253_s6 = sphi %s266_s6, %s11_s6  }
   0x2   : > { %p89_p1 = scmp.lt.s32.totalorder %s253_s6, 3 }
   0x4   : > { %p90_p2 = pnand %p225_p0, %p89_p1 }
   0x5   : > { %s226_s8 = sshll.u32 (!%p90_p2), %s221_s7, 2  ;;  %s255_s13 = smov (!%p90_p2), 127  }
   0x6   : > { %93 = sbr.rel (%p90_p2) target bundleno = 142 (0x8e), region = 24  ;;  %p111_p3 = scmp.lt.s32.totalorder (!%p90_p2), %s226_s8, 7 }
   0xb   : > { %s286_s8 = smov (!%p111_p3, %s226_s8), 7  ;;  %vm160_vm0 = vcmask 3072  }
   0xc   : > { %s237_s9 = sshll.u32 %s286_s8, 3  ;;  %s230_s14 = sshll.u32 %s286_s8, 2 }
   0xd   : > { %s115_s12 = scalar_lea.vmem %s283_s0, %s237_s9  ;;  %s121_s17 = scalar_lea.vmem %s284_s1, %s230_s14 }
   0xe   : > { %v123_v0 = vld [vmem:[%s115_s12] sm:$0xf]  ;;  %v231_v1 = vld [vmem:[%s115_s12 + $0x4] sm:$0xf]  ;;  %v125_v2 = vld [vmem:[%s115_s12 + $0x10] sm:$0xf] }
   0xf   : > { %v132_v3 = vadd.f32 %v231_v1, %v123_v0  ;;  %v233_v4 = vld [vmem:[%s115_s12 + $0x14] sm:$0xf]  ;;  %v124_v5 = vld [vmem:[%s115_s12 + $0x8] sm:$0xf]  ;;  %v232_v6 = vld [vmem:[%s115_s12 + $0xc] sm:$0xf] }
  0x10   : > { %v134_v7 = vadd.f32 %v233_v4, %v125_v2  ;;  %v126_v8 = vld [vmem:[%s115_s12 + $0x18] sm:$0xf]  ;;  %v234_v9 = vld [vmem:[%s115_s12 + $0x1c] sm:$0xf]  ;;  %v133_v10 = vadd.f32 %v232_v6, %v124_v5 }
  0x11   : > { %140 = vrot.lane.b32.xlu0 %v132_v3, %s255_s13  ;;  %v135_v11 = vadd.f32 %v234_v9, %v126_v8 }
  0x12   : > { %144 = vrot.lane.b32.xlu1 %v134_v7, %s255_s13 }
  0x15   : > { %142 = vrot.lane.b32.xlu0 %v133_v10, %s255_s13 }
  0x16   : > { %146 = vrot.lane.b32.xlu1 %v135_v11, %s255_s13 }
  0x83   : > { %v141_v12 = vpop.permute.xlu0 %140 }
  0x84   : > { %v152_v13 = vadd.f32 %v141_v12, %v132_v3  ;;  %v145_v14 = vpop.permute.xlu1 %144 }
  0x85   : > { %v154_v16 = vadd.f32 %v145_v14, %v134_v7 }
  0x86   : > { %v156_v15 = vmul.f32 0.25, %v152_v13 }
  0x87   : > { %v143_v17 = vpop.permute.xlu0 %142  ;;  %v158_v22 = vmul.f32 0.25, %v154_v16 }
  0x88   : > { %161 = vst.msk [vmem:[%s121_s17] sm:$0xf] %vm160_vm0, %v156_v15  ;;  %v153_v18 = vadd.f32 %v143_v17, %v133_v10  ;;  %v147_v19 = vpop.permute.xlu1 %146 }
  0x89   : > { %v155_v20 = vadd.f32 %v147_v19, %v135_v11  ;;  %163 = vst.msk [vmem:[%s121_s17 + $0x8] sm:$0xf] %vm160_vm0, %v158_v22 }
  0x8a   : > { %v157_v21 = vmul.f32 0.25, %v153_v18 }
  0x8b   : > { %v159_v23 = vmul.f32 0.25, %v155_v20 }
  0x8c   : > { %162 = vst.msk [vmem:[%s121_s17 + $0x4] sm:$0xf] %vm160_vm0, %v157_v21 }
  0x8d   : > { %164 = vst.msk [vmem:[%s121_s17 + $0xc] sm:$0xf] %vm160_vm0, %v159_v23 }
  0x8e PF: > { %s11_s6 = sadd.s32 1, %s253_s6  }
  0x8f   : > { %p8_p4 = scmp.ge.s32.totalorder %s11_s6, 4  }
  0x91   :  { %10 = sbr.rel (!%p8_p4) target bundleno = 1 (0x1), region = 55 }

// kernel: _lambda_.17
= control target key start
LH: loop header
LB: loop body
LE: loop exit
PB: predicated region body
PF: predicated region fallthrough
CT: control target
= control target key end

     0   :  { %s1127_s12 = smov 0   ;;  %s1262_s0 = inlined_call_operand.vmem [shape: bf16[2,38,8], index: 0, kind: input, shape index: {}]   ;;  %s1263_s1 = inlined_call_operand.vmem [shape: bf16[9,8,16], index: 1, kind: input, shape index: {}]   ;;  %s1264_s2 = inlined_call_operand.vmem [shape: f32[1,16], index: 2, kind: input, shape index: {}]   ;;  %s1265_s3 = inlined_call_operand.vmem [shape: bf16[2,24,16], index: 3, kind: output, shape index: {}]  }
   0x1 LB: > { %s931_s13 = sadd.s32 4294967295, %s1105_s12   ;;  %p935_p0 = scmp.ge.s32.totalorder %s1105_s12, 1  ;;  %s1105_s12 = sphi %s1127_s12, %s13_s12  }
   0x2   : > { %p137_p1 = scmp.lt.s32.totalorder %s1105_s12, 3 }
   0x4   : > { %p138_p2 = pnand %p935_p0, %p137_p1 }
   0x5   : > { %p161_p3 = scmp.lt.s32.totalorder (!%p138_p2), %s931_s13, 1 }
   0x6   : > { %141 = sbr.rel (%p138_p2) target bundleno = 267 (0x10b), region = 32 }
   0xb   : > { %v938_v0 = vld [vmem:[%s1263_s1 + $0x4] sm:$0xf]  ;;  %vm212_vm0 = vcmask 1043456   ;;  %v175_v1 = vld [vmem:[%s1263_s1] sm:$0xf]  ;;  %s1267_s13 = smov (!%p161_p3, %s931_s13), 1 }
   0xc   : > { %1067 = vmatprep.subr.msk.bf16.mxu0 %vm212_vm0, %v938_v0  ;;  %v214_v2 = vsel %vm212_vm0, %v938_v0, 0  ;;  %1068 = vmatprep.subr.msk.bf16.mxu1 %vm212_vm0, %v175_v1  ;;  %v271_v3 = vsel %vm212_vm0, %v175_v1, 0  ;;  %v946_v4 = vld [vmem:[%s1263_s1 + $0x8] sm:$0xf]  ;;  %v950_v5 = vld [vmem:[%s1263_s1 + $0xc] sm:$0xf] }
   0xd   : > { %1014 = vmatpush3.bf16.msra.mxu0 %v214_v2  ;;  %1020 = vmatpush3.bf16.msra.mxu1 %v271_v3  ;;  %s1076_s22 = smul.u32 20, %s1267_s13  ;;  %vm189_vm1 = vsmask.f32 7424  ;;  %vm205_vm2 = vcmask 64512   ;;  %v412_v6 = vsel %vm212_vm0, %v950_v5, 0  ;;  %vm327_vm3 = vcmask 1046528  }
   0xe   : > { %1069 = vmatprep.subr.msk.bf16.mxu0 %vm212_vm0, %v946_v4  ;;  %1070 = vmatprep.subr.msk.bf16.mxu1 %vm212_vm0, %v950_v5  ;;  %vm401_vm4 = vcmask 1044480   ;;  %v959_v23 = vld [vmem:[%s1263_s1 + $0x14] sm:$0xf]  ;;  %v338_v39 = vsel %vm212_vm0, %v946_v4, 0  ;;  %v955_v52 = vld [vmem:[%s1263_s1 + $0x10] sm:$0xf] }
   0xf   : > { %s1159_s25 = scalar_lea.vmem %s1262_s0, %s1076_s22  ;;  %v560_v55 = vsel %vm212_vm0, %v959_v23, 0  ;;  %v969_v57 = vld [vmem:[%s1263_s1 + $0x1c] sm:$0xf]  ;;  %vm471_vm5 = vsmask.f32 4352  ;;  %vm629_vm7 = vcmask 1045504  }
  0x10   : > { %v172_v7 = vld [vmem:[%s1159_s25] sm:$0xf]  ;;  %v1164_v8 = vld [vmem:[%s1159_s25 + $0x4] sm:$0xf]  ;;  %v1167_v9 = vld [vmem:[%s1159_s25 + $0x8] sm:$0xf] }
  0x11   : > { %v176_v10 = vld [vmem:[%s1159_s25 + $0xc] sm:$0x1]  ;;  %v939_v11 = vcombine.low %v172_v7, %v1164_v8  ;;  %v943_v12 = vcombine.low %v1167_v9, %v1167_v9  ;;  %v321_v13 = vld [vmem:[%s1159_s25] sm:$0xe]  ;;  %v613_v33 = vld [vmem:[%s1159_s25 + $0x4] sm:$0xc]  ;;  %v960_v53 = vcombine.low %v1164_v8, %v1167_v9 }
  0x12   : > { %v391_v14 = vld [vmem:[%s1159_s25] sm:$0x8]  ;;  %v1176_v15 = vcombine.low %v1167_v9, %v176_v10  ;;  %v947_v16 = vcombine.low %v321_v13, %v1164_v8  ;;  %v392_v17 = vld [vmem:[%s1159_s25 + $0xc] sm:$0x7]  ;;  %v1198_v37 = vld [vmem:[%s1159_s25 + $0x8] sm:$0xf] }
  0x13   : > { %v951_v18 = vcombine.low %v391_v14, %v1164_v8  ;;  %v1182_v19 = vld [vmem:[%s1159_s25 + $0xc] sm:$0xf]  ;;  %v191_v20 = vshrl.u32 %v939_v11, 16  ;;  %v193_v21 = vshll.u32 %v939_v11, 16  ;;  %1021 = vmatprep.mubr.msk.bf16.mxu1 %vm205_vm2, %v939_v11  ;;  %v952_v22 = vcombine.low %v1167_v9, %v392_v17  ;;  %v693_v43 = vld [vmem:[%s1159_s25 + $0x10] sm:$0x7] }
  0x14   : > { %v956_v24 = vcombine.low %v1167_v9, %v1182_v19  ;;  %v198_v25 = vshll.u32 %v1176_v15, 16  ;;  %v202_v26 = vshrl.u32 %v1176_v15, 16  ;;  %1022 = vmatmul.mubr.msk.bf16.vlgmr.msra.gmra.mxu1 %vm205_vm2, %v943_v12  ;;  %v328_v27 = vrot.slane %v947_v16, 1  ;;  %v615_v42 = vld [vmem:[%s1159_s25 + $0xc] sm:$0xf]  ;;  %s1077_s11 = smul.u32 12, %s1267_s13 }
  0x15   : > { %v329_v28 = vrot.slane %v1176_v15, 1  ;;  %v195_v29 = vrot.slane %v193_v21, 1  ;;  %1032 = vmatpush3.bf16.msra.mxu1 %v412_v6  ;;  %v402_v30 = vrot.slane %v951_v18, 3  ;;  %v403_v31 = vrot.slane %v952_v22, 3  ;;  %v616_v0 = vld [vmem:[%s1159_s25 + $0x10] sm:$0x3] }
  0x16   : > { %v473_v32 = vshrl.u32 %v951_v18, 16  ;;  %v200_v34 = vrot.slane %v198_v25, 1  ;;  %1072 = vmatprep.subr.msk.bf16.mxu1 %vm212_vm0, %v959_v23  ;;  %v476_v35 = vshll.u32 %v951_v18, 16  ;;  %v481_v36 = vshrl.u32 %v956_v24, 16  ;;  %v964_v10 = vld [vmem:[%s1263_s1 + $0x18] sm:$0xf]  ;;  %s170_s16 = scalar_lea.vmem %s1265_s3, %s1077_s11 }
  0x17   : > { %v196_v38 = vor.u32 %v195_v29, %v191_v20  ;;  %v404_v40 = vsel %vm401_vm4, %v402_v30, %v403_v31  ;;  %v484_v41 = vshll.u32 %v956_v24, 16  ;;  %v330_v45 = vsel %vm327_vm3, %v328_v27, %v329_v28  ;;  %v777_v15 = vld [vmem:[%s1159_s25 + $0x4] sm:$0x8] }
  0x18   : > { %v204_v44 = vor.u32 %v202_v26, %v200_v34  ;;  %1033 = vmatprep.mubr.msk.bf16.mxu1 %vm205_vm2, %v404_v40  ;;  %v475_v46 = vrot.slane %v473_v32, 3  ;;  %v478_v47 = vrot.slane %v476_v35, 4  ;;  %v483_v49 = vrot.slane %v481_v36, 3 }
  0x19   : > { %v201_v48 = vsel %vm189_vm1, %v196_v38, %v200_v34  ;;  %v486_v50 = vrot.slane %v484_v41, 4  ;;  %v965_v51 = vcombine.low %v613_v33, %v1198_v37  ;;  %v970_v54 = vcombine.low %v615_v42, %v693_v43 }
  0x1a   : > { %1015 = vmatprep.mubr.msk.bf16.mxu0 %vm205_vm2, %v201_v48  ;;  %v479_v61 = vor.u32 %v478_v47, %v475_v46  ;;  %vm699_vm6 = vsmask.f32 5376  ;;  %v496_v6 = vsel %vm212_vm0, %v955_v52, 0  ;;  %v961_v8 = vcombine.low %v1182_v19, %v1182_v19  ;;  %v973_v19 = vld [vmem:[%s1263_s1 + $0x20] sm:$0xf] }
  0x1b   : > { %1016 = vmatmul.mubr.msk.bf16.vlgmr.msra.gmra.mxu0 %vm205_vm2, %v204_v44  ;;  %v701_v56 = vshrl.u32 %v965_v51, 16  ;;  %v704_v58 = vshll.u32 %v965_v51, 16  ;;  %v709_v59 = vshrl.u32 %v970_v54, 16  ;;  %v712_v60 = vshll.u32 %v970_v54, 16 }
  0x1c   : > { %1026 = vmatpush3.bf16.msra.mxu0 %v338_v39  ;;  %1027 = vmatprep.mubr.msk.bf16.mxu0 %vm205_vm2, %v330_v45  ;;  %v487_v62 = vor.u32 %v486_v50, %v483_v49  ;;  %v966_v9 = vcombine.low %v615_v42, %v616_v0  ;;  %v724_v11 = vsel %vm212_vm0, %v969_v57, 0  ;;  %v630_v13 = vrot.slane %v965_v51, 2 }
  0x1d   : > { %1071 = vmatprep.subr.msk.bf16.mxu0 %vm212_vm0, %v955_v52  ;;  %1034 = vmatmul.mubr.msk.bf16.vlgmr.msra.gmra.mxu1 %vm205_vm2, %v403_v31  ;;  %v703_v63 = vrot.slane %v701_v56, 2  ;;  %v706_v1 = vrot.slane %v704_v58, 3  ;;  %v711_v2 = vrot.slane %v709_v59, 2  ;;  %v714_v3 = vrot.slane %v712_v60, 3 }
  0x1e   : > { %1044 = vmatpush3.bf16.msra.mxu1 %v560_v55  ;;  %1045 = vmatprep.mubr.msk.bf16.mxu1 %vm205_vm2, %v960_v53  ;;  %v488_v7 = vsel %vm471_vm5, %v479_v61, %v487_v62  ;;  %v631_v14 = vrot.slane %v966_v9, 2  ;;  %v640_v16 = vsel %vm212_vm0, %v964_v10, 0  ;;  %v974_v18 = vcombine.low %v777_v15, %v1198_v37 }
  0x1f   : > { %1074 = vmatprep.subr.msk.bf16.mxu1 %vm212_vm0, %v969_v57  ;;  %v707_v4 = vor.u32 %v706_v1, %v703_v63  ;;  %v715_v5 = vor.u32 %v714_v3, %v711_v2  ;;  %v784_v21 = vrot.slane %v970_v54, 3  ;;  %v793_v22 = vsel %vm212_vm0, %v973_v19, 0 }
  0x20   : > { %v632_v17 = vsel %vm629_vm7, %v630_v13, %v631_v14  ;;  %v783_v20 = vrot.slane %v974_v18, 3  ;;  %vm872_vm8 = vcmask 125952  }
  0x21   : > { %v716_v12 = vsel %vm699_vm6, %v707_v4, %v715_v5 }
  0x22   : > { %v785_v23 = vsel %vm401_vm4, %v783_v20, %v784_v21 }
  0x23   : > { %1028 = vmatmul.mubr.msk.bf16.vlgmr.msra.gmra.mxu0 %vm205_vm2, %v329_v28 }
  0x24   : > { %1038 = vmatpush3.bf16.msra.mxu0 %v496_v6  ;;  %1039 = vmatprep.mubr.msk.bf16.mxu0 %vm205_vm2, %v488_v7 }
  0x25   : > { %1073 = vmatprep.subr.msk.bf16.mxu0 %vm212_vm0, %v964_v10  ;;  %1046 = vmatmul.mubr.msk.bf16.vlgmr.msra.gmra.mxu1 %vm205_vm2, %v961_v8  ;;  %v977_v10 = vld [vmem:[%s1264_s2] ss:$0 sm:$0xff] }
  0x26   : > { %1056 = vmatpush3.bf16.msra.mxu1 %v724_v11  ;;  %1057 = vmatprep.mubr.msk.bf16.mxu1 %vm205_vm2, %v716_v12 }
  0x2b   : > { %1040 = vmatmul.mubr.msk.bf16.vlgmr.msra.gmra.mxu0 %vm205_vm2, %v487_v62 }
  0x2c   : > { %1050 = vmatpush3.bf16.msra.mxu0 %v640_v16  ;;  %1051 = vmatprep.mubr.msk.bf16.mxu0 %vm205_vm2, %v632_v17 }
  0x2d   : > { %1075 = vmatprep.subr.msk.bf16.mxu0 %vm212_vm0, %v973_v19  ;;  %1058 = vmatmul.mubr.msk.bf16.vlgmr.msra.gmra.mxu1 %vm205_vm2, %v715_v5 }
  0x33   : > { %1052 = vmatmul.mubr.msk.bf16.vlgmr.msra.gmra.mxu0 %vm205_vm2, %v631_v14 }
  0x34   : > { %1062 = vmatpush3.bf16.msra.mxu0 %v793_v22  ;;  %1063 = vmatprep.mubr.msk.bf16.mxu0 %vm205_vm2, %v785_v23 }
  0x3b   : > { %1064 = vmatmul.mubr.msk.bf16.vlgmr.msra.gmra.mxu0 %vm205_vm2, %v784_v21 }
  0xd4   : > { %v1023_v24 = vpop.f32.mrf.mxu1 }
  0xd6   : > { %v307_v25 = vpop.f32.mrf.mxu1 }
  0xd8   : > { %v1024_v26 = vpop.f32.mrf.mxu1 }
  0xda   : > { %v310_v27 = vpop.f32.mrf.mxu1 }
  0xdb   : > { %v1017_v28 = vpop.f32.mrf.mxu0 }
  0xdc   : > { %v316_v41 = vadd.f32 %v1023_v24, %v1017_v28 }
  0xdd   : > { %v250_v29 = vpop.f32.mrf.mxu0  ;;  %v1035_v30 = vpop.f32.mrf.mxu1 }
  0xde   : > { %v308_v44 = vadd.f32 %v307_v25, %v250_v29 }
  0xdf   : > { %v1018_v31 = vpop.f32.mrf.mxu0  ;;  %v448_v32 = vpop.f32.mrf.mxu1 }
  0xe1   : > { %v253_v33 = vpop.f32.mrf.mxu0  ;;  %v1036_v34 = vpop.f32.mrf.mxu1 }
  0xe2   : > { %v311_v51 = vadd.f32 %v310_v27, %v253_v33 }
  0xe3   : > { %v1029_v35 = vpop.f32.mrf.mxu0  ;;  %v451_v36 = vpop.f32.mrf.mxu1 }
  0xe4   : > { %v390_v45 = vadd.f32 %v1029_v35, %v316_v41 }
  0xe5   : > { %v374_v37 = vpop.f32.mrf.mxu0  ;;  %v1047_v38 = vpop.f32.mrf.mxu1 }
  0xe6   : > { %v388_v48 = vadd.f32 %v374_v37, %v308_v44  ;;  %v464_v52 = vadd.f32 %v1035_v30, %v390_v45 }
  0xe7   : > { %v1030_v39 = vpop.f32.mrf.mxu0  ;;  %v596_v40 = vpop.f32.mrf.mxu1 }
  0xe8   : > { %v462_v55 = vadd.f32 %v448_v32, %v388_v48 }
  0xe9   : > { %v377_v42 = vpop.f32.mrf.mxu0  ;;  %v1048_v43 = vpop.f32.mrf.mxu1 }
  0xea   : > { %v389_v56 = vadd.f32 %v377_v42, %v311_v51 }
  0xeb   : > { %v1041_v46 = vpop.f32.mrf.mxu0  ;;  %v599_v47 = vpop.f32.mrf.mxu1 }
  0xec   : > { %v548_v57 = vadd.f32 %v1041_v46, %v464_v52  ;;  %v463_v62 = vadd.f32 %v451_v36, %v389_v56 }
  0xed   : > { %v532_v49 = vpop.f32.mrf.mxu0  ;;  %v1059_v50 = vpop.f32.mrf.mxu1 }
  0xee   : > { %v546_v60 = vadd.f32 %v532_v49, %v462_v55  ;;  %v612_v63 = vadd.f32 %v1047_v38, %v548_v57 }
  0xef   : > { %v1042_v53 = vpop.f32.mrf.mxu0  ;;  %v760_v54 = vpop.f32.mrf.mxu1 }
  0xf0   : > { %v610_v1 = vadd.f32 %v596_v40, %v546_v60 }
  0xf1   : > { %v535_v58 = vpop.f32.mrf.mxu0  ;;  %v1060_v59 = vpop.f32.mrf.mxu1 }
  0xf2   : > { %v547_v2 = vadd.f32 %v535_v58, %v463_v62 }
  0xf3   : > { %v1053_v61 = vpop.f32.mrf.mxu0  ;;  %v763_v17 = vpop.f32.mrf.mxu1 }
  0xf4   : > { %v692_v3 = vadd.f32 %v1053_v61, %v612_v63  ;;  %v611_v7 = vadd.f32 %v599_v47, %v547_v2 }
  0xf5   : > { %v676_v0 = vpop.f32.mrf.mxu0 }
  0xf6   : > { %v690_v5 = vadd.f32 %v676_v0, %v610_v1  ;;  %v776_v8 = vadd.f32 %v1059_v50, %v692_v3 }
  0xf7   : > { %v1054_v4 = vpop.f32.mrf.mxu0 }
  0xf8   : > { %v774_v11 = vadd.f32 %v760_v54, %v690_v5 }
  0xf9   : > { %v679_v6 = vpop.f32.mrf.mxu0 }
  0xfa   : > { %v691_v12 = vadd.f32 %v679_v6, %v611_v7 }
  0xfb   : > { %v1065_v9 = vpop.f32.mrf.mxu0 }
  0xfc   : > { %v845_v13 = vadd.f32 %v1065_v9, %v776_v8  ;;  %v775_v19 = vadd.f32 %v763_v17, %v691_v12 }
  0xfd   : > { %v829_v14 = vpop.f32.mrf.mxu0 }
  0xfe   : > { %v855_v15 = vadd.f32 %v977_v10, %v845_v13  ;;  %v843_v16 = vadd.f32 %v829_v14, %v774_v11 }
  0xff   : > { %v1066_v18 = vpop.f32.mrf.mxu0 }
 0x100   : > { %v858_v20 = vmax.f32 %v855_v15, 0.0  ;;  %v853_v21 = vadd.f32 %v977_v10, %v843_v16 }
 0x101   : > { %v832_v22 = vpop.f32.mrf.mxu0 }
 0x102   : > { %v985_v23 = vpack.c.bf16 %v858_v20, %v858_v20  ;;  %v856_v24 = vmax.f32 %v853_v21, 0.0  ;;  %v844_v25 = vadd.f32 %v832_v22, %v775_v19 }
 0x104   : > { %875 = vst.msk [vmem:[%s170_s16 + $0x8] sm:$0xf] %vm872_vm8, %v985_v23  ;;  %v983_v26 = vpack.c.bf16 %v856_v24, %v856_v24  ;;  %v854_v27 = vadd.f32 %v977_v10, %v844_v25 }
 0x106   : > { %873 = vst.msk [vmem:[%s170_s16] sm:$0xf] %vm872_vm8, %v983_v26  ;;  %v857_v28 = vmax.f32 %v854_v27, 0.0 }
 0x108   : > { %v984_v29 = vpack.c.bf16 %v857_v28, %v857_v28 }
 0x10a   : > { %874 = vst.msk [vmem:[%s170_s16 + $0x4] sm:$0xf] %vm872_vm8, %v984_v29 }
 0x10b PF: > { %s13_s12 = sadd.s32 1, %s1105_s12  }
 0x10c   : > { %p10_p4 = scmp.ge.s32.totalorder %s13_s12, 4  }
 0x10e   :  { %12 = sbr.rel (!%p10_p4) target bundleno = 1 (0x1), region = 70 }

// kernel: _lambda_.23
= control target key start
LH: loop header
LB: loop body
LE: loop exit
PB: predicated region body
PF: predicated region fallthrough
CT: control target
= control target key end

     0   :  { %s228_s6 = smov 0   ;;  %s245_s0 = inlined_call_operand.vmem [shape: bf16[4,2,2,64], index: 0, kind: input, shape index: {}]   ;;  %s246_s1 = inlined_call_operand.vmem [shape: bf16[4,2,32], index: 1, kind: output, shape index: {}]  }
   0x1 LB: > { %s188_s7 = sadd.s32 4294967295, %s215_s6   ;;  %p192_p0 = scmp.ge.s32.totalorder %s215_s6, 1  ;;  %s215_s6 = sphi %s228_s6, %s11_s6  }
   0x2   : > { %p88_p1 = scmp.lt.s32.totalorder %s215_s6, 3 }
   0x4   : > { %p89_p2 = pnand %p192_p0, %p88_p1 }
   0x5   : > { %s193_s8 = sshll.u32 (!%p89_p2), %s188_s7, 1  ;;  %s217_s13 = smov (!%p89_p2), 96  }
   0x6   : > { %92 = sbr.rel (%p89_p2) target bundleno = 139 (0x8b), region = 24  ;;  %p108_p3 = scmp.lt.s32.totalorder (!%p89_p2), %s193_s8, 3 }
   0xb   : > { %s248_s8 = smov (!%p108_p3, %s193_s8), 3  ;;  %vm135_vm0 = vcmask 253952  }
   0xc   : > { %s194_s9 = sshll.u32 %s248_s8, 1  ;;  %s116_s16 = scalar_lea.vmem %s246_s1, %s248_s8 }
   0xd   : > { %s111_s12 = scalar_lea.vmem %s245_s0, %s194_s9 }
   0xe   : > { %v118_v0 = vld [vmem:[%s111_s12] sm:$0x1]  ;;  %v196_v1 = vld [vmem:[%s111_s12 + $0x1] sm:$0x1]  ;;  %v119_v2 = vld [vmem:[%s111_s12 + $0x2] sm:$0x1] }
   0xf   : > { %v123_v3 = vmax.bf16 %v196_v1, %v118_v0  ;;  %v197_v4 = vld [vmem:[%s111_s12 + $0x3] sm:$0x1] }
  0x10   : > { %v124_v5 = vmax.bf16 %v197_v4, %v119_v2 }
  0x11   : > { %127 = vrot.lane.b32.xlu0 %v123_v3, %s217_s13 }
  0x15   : > { %129 = vrot.lane.b32.xlu0 %v124_v5, %s217_s13 }
  0x83   : > { %v128_v6 = vpop.permute.xlu0 %127 }
  0x84   : > { %v133_v7 = vmax.bf16 %v128_v6, %v123_v3 }
  0x86   : > { %136 = vst.msk [vmem:[%s116_s16] sm:$0x1] %vm135_vm0, %v133_v7 }
  0x87   : > { %v130_v8 = vpop.permute.xlu0 %129 }
  0x88   : > { %v134_v9 = vmax.bf16 %v130_v8, %v124_v5 }
  0x8a   : > { %137 = vst.msk [vmem:[%s116_s16 + $0x1] sm:$0x1] %vm135_vm0, %v134_v9 }
  0x8b PF: > { %s11_s6 = sadd.s32 1, %s215_s6  }
  0x8c   : > { %p8_p4 = scmp.ge.s32.totalorder %s11_s6, 4  }
  0x8e   :  { %10 = sbr.rel (!%p8_p4) target bundleno = 1 (0x1), region = 55 }

// kernel: _lambda_.22
= control target key start
LH: loop header
LB: loop body
LE: loop exit
PB: predicated region body
PF: predicated region fallthrough
CT: control target
= control target key end

     0   :  { %s1312_s12 = smov 0   ;;  %s1456_s0 = inlined_call_operand.vmem [shape: bf16[2,38,32], index: 0, kind: input, shape index: {}]   ;;  %s1457_s1 = inlined_call_operand.vmem [shape: bf16[9,32,32], index: 1, kind: input, shape index: {}]   ;;  %s1458_s2 = inlined_call_operand.vmem [shape: f32[1,32], index: 2, kind: input, shape index: {}]   ;;  %s1459_s3 = inlined_call_operand.vmem [shape: bf16[2,24,32], index: 3, kind: output, shape index: {}]  }
   0x1 LB: > { %s1038_s13 = sadd.s32 4294967295, %s1290_s12   ;;  %p1042_p0 = scmp.ge.s32.totalorder %s1290_s12, 1  ;;  %s1290_s12 = sphi %s1312_s12, %s13_s12  }
   0x2   : > { %p137_p1 = scmp.lt.s32.totalorder %s1290_s12, 3 }
   0x4   : > { %p138_p2 = pnand %p1042_p0, %p137_p1 }
   0x5   : > { %p161_p3 = scmp.lt.s32.totalorder (!%p138_p2), %s1038_s13, 1 }
   0x6   : > { %141 = sbr.rel (%p138_p2) target bundleno = 266 (0x10a), region = 32 }
   0xb   : > { %v1253_v0 = vld [vmem:[%s1457_s1 + $0x18] sm:$0xff]   ;;  %v1254_v1 = vld [vmem:[%s1457_s1 + $0x8] sm:$0xff]   ;;  %v1255_v2 = vld [vmem:[%s1457_s1 + $0x10] sm:$0xff]   ;;  %s1461_s13 = smov (!%p161_p3, %s1038_s13), 1  ;;  %vm223_vm0 = vcmask 261120   ;;  %vm353_vm2 = vcmask 1046528  }
   0xc   : > { %1171 = vmatprep.subr.bf16.mxu0 %v1253_v0  ;;  %1179 = vmatprep.subr.bf16.mxu1 %v1254_v1  ;;  %v1256_v3 = vld [vmem:[%s1457_s1] sm:$0xff]   ;;  %s1243_s22 = smul.u32 20, %s1461_s13  ;;  %v1259_v4 = vld [vmem:[%s1457_s1 + $0x28] sm:$0xff]   ;;  %v1261_v5 = vld [vmem:[%s1457_s1 + $0x38] sm:$0xff]   ;;  %vm195_vm1 = vsmask.f32 7424 }
   0xd   : > { %1172 = vmatpush3.bf16.msra.mxu0 %v1253_v0  ;;  %1180 = vmatpush3.bf16.msra.mxu1 %v1254_v1  ;;  %v1263_v13 = vld [vmem:[%s1457_s1 + $0x30] sm:$0xff]   ;;  %vm439_vm3 = vcmask 1044480   ;;  %v1268_v31 = vld [vmem:[%s1457_s1 + $0x58] sm:$0xff]   ;;  %v1262_v35 = vld [vmem:[%s1457_s1 + $0x20] sm:$0xff]   ;;  %vm521_vm4 = vsmask.f32 4352 }
   0xe   : > { %1173 = vmatprep.subr.bf16.mxu0 %v1255_v2  ;;  %1181 = vmatprep.subr.bf16.mxu1 %v1256_v3  ;;  %s1341_s27 = scalar_lea.vmem %s1456_s0, %s1243_s22  ;;  %v1270_v39 = vld [vmem:[%s1457_s1 + $0x50] sm:$0xff]   ;;  %v1267_v43 = vld [vmem:[%s1457_s1 + $0x48] sm:$0xff]   ;;  %v1275_v55 = vld [vmem:[%s1457_s1 + $0x78] sm:$0xff]   ;;  %vm785_vm5 = vsmask.f32 5376  ;;  %vm703_vm6 = vcmask 1045504  }
   0xf   : > { %v172_v6 = vld [vmem:[%s1341_s27] sm:$0xf]  ;;  %v1348_v7 = vld [vmem:[%s1341_s27 + $0x4] sm:$0xf]  ;;  %v1351_v8 = vld [vmem:[%s1341_s27 + $0x8] sm:$0xf] }
  0x10   : > { %v179_v9 = vld [vmem:[%s1341_s27 + $0xc] sm:$0x1]  ;;  %v1049_v10 = vcombine.low %v172_v6, %v1348_v7  ;;  %v1055_v11 = vcombine.low %v1351_v8, %v1351_v8  ;;  %v344_v14 = vld [vmem:[%s1341_s27] sm:$0xe]  ;;  %v1092_v42 = vcombine.low %v1348_v7, %v1351_v8  ;;  %v684_v51 = vld [vmem:[%s1341_s27 + $0x4] sm:$0xc] }
  0x11   : > { %1174 = vmatpush3.bf16.msra.mxu0 %v1255_v2  ;;  %1182 = vmatpush3.bf16.msra.mxu1 %v1256_v3  ;;  %v1358_v12 = vcombine.low %v1351_v8, %v179_v9  ;;  %v1064_v17 = vcombine.low %v344_v14, %v1348_v7  ;;  %v426_v18 = vld [vmem:[%s1341_s27] sm:$0x8]  ;;  %v427_v19 = vld [vmem:[%s1341_s27 + $0xc] sm:$0x7]  ;;  %v685_v52 = vld [vmem:[%s1341_s27 + $0x8] sm:$0xf] }
  0x12   : > { %1187 = vmatprep.subr.bf16.mxu0 %v1259_v4  ;;  %1195 = vmatprep.subr.bf16.mxu1 %v1261_v5  ;;  %v197_v15 = vshrl.u32 %v1049_v10, 16  ;;  %v199_v16 = vshll.u32 %v1049_v10, 16  ;;  %v1073_v23 = vcombine.low %v426_v18, %v1348_v7  ;;  %v1074_v26 = vcombine.low %v1351_v8, %v427_v19  ;;  %v1378_v33 = vld [vmem:[%s1341_s27 + $0xc] sm:$0xf]  ;;  %v687_v56 = vld [vmem:[%s1341_s27 + $0x10] sm:$0x3] }
  0x13   : > { %1183 = vmatprep.mubr.msk.bf16.mxu1 %vm223_vm0, %v1049_v10  ;;  %v204_v20 = vshll.u32 %v1358_v12, 16  ;;  %v208_v21 = vshrl.u32 %v1358_v12, 16  ;;  %v355_v22 = vrot.slane %v1358_v12, 1  ;;  %v354_v25 = vrot.slane %v1064_v17, 1  ;;  %v686_v53 = vld [vmem:[%s1341_s27 + $0xc] sm:$0xf] }
  0x14   : > { %1184 = vmatmul.mubr.msk.bf16.vlgmr.msra.gmra.mxu1 %vm223_vm0, %v1055_v11  ;;  %v201_v24 = vrot.slane %v199_v16, 1  ;;  %v440_v28 = vrot.slane %v1073_v23, 3  ;;  %v441_v30 = vrot.slane %v1074_v26, 3  ;;  %v1083_v38 = vcombine.low %v1351_v8, %v1378_v33  ;;  %v776_v58 = vld [vmem:[%s1341_s27 + $0x10] sm:$0x7]  ;;  %v1269_v61 = vld [vmem:[%s1457_s1 + $0x40] sm:$0xff]  }
  0x15   : > { %1196 = vmatpush3.bf16.msra.mxu1 %v1261_v5  ;;  %v206_v27 = vrot.slane %v204_v20, 1  ;;  %v356_v36 = vsel %vm353_vm2, %v354_v25, %v355_v22  ;;  %v523_v40 = vshrl.u32 %v1073_v23, 16  ;;  %v526_v41 = vshll.u32 %v1073_v23, 16  ;;  %v1273_v9 = vld [vmem:[%s1457_s1 + $0x68] sm:$0xff]   ;;  %v872_v14 = vld [vmem:[%s1341_s27 + $0x4] sm:$0x8] }
  0x16   : > { %1197 = vmatprep.subr.bf16.mxu1 %v1263_v13  ;;  %v202_v29 = vor.u32 %v201_v24, %v197_v15  ;;  %v442_v37 = vsel %vm439_vm3, %v440_v28, %v441_v30  ;;  %v531_v44 = vshrl.u32 %v1083_v38, 16  ;;  %v534_v45 = vshll.u32 %v1083_v38, 16  ;;  %v1276_v16 = vld [vmem:[%s1457_s1 + $0x60] sm:$0xff]   ;;  %v1281_v19 = vld [vmem:[%s1457_s1 + $0x88] sm:$0xff]   ;;  %s1244_s4 = smul.u32 12, %s1461_s13 }
  0x17   : > { %v210_v32 = vor.u32 %v208_v21, %v206_v27  ;;  %1199 = vmatprep.mubr.msk.bf16.mxu1 %vm223_vm0, %v442_v37  ;;  %v525_v46 = vrot.slane %v523_v40, 3  ;;  %v528_v47 = vrot.slane %v526_v41, 4  ;;  %v1102_v57 = vcombine.low %v684_v51, %v685_v52 }
  0x18   : > { %v207_v34 = vsel %vm195_vm1, %v202_v29, %v206_v27  ;;  %v533_v48 = vrot.slane %v531_v44, 3  ;;  %v536_v49 = vrot.slane %v534_v45, 4  ;;  %v1093_v59 = vcombine.low %v1378_v33, %v1378_v33  ;;  %s170_s7 = scalar_lea.vmem %s1459_s3, %s1244_s4 }
  0x19   : > { %1198 = vmatpush3.bf16.msra.mxu1 %v1263_v13  ;;  %1175 = vmatprep.mubr.msk.bf16.mxu0 %vm223_vm0, %v207_v34  ;;  %v529_v50 = vor.u32 %v528_v47, %v525_v46  ;;  %v1112_v60 = vcombine.low %v686_v53, %v776_v58  ;;  %v1103_v63 = vcombine.low %v686_v53, %v687_v56  ;;  %v787_v0 = vshrl.u32 %v1102_v57, 16 }
  0x1a   : > { %1176 = vmatmul.mubr.msk.bf16.vlgmr.msra.gmra.mxu0 %vm223_vm0, %v210_v32  ;;  %1211 = vmatprep.subr.bf16.mxu1 %v1268_v31  ;;  %v537_v54 = vor.u32 %v536_v49, %v533_v48  ;;  %v790_v1 = vshll.u32 %v1102_v57, 16  ;;  %v704_v10 = vrot.slane %v1102_v57, 2  ;;  %v1121_v18 = vcombine.low %v872_v14, %v685_v52 }
  0x1b   : > { %1188 = vmatpush3.bf16.msra.mxu0 %v1259_v4  ;;  %1191 = vmatprep.mubr.msk.bf16.mxu0 %vm223_vm0, %v356_v36  ;;  %v795_v2 = vshrl.u32 %v1112_v60, 16  ;;  %v798_v3 = vshll.u32 %v1112_v60, 16  ;;  %v1277_v4 = vld [vmem:[%s1457_s1 + $0x70] sm:$0xff]   ;;  %v789_v5 = vrot.slane %v787_v0, 2  ;;  %v705_v11 = vrot.slane %v1103_v63, 2 }
  0x1c   : > { %1189 = vmatprep.subr.bf16.mxu0 %v1262_v35  ;;  %1200 = vmatmul.mubr.msk.bf16.vlgmr.msra.gmra.mxu1 %vm223_vm0, %v441_v30  ;;  %v538_v62 = vsel %vm521_vm4, %v529_v50, %v537_v54  ;;  %v792_v6 = vrot.slane %v790_v1, 3  ;;  %v881_v20 = vrot.slane %v1121_v18, 3  ;;  %v882_v21 = vrot.slane %v1112_v60, 3 }
  0x1d   : > { %1212 = vmatpush3.bf16.msra.mxu1 %v1268_v31  ;;  %1215 = vmatprep.mubr.msk.bf16.mxu1 %vm223_vm0, %v1092_v42  ;;  %v797_v7 = vrot.slane %v795_v2, 2  ;;  %v800_v8 = vrot.slane %v798_v3, 3  ;;  %v706_v17 = vsel %vm703_vm6, %v704_v10, %v705_v11  ;;  %v1126_v10 = vld [vmem:[%s1458_s2] ss:$0 sm:$0xff]  ;;  %vm979_vm7 = vcmask 257024  }
  0x1e   : > { %1213 = vmatprep.subr.bf16.mxu1 %v1270_v39  ;;  %v793_v12 = vor.u32 %v792_v6, %v789_v5  ;;  %v883_v23 = vsel %vm439_vm3, %v881_v20, %v882_v21 }
  0x1f   : > { %1190 = vmatpush3.bf16.msra.mxu0 %v1262_v35  ;;  %v801_v13 = vor.u32 %v800_v8, %v797_v7 }
  0x20   : > { %1203 = vmatprep.subr.bf16.mxu0 %v1267_v43 }
  0x21   : > { %1214 = vmatpush3.bf16.msra.mxu1 %v1270_v39  ;;  %v802_v15 = vsel %vm785_vm5, %v793_v12, %v801_v13 }
  0x22   : > { %1192 = vmatmul.mubr.msk.bf16.vlgmr.msra.gmra.mxu0 %vm223_vm0, %v355_v22  ;;  %1227 = vmatprep.subr.bf16.mxu1 %v1275_v55  ;;  %v1282_v22 = vld [vmem:[%s1457_s1 + $0x80] sm:$0xff]  }
  0x23   : > { %1204 = vmatpush3.bf16.msra.mxu0 %v1267_v43  ;;  %1207 = vmatprep.mubr.msk.bf16.mxu0 %vm223_vm0, %v538_v62 }
  0x24   : > { %1205 = vmatprep.subr.bf16.mxu0 %v1269_v61  ;;  %1216 = vmatmul.mubr.msk.bf16.vlgmr.msra.gmra.mxu1 %vm223_vm0, %v1093_v59 }
  0x25   : > { %1228 = vmatpush3.bf16.msra.mxu1 %v1275_v55  ;;  %1231 = vmatprep.mubr.msk.bf16.mxu1 %vm223_vm0, %v802_v15 }
  0x26   : > { %1229 = vmatprep.subr.bf16.mxu1 %v1277_v4 }
  0x27   : > { %1206 = vmatpush3.bf16.msra.mxu0 %v1269_v61 }
  0x28   : > { %1219 = vmatprep.subr.bf16.mxu0 %v1273_v9 }
  0x29   : > { %1230 = vmatpush3.bf16.msra.mxu1 %v1277_v4 }
  0x2a   : > { %1208 = vmatmul.mubr.msk.bf16.vlgmr.msra.gmra.mxu0 %vm223_vm0, %v537_v54 }
  0x2b   : > { %1220 = vmatpush3.bf16.msra.mxu0 %v1273_v9  ;;  %1223 = vmatprep.mubr.msk.bf16.mxu0 %vm223_vm0, %v706_v17 }
  0x2c   : > { %1221 = vmatprep.subr.bf16.mxu0 %v1276_v16  ;;  %1232 = vmatmul.mubr.msk.bf16.vlgmr.msra.gmra.mxu1 %vm223_vm0, %v801_v13 }
  0x2f   : > { %1222 = vmatpush3.bf16.msra.mxu0 %v1276_v16 }
  0x30   : > { %1235 = vmatprep.subr.bf16.mxu0 %v1281_v19 }
  0x32   : > { %1224 = vmatmul.mubr.msk.bf16.vlgmr.msra.gmra.mxu0 %vm223_vm0, %v705_v11 }
  0x33   : > { %1236 = vmatpush3.bf16.msra.mxu0 %v1281_v19  ;;  %1239 = vmatprep.mubr.msk.bf16.mxu0 %vm223_vm0, %v883_v23 }
  0x34   : > { %1237 = vmatprep.subr.bf16.mxu0 %v1282_v22 }
  0x37   : > { %1238 = vmatpush3.bf16.msra.mxu0 %v1282_v22 }
  0x3a   : > { %1240 = vmatmul.mubr.msk.bf16.vlgmr.msra.gmra.mxu0 %vm223_vm0, %v882_v21 }
  0xd4   : > { %v1185_v24 = vpop.f32.mrf.mxu1 }
  0xd6   : > { %v330_v25 = vpop.f32.mrf.mxu1 }
  0xd8   : > { %v1186_v26 = vpop.f32.mrf.mxu1 }
  0xda   : > { %v333_v27 = vpop.f32.mrf.mxu1  ;;  %v1177_v28 = vpop.f32.mrf.mxu0 }
  0xdb   : > { %v339_v41 = vadd.f32 %v1185_v24, %v1177_v28 }
  0xdc   : > { %v264_v29 = vpop.f32.mrf.mxu0  ;;  %v1201_v30 = vpop.f32.mrf.mxu1 }
  0xdd   : > { %v331_v44 = vadd.f32 %v330_v25, %v264_v29 }
  0xde   : > { %v1178_v31 = vpop.f32.mrf.mxu0  ;;  %v495_v32 = vpop.f32.mrf.mxu1 }
  0xe0   : > { %v267_v33 = vpop.f32.mrf.mxu0  ;;  %v1202_v34 = vpop.f32.mrf.mxu1 }
  0xe1   : > { %v334_v51 = vadd.f32 %v333_v27, %v267_v33 }
  0xe2   : > { %v1193_v35 = vpop.f32.mrf.mxu0  ;;  %v498_v36 = vpop.f32.mrf.mxu1 }
  0xe3   : > { %v425_v45 = vadd.f32 %v1193_v35, %v339_v41 }
  0xe4   : > { %v409_v37 = vpop.f32.mrf.mxu0  ;;  %v1217_v38 = vpop.f32.mrf.mxu1 }
  0xe5   : > { %v423_v48 = vadd.f32 %v409_v37, %v331_v44  ;;  %v511_v52 = vadd.f32 %v1201_v30, %v425_v45 }
  0xe6   : > { %v1194_v39 = vpop.f32.mrf.mxu0  ;;  %v667_v40 = vpop.f32.mrf.mxu1 }
  0xe7   : > { %v509_v55 = vadd.f32 %v495_v32, %v423_v48 }
  0xe8   : > { %v412_v42 = vpop.f32.mrf.mxu0  ;;  %v1218_v43 = vpop.f32.mrf.mxu1 }
  0xe9   : > { %v424_v56 = vadd.f32 %v412_v42, %v334_v51 }
  0xea   : > { %v1209_v46 = vpop.f32.mrf.mxu0  ;;  %v670_v47 = vpop.f32.mrf.mxu1 }
  0xeb   : > { %v607_v57 = vadd.f32 %v1209_v46, %v511_v52  ;;  %v510_v62 = vadd.f32 %v498_v36, %v424_v56 }
  0xec   : > { %v591_v49 = vpop.f32.mrf.mxu0  ;;  %v1233_v50 = vpop.f32.mrf.mxu1 }
  0xed   : > { %v605_v60 = vadd.f32 %v591_v49, %v509_v55  ;;  %v683_v63 = vadd.f32 %v1217_v38, %v607_v57 }
  0xee   : > { %v1210_v53 = vpop.f32.mrf.mxu0  ;;  %v855_v54 = vpop.f32.mrf.mxu1 }
  0xef   : > { %v681_v1 = vadd.f32 %v667_v40, %v605_v60 }
  0xf0   : > { %v594_v58 = vpop.f32.mrf.mxu0  ;;  %v1234_v59 = vpop.f32.mrf.mxu1 }
  0xf1   : > { %v606_v2 = vadd.f32 %v594_v58, %v510_v62 }
  0xf2   : > { %v1225_v61 = vpop.f32.mrf.mxu0  ;;  %v858_v17 = vpop.f32.mrf.mxu1 }
  0xf3   : > { %v775_v3 = vadd.f32 %v1225_v61, %v683_v63  ;;  %v682_v7 = vadd.f32 %v670_v47, %v606_v2 }
  0xf4   : > { %v759_v0 = vpop.f32.mrf.mxu0 }
  0xf5   : > { %v773_v5 = vadd.f32 %v759_v0, %v681_v1  ;;  %v871_v8 = vadd.f32 %v1233_v50, %v775_v3 }
  0xf6   : > { %v1226_v4 = vpop.f32.mrf.mxu0 }
  0xf7   : > { %v869_v11 = vadd.f32 %v855_v54, %v773_v5 }
  0xf8   : > { %v762_v6 = vpop.f32.mrf.mxu0 }
  0xf9   : > { %v774_v12 = vadd.f32 %v762_v6, %v682_v7 }
  0xfa   : > { %v1241_v9 = vpop.f32.mrf.mxu0 }
  0xfb   : > { %v952_v13 = vadd.f32 %v1241_v9, %v871_v8  ;;  %v870_v19 = vadd.f32 %v858_v17, %v774_v12 }
  0xfc   : > { %v936_v14 = vpop.f32.mrf.mxu0 }
  0xfd   : > { %v962_v15 = vadd.f32 %v1126_v10, %v952_v13  ;;  %v950_v16 = vadd.f32 %v936_v14, %v869_v11 }
  0xfe   : > { %v1242_v18 = vpop.f32.mrf.mxu0 }
  0xff   : > { %v965_v20 = vmax.f32 %v962_v15, 0.0  ;;  %v960_v21 = vadd.f32 %v1126_v10, %v950_v16 }
 0x100   : > { %v939_v22 = vpop.f32.mrf.mxu0 }
 0x101   : > { %v1134_v23 = vpack.c.bf16 %v965_v20, %v965_v20  ;;  %v963_v24 = vmax.f32 %v960_v21, 0.0  ;;  %v951_v25 = vadd.f32 %v939_v22, %v870_v19 }
 0x103   : > { %982 = vst.msk [vmem:[%s170_s7 + $0x8] sm:$0xf] %vm979_vm7, %v1134_v23  ;;  %v1132_v26 = vpack.c.bf16 %v963_v24, %v963_v24  ;;  %v961_v27 = vadd.f32 %v1126_v10, %v951_v25 }
 0x105   : > { %980 = vst.msk [vmem:[%s170_s7] sm:$0xf] %vm979_vm7, %v1132_v26  ;;  %v964_v28 = vmax.f32 %v961_v27, 0.0 }
 0x107   : > { %v1133_v29 = vpack.c.bf16 %v964_v28, %v964_v28 }
 0x109   : > { %981 = vst.msk [vmem:[%s170_s7 + $0x4] sm:$0xf] %vm979_vm7, %v1133_v29 }
 0x10a PF: > { %s13_s12 = sadd.s32 1, %s1290_s12  }
 0x10b   : > { %p10_p4 = scmp.ge.s32.totalorder %s13_s12, 4  }
 0x10d   :  { %12 = sbr.rel (!%p10_p4) target bundleno = 1 (0x1), region = 70 }

// kernel: _lambda_.25
= control target key start
LH: loop header
LB: loop body
LE: loop exit
PB: predicated region body
PF: predicated region fallthrough
CT: control target
= control target key end

     0   :  { %s1883_s24 = smov 0   ;;  %s2102_s0 = inlined_call_operand.vmem [shape: bf16[2,38,64], index: 0, kind: input, shape index: {}]   ;;  %s2103_s1 = inlined_call_operand.vmem [shape: bf16[9,64,16], index: 1, kind: input, shape index: {}]   ;;  %s2104_s2 = inlined_call_operand.vmem [shape: f32[1,16], index: 2, kind: input, shape index: {}]   ;;  %s2105_s3 = inlined_call_operand.vmem [shape: bf16[16,16], index: 3, kind: input, shape index: {}]   ;;  %s2106_s4 = inlined_call_operand.vmem [shape: f32[1,16], index: 4, kind: input, shape index: {}]   ;;  %s2107_s5 = inlined_call_operand.vmem [shape: bf16[16,16], index: 5, kind: input, shape index: {}]   ;;  %s2108_s6 = inlined_call_operand.vmem [shape: f32[1,16], index: 6, kind: input, shape index: {}]   ;;  %s2109_s7 = inlined_call_operand.vmem [shape: bf16[2,24,16], index: 7, kind: output, shape index: {}]  }
   0x1 LB: > { %s1439_s25 = sadd.s32 4294967295, %s1841_s24   ;;  %p1443_p0 = scmp.ge.s32.totalorder %s1841_s24, 1  ;;  %s1841_s24 = sphi %s1883_s24, %s17_s24  }
   0x2   : > { %p237_p1 = scmp.lt.s32.totalorder %s1841_s24, 3 }
   0x4   : > { %p238_p2 = pnand %p1443_p0, %p237_p1 }
   0x5   : > { %p269_p3 = scmp.lt.s32.totalorder (!%p238_p2), %s1439_s25, 1 }
   0x6   : > { %241 = sbr.rel (%p238_p2) target bundleno = 712 (0x2c8), region = 48 }
   0xb   : > { %v1784_v0 = vld [vmem:[%s2103_s1 + $0x38] sm:$0xff]   ;;  %v1786_v2 = vld [vmem:[%s2103_s1 + $0x30] sm:$0xff]   ;;  %s2111_s25 = smov (!%p269_p3, %s1439_s25), 1  ;;  %v1788_v4 = vld [vmem:[%s2103_s1 + $0x28] sm:$0xff]   ;;  %vm351_vm0 = vcmask 523264   ;;  %vm497_vm2 = vcmask 1046528  }
   0xc   : > { %v1785_v1 = vld [vmem:[%s2103_s1 + $0x18] sm:$0xff]   ;;  %1654 = vmatprep.subr.bf16.mxu0 %v1784_v0  ;;  %v1787_v3 = vld [vmem:[%s2103_s1 + $0x10] sm:$0xff]   ;;  %s1774_s13 = smul.u32 20, %s2111_s25  ;;  %v1789_v5 = vld [vmem:[%s2103_s1 + $0x8] sm:$0xff]   ;;  %vm311_vm1 = vsmask.f32 7424 }
   0xd   : > { %1666 = vmatprep.subr.bf16.mxu1 %v1785_v1  ;;  %1655 = vmatpush3.bf16.msra.mxu0 %v1784_v0  ;;  %v1790_v6 = vld [vmem:[%s2103_s1 + $0x20] sm:$0xff]   ;;  %v1795_v16 = vld [vmem:[%s2103_s1 + $0x58] sm:$0xff]   ;;  %v1797_v25 = vld [vmem:[%s2103_s1 + $0x50] sm:$0xff]   ;;  %vm599_vm3 = vcmask 1044480   ;;  %vm697_vm4 = vsmask.f32 4352 }
   0xe   : > { %1667 = vmatpush3.bf16.msra.mxu1 %v1785_v1  ;;  %1656 = vmatprep.subr.bf16.mxu0 %v1786_v2  ;;  %s1915_s18 = scalar_lea.vmem %s2102_s0, %s1774_s13  ;;  %v1791_v10 = vld [vmem:[%s2103_s1] sm:$0xff]   ;;  %v1796_v20 = vld [vmem:[%s2103_s1 + $0x78] sm:$0xff]   ;;  %v1798_v27 = vld [vmem:[%s2103_s1 + $0x70] sm:$0xff]   ;;  %vm911_vm5 = vcmask 1045504   ;;  %vm1009_vm6 = vsmask.f32 5376 }
   0xf   : > { %1668 = vmatprep.subr.bf16.mxu1 %v1787_v3  ;;  %v280_v7 = vld [vmem:[%s1915_s18] sm:$0xf]  ;;  %v1922_v8 = vld [vmem:[%s1915_s18 + $0x4] sm:$0xf]  ;;  %v1925_v9 = vld [vmem:[%s1915_s18 + $0x8] sm:$0xf] }
  0x10   : > { %v291_v11 = vld [vmem:[%s1915_s18 + $0xc] sm:$0x1]  ;;  %v1454_v12 = vcombine.low %v280_v7, %v1922_v8  ;;  %v1462_v23 = vcombine.low %v1925_v9, %v1925_v9  ;;  %v484_v28 = vld [vmem:[%s1915_s18] sm:$0xe]  ;;  %v1804_v46 = vld [vmem:[%s2103_s1 + $0x98] sm:$0xff]   ;;  %v1523_v60 = vcombine.low %v1922_v8, %v1925_v9  ;;  %vm1235_vm7 = vcmask 130048  }
  0x11   : > { %1657 = vmatpush3.bf16.msra.mxu0 %v1786_v2  ;;  %v1933_v13 = vcombine.low %v1925_v9, %v291_v11  ;;  %v1477_v29 = vcombine.low %v484_v28, %v1922_v8  ;;  %v582_v31 = vld [vmem:[%s1915_s18] sm:$0x8]  ;;  %v583_v32 = vld [vmem:[%s1915_s18 + $0xc] sm:$0x7]  ;;  %v1807_v51 = vld [vmem:[%s2103_s1 + $0xb8] sm:$0xff]   ;;  %s1775_s30 = smul.u32 12, %s2111_s25 }
  0x12   : > { %1669 = vmatpush3.bf16.msra.mxu1 %v1787_v3  ;;  %1658 = vmatprep.subr.bf16.mxu0 %v1788_v4  ;;  %v313_v14 = vshrl.u32 %v1454_v12, 16  ;;  %v315_v15 = vshll.u32 %v1454_v12, 16  ;;  %v1799_v33 = vld [vmem:[%s2103_s1 + $0x48] sm:$0xff]   ;;  %v1492_v34 = vcombine.low %v582_v31, %v1922_v8  ;;  %v1493_v35 = vcombine.low %v1925_v9, %v583_v32  ;;  %v1801_v42 = vld [vmem:[%s2103_s1 + $0x40] sm:$0xff]   ;;  %v1808_v54 = vld [vmem:[%s2103_s1 + $0x90] sm:$0xff]  }
  0x13   : > { %1670 = vmatprep.subr.bf16.mxu1 %v1789_v5  ;;  %1674 = vmatprep.mubr.msk.bf16.mxu1 %vm351_vm0, %v1454_v12  ;;  %v320_v17 = vshll.u32 %v1933_v13, 16  ;;  %v324_v18 = vshrl.u32 %v1933_v13, 16  ;;  %v499_v30 = vrot.slane %v1933_v13, 1  ;;  %v1800_v36 = vld [vmem:[%s2103_s1 + $0x68] sm:$0xff]   ;;  %v498_v37 = vrot.slane %v1477_v29, 1  ;;  %v1802_v45 = vld [vmem:[%s2103_s1 + $0x60] sm:$0xff]   ;;  %s278_s10 = scalar_lea.vmem %s2109_s7, %s1775_s30 }
  0x14   : > { %v317_v19 = vrot.slane %v315_v15, 1  ;;  %v600_v38 = vrot.slane %v1492_v34, 3  ;;  %v601_v39 = vrot.slane %v1493_v35, 3  ;;  %v699_v41 = vshrl.u32 %v1492_v34, 16  ;;  %v1983_v47 = vld [vmem:[%s1915_s18 + $0xc] sm:$0xf] }
  0x15   : > { %1659 = vmatpush3.bf16.msra.mxu0 %v1788_v4  ;;  %v322_v21 = vrot.slane %v320_v17, 1  ;;  %v500_v40 = vsel %vm497_vm2, %v498_v37, %v499_v30  ;;  %v702_v44 = vshll.u32 %v1492_v34, 16  ;;  %v1508_v50 = vcombine.low %v1925_v9, %v1983_v47  ;;  %v1809_v55 = vld [vmem:[%s2103_s1 + $0xb0] sm:$0xff]   ;;  %v1810_v61 = vld [vmem:[%s2103_s1 + $0x88] sm:$0xff]   ;;  %v888_v62 = vld [vmem:[%s1915_s18 + $0x4] sm:$0xc] }
  0x16   : > { %1671 = vmatpush3.bf16.msra.mxu1 %v1789_v5  ;;  %1660 = vmatprep.subr.bf16.mxu0 %v1790_v6  ;;  %v318_v22 = vor.u32 %v317_v19, %v313_v14  ;;  %v602_v43 = vsel %vm599_vm3, %v600_v38, %v601_v39  ;;  %v701_v48 = vrot.slane %v699_v41, 3  ;;  %v1811_v63 = vld [vmem:[%s2103_s1 + $0xa8] sm:$0xff]   ;;  %v996_v4 = vld [vmem:[%s1915_s18 + $0x10] sm:$0x7]  ;;  %v1812_v11 = vld [vmem:[%s2103_s1 + $0x80] sm:$0xff]   ;;  %vm1380_vm8 = vcmask 125952  }
  0x17   : > { %1672 = vmatprep.subr.bf16.mxu1 %v1791_v10  ;;  %v326_v24 = vor.u32 %v324_v18, %v322_v21  ;;  %v704_v49 = vrot.slane %v702_v44, 4  ;;  %v707_v52 = vshrl.u32 %v1508_v50, 16  ;;  %v710_v53 = vshll.u32 %v1508_v50, 16  ;;  %v2008_v1 = vld [vmem:[%s1915_s18 + $0x8] sm:$0xf]  ;;  %v1813_v12 = vld [vmem:[%s2103_s1 + $0xa0] sm:$0xff]  }
  0x18   : > { %v323_v26 = vsel %vm311_vm1, %v318_v22, %v322_v21  ;;  %v890_v2 = vld [vmem:[%s1915_s18 + $0xc] sm:$0xf]  ;;  %v1539_v3 = vcombine.low %v888_v62, %v2008_v1  ;;  %v1815_v18 = vld [vmem:[%s2103_s1 + $0xd8] sm:$0xff]   ;;  %v1108_v31 = vld [vmem:[%s1915_s18 + $0x4] sm:$0x8] }
  0x19   : > { %1661 = vmatpush3.bf16.msra.mxu0 %v1790_v6  ;;  %1662 = vmatprep.mubr.msk.bf16.mxu0 %vm351_vm0, %v323_v26  ;;  %v705_v56 = vor.u32 %v704_v49, %v701_v48  ;;  %v709_v57 = vrot.slane %v707_v52, 3  ;;  %v712_v58 = vrot.slane %v710_v53, 4  ;;  %v2015_v5 = vcombine.low %v890_v2, %v996_v4  ;;  %v891_v6 = vld [vmem:[%s1915_s18 + $0x10] sm:$0x3]  ;;  %v1818_v19 = vld [vmem:[%s2103_s1 + $0xf8] sm:$0xff]   ;;  %v1821_v29 = vld [vmem:[%s2103_s1 + $0xc8] sm:$0xff]  }
  0x1a   : > { %1673 = vmatpush3.bf16.msra.mxu1 %v1791_v10  ;;  %1678 = vmatprep.subr.bf16.mxu0 %v1795_v16  ;;  %v1011_v7 = vshrl.u32 %v1539_v3, 16  ;;  %v1014_v8 = vshll.u32 %v1539_v3, 16  ;;  %v1540_v15 = vcombine.low %v890_v2, %v891_v6  ;;  %v912_v21 = vrot.slane %v1539_v3, 2  ;;  %v1820_v26 = vld [vmem:[%s2103_s1 + $0xf0] sm:$0xff]   ;;  %v1823_v32 = vld [vmem:[%s2103_s1 + $0xc0] sm:$0xff]   ;;  %v1828_v35 = vld [vmem:[%s2103_s1 + $0x118] sm:$0xff]  }
  0x1b   : > { %1690 = vmatprep.subr.bf16.mxu1 %v1796_v20  ;;  %v713_v59 = vor.u32 %v712_v58, %v709_v57  ;;  %v1019_v9 = vshrl.u32 %v2015_v5, 16  ;;  %v1022_v10 = vshll.u32 %v2015_v5, 16  ;;  %v1570_v34 = vcombine.low %v1108_v31, %v2008_v1  ;;  %v1829_v38 = vld [vmem:[%s2103_s1 + $0x110] sm:$0xff]   ;;  %v1831_v41 = vld [vmem:[%s2103_s1 + $0x100] sm:$0xff]  }
  0x1c   : > { %1663 = vmatmul.mubr.msk.bf16.vlgmr.msra.gmra.mxu0 %vm351_vm0, %v326_v24  ;;  %v1013_v13 = vrot.slane %v1011_v7, 2  ;;  %v1016_v14 = vrot.slane %v1014_v8, 3  ;;  %v913_v22 = vrot.slane %v1540_v15, 2  ;;  %v1122_v37 = vrot.slane %v2015_v5, 3 }
  0x1d   : > { %1675 = vmatmul.mubr.msk.bf16.vlgmr.msra.gmra.mxu1 %vm351_vm0, %v1462_v23  ;;  %1679 = vmatpush3.bf16.msra.mxu0 %v1795_v16  ;;  %v714_v0 = vsel %vm697_vm4, %v705_v56, %v713_v59  ;;  %v1021_v16 = vrot.slane %v1019_v9, 2  ;;  %v1024_v17 = vrot.slane %v1022_v10, 3 }
  0x1e   : > { %1691 = vmatpush3.bf16.msra.mxu1 %v1796_v20  ;;  %1680 = vmatprep.subr.bf16.mxu0 %v1797_v25  ;;  %v1524_v20 = vcombine.low %v1983_v47, %v1983_v47  ;;  %v1017_v23 = vor.u32 %v1016_v14, %v1013_v13 }
  0x1f   : > { %1692 = vmatprep.subr.bf16.mxu1 %v1798_v27  ;;  %1686 = vmatprep.mubr.msk.bf16.mxu0 %vm351_vm0, %v500_v40  ;;  %v1025_v24 = vor.u32 %v1024_v17, %v1021_v16  ;;  %v1830_v40 = vld [vmem:[%s2103_s1 + $0x108] sm:$0xff]  }
  0x20   : > { %1698 = vmatprep.mubr.msk.bf16.mxu1 %vm351_vm0, %v602_v43 }
  0x21   : > { %1681 = vmatpush3.bf16.msra.mxu0 %v1797_v25  ;;  %v1819_v25 = vld [vmem:[%s2103_s1 + $0xd0] sm:$0xff]   ;;  %v1026_v28 = vsel %vm1009_vm6, %v1017_v23, %v1025_v24 }
  0x22   : > { %1693 = vmatpush3.bf16.msra.mxu1 %v1798_v27  ;;  %1682 = vmatprep.subr.bf16.mxu0 %v1799_v33  ;;  %v914_v27 = vsel %vm911_vm5, %v912_v21, %v913_v22 }
  0x23   : > { %1694 = vmatprep.subr.bf16.mxu1 %v1800_v36 }
  0x25   : > { %1683 = vmatpush3.bf16.msra.mxu0 %v1799_v33  ;;  %v1824_v33 = vld [vmem:[%s2103_s1 + $0xe0] sm:$0xff]  }
  0x26   : > { %1695 = vmatpush3.bf16.msra.mxu1 %v1800_v36  ;;  %1684 = vmatprep.subr.bf16.mxu0 %v1801_v42  ;;  %v1121_v36 = vrot.slane %v1570_v34, 3  ;;  %v1577_v34 = vld [vmem:[%s2104_s2] ss:$0 sm:$0xff] }
  0x27   : > { %1696 = vmatprep.subr.bf16.mxu1 %v1802_v45 }
  0x29   : > { %1685 = vmatpush3.bf16.msra.mxu0 %v1801_v42  ;;  %v1833_v42 = vld [vmem:[%s2105_s3] sm:$0xff]  }
  0x2a   : > { %1697 = vmatpush3.bf16.msra.mxu1 %v1802_v45  ;;  %1702 = vmatprep.subr.bf16.mxu0 %v1804_v46 }
  0x2b   : > { %1714 = vmatprep.subr.bf16.mxu1 %v1807_v51 }
  0x2c   : > { %1687 = vmatmul.mubr.msk.bf16.vlgmr.msra.gmra.mxu0 %vm351_vm0, %v499_v30  ;;  %v1822_v30 = vld [vmem:[%s2103_s1 + $0xe8] sm:$0xff]  }
  0x2d   : > { %1699 = vmatmul.mubr.msk.bf16.vlgmr.msra.gmra.mxu1 %vm351_vm0, %v601_v39  ;;  %1703 = vmatpush3.bf16.msra.mxu0 %v1804_v46  ;;  %v1123_v39 = vsel %vm599_vm3, %v1121_v36, %v1122_v37 }
  0x2e   : > { %1715 = vmatpush3.bf16.msra.mxu1 %v1807_v51  ;;  %1704 = vmatprep.subr.bf16.mxu0 %v1808_v54 }
  0x2f   : > { %1716 = vmatprep.subr.bf16.mxu1 %v1809_v55  ;;  %1710 = vmatprep.mubr.msk.bf16.mxu0 %vm351_vm0, %v714_v0 }
  0x30   : > { %1722 = vmatprep.mubr.msk.bf16.mxu1 %vm351_vm0, %v1523_v60 }
  0x31   : > { %1705 = vmatpush3.bf16.msra.mxu0 %v1808_v54 }
  0x32   : > { %1717 = vmatpush3.bf16.msra.mxu1 %v1809_v55  ;;  %1706 = vmatprep.subr.bf16.mxu0 %v1810_v61 }
  0x33   : > { %1718 = vmatprep.subr.bf16.mxu1 %v1811_v63 }
  0x35   : > { %1707 = vmatpush3.bf16.msra.mxu0 %v1810_v61 }
  0x36   : > { %1719 = vmatpush3.bf16.msra.mxu1 %v1811_v63  ;;  %1708 = vmatprep.subr.bf16.mxu0 %v1812_v11 }
  0x37   : > { %1720 = vmatprep.subr.bf16.mxu1 %v1813_v12 }
  0x39   : > { %1709 = vmatpush3.bf16.msra.mxu0 %v1812_v11 }
  0x3a   : > { %1721 = vmatpush3.bf16.msra.mxu1 %v1813_v12  ;;  %1726 = vmatprep.subr.bf16.mxu0 %v1815_v18 }
  0x3b   : > { %1738 = vmatprep.subr.bf16.mxu1 %v1818_v19 }
  0x3c   : > { %1711 = vmatmul.mubr.msk.bf16.vlgmr.msra.gmra.mxu0 %vm351_vm0, %v713_v59 }
  0x3d   : > { %1723 = vmatmul.mubr.msk.bf16.vlgmr.msra.gmra.mxu1 %vm351_vm0, %v1524_v20  ;;  %1727 = vmatpush3.bf16.msra.mxu0 %v1815_v18 }
  0x3e   : > { %1739 = vmatpush3.bf16.msra.mxu1 %v1818_v19  ;;  %1728 = vmatprep.subr.bf16.mxu0 %v1819_v25 }
  0x3f   : > { %1740 = vmatprep.subr.bf16.mxu1 %v1820_v26  ;;  %1734 = vmatprep.mubr.msk.bf16.mxu0 %vm351_vm0, %v914_v27 }
  0x40   : > { %1746 = vmatprep.mubr.msk.bf16.mxu1 %vm351_vm0, %v1026_v28 }
  0x41   : > { %1729 = vmatpush3.bf16.msra.mxu0 %v1819_v25 }
  0x42   : > { %1741 = vmatpush3.bf16.msra.mxu1 %v1820_v26  ;;  %1730 = vmatprep.subr.bf16.mxu0 %v1821_v29 }
  0x43   : > { %1742 = vmatprep.subr.bf16.mxu1 %v1822_v30 }
  0x45   : > { %1731 = vmatpush3.bf16.msra.mxu0 %v1821_v29 }
  0x46   : > { %1743 = vmatpush3.bf16.msra.mxu1 %v1822_v30  ;;  %1732 = vmatprep.subr.bf16.mxu0 %v1823_v32 }
  0x47   : > { %1744 = vmatprep.subr.bf16.mxu1 %v1824_v33 }
  0x49   : > { %1733 = vmatpush3.bf16.msra.mxu0 %v1823_v32 }
  0x4a   : > { %1745 = vmatpush3.bf16.msra.mxu1 %v1824_v33  ;;  %1750 = vmatprep.subr.bf16.mxu0 %v1828_v35 }
  0x4b   : > { %1762 = vmatprep.subr.bf16.mxu1 %v1833_v42 }
  0x4c   : > { %1735 = vmatmul.mubr.msk.bf16.vlgmr.msra.gmra.mxu0 %vm351_vm0, %v913_v22 }
  0x4d   : > { %1747 = vmatmul.mubr.msk.bf16.vlgmr.msra.gmra.mxu1 %vm351_vm0, %v1025_v24  ;;  %1751 = vmatpush3.bf16.msra.mxu0 %v1828_v35 }
  0x4e   : > { %1758 = vmatprep.mubr.msk.bf16.mxu0 %vm351_vm0, %v1123_v39  ;;  %1752 = vmatprep.subr.bf16.mxu0 %v1829_v38 }
  0x4f   : > { %1763 = vmatpush3.bf16.msra.mxu1 %v1833_v42 }
  0x51   : > { %1753 = vmatpush3.bf16.msra.mxu0 %v1829_v38 }
  0x52   : > { %1754 = vmatprep.subr.bf16.mxu0 %v1830_v40 }
  0x55   : > { %1755 = vmatpush3.bf16.msra.mxu0 %v1830_v40 }
  0x56   : > { %1756 = vmatprep.subr.bf16.mxu0 %v1831_v41 }
  0x59   : > { %1757 = vmatpush3.bf16.msra.mxu0 %v1831_v41 }
  0x5c   : > { %1759 = vmatmul.mubr.msk.bf16.vlgmr.msra.gmra.mxu0 %vm351_vm0, %v1122_v37 }
  0xdc   : > { %v1664_v43 = vpop.f32.mrf.mxu0 }
  0xdd   : > { %v1676_v44 = vpop.f32.mrf.mxu1 }
  0xde   : > { %v392_v45 = vpop.f32.mrf.mxu0  ;;  %v479_v1 = vadd.f32 %v1676_v44, %v1664_v43 }
  0xdf   : > { %v470_v46 = vpop.f32.mrf.mxu1 }
  0xe0   : > { %v1665_v47 = vpop.f32.mrf.mxu0  ;;  %v471_v4 = vadd.f32 %v470_v46, %v392_v45 }
  0xe1   : > { %v1677_v48 = vpop.f32.mrf.mxu1 }
  0xe2   : > { %v395_v49 = vpop.f32.mrf.mxu0  ;;  %v1834_v48 = vld [vmem:[%s2107_s5] sm:$0xff]  }
  0xe3   : > { %v473_v50 = vpop.f32.mrf.mxu1  ;;  %1768 = vmatprep.subr.bf16.mxu1 %v1834_v48 }
  0xe4   : > { %v474_v11 = vadd.f32 %v473_v50, %v395_v49  ;;  %v1578_v50 = vld [vmem:[%s2106_s4] ss:$0 sm:$0xff] }
  0xec   : > { %v1688_v51 = vpop.f32.mrf.mxu0 }
  0xed   : > { %v1700_v52 = vpop.f32.mrf.mxu1  ;;  %v581_v5 = vadd.f32 %v1688_v51, %v479_v1 }
  0xee   : > { %v565_v53 = vpop.f32.mrf.mxu0 }
  0xef   : > { %v667_v54 = vpop.f32.mrf.mxu1  ;;  %v579_v8 = vadd.f32 %v565_v53, %v471_v4  ;;  %v683_v12 = vadd.f32 %v1700_v52, %v581_v5 }
  0xf0   : > { %v1689_v55 = vpop.f32.mrf.mxu0 }
  0xf1   : > { %v1701_v56 = vpop.f32.mrf.mxu1  ;;  %v681_v15 = vadd.f32 %v667_v54, %v579_v8 }
  0xf2   : > { %v568_v57 = vpop.f32.mrf.mxu0 }
  0xf3   : > { %v670_v58 = vpop.f32.mrf.mxu1  ;;  %v580_v16 = vadd.f32 %v568_v57, %v474_v11 }
  0xf5   : > { %v682_v19 = vadd.f32 %v670_v58, %v580_v16 }
  0xfc   : > { %v1712_v59 = vpop.f32.mrf.mxu0 }
  0xfd   : > { %v1724_v60 = vpop.f32.mrf.mxu1  ;;  %v795_v17 = vadd.f32 %v1712_v59, %v683_v12 }
  0xfe   : > { %v779_v61 = vpop.f32.mrf.mxu0 }
  0xff   : > { %v871_v62 = vpop.f32.mrf.mxu1  ;;  %v793_v18 = vadd.f32 %v779_v61, %v681_v15  ;;  %v887_v20 = vadd.f32 %v1724_v60, %v795_v17 }
 0x100   : > { %v1713_v63 = vpop.f32.mrf.mxu0 }
 0x101   : > { %v1725_v0 = vpop.f32.mrf.mxu1  ;;  %v885_v21 = vadd.f32 %v871_v62, %v793_v18  ;;  %v1582_v62 = vld [vmem:[%s2108_s6] ss:$0 sm:$0xff] }
 0x102   : > { %v782_v2 = vpop.f32.mrf.mxu0 }
 0x103   : > { %v874_v3 = vpop.f32.mrf.mxu1  ;;  %v794_v22 = vadd.f32 %v782_v2, %v682_v19 }
 0x105   : > { %v886_v26 = vadd.f32 %v874_v3, %v794_v22 }
 0x10c   : > { %v1736_v6 = vpop.f32.mrf.mxu0 }
 0x10d   : > { %v1748_v7 = vpop.f32.mrf.mxu1  ;;  %v995_v23 = vadd.f32 %v1736_v6, %v887_v20 }
 0x10e   : > { %v979_v9 = vpop.f32.mrf.mxu0 }
 0x10f   : > { %v1091_v10 = vpop.f32.mrf.mxu1  ;;  %v993_v24 = vadd.f32 %v979_v9, %v885_v21  ;;  %v1107_v27 = vadd.f32 %v1748_v7, %v995_v23 }
 0x110   : > { %v1737_v13 = vpop.f32.mrf.mxu0 }
 0x111   : > { %v1749_v14 = vpop.f32.mrf.mxu1  ;;  %v1105_v29 = vadd.f32 %v1091_v10, %v993_v24 }
 0x112   : > { %v982_v25 = vpop.f32.mrf.mxu0 }
 0x113   : > { %v994_v30 = vadd.f32 %v982_v25, %v886_v26  ;;  %v1094_v31 = vpop.f32.mrf.mxu1 }
 0x115   : > { %v1106_v37 = vadd.f32 %v1094_v31, %v994_v30 }
 0x11c   : > { %v1760_v28 = vpop.f32.mrf.mxu0 }
 0x11d   : > { %v1204_v32 = vadd.f32 %v1760_v28, %v1107_v27 }
 0x11e   : > { %v1188_v33 = vpop.f32.mrf.mxu0 }
 0x11f   : > { %v1202_v35 = vadd.f32 %v1188_v33, %v1105_v29  ;;  %v1214_v38 = vadd.f32 %v1577_v34, %v1204_v32 }
 0x120   : > { %v1761_v36 = vpop.f32.mrf.mxu0 }
 0x121   : > { %v1212_v40 = vadd.f32 %v1577_v34, %v1202_v35  ;;  %v1217_v43 = vmax.f32 %v1214_v38, 0.0 }
 0x122   : > { %v1191_v39 = vpop.f32.mrf.mxu0 }
 0x123   : > { %v1203_v41 = vadd.f32 %v1191_v39, %v1106_v37  ;;  %v1215_v44 = vmax.f32 %v1212_v40, 0.0  ;;  %v1222_v47 = vpack.c.bf16 %v1217_v43, %v1217_v43 }
 0x125   : > { %v1213_v42 = vadd.f32 %v1577_v34, %v1203_v41 }
 0x127   : > { %v1216_v45 = vmax.f32 %v1213_v42, 0.0 }
 0x129   : > { %v1221_v46 = vpack.c.bf16 %v1216_v45, %v1215_v44 }
 0x12b   : > { %1764 = vmatprep.mubr.msk.bf16.mxu1 %vm1235_vm7, %v1221_v46 }
 0x12c   : > { %1765 = vmatmul.mubr.msk.bf16.vlgmr.msra.gmra.mxu1 %vm1235_vm7, %v1222_v47 }
 0x12d   : > { %1769 = vmatpush3.bf16.msra.mxu1 %v1834_v48 }
 0x1ec   : > { %v1766_v49 = vpop.f32.mrf.mxu1 }
 0x1ed   : > { %v1285_v52 = vadd.f32 %v1766_v49, %v1578_v50 }
 0x1ee   : > { %v1276_v51 = vpop.f32.mrf.mxu1 }
 0x1ef   : > { %v1277_v54 = vadd.f32 %v1578_v50, %v1276_v51  ;;  %v1292_v57 = vmax.f32 %v1285_v52, 0.0 }
 0x1f0   : > { %v1767_v53 = vpop.f32.mrf.mxu1 }
 0x1f1   : > { %v1290_v58 = vmax.f32 %v1277_v54, 0.0  ;;  %v1297_v61 = vpack.c.bf16 %v1292_v57, %v1292_v57 }
 0x1f2   : > { %v1279_v55 = vpop.f32.mrf.mxu1 }
 0x1f3   : > { %v1280_v56 = vadd.f32 %v1578_v50, %v1279_v55 }
 0x1f5   : > { %v1291_v59 = vmax.f32 %v1280_v56, 0.0 }
 0x1f7   : > { %v1296_v60 = vpack.c.bf16 %v1291_v59, %v1290_v58 }
 0x1f9   : > { %1770 = vmatprep.mubr.msk.bf16.mxu1 %vm1235_vm7, %v1296_v60 }
 0x1fa   : > { %1771 = vmatmul.mubr.msk.bf16.vlgmr.msra.gmra.mxu1 %vm1235_vm7, %v1297_v61 }
 0x2ba   : > { %v1772_v63 = vpop.f32.mrf.mxu1 }
 0x2bb   : > { %v1359_v0 = vadd.f32 %v1772_v63, %v1582_v62 }
 0x2bc   : > { %v1350_v1 = vpop.f32.mrf.mxu1 }
 0x2bd   : > { %v1366_v2 = vmax.f32 %v1359_v0, 0.0  ;;  %v1351_v3 = vadd.f32 %v1582_v62, %v1350_v1 }
 0x2be   : > { %v1773_v4 = vpop.f32.mrf.mxu1 }
 0x2bf   : > { %v1593_v5 = vpack.c.bf16 %v1366_v2, %v1366_v2  ;;  %v1364_v6 = vmax.f32 %v1351_v3, 0.0 }
 0x2c0   : > { %v1353_v7 = vpop.f32.mrf.mxu1 }
 0x2c1   : > { %1383 = vst.msk [vmem:[%s278_s10 + $0x8] sm:$0xf] %vm1380_vm8, %v1593_v5  ;;  %v1591_v8 = vpack.c.bf16 %v1364_v6, %v1364_v6  ;;  %v1354_v9 = vadd.f32 %v1582_v62, %v1353_v7 }
 0x2c3   : > { %1381 = vst.msk [vmem:[%s278_s10] sm:$0xf] %vm1380_vm8, %v1591_v8  ;;  %v1365_v10 = vmax.f32 %v1354_v9, 0.0 }
 0x2c5   : > { %v1592_v11 = vpack.c.bf16 %v1365_v10, %v1365_v10 }
 0x2c7   : > { %1382 = vst.msk [vmem:[%s278_s10 + $0x4] sm:$0xf] %vm1380_vm8, %v1592_v11 }
 0x2c8 PF: > { %s17_s24 = sadd.s32 1, %s1841_s24  }
 0x2c9   : > { %p14_p4 = scmp.ge.s32.totalorder %s17_s24, 4  }
 0x2cb   :  { %16 = sbr.rel (!%p14_p4) target bundleno = 1 (0x1), region = 86 }

// kernel: _lambda_.27
= control target key start
LH: loop header
LB: loop body
LE: loop exit
PB: predicated region body
PF: predicated region fallthrough
CT: control target
= control target key end

     0   :  { %s2746_s11 = smov 0   ;;  %s3293_s0 = inlined_call_operand.vmem [shape: bf16[2,102,32], index: 0, kind: input, shape index: {}]   ;;  %s3294_s1 = inlined_call_operand.vmem [shape: bf16[9,32,8], index: 1, kind: input, shape index: {}]   ;;  %s3295_s2 = inlined_call_operand.vmem [shape: f32[1,8], index: 2, kind: input, shape index: {}]   ;;  %s3296_s3 = inlined_call_operand.vmem [shape: bf16[8,8], index: 3, kind: input, shape index: {}]   ;;  %s3297_s4 = inlined_call_operand.vmem [shape: f32[1,8], index: 4, kind: input, shape index: {}]   ;;  %s3298_s5 = inlined_call_operand.vmem [shape: bf16[8,8], index: 5, kind: input, shape index: {}]   ;;  %s3299_s6 = inlined_call_operand.vmem [shape: f32[1,8], index: 6, kind: input, shape index: {}]   ;;  %s3300_s7 = inlined_call_operand.vmem [shape: bf16[8,1], index: 7, kind: input, shape index: {}]   ;;  %s3301_s8 = inlined_call_operand.<no memory space> [shape: f32[1,1], index: 8, kind: input, shape index: {}]   ;;  %s3302_s9 = inlined_call_operand.vmem [shape: f32[2,80,1], index: 9, kind: output, shape index: {}]  }
   0x1   :  { %v14_v0 = vstv %s3301_s8 }
   0x2   :  { %15 = vst [vmem:[#allocation2] sm:$0x1] %v14_v0 }
   0x3 LB: > { %s2121_s12 = sadd.s32 4294967295, %s2689_s11   ;;  %p2125_p0 = scmp.ge.s32.totalorder %s2689_s11, 1  ;;  %s2689_s11 = sphi %s2746_s11, %s21_s11  }
   0x4   : > { %p289_p1 = scmp.lt.s32.totalorder %s2689_s11, 3 }
   0x6   : > { %p290_p2 = pnand %p2125_p0, %p289_p1 }
   0x7   : > { %p325_p3 = scmp.lt.s32.totalorder (!%p290_p2), %s2121_s12, 1 }
   0x8   : > { %293 = sbr.rel (%p290_p2) target bundleno = 1030 (0x406), region = 56 }
   0xd   : > { %v2642_v1 = vld [vmem:[%s3294_s1 + $0x18] sm:$0xff]   ;;  %v2691_v2 = vmov 0.0   ;;  %v2643_v3 = vld [vmem:[%s3294_s1 + $0x8] sm:$0xff]   ;;  %v2644_v4 = vld [vmem:[%s3294_s1 + $0x10] sm:$0xff]   ;;  %vm2692_vm0 = vmmov 0   ;;  %s3304_s12 = smov (!%p325_p3, %s2121_s12), 1 }
   0xe   : > { %2348 = vmatprep.subr.bf16.mxu0 %v2691_v2  ;;  %2372 = vmatprep.subr.bf16.mxu1 %v2691_v2  ;;  %v2645_v5 = vld [vmem:[%s3294_s1] sm:$0xff]   ;;  %s2630_s20 = smul.u32 52, %s3304_s12  ;;  %vm441_vm1 = vcmask 261120   ;;  %v2654_v6 = vld [vmem:[%s3294_s1 + $0x38] sm:$0xff]   ;;  %v2655_v15 = vld [vmem:[%s3294_s1 + $0x30] sm:$0xff]   ;;  %vm1103_vm3 = vcmask 1045504  }
   0xf   : > { %2349 = vmatpush3.bf16.msra.mxu0 %v2642_v1  ;;  %2352 = vmatprep.mubr.msk.bf16.mxu0 %vm2692_vm0, %v2691_v2  ;;  %vm384_vm2 = vsmask.f32 7424  ;;  %v2648_v19 = vld [vmem:[%s3294_s1 + $0x28] sm:$0xff]   ;;  %v2651_v26 = vld [vmem:[%s3294_s1 + $0x20] sm:$0xff]   ;;  %vm634_vm4 = vcmask 1046528   ;;  %v2665_v62 = vld [vmem:[%s3294_s1 + $0x58] sm:$0xff]  }
  0x10   : > { %2373 = vmatpush3.bf16.msra.mxu1 %v2643_v3  ;;  %2350 = vmatprep.subr.bf16.mxu0 %v2691_v2  ;;  %s2781_s23 = scalar_lea.vmem %s3293_s0, %s2630_s20  ;;  %vm930_vm5 = vsmask.f32 6400  ;;  %vm1399_vm6 = vsmask.f32 5376  ;;  %vm1572_vm7 = vcmask 1044480   ;;  %vm1750_vm8 = vcmask 1043456  }
  0x11   : > { %2374 = vmatprep.subr.bf16.mxu1 %v2691_v2  ;;  %2376 = vmatprep.mubr.msk.bf16.mxu1 %vm2692_vm0, %v2691_v2  ;;  %v336_v7 = vld [vmem:[%s2781_s23] sm:$0xf]  ;;  %v2789_v8 = vld [vmem:[%s2781_s23 + $0x4] sm:$0xf]  ;;  %v2793_v10 = vld [vmem:[%s2781_s23 + $0x8] sm:$0xff]   ;;  %vm1734_vm9 = vcmask 64512  }
  0x12   : > { %v2132_v9 = vcombine.low %v336_v7, %v2789_v8  ;;  %v393_v13 = vshll.u32 %v2793_v10, 16  ;;  %v2798_v14 = vld [vmem:[%s2781_s23 + $0x10] sm:$0xff]   ;;  %v397_v20 = vshrl.u32 %v2793_v10, 16  ;;  %v2817_v25 = vld [vmem:[%s2781_s23 + $0x18] sm:$0xff]   ;;  %v2835_v32 = vld [vmem:[%s2781_s23 + $0x20] sm:$0xff]   ;;  %v636_v1 = vrot.slane %v2793_v10, 1 }
  0x13   : > { %2351 = vmatpush3.bf16.msra.mxu0 %v2644_v4  ;;  %v401_v21 = vshll.u32 %v2798_v14, 16  ;;  %v405_v28 = vshrl.u32 %v2798_v14, 16  ;;  %v409_v29 = vshll.u32 %v2817_v25, 16  ;;  %v413_v34 = vshrl.u32 %v2817_v25, 16  ;;  %v756_v39 = vld [vmem:[%s2781_s23 + $0x4] sm:$0xe] }
  0x14   : > { %2375 = vmatpush3.bf16.msra.mxu1 %v2645_v5  ;;  %2396 = vmatprep.subr.bf16.mxu0 %v2691_v2  ;;  %v386_v11 = vshrl.u32 %v2132_v9, 16  ;;  %v388_v12 = vshll.u32 %v2132_v9, 16  ;;  %v395_v17 = vrot.slane %v393_v13, 1  ;;  %v417_v35 = vshll.u32 %v2835_v32, 16  ;;  %v2856_v40 = vld [vmem:[%s2781_s23 + $0x8] sm:$0xf] }
  0x15   : > { %2420 = vmatprep.subr.bf16.mxu1 %v2691_v2  ;;  %v403_v24 = vrot.slane %v401_v21, 1  ;;  %v411_v31 = vrot.slane %v409_v29, 1  ;;  %v2848_v38 = vld [vmem:[%s2781_s23 + $0x28] ss:$0 sps:$4 sm:$0x11]   ;;  %v421_v42 = vshrl.u32 %v2835_v32, 16  ;;  %v2862_v44 = vcombine.low %v756_v39, %v2856_v40 }
  0x16   : > { %v390_v16 = vrot.slane %v388_v12, 1  ;;  %v399_v23 = vor.u32 %v397_v20, %v395_v17  ;;  %v419_v37 = vrot.slane %v417_v35, 1  ;;  %v425_v43 = vshll.u32 %v2848_v38, 16  ;;  %v2865_v45 = vld [vmem:[%s2781_s23 + $0xc] sm:$0xff]   ;;  %v2869_v46 = vld [vmem:[%s2781_s23 + $0x20] sm:$0xff]   ;;  %v2895_v61 = vld [vmem:[%s2781_s23 + $0x14] sm:$0xff]  }
  0x17   : > { %2377 = vmatmul.mubr.msk.bf16.vlgmr.msra.gmra.mxu1 %vm441_vm1, %v2132_v9  ;;  %v407_v30 = vor.u32 %v405_v28, %v403_v24  ;;  %v415_v36 = vor.u32 %v413_v34, %v411_v31  ;;  %v2872_v47 = vld [vmem:[%s2781_s23 + $0x28] sm:$0xff]   ;;  %v625_v50 = vld [vmem:[%s2781_s23] sm:$0xe]  ;;  %v1274_v51 = vrot.slane %v2869_v46, 2  ;;  %v800_v53 = vrot.slane %v2862_v44, 1  ;;  %v2666_v4 = vld [vmem:[%s3294_s1 + $0x50] sm:$0xff]  }
  0x18   : > { %2380 = vmatprep.mubr.msk.bf16.mxu1 %vm2692_vm0, %v2691_v2  ;;  %2421 = vmatpush3.bf16.msra.mxu1 %v2654_v6  ;;  %v391_v18 = vor.u32 %v390_v16, %v386_v11  ;;  %v404_v27 = vsel %vm384_vm2, %v399_v23, %v403_v24  ;;  %v423_v48 = vor.u32 %v421_v42, %v419_v37  ;;  %v427_v49 = vrot.slane %v425_v43, 1  ;;  %v2680_v56 = vld [vmem:[%s2781_s23 + $0x30] ss:$0 sps:$4 sm:$0x33]   ;;  %v2657_v6 = vld [vmem:[%s3294_s1 + $0x48] sm:$0xff]   ;;  %v2671_v39 = vld [vmem:[%s3294_s1 + $0x78] sm:$0xff]  }
  0x19   : > { %2422 = vmatprep.subr.bf16.mxu1 %v2691_v2  ;;  %v412_v33 = vsel %vm384_vm2, %v407_v30, %v411_v31  ;;  %v420_v41 = vsel %vm384_vm2, %v415_v36, %v419_v37  ;;  %v1276_v52 = vrot.slane %v2872_v47, 2  ;;  %v801_v54 = vrot.slane %v2865_v45, 1  ;;  %s2631_s25 = smul.u32 80, %s3304_s12 }
  0x1a   : > { %v396_v22 = vsel %vm384_vm2, %v391_v18, %v395_v17  ;;  %v428_v57 = vsel %vm384_vm2, %v423_v48, %v427_v49  ;;  %v2156_v58 = vcombine.low %v625_v50, %v2789_v8  ;;  %v1278_v59 = vrot.slane %v2680_v56, 2  ;;  %v2921_v8 = vld [vmem:[%s2781_s23 + $0x1c] sm:$0xff]   ;;  %v2667_v49 = vld [vmem:[%s3294_s1 + $0x68] sm:$0xff]  }
  0x1b   : > { %2353 = vmatmul.mubr.msk.bf16.vlgmr.msra.gmra.mxu0 %vm441_vm1, %v396_v22  ;;  %v2888_v55 = vsel %vm1103_vm3, %v1274_v51, %v1276_v52  ;;  %v802_v60 = vsel %vm634_vm4, %v800_v53, %v801_v54  ;;  %v803_v3 = vrot.slane %v2895_v61, 1  ;;  %v638_v9 = vrot.slane %v2798_v14, 1  ;;  %v1094_v22 = vld [vmem:[%s2781_s23 + $0x4] sm:$0xc]  ;;  %s3268_s28 = scalar_lea.vmem %s3302_s9, %s2631_s25 }
  0x1c   : > { %2423 = vmatpush3.bf16.msra.mxu1 %v2655_v15  ;;  %2397 = vmatpush3.bf16.msra.mxu0 %v2648_v19  ;;  %v2902_v63 = vsel %vm1103_vm3, %v1276_v52, %v1278_v59  ;;  %v635_v0 = vrot.slane %v2156_v58, 1  ;;  %v805_v11 = vrot.slane %v2921_v8, 1  ;;  %v640_v15 = vrot.slane %v2817_v25, 1  ;;  %v2664_v19 = vld [vmem:[%s2781_s23 + $0x2c] ss:$0 sps:$4 sm:$0x11]  }
  0x1d   : > { %2468 = vmatprep.subr.bf16.mxu1 %v2691_v2  ;;  %2356 = vmatprep.mubr.msk.bf16.mxu0 %vm2692_vm0, %v2691_v2  ;;  %v804_v7 = vsel %vm634_vm4, %v801_v54, %v803_v3  ;;  %v639_v12 = vsel %vm634_vm4, %v636_v1, %v638_v9  ;;  %v642_v20 = vrot.slane %v2835_v32, 1  ;;  %v809_v21 = vrot.slane %v2664_v19, 1  ;;  %v2669_v58 = vld [vmem:[%s3294_s1 + $0x60] sm:$0xff]  }
  0x1e   : > { %2398 = vmatprep.subr.bf16.mxu0 %v2691_v2  ;;  %v637_v5 = vsel %vm634_vm4, %v635_v0, %v636_v1  ;;  %v806_v13 = vsel %vm634_vm4, %v803_v3, %v805_v11  ;;  %v641_v17 = vsel %vm634_vm4, %v638_v9, %v640_v15  ;;  %v935_v28 = vshll.u32 %v2862_v44, 16 }
  0x1f   : > { %2381 = vmatmul.mubr.msk.bf16.gmra.mxu1 %vm441_vm1, %v2793_v10  ;;  %v2662_v10 = vld [vmem:[%s3294_s1 + $0x40] sm:$0xff]   ;;  %v643_v23 = vsel %vm634_vm4, %v640_v15, %v642_v20  ;;  %v940_v29 = vshrl.u32 %v2865_v45, 16  ;;  %v943_v30 = vshll.u32 %v2865_v45, 16  ;;  %v949_v42 = vshrl.u32 %v2895_v61, 16  ;;  %v3034_v15 = vld [vmem:[%s2781_s23 + $0x10] sm:$0xff]  }
  0x20   : > { %2384 = vmatprep.mubr.msk.bf16.mxu1 %vm2692_vm0, %v2691_v2  ;;  %2399 = vmatpush3.bf16.msra.mxu0 %v2651_v26  ;;  %v644_v26 = vrot.slane %v2848_v38, 1  ;;  %v937_v35 = vrot.slane %v935_v28, 2  ;;  %v952_v43 = vshll.u32 %v2895_v61, 16  ;;  %v958_v56 = vshrl.u32 %v2921_v8, 16 }
  0x21   : > { %2444 = vmatprep.subr.bf16.mxu0 %v2691_v2  ;;  %v942_v36 = vrot.slane %v940_v29, 1  ;;  %v945_v37 = vrot.slane %v943_v30, 2  ;;  %v951_v50 = vrot.slane %v949_v42, 1  ;;  %v1109_v59 = vrot.slane %v2921_v8, 2 }
  0x22   : > { %v954_v52 = vrot.slane %v952_v43, 2  ;;  %v1270_v42 = vrot.slane %v3034_v15, 2  ;;  %vm2055_vm10 = vcmask 7168  }
  0x23   : > { %2357 = vmatmul.mubr.msk.bf16.gmra.mxu0 %vm441_vm1, %v404_v27  ;;  %v932_v27 = vshrl.u32 %v2862_v44, 16  ;;  %v1107_v44 = vrot.slane %v2895_v61, 2  ;;  %v960_v61 = vrot.slane %v958_v56, 1  ;;  %v2678_v56 = vld [vmem:[%s3294_s1 + $0x80] sm:$0xff]  }
  0x24   : > { %2360 = vmatprep.mubr.msk.bf16.mxu0 %vm2692_vm0, %v2691_v2  ;;  %v955_v54 = vor.u32 %v954_v52, %v951_v50 }
  0x25   : > { %v934_v34 = vrot.slane %v932_v27, 1  ;;  %v1110_v0 = vsel %vm1103_vm3, %v1107_v44, %v1109_v59 }
  0x27   : > { %2385 = vmatmul.mubr.msk.bf16.gmra.mxu1 %vm441_vm1, %v2798_v14  ;;  %v2940_v14 = vld [vmem:[%s2781_s23 + $0x24] sm:$0xff]  }
  0x28   : > { %2388 = vmatprep.mubr.msk.bf16.mxu1 %vm2692_vm0, %v2691_v2  ;;  %v807_v16 = vrot.slane %v2940_v14, 1  ;;  %v967_v3 = vshrl.u32 %v2940_v14, 16 }
  0x2a   : > { %v808_v18 = vsel %vm634_vm4, %v805_v11, %v807_v16  ;;  %v810_v24 = vsel %vm634_vm4, %v807_v16, %v809_v21  ;;  %v969_v9 = vrot.slane %v967_v3, 1  ;;  %v2670_v11 = vld [vmem:[%s2781_s23 + $0x2c] ss:$0 sps:$4 sm:$0x33]   ;;  %v1409_v21 = vshrl.u32 %v3034_v15, 16 }
  0x2b   : > { %2361 = vmatmul.mubr.msk.bf16.gmra.mxu0 %vm441_vm1, %v412_v33  ;;  %v645_v33 = vsel %vm634_vm4, %v642_v20, %v644_v26  ;;  %v976_v16 = vshrl.u32 %v2670_v11, 16 }
  0x2c   : > { %2364 = vmatprep.mubr.msk.bf16.mxu0 %vm2692_vm0, %v2691_v2  ;;  %v1411_v29 = vrot.slane %v1409_v21, 2 }
  0x2f   : > { %2389 = vmatmul.mubr.msk.bf16.gmra.mxu1 %vm441_vm1, %v2817_v25  ;;  %v2197_v25 = vcombine.low %v1094_v22, %v2856_v40  ;;  %v938_v40 = vor.u32 %v937_v35, %v934_v34  ;;  %v1412_v22 = vshll.u32 %v3034_v15, 16 }
  0x30   : > { %2392 = vmatprep.mubr.msk.bf16.mxu1 %vm2692_vm0, %v2691_v2 }
  0x31   : > { %v1104_v31 = vrot.slane %v2197_v25, 2  ;;  %v1414_v30 = vrot.slane %v1412_v22, 3 }
  0x33   : > { %2365 = vmatmul.mubr.msk.bf16.gmra.mxu0 %vm441_vm1, %v420_v41  ;;  %v946_v41 = vor.u32 %v945_v37, %v942_v36  ;;  %v1415_v34 = vor.u32 %v1414_v30, %v1411_v29 }
  0x34   : > { %2368 = vmatprep.mubr.msk.bf16.mxu0 %vm2692_vm0, %v2691_v2 }
  0x35   : > { %v947_v48 = vsel %vm930_vm5, %v938_v40, %v946_v41 }
  0x37   : > { %2393 = vmatmul.mubr.msk.bf16.gmra.mxu1 %vm441_vm1, %v2835_v32  ;;  %v1105_v32 = vrot.slane %v2865_v45, 2  ;;  %v2672_v45 = vld [vmem:[%s3294_s1 + $0x70] sm:$0xff]  }
  0x38   : > { %2424 = vmatprep.mubr.msk.bf16.mxu1 %vm2692_vm0, %v2691_v2 }
  0x39   : > { %v1106_v38 = vsel %vm1103_vm3, %v1104_v31, %v1105_v32  ;;  %v1108_v53 = vsel %vm1103_vm3, %v1105_v32, %v1107_v44  ;;  %v3047_v31 = vld [vmem:[%s2781_s23 + $0x18] sm:$0xff]   ;;  %v1427_v44 = vshrl.u32 %v2869_v46, 16 }
  0x3a   : > { %v1418_v35 = vshrl.u32 %v3047_v31, 16  ;;  %v1421_v36 = vshll.u32 %v3047_v31, 16 }
  0x3b   : > { %2369 = vmatmul.mubr.msk.bf16.gmra.mxu0 %vm441_vm1, %v428_v57  ;;  %v961_v57 = vshll.u32 %v2921_v8, 16  ;;  %v1429_v52 = vrot.slane %v1427_v44, 2 }
  0x3c   : > { %2400 = vmatprep.mubr.msk.bf16.mxu0 %vm2692_vm0, %v2691_v2  ;;  %v1423_v40 = vrot.slane %v1421_v36, 3 }
  0x3f   : > { %2425 = vmatmul.mubr.msk.bf16.vlgmr.msra.gmra.mxu1 %vm441_vm1, %v802_v60  ;;  %v956_v60 = vsel %vm930_vm5, %v946_v41, %v955_v54 }
  0x40   : > { %2428 = vmatprep.mubr.msk.bf16.mxu1 %vm2692_vm0, %v2691_v2  ;;  %2469 = vmatpush3.bf16.msra.mxu1 %v2665_v62  ;;  %v963_v62 = vrot.slane %v961_v57, 2 }
  0x41   : > { %2470 = vmatprep.subr.bf16.mxu1 %v2691_v2 }
  0x42   : > { %v964_v1 = vor.u32 %v963_v62, %v960_v61 }
  0x43   : > { %2401 = vmatmul.mubr.msk.bf16.vlgmr.msra.gmra.mxu0 %vm441_vm1, %v637_v5  ;;  %v1111_v5 = vrot.slane %v2940_v14, 2 }
  0x44   : > { %2471 = vmatpush3.bf16.msra.mxu1 %v2666_v4  ;;  %2445 = vmatpush3.bf16.msra.mxu0 %v2657_v6  ;;  %v970_v4 = vshll.u32 %v2940_v14, 16  ;;  %v1225_v6 = vld [vmem:[%s2781_s23 + $0x8] sm:$0xc]  ;;  %v965_v8 = vsel %vm930_vm5, %v955_v54, %v964_v1  ;;  %v1272_v54 = vrot.slane %v3047_v31, 2 }
  0x45   : > { %2516 = vmatprep.subr.bf16.mxu1 %v2691_v2  ;;  %2404 = vmatprep.mubr.msk.bf16.mxu0 %vm2692_vm0, %v2691_v2 }
  0x46   : > { %2446 = vmatprep.subr.bf16.mxu0 %v2691_v2 }
  0x47   : > { %2429 = vmatmul.mubr.msk.bf16.gmra.mxu1 %vm441_vm1, %v804_v7  ;;  %v3027_v7 = vld [vmem:[%s2781_s23 + $0xc] sm:$0xf] }
  0x48   : > { %2432 = vmatprep.mubr.msk.bf16.mxu1 %vm2692_vm0, %v2691_v2  ;;  %2447 = vmatpush3.bf16.msra.mxu0 %v2662_v10  ;;  %v972_v10 = vrot.slane %v970_v4, 2 }
  0x49   : > { %2492 = vmatprep.subr.bf16.mxu0 %v2691_v2 }
  0x4a   : > { %v973_v14 = vor.u32 %v972_v10, %v969_v9 }
  0x4b   : > { %2405 = vmatmul.mubr.msk.bf16.gmra.mxu0 %vm441_vm1, %v639_v12  ;;  %v1112_v12 = vsel %vm1103_vm3, %v1109_v59, %v1111_v5  ;;  %v1439_v59 = vshll.u32 %v2872_v47, 16 }
  0x4c   : > { %2408 = vmatprep.mubr.msk.bf16.mxu0 %vm2692_vm0, %v2691_v2 }
  0x4f   : > { %2433 = vmatmul.mubr.msk.bf16.gmra.mxu1 %vm441_vm1, %v806_v13  ;;  %v2209_v13 = vcombine.low %v1225_v6, %v3027_v7  ;;  %v1275_v6 = vsel %vm1103_vm3, %v1272_v54, %v1274_v51  ;;  %v1563_v51 = vld [vmem:[%s2781_s23 + $0x8] sm:$0x8] }
  0x50   : > { %2436 = vmatprep.mubr.msk.bf16.mxu1 %vm2692_vm0, %v2691_v2 }
  0x51   : > { %v1401_v19 = vshrl.u32 %v2209_v13, 16  ;;  %v1404_v20 = vshll.u32 %v2209_v13, 16  ;;  %v1269_v41 = vrot.slane %v2209_v13, 2  ;;  %v2238_v13 = vcombine.low %v1563_v51, %v3027_v7 }
  0x53   : > { %2409 = vmatmul.mubr.msk.bf16.gmra.mxu0 %vm441_vm1, %v641_v17  ;;  %v979_v17 = vshll.u32 %v2670_v11, 16  ;;  %v1403_v27 = vrot.slane %v1401_v19, 2  ;;  %v1406_v28 = vrot.slane %v1404_v20, 3 }
  0x54   : > { %2412 = vmatprep.mubr.msk.bf16.mxu0 %vm2692_vm0, %v2691_v2 }
  0x55   : > { %v981_v25 = vrot.slane %v979_v17, 2  ;;  %v1576_v17 = vrot.slane %v3047_v31, 3  ;;  %v1721_v31 = vld [vmem:[%s3296_s3] sm:$0xf] }
  0x57   : > { %2437 = vmatmul.mubr.msk.bf16.gmra.mxu1 %vm441_vm1, %v808_v18  ;;  %v1113_v18 = vrot.slane %v2670_v11, 2 }
  0x58   : > { %2440 = vmatprep.mubr.msk.bf16.mxu1 %vm2692_vm0, %v2691_v2 }
  0x59   : > { %v1114_v26 = vsel %vm1103_vm3, %v1111_v5, %v1113_v18  ;;  %v1580_v18 = vrot.slane %v2872_v47, 3 }
  0x5b   : > { %2413 = vmatmul.mubr.msk.bf16.gmra.mxu0 %vm441_vm1, %v643_v23  ;;  %v974_v23 = vsel %vm930_vm5, %v964_v1, %v973_v14  ;;  %v2681_v1 = vld [vmem:[%s2781_s23 + $0x30] ss:$0 sps:$4 sm:$0x77]  }
  0x5c   : > { %2416 = vmatprep.mubr.msk.bf16.mxu0 %vm2692_vm0, %v2691_v2  ;;  %v1445_v4 = vshrl.u32 %v2681_v1, 16  ;;  %v1448_v5 = vshll.u32 %v2681_v1, 16  ;;  %v1582_v21 = vrot.slane %v2681_v1, 3 }
  0x5e   : > { %v1447_v9 = vrot.slane %v1445_v4, 2  ;;  %v1450_v10 = vrot.slane %v1448_v5, 3 }
  0x5f   : > { %2441 = vmatmul.mubr.msk.bf16.gmra.mxu1 %vm441_vm1, %v810_v24  ;;  %v978_v24 = vrot.slane %v976_v16, 1 }
  0x60   : > { %2472 = vmatprep.mubr.msk.bf16.mxu1 %vm2692_vm0, %v2691_v2  ;;  %v1451_v11 = vor.u32 %v1450_v10, %v1447_v9 }
  0x61   : > { %v982_v32 = vor.u32 %v981_v25, %v978_v24 }
  0x63   : > { %2417 = vmatmul.mubr.msk.bf16.gmra.mxu0 %vm441_vm1, %v645_v33  ;;  %v1407_v33 = vor.u32 %v1406_v28, %v1403_v27  ;;  %v983_v37 = vsel %vm930_vm5, %v973_v14, %v982_v32  ;;  %v1573_v14 = vrot.slane %v2238_v13, 3 }
  0x64   : > { %2448 = vmatprep.mubr.msk.bf16.mxu0 %vm2692_vm0, %v2691_v2 }
  0x67   : > { %2473 = vmatmul.mubr.msk.bf16.vlgmr.msra.gmra.mxu1 %vm441_vm1, %v1106_v38  ;;  %v1416_v38 = vsel %vm1399_vm6, %v1407_v33, %v1415_v34 }
  0x68   : > { %2476 = vmatprep.mubr.msk.bf16.mxu1 %vm2692_vm0, %v2691_v2  ;;  %2517 = vmatpush3.bf16.msra.mxu1 %v2671_v39  ;;  %v1420_v39 = vrot.slane %v1418_v35, 2 }
  0x69   : > { %2518 = vmatprep.subr.bf16.mxu1 %v2691_v2 }
  0x6a   : > { %v1424_v43 = vor.u32 %v1423_v40, %v1420_v39 }
  0x6b   : > { %2449 = vmatmul.mubr.msk.bf16.vlgmr.msra.gmra.mxu0 %vm441_vm1, %v947_v48  ;;  %v1271_v48 = vsel %vm1103_vm3, %v1269_v41, %v1270_v42 }
  0x6c   : > { %2519 = vmatpush3.bf16.msra.mxu1 %v2672_v45  ;;  %2493 = vmatpush3.bf16.msra.mxu0 %v2667_v49  ;;  %v1430_v45 = vshll.u32 %v2869_v46, 16  ;;  %v2675_v49 = vld [vmem:[%s3294_s1 + $0x88] sm:$0xff]   ;;  %v1425_v50 = vsel %vm1399_vm6, %v1415_v34, %v1424_v43  ;;  %v1752_v34 = vsel %vm1750_vm8, %v1721_v31, 0 }
  0x6d   : > { %2564 = vmatprep.subr.bf16.mxu1 %v2691_v2  ;;  %2452 = vmatprep.mubr.msk.bf16.mxu0 %vm2692_vm0, %v2691_v2 }
  0x6e   : > { %2494 = vmatprep.subr.bf16.mxu0 %v2691_v2 }
  0x6f   : > { %2477 = vmatmul.mubr.msk.bf16.gmra.mxu1 %vm441_vm1, %v1108_v53  ;;  %v1432_v53 = vrot.slane %v1430_v45, 3 }
  0x70   : > { %2480 = vmatprep.mubr.msk.bf16.mxu1 %vm2692_vm0, %v2691_v2  ;;  %2495 = vmatpush3.bf16.msra.mxu0 %v2669_v58  ;;  %v1436_v58 = vshrl.u32 %v2872_v47, 16 }
  0x71   : > { %2540 = vmatprep.subr.bf16.mxu0 %v2691_v2  ;;  %v1433_v57 = vor.u32 %v1432_v53, %v1429_v52 }
  0x72   : > { %v1438_v62 = vrot.slane %v1436_v58, 2 }
  0x73   : > { %2453 = vmatmul.mubr.msk.bf16.gmra.mxu0 %vm441_vm1, %v956_v60  ;;  %v1273_v60 = vsel %vm1103_vm3, %v1270_v42, %v1272_v54  ;;  %v1434_v61 = vsel %vm1399_vm6, %v1424_v43, %v1433_v57 }
  0x74   : > { %2456 = vmatprep.mubr.msk.bf16.mxu0 %vm2692_vm0, %v2691_v2 }
  0x77   : > { %2481 = vmatmul.mubr.msk.bf16.gmra.mxu1 %vm441_vm1, %v1110_v0  ;;  %v1441_v0 = vrot.slane %v1439_v59, 3 }
  0x78   : > { %2484 = vmatprep.mubr.msk.bf16.mxu1 %vm2692_vm0, %v2691_v2 }
  0x79   : > { %v1442_v3 = vor.u32 %v1441_v0, %v1438_v62 }
  0x7b   : > { %2457 = vmatmul.mubr.msk.bf16.gmra.mxu0 %vm441_vm1, %v965_v8  ;;  %v1443_v8 = vsel %vm1399_vm6, %v1433_v57, %v1442_v3 }
  0x7c   : > { %2460 = vmatprep.mubr.msk.bf16.mxu0 %vm2692_vm0, %v2691_v2 }
  0x7f   : > { %2485 = vmatmul.mubr.msk.bf16.gmra.mxu1 %vm441_vm1, %v1112_v12  ;;  %v1452_v12 = vsel %vm1399_vm6, %v1442_v3, %v1451_v11 }
  0x80   : > { %2488 = vmatprep.mubr.msk.bf16.mxu1 %vm2692_vm0, %v2691_v2 }
  0x83   : > { %2461 = vmatmul.mubr.msk.bf16.gmra.mxu0 %vm441_vm1, %v974_v23 }
  0x84   : > { %2464 = vmatprep.mubr.msk.bf16.mxu0 %vm2692_vm0, %v2691_v2 }
  0x87   : > { %2489 = vmatmul.mubr.msk.bf16.gmra.mxu1 %vm441_vm1, %v1114_v26 }
  0x88   : > { %2520 = vmatprep.mubr.msk.bf16.mxu1 %vm2692_vm0, %v2691_v2 }
  0x8b   : > { %2465 = vmatmul.mubr.msk.bf16.gmra.mxu0 %vm441_vm1, %v983_v37 }
  0x8c   : > { %2496 = vmatprep.mubr.msk.bf16.mxu0 %vm2692_vm0, %v2691_v2 }
  0x8f   : > { %2521 = vmatmul.mubr.msk.bf16.vlgmr.msra.gmra.mxu1 %vm441_vm1, %v1416_v38 }
  0x90   : > { %2524 = vmatprep.mubr.msk.bf16.mxu1 %vm2692_vm0, %v2691_v2  ;;  %2565 = vmatpush3.bf16.msra.mxu1 %v1752_v34 }
  0x91   : > { %2608 = vmatprep.subr.bf16.mxu1 %v2691_v2 }
  0x93   : > { %2497 = vmatmul.mubr.msk.bf16.vlgmr.msra.gmra.mxu0 %vm441_vm1, %v1271_v48 }
  0x94   : > { %2541 = vmatpush3.bf16.msra.mxu0 %v2675_v49  ;;  %2500 = vmatprep.mubr.msk.bf16.mxu0 %vm2692_vm0, %v2691_v2 }
  0x95   : > { %2542 = vmatprep.subr.bf16.mxu0 %v2691_v2 }
  0x97   : > { %2525 = vmatmul.mubr.msk.bf16.gmra.mxu1 %vm441_vm1, %v1425_v50 }
  0x98   : > { %2528 = vmatprep.mubr.msk.bf16.mxu1 %vm2692_vm0, %v2691_v2  ;;  %2543 = vmatpush3.bf16.msra.mxu0 %v2678_v56 }
  0x99   : > { %2586 = vmatprep.subr.bf16.mxu0 %v2691_v2 }
  0x9b   : > { %2501 = vmatmul.mubr.msk.bf16.gmra.mxu0 %vm441_vm1, %v1273_v60 }
  0x9c   : > { %2504 = vmatprep.mubr.msk.bf16.mxu0 %vm2692_vm0, %v2691_v2 }
  0x9f   : > { %2529 = vmatmul.mubr.msk.bf16.gmra.mxu1 %vm441_vm1, %v1434_v61 }
  0xa0   : > { %2532 = vmatprep.mubr.msk.bf16.mxu1 %vm2692_vm0, %v2691_v2 }
  0xa3   : > { %2505 = vmatmul.mubr.msk.bf16.gmra.mxu0 %vm441_vm1, %v1275_v6 }
  0xa4   : > { %2508 = vmatprep.mubr.msk.bf16.mxu0 %vm2692_vm0, %v2691_v2 }
  0xa7   : > { %2533 = vmatmul.mubr.msk.bf16.gmra.mxu1 %vm441_vm1, %v1443_v8 }
  0xa8   : > { %2536 = vmatprep.mubr.msk.bf16.mxu1 %vm2692_vm0, %v2691_v2 }
  0xab   : > { %2509 = vmatmul.mubr.msk.bf16.gmra.mxu0 %vm441_vm1, %v2888_v55  ;;  %v1574_v55 = vrot.slane %v3034_v15, 3 }
  0xac   : > { %2512 = vmatprep.mubr.msk.bf16.mxu0 %vm2692_vm0, %v2691_v2 }
  0xad   : > { %v1575_v16 = vsel %vm1572_vm7, %v1573_v14, %v1574_v55  ;;  %v1577_v7 = vsel %vm1572_vm7, %v1574_v55, %v1576_v17 }
  0xaf   : > { %2537 = vmatmul.mubr.msk.bf16.gmra.mxu1 %vm441_vm1, %v1452_v12 }
  0xb0   : > { %2566 = vmatprep.mubr.msk.bf16.mxu1 %vm2692_vm0, %v2691_v2 }
  0xb3   : > { %2513 = vmatmul.mubr.msk.bf16.gmra.mxu0 %vm441_vm1, %v2902_v63  ;;  %v1578_v63 = vrot.slane %v2869_v46, 3  ;;  %v1583_v46 = vsel %vm1572_vm7, %v1580_v18, %v1582_v21 }
  0xb4   : > { %2544 = vmatprep.mubr.msk.bf16.mxu0 %vm2692_vm0, %v2691_v2 }
  0xb5   : > { %v1579_v15 = vsel %vm1572_vm7, %v1576_v17, %v1578_v63  ;;  %v1581_v19 = vsel %vm1572_vm7, %v1578_v63, %v1580_v18 }
  0xbb   : > { %2545 = vmatmul.mubr.msk.bf16.vlgmr.msra.gmra.mxu0 %vm441_vm1, %v1575_v16 }
  0xbc   : > { %2548 = vmatprep.mubr.msk.bf16.mxu0 %vm2692_vm0, %v2691_v2 }
  0xc3   : > { %2549 = vmatmul.mubr.msk.bf16.gmra.mxu0 %vm441_vm1, %v1577_v7 }
  0xc4   : > { %2552 = vmatprep.mubr.msk.bf16.mxu0 %vm2692_vm0, %v2691_v2 }
  0xcb   : > { %2553 = vmatmul.mubr.msk.bf16.gmra.mxu0 %vm441_vm1, %v1579_v15 }
  0xcc   : > { %2556 = vmatprep.mubr.msk.bf16.mxu0 %vm2692_vm0, %v2691_v2 }
  0xd3   : > { %2557 = vmatmul.mubr.msk.bf16.gmra.mxu0 %vm441_vm1, %v1581_v19 }
  0xd4   : > { %2560 = vmatprep.mubr.msk.bf16.mxu0 %vm2692_vm0, %v2691_v2 }
  0xd7   : > { %v586_v20 = vpop.f32.mrf.mxu1 }
  0xd9   : > { %v2378_v22 = vpop.f32.mrf.mxu1 }
  0xdb   : > { %v589_v23 = vpop.f32.mrf.mxu1  ;;  %v491_v25 = vpop.f32.mrf.mxu0  ;;  %2561 = vmatmul.mubr.msk.bf16.gmra.mxu0 %vm441_vm1, %v1583_v46 }
  0xdc   : > { %v587_v26 = vadd.f32 %v586_v20, %v491_v25  ;;  %2588 = vmatprep.mubr.msk.bf16.mxu0 %vm2692_vm0, %v2691_v2 }
  0xdd   : > { %v2379_v24 = vpop.f32.mrf.mxu1  ;;  %v2354_v47 = vpop.f32.mrf.mxu0 }
  0xdf   : > { %v594_v27 = vpop.f32.mrf.mxu1  ;;  %v494_v28 = vpop.f32.mrf.mxu0 }
  0xe0   : > { %v590_v30 = vadd.f32 %v589_v23, %v494_v28 }
  0xe1   : > { %v2382_v29 = vpop.f32.mrf.mxu1  ;;  %v2355_v32 = vpop.f32.mrf.mxu0 }
  0xe3   : > { %v597_v33 = vpop.f32.mrf.mxu1  ;;  %v499_v35 = vpop.f32.mrf.mxu0 }
  0xe4   : > { %v595_v37 = vadd.f32 %v594_v27, %v499_v35 }
  0xe5   : > { %v2383_v36 = vpop.f32.mrf.mxu1  ;;  %v2358_v38 = vpop.f32.mrf.mxu0 }
  0xe7   : > { %v602_v39 = vpop.f32.mrf.mxu1  ;;  %v502_v40 = vpop.f32.mrf.mxu0 }
  0xe8   : > { %v598_v42 = vadd.f32 %v597_v33, %v502_v40 }
  0xe9   : > { %v2386_v41 = vpop.f32.mrf.mxu1  ;;  %v2359_v43 = vpop.f32.mrf.mxu0 }
  0xeb   : > { %v605_v44 = vpop.f32.mrf.mxu1  ;;  %v507_v45 = vpop.f32.mrf.mxu0 }
  0xec   : > { %v603_v49 = vadd.f32 %v602_v39, %v507_v45 }
  0xed   : > { %v2387_v48 = vpop.f32.mrf.mxu1  ;;  %v2362_v50 = vpop.f32.mrf.mxu0 }
  0xef   : > { %v610_v52 = vpop.f32.mrf.mxu1  ;;  %v510_v53 = vpop.f32.mrf.mxu0 }
  0xf0   : > { %v606_v56 = vadd.f32 %v605_v44, %v510_v53 }
  0xf1   : > { %v2390_v54 = vpop.f32.mrf.mxu1  ;;  %v2363_v57 = vpop.f32.mrf.mxu0 }
  0xf3   : > { %v613_v58 = vpop.f32.mrf.mxu1  ;;  %v515_v59 = vpop.f32.mrf.mxu0 }
  0xf4   : > { %v611_v61 = vadd.f32 %v610_v52, %v515_v59 }
  0xf5   : > { %v2391_v60 = vpop.f32.mrf.mxu1  ;;  %v2366_v62 = vpop.f32.mrf.mxu0 }
  0xf7   : > { %v618_v0 = vpop.f32.mrf.mxu1  ;;  %v518_v1 = vpop.f32.mrf.mxu0 }
  0xf8   : > { %v614_v4 = vadd.f32 %v613_v58, %v518_v1 }
  0xf9   : > { %v2394_v3 = vpop.f32.mrf.mxu1  ;;  %v2367_v5 = vpop.f32.mrf.mxu0 }
  0xfb   : > { %v621_v6 = vpop.f32.mrf.mxu1  ;;  %v523_v8 = vpop.f32.mrf.mxu0 }
  0xfc   : > { %v619_v10 = vadd.f32 %v618_v0, %v523_v8 }
  0xfd   : > { %v2395_v9 = vpop.f32.mrf.mxu1  ;;  %v2370_v11 = vpop.f32.mrf.mxu0 }
  0xff   : > { %v872_v12 = vpop.f32.mrf.mxu1  ;;  %v526_v51 = vpop.f32.mrf.mxu0 }
 0x100   : > { %v622_v14 = vadd.f32 %v621_v6, %v526_v51 }
 0x101   : > { %v2426_v13 = vpop.f32.mrf.mxu1  ;;  %v2371_v55 = vpop.f32.mrf.mxu0 }
 0x103   : > { %v875_v16 = vpop.f32.mrf.mxu1  ;;  %v707_v17 = vpop.f32.mrf.mxu0 }
 0x104   : > { %v746_v63 = vadd.f32 %v707_v17, %v587_v26 }
 0x105   : > { %v2427_v7 = vpop.f32.mrf.mxu1  ;;  %v2402_v15 = vpop.f32.mrf.mxu0 }
 0x106   : > { %v911_v19 = vadd.f32 %v872_v12, %v746_v63 }
 0x107   : > { %v880_v18 = vpop.f32.mrf.mxu1  ;;  %v710_v20 = vpop.f32.mrf.mxu0 }
 0x108   : > { %v747_v22 = vadd.f32 %v710_v20, %v590_v30 }
 0x109   : > { %v2430_v21 = vpop.f32.mrf.mxu1  ;;  %v2403_v46 = vpop.f32.mrf.mxu0 }
 0x10a   : > { %v912_v24 = vadd.f32 %v875_v16, %v747_v22 }
 0x10b   : > { %v883_v23 = vpop.f32.mrf.mxu1  ;;  %v715_v25 = vpop.f32.mrf.mxu0 }
 0x10c   : > { %v748_v27 = vadd.f32 %v715_v25, %v595_v37 }
 0x10d   : > { %v2431_v47 = vpop.f32.mrf.mxu1  ;;  %v2406_v28 = vpop.f32.mrf.mxu0 }
 0x10e   : > { %v913_v31 = vadd.f32 %v880_v18, %v748_v27 }
 0x10f   : > { %v888_v29 = vpop.f32.mrf.mxu1  ;;  %v718_v32 = vpop.f32.mrf.mxu0 }
 0x110   : > { %v749_v34 = vadd.f32 %v718_v32, %v598_v42 }
 0x111   : > { %v2434_v33 = vpop.f32.mrf.mxu1  ;;  %v2407_v35 = vpop.f32.mrf.mxu0 }
 0x112   : > { %v914_v36 = vadd.f32 %v883_v23, %v749_v34 }
 0x113   : > { %v891_v26 = vpop.f32.mrf.mxu1  ;;  %v723_v38 = vpop.f32.mrf.mxu0 }
 0x114   : > { %v750_v40 = vadd.f32 %v723_v38, %v603_v49 }
 0x115   : > { %v2435_v39 = vpop.f32.mrf.mxu1  ;;  %v2410_v41 = vpop.f32.mrf.mxu0 }
 0x116   : > { %v915_v43 = vadd.f32 %v888_v29, %v750_v40 }
 0x117   : > { %v896_v30 = vpop.f32.mrf.mxu1  ;;  %v726_v44 = vpop.f32.mrf.mxu0 }
 0x118   : > { %v751_v48 = vadd.f32 %v726_v44, %v606_v56 }
 0x119   : > { %v2438_v45 = vpop.f32.mrf.mxu1  ;;  %v2411_v50 = vpop.f32.mrf.mxu0 }
 0x11a   : > { %v916_v52 = vadd.f32 %v891_v26, %v751_v48 }
 0x11b   : > { %v899_v37 = vpop.f32.mrf.mxu1  ;;  %v731_v53 = vpop.f32.mrf.mxu0 }
 0x11c   : > { %v752_v57 = vadd.f32 %v731_v53, %v611_v61  ;;  %v1837_v61 = vld [vmem:[%s3298_s5] sm:$0xf] }
 0x11d   : > { %v2439_v54 = vpop.f32.mrf.mxu1  ;;  %v2414_v58 = vpop.f32.mrf.mxu0 }
 0x11e   : > { %v917_v59 = vadd.f32 %v896_v30, %v752_v57 }
 0x11f   : > { %v904_v42 = vpop.f32.mrf.mxu1  ;;  %v734_v60 = vpop.f32.mrf.mxu0 }
 0x120   : > { %v753_v0 = vadd.f32 %v734_v60, %v614_v4  ;;  %v1866_v4 = vsel %vm1750_vm8, %v1837_v61, 0 }
 0x121   : > { %v2442_v62 = vpop.f32.mrf.mxu1  ;;  %v2415_v1 = vpop.f32.mrf.mxu0  ;;  %2587 = vmatpush3.bf16.msra.mxu0 %v1866_v4 }
 0x122   : > { %v918_v3 = vadd.f32 %v899_v37, %v753_v0 }
 0x123   : > { %v907_v49 = vpop.f32.mrf.mxu1  ;;  %v739_v5 = vpop.f32.mrf.mxu0 }
 0x124   : > { %v754_v8 = vadd.f32 %v739_v5, %v619_v10 }
 0x125   : > { %v2443_v6 = vpop.f32.mrf.mxu1  ;;  %v2418_v9 = vpop.f32.mrf.mxu0 }
 0x126   : > { %v919_v11 = vadd.f32 %v904_v42, %v754_v8 }
 0x127   : > { %v1176_v56 = vpop.f32.mrf.mxu1  ;;  %v742_v12 = vpop.f32.mrf.mxu0 }
 0x128   : > { %v755_v13 = vadd.f32 %v742_v12, %v622_v14 }
 0x129   : > { %v2474_v51 = vpop.f32.mrf.mxu1  ;;  %v2419_v55 = vpop.f32.mrf.mxu0 }
 0x12a   : > { %v920_v17 = vadd.f32 %v907_v49, %v755_v13 }
 0x12b   : > { %v1179_v16 = vpop.f32.mrf.mxu1  ;;  %v1045_v7 = vpop.f32.mrf.mxu0 }
 0x12c   : > { %v1084_v15 = vadd.f32 %v1045_v7, %v911_v19 }
 0x12d   : > { %v2475_v63 = vpop.f32.mrf.mxu1  ;;  %v2450_v10 = vpop.f32.mrf.mxu0 }
 0x12e   : > { %v3153_v20 = vadd.f32 %v1176_v56, %v1084_v15 }
 0x12f   : > { %v1184_v18 = vpop.f32.mrf.mxu1  ;;  %v1048_v21 = vpop.f32.mrf.mxu0 }
 0x130   : > { %v1085_v14 = vadd.f32 %v1048_v21, %v912_v24 }
 0x131   : > { %v2478_v22 = vpop.f32.mrf.mxu1  ;;  %v2451_v46 = vpop.f32.mrf.mxu0 }
 0x132   : > { %v3155_v25 = vadd.f32 %v1179_v16, %v1085_v14 }
 0x133   : > { %v1187_v23 = vpop.f32.mrf.mxu1  ;;  %v1053_v47 = vpop.f32.mrf.mxu0 }
 0x134   : > { %v1086_v28 = vadd.f32 %v1053_v47, %v913_v31 }
 0x135   : > { %v2479_v27 = vpop.f32.mrf.mxu1  ;;  %v2454_v29 = vpop.f32.mrf.mxu0 }
 0x136   : > { %v3157_v33 = vadd.f32 %v1184_v18, %v1086_v28 }
 0x137   : > { %v1192_v32 = vpop.f32.mrf.mxu1  ;;  %v1056_v34 = vpop.f32.mrf.mxu0 }
 0x138   : > { %v1087_v35 = vadd.f32 %v1056_v34, %v914_v36 }
 0x139   : > { %v2482_v19 = vpop.f32.mrf.mxu1  ;;  %v2455_v26 = vpop.f32.mrf.mxu0 }
 0x13a   : > { %v3159_v39 = vadd.f32 %v1187_v23, %v1087_v35 }
 0x13b   : > { %v1195_v38 = vpop.f32.mrf.mxu1  ;;  %v1061_v40 = vpop.f32.mrf.mxu0 }
 0x13c   : > { %v1088_v41 = vadd.f32 %v1061_v40, %v915_v43 }
 0x13d   : > { %v2483_v24 = vpop.f32.mrf.mxu1  ;;  %v2458_v30 = vpop.f32.mrf.mxu0 }
 0x13e   : > { %v3161_v45 = vadd.f32 %v1192_v32, %v1088_v41 }
 0x13f   : > { %v1200_v44 = vpop.f32.mrf.mxu1  ;;  %v1064_v48 = vpop.f32.mrf.mxu0 }
 0x140   : > { %v1089_v50 = vadd.f32 %v1064_v48, %v916_v52 }
 0x141   : > { %v2486_v31 = vpop.f32.mrf.mxu1  ;;  %v2459_v37 = vpop.f32.mrf.mxu0 }
 0x142   : > { %v3163_v54 = vadd.f32 %v1195_v38, %v1089_v50 }
 0x143   : > { %v1203_v53 = vpop.f32.mrf.mxu1  ;;  %v1069_v57 = vpop.f32.mrf.mxu0 }
 0x144   : > { %v1090_v58 = vadd.f32 %v1069_v57, %v917_v59 }
 0x145   : > { %v2487_v36 = vpop.f32.mrf.mxu1  ;;  %v2462_v42 = vpop.f32.mrf.mxu0 }
 0x146   : > { %v3165_v62 = vadd.f32 %v1200_v44, %v1090_v58 }
 0x147   : > { %v1208_v60 = vpop.f32.mrf.mxu1  ;;  %v1072_v0 = vpop.f32.mrf.mxu0 }
 0x148   : > { %v1091_v1 = vadd.f32 %v1072_v0, %v918_v3 }
 0x149   : > { %v2490_v43 = vpop.f32.mrf.mxu1  ;;  %v2463_v49 = vpop.f32.mrf.mxu0 }
 0x14a   : > { %v3167_v6 = vadd.f32 %v1203_v53, %v1091_v1 }
 0x14b   : > { %v1211_v5 = vpop.f32.mrf.mxu1  ;;  %v1077_v8 = vpop.f32.mrf.mxu0 }
 0x14c   : > { %v1092_v9 = vadd.f32 %v1077_v8, %v919_v11 }
 0x14d   : > { %v2491_v52 = vpop.f32.mrf.mxu1  ;;  %v2466_v56 = vpop.f32.mrf.mxu0 }
 0x14e   : > { %v3169_v51 = vadd.f32 %v1208_v60, %v1092_v9 }
 0x14f   : > { %v1514_v12 = vpop.f32.mrf.mxu1  ;;  %v1080_v13 = vpop.f32.mrf.mxu0 }
 0x150   : > { %v1093_v61 = vadd.f32 %v1080_v13, %v920_v17 }
 0x151   : > { %v2522_v59 = vpop.f32.mrf.mxu1  ;;  %v2467_v55 = vpop.f32.mrf.mxu0 }
 0x152   : > { %v3171_v4 = vadd.f32 %v1211_v5, %v1093_v61  ;;  %v3188_v5 = vld [vmem:[%s3295_s2] ss:$0 sm:$0xff] }
 0x153   : > { %v1517_v16 = vpop.f32.mrf.mxu1  ;;  %v1341_v7 = vpop.f32.mrf.mxu0 }
 0x154   : > { %v1380_v58 = vadd.f32 %v1341_v7, %v3153_v20 }
 0x155   : > { %v2523_v3 = vpop.f32.mrf.mxu1  ;;  %v2498_v63 = vpop.f32.mrf.mxu0 }
 0x156   : > { %v1553_v0 = vadd.f32 %v1514_v12, %v1380_v58 }
 0x157   : > { %v1522_v15 = vpop.f32.mrf.mxu1  ;;  %v1344_v10 = vpop.f32.mrf.mxu0 }
 0x158   : > { %v1381_v43 = vadd.f32 %v1344_v10, %v3155_v25 }
 0x159   : > { %v2526_v18 = vpop.f32.mrf.mxu1  ;;  %v2499_v21 = vpop.f32.mrf.mxu0 }
 0x15a   : > { %v1554_v52 = vadd.f32 %v1517_v16, %v1381_v43 }
 0x15b   : > { %v1525_v22 = vpop.f32.mrf.mxu1  ;;  %v1349_v11 = vpop.f32.mrf.mxu0 }
 0x15c   : > { %v1382_v9 = vadd.f32 %v1349_v11, %v3157_v33 }
 0x15d   : > { %v2527_v14 = vpop.f32.mrf.mxu1  ;;  %v2502_v46 = vpop.f32.mrf.mxu0 }
 0x15e   : > { %v1555_v61 = vadd.f32 %v1522_v15, %v1382_v9 }
 0x15f   : > { %v1530_v23 = vpop.f32.mrf.mxu1  ;;  %v1352_v47 = vpop.f32.mrf.mxu0 }
 0x160   : > { %v1383_v12 = vadd.f32 %v1352_v47, %v3159_v39 }
 0x161   : > { %v2530_v27 = vpop.f32.mrf.mxu1  ;;  %v2503_v28 = vpop.f32.mrf.mxu0 }
 0x162   : > { %v1556_v18 = vadd.f32 %v1525_v22, %v1383_v12 }
 0x163   : > { %v1533_v17 = vpop.f32.mrf.mxu1  ;;  %v1357_v29 = vpop.f32.mrf.mxu0 }
 0x164   : > { %v1384_v16 = vadd.f32 %v1357_v29, %v3161_v45 }
 0x165   : > { %v2531_v32 = vpop.f32.mrf.mxu1  ;;  %v2506_v34 = vpop.f32.mrf.mxu0 }
 0x166   : > { %v1557_v39 = vadd.f32 %v1530_v23, %v1384_v16 }
 0x167   : > { %v3173_v19 = vpop.f32.mrf.mxu1  ;;  %v1360_v35 = vpop.f32.mrf.mxu0 }
 0x168   : > { %v1385_v46 = vadd.f32 %v1360_v35, %v3163_v54 }
 0x169   : > { %v2534_v26 = vpop.f32.mrf.mxu1  ;;  %v2507_v38 = vpop.f32.mrf.mxu0 }
 0x16a   : > { %v1558_v32 = vadd.f32 %v1533_v17, %v1385_v46 }
 0x16b   : > { %v3175_v40 = vpop.f32.mrf.mxu1  ;;  %v1365_v24 = vpop.f32.mrf.mxu0 }
 0x16c   : > { %v1386_v34 = vadd.f32 %v1365_v24, %v3165_v62 }
 0x16d   : > { %v2535_v41 = vpop.f32.mrf.mxu1  ;;  %v2510_v30 = vpop.f32.mrf.mxu0 }
 0x16e   : > { %v1559_v54 = vadd.f32 %v3173_v19, %v1386_v34 }
 0x16f   : > { %v3177_v44 = vpop.f32.mrf.mxu1  ;;  %v1368_v48 = vpop.f32.mrf.mxu0 }
 0x170   : > { %v1387_v35 = vadd.f32 %v1368_v48, %v3167_v6 }
 0x171   : > { %v2538_v31 = vpop.f32.mrf.mxu1  ;;  %v2511_v50 = vpop.f32.mrf.mxu0 }
 0x173   : > { %v3179_v37 = vpop.f32.mrf.mxu1  ;;  %v1373_v53 = vpop.f32.mrf.mxu0 }
 0x174   : > { %v1388_v58 = vadd.f32 %v1373_v53, %v3169_v51 }
 0x175   : > { %v2539_v57 = vpop.f32.mrf.mxu1  ;;  %v2514_v36 = vpop.f32.mrf.mxu0 }
 0x176   : > { %v1560_v36 = vadd.f32 %v3175_v40, %v1387_v35  ;;  %v1561_v6 = vadd.f32 %v3177_v44, %v1388_v58 }
 0x177   : > { %v3182_v42 = vpop.f32.mrf.mxu0 }
 0x178   : > { %v1389_v48 = vadd.f32 %v3182_v42, %v3171_v4 }
 0x179   : > { %v2515_v60 = vpop.f32.mrf.mxu0 }
 0x17a   : > { %v1562_v9 = vadd.f32 %v3179_v37, %v1389_v48  ;;  %v1951_v37 = vld [vmem:[%s3300_s7] sm:$0xf] }
 0x17b   : > { %v1645_v1 = vpop.f32.mrf.mxu0 }
 0x17c   : > { %v1684_v49 = vadd.f32 %v1645_v1, %v1553_v0 }
 0x17d   : > { %v2546_v8 = vpop.f32.mrf.mxu0 }
 0x17e   : > { %v1701_v20 = vadd.f32 %v3188_v5, %v1684_v49 }
 0x17f   : > { %v1648_v56 = vpop.f32.mrf.mxu0 }
 0x180   : > { %v1685_v13 = vadd.f32 %v1648_v56, %v1554_v52  ;;  %v1711_v7 = vmax.f32 %v1701_v20, 0.0 }
 0x181   : > { %v2547_v59 = vpop.f32.mrf.mxu0 }
 0x182   : > { %v1702_v25 = vadd.f32 %v3188_v5, %v1685_v13 }
 0x183   : > { %v1653_v55 = vpop.f32.mrf.mxu0 }
 0x184   : > { %v1712_v3 = vmax.f32 %v1702_v25, 0.0  ;;  %v1686_v63 = vadd.f32 %v1653_v55, %v1555_v61  ;;  %v1980_v25 = vsel %vm1750_vm8, %v1951_v37, 0  ;;  %v2247_v55 = vld [vmem:[%s3297_s4] ss:$0 sm:$0xff] }
 0x185   : > { %v2550_v10 = vpop.f32.mrf.mxu0 }
 0x186   : > { %v1723_v33 = vpack.c.bf16 %v1712_v3, %v1711_v7  ;;  %v1703_v11 = vadd.f32 %v3188_v5, %v1686_v63 }
 0x187   : > { %v1656_v21 = vpop.f32.mrf.mxu0 }
 0x188   : > { %v1687_v14 = vadd.f32 %v1656_v21, %v1556_v18  ;;  %2567 = vmatmul.mubr.msk.bf16.vlgmr.msra.gmra.mxu1 %vm1734_vm9, %v1723_v33  ;;  %v1713_v22 = vmax.f32 %v1703_v11, 0.0 }
 0x189   : > { %v2551_v15 = vpop.f32.mrf.mxu0  ;;  %2570 = vmatprep.mubr.msk.bf16.mxu1 %vm2692_vm0, %v2691_v2  ;;  %2609 = vmatpush3.bf16.msra.mxu1 %v1980_v25 }
 0x18a   : > { %v1704_v47 = vadd.f32 %v3188_v5, %v1687_v14 }
 0x18b   : > { %v1661_v27 = vpop.f32.mrf.mxu0 }
 0x18c   : > { %v1714_v28 = vmax.f32 %v1704_v47, 0.0  ;;  %v1688_v45 = vadd.f32 %v1661_v27, %v1557_v39 }
 0x18d   : > { %v2554_v29 = vpop.f32.mrf.mxu0 }
 0x18e   : > { %v1724_v26 = vpack.c.bf16 %v1714_v28, %v1713_v22  ;;  %v1705_v41 = vadd.f32 %v3188_v5, %v1688_v45 }
 0x18f   : > { %v1664_v38 = vpop.f32.mrf.mxu0 }
 0x190   : > { %v1689_v30 = vadd.f32 %v1664_v38, %v1558_v32  ;;  %2571 = vmatmul.mubr.msk.bf16.gmra.mxu1 %vm1734_vm9, %v1724_v26  ;;  %v1715_v50 = vmax.f32 %v1705_v41, 0.0 }
 0x191   : > { %v2555_v23 = vpop.f32.mrf.mxu0  ;;  %2574 = vmatprep.mubr.msk.bf16.mxu1 %vm2692_vm0, %v2691_v2 }
 0x192   : > { %v1706_v31 = vadd.f32 %v3188_v5, %v1689_v30 }
 0x193   : > { %v1669_v17 = vpop.f32.mrf.mxu0 }
 0x194   : > { %v1716_v62 = vmax.f32 %v1706_v31, 0.0  ;;  %v1690_v24 = vadd.f32 %v1669_v17, %v1559_v54 }
 0x195   : > { %v2558_v57 = vpop.f32.mrf.mxu0 }
 0x196   : > { %v1725_v60 = vpack.c.bf16 %v1716_v62, %v1715_v50  ;;  %v1707_v43 = vadd.f32 %v3188_v5, %v1690_v24 }
 0x197   : > { %v1672_v0 = vpop.f32.mrf.mxu0 }
 0x198   : > { %v1691_v1 = vadd.f32 %v1672_v0, %v1560_v36  ;;  %2575 = vmatmul.mubr.msk.bf16.gmra.mxu1 %vm1734_vm9, %v1725_v60  ;;  %v1717_v51 = vmax.f32 %v1707_v43, 0.0 }
 0x199   : > { %v2559_v19 = vpop.f32.mrf.mxu0  ;;  %2578 = vmatprep.mubr.msk.bf16.mxu1 %vm2692_vm0, %v2691_v2 }
 0x19a   : > { %v1708_v40 = vadd.f32 %v3188_v5, %v1691_v1 }
 0x19b   : > { %v1677_v49 = vpop.f32.mrf.mxu0 }
 0x19c   : > { %v1718_v53 = vmax.f32 %v1708_v40, 0.0  ;;  %v1692_v8 = vadd.f32 %v1677_v49, %v1561_v6  ;;  %v2253_v49 = vld [vmem:[%s3299_s6] ss:$0 sm:$0xff] }
 0x19d   : > { %v2562_v52 = vpop.f32.mrf.mxu0 }
 0x19e   : > { %v1726_v56 = vpack.c.bf16 %v1718_v53, %v1717_v51  ;;  %v1709_v13 = vadd.f32 %v3188_v5, %v1692_v8 }
 0x19f   : > { %v1680_v20 = vpop.f32.mrf.mxu0 }
 0x1a0   : > { %v1693_v59 = vadd.f32 %v1680_v20, %v1562_v9  ;;  %2579 = vmatmul.mubr.msk.bf16.gmra.mxu1 %vm1734_vm9, %v1726_v56  ;;  %v1719_v42 = vmax.f32 %v1709_v13, 0.0 }
 0x1a1   : > { %v2563_v44 = vpop.f32.mrf.mxu0  ;;  %2582 = vmatprep.mubr.msk.bf16.mxu1 %vm2692_vm0, %v2691_v2 }
 0x1a2   : > { %v1710_v4 = vadd.f32 %v3188_v5, %v1693_v59 }
 0x1a4   : > { %v1720_v61 = vmax.f32 %v1710_v4, 0.0 }
 0x1a6   : > { %v1727_v12 = vpack.c.bf16 %v1720_v61, %v1719_v42 }
 0x1a8   : > { %2583 = vmatmul.mubr.msk.bf16.gmra.mxu1 %vm1734_vm9, %v1727_v12 }
 0x1a9   : > { %2610 = vmatprep.mubr.msk.bf16.mxu1 %vm2692_vm0, %v2691_v2 }
 0x248   : > { %v1788_v5 = vpop.f32.mrf.mxu1 }
 0x249   : > { %v1789_v3 = vadd.f32 %v2247_v55, %v1788_v5 }
 0x24a   : > { %v2568_v7 = vpop.f32.mrf.mxu1 }
 0x24b   : > { %v1827_v16 = vmax.f32 %v1789_v3, 0.0 }
 0x24c   : > { %v1791_v63 = vpop.f32.mrf.mxu1 }
 0x24d   : > { %v1792_v10 = vadd.f32 %v2247_v55, %v1791_v63 }
 0x24e   : > { %v2569_v18 = vpop.f32.mrf.mxu1 }
 0x24f   : > { %v1828_v33 = vmax.f32 %v1792_v10, 0.0 }
 0x250   : > { %v1796_v21 = vpop.f32.mrf.mxu1 }
 0x251   : > { %v1839_v11 = vpack.c.bf16 %v1828_v33, %v1827_v16  ;;  %v1797_v15 = vadd.f32 %v2247_v55, %v1796_v21 }
 0x252   : > { %v2572_v14 = vpop.f32.mrf.mxu1 }
 0x253   : > { %2589 = vmatmul.mubr.msk.bf16.vlgmr.msra.gmra.mxu0 %vm1734_vm9, %v1839_v11  ;;  %v1829_v27 = vmax.f32 %v1797_v15, 0.0 }
 0x254   : > { %v1799_v39 = vpop.f32.mrf.mxu1  ;;  %2592 = vmatprep.mubr.msk.bf16.mxu0 %vm2692_vm0, %v2691_v2 }
 0x255   : > { %v1800_v46 = vadd.f32 %v2247_v55, %v1799_v39 }
 0x256   : > { %v2573_v47 = vpop.f32.mrf.mxu1 }
 0x257   : > { %v1830_v22 = vmax.f32 %v1800_v46, 0.0 }
 0x258   : > { %v1804_v28 = vpop.f32.mrf.mxu1 }
 0x259   : > { %v1840_v45 = vpack.c.bf16 %v1830_v22, %v1829_v27  ;;  %v1805_v32 = vadd.f32 %v2247_v55, %v1804_v28 }
 0x25a   : > { %v2576_v29 = vpop.f32.mrf.mxu1 }
 0x25b   : > { %2593 = vmatmul.mubr.msk.bf16.gmra.mxu0 %vm1734_vm9, %v1840_v45  ;;  %v1831_v41 = vmax.f32 %v1805_v32, 0.0 }
 0x25c   : > { %v1807_v34 = vpop.f32.mrf.mxu1  ;;  %2596 = vmatprep.mubr.msk.bf16.mxu0 %vm2692_vm0, %v2691_v2 }
 0x25d   : > { %v1808_v26 = vadd.f32 %v2247_v55, %v1807_v34 }
 0x25e   : > { %v2577_v38 = vpop.f32.mrf.mxu1 }
 0x25f   : > { %v1832_v30 = vmax.f32 %v1808_v26, 0.0 }
 0x260   : > { %v1812_v23 = vpop.f32.mrf.mxu1 }
 0x261   : > { %v1841_v54 = vpack.c.bf16 %v1832_v30, %v1831_v41  ;;  %v1813_v31 = vadd.f32 %v2247_v55, %v1812_v23 }
 0x262   : > { %v2580_v35 = vpop.f32.mrf.mxu1 }
 0x263   : > { %2597 = vmatmul.mubr.msk.bf16.gmra.mxu0 %vm1734_vm9, %v1841_v54  ;;  %v1833_v24 = vmax.f32 %v1813_v31, 0.0  ;;  %v2259_v35 = vld [vmem:[#allocation2] ss:$0 sm:$0xff] }
 0x264   : > { %v1815_v17 = vpop.f32.mrf.mxu1  ;;  %2600 = vmatprep.mubr.msk.bf16.mxu0 %vm2692_vm0, %v2691_v2 }
 0x265   : > { %v1816_v50 = vadd.f32 %v2247_v55, %v1815_v17 }
 0x266   : > { %v2581_v62 = vpop.f32.mrf.mxu1 }
 0x267   : > { %v1834_v57 = vmax.f32 %v1816_v50, 0.0 }
 0x268   : > { %v1820_v36 = vpop.f32.mrf.mxu1 }
 0x269   : > { %v1842_v58 = vpack.c.bf16 %v1834_v57, %v1833_v24  ;;  %v1821_v0 = vadd.f32 %v2247_v55, %v1820_v36 }
 0x26a   : > { %v2584_v60 = vpop.f32.mrf.mxu1 }
 0x26b   : > { %2601 = vmatmul.mubr.msk.bf16.gmra.mxu0 %vm1734_vm9, %v1842_v58  ;;  %v1835_v6 = vmax.f32 %v1821_v0, 0.0 }
 0x26c   : > { %v1823_v43 = vpop.f32.mrf.mxu1  ;;  %2604 = vmatprep.mubr.msk.bf16.mxu0 %vm2692_vm0, %v2691_v2 }
 0x26d   : > { %v1824_v1 = vadd.f32 %v2247_v55, %v1823_v43 }
 0x26e   : > { %v2585_v19 = vpop.f32.mrf.mxu1 }
 0x26f   : > { %v1836_v48 = vmax.f32 %v1824_v1, 0.0 }
 0x271   : > { %v1843_v40 = vpack.c.bf16 %v1836_v48, %v1835_v6 }
 0x273   : > { %2605 = vmatmul.mubr.msk.bf16.gmra.mxu0 %vm1734_vm9, %v1843_v40 }
 0x313   : > { %v1902_v51 = vpop.f32.mrf.mxu0 }
 0x314   : > { %v1903_v8 = vadd.f32 %v2253_v49, %v1902_v51 }
 0x315   : > { %v2590_v53 = vpop.f32.mrf.mxu0 }
 0x316   : > { %v1941_v20 = vmax.f32 %v1903_v8, 0.0 }
 0x317   : > { %v1905_v52 = vpop.f32.mrf.mxu0 }
 0x318   : > { %v1906_v9 = vadd.f32 %v2253_v49, %v1905_v52 }
 0x319   : > { %v2591_v56 = vpop.f32.mrf.mxu0 }
 0x31a   : > { %v1942_v13 = vmax.f32 %v1906_v9, 0.0 }
 0x31b   : > { %v1910_v59 = vpop.f32.mrf.mxu0 }
 0x31c   : > { %v1953_v44 = vpack.c.bf16 %v1942_v13, %v1941_v20  ;;  %v1911_v42 = vadd.f32 %v2253_v49, %v1910_v59 }
 0x31d   : > { %v2594_v4 = vpop.f32.mrf.mxu0 }
 0x31e   : > { %2611 = vmatmul.mubr.msk.bf16.vlgmr.msra.gmra.mxu1 %vm1734_vm9, %v1953_v44  ;;  %v1943_v25 = vmax.f32 %v1911_v42, 0.0 }
 0x31f   : > { %v1913_v61 = vpop.f32.mrf.mxu0  ;;  %2614 = vmatprep.mubr.msk.bf16.mxu1 %vm2692_vm0, %v2691_v2 }
 0x320   : > { %v1914_v12 = vadd.f32 %v2253_v49, %v1913_v61 }
 0x321   : > { %v2595_v37 = vpop.f32.mrf.mxu0 }
 0x322   : > { %v1944_v55 = vmax.f32 %v1914_v12, 0.0 }
 0x323   : > { %v1918_v5 = vpop.f32.mrf.mxu0 }
 0x324   : > { %v1954_v7 = vpack.c.bf16 %v1944_v55, %v1943_v25  ;;  %v1919_v63 = vadd.f32 %v2253_v49, %v1918_v5 }
 0x325   : > { %v2598_v3 = vpop.f32.mrf.mxu0 }
 0x326   : > { %2615 = vmatmul.mubr.msk.bf16.gmra.mxu1 %vm1734_vm9, %v1954_v7  ;;  %v1945_v33 = vmax.f32 %v1919_v63, 0.0 }
 0x327   : > { %v1921_v10 = vpop.f32.mrf.mxu0  ;;  %2618 = vmatprep.mubr.msk.bf16.mxu1 %vm2692_vm0, %v2691_v2 }
 0x328   : > { %v1922_v18 = vadd.f32 %v2253_v49, %v1921_v10 }
 0x329   : > { %v2599_v16 = vpop.f32.mrf.mxu0 }
 0x32a   : > { %v1946_v21 = vmax.f32 %v1922_v18, 0.0 }
 0x32b   : > { %v1926_v11 = vpop.f32.mrf.mxu0 }
 0x32c   : > { %v1955_v14 = vpack.c.bf16 %v1946_v21, %v1945_v33  ;;  %v1927_v39 = vadd.f32 %v2253_v49, %v1926_v11 }
 0x32d   : > { %v2602_v15 = vpop.f32.mrf.mxu0 }
 0x32e   : > { %2619 = vmatmul.mubr.msk.bf16.gmra.mxu1 %vm1734_vm9, %v1955_v14  ;;  %v1947_v22 = vmax.f32 %v1927_v39, 0.0 }
 0x32f   : > { %v1929_v46 = vpop.f32.mrf.mxu0  ;;  %2622 = vmatprep.mubr.msk.bf16.mxu1 %vm2692_vm0, %v2691_v2 }
 0x330   : > { %v1930_v47 = vadd.f32 %v2253_v49, %v1929_v46 }
 0x331   : > { %v2603_v27 = vpop.f32.mrf.mxu0 }
 0x332   : > { %v1948_v28 = vmax.f32 %v1930_v47, 0.0 }
 0x333   : > { %v1934_v45 = vpop.f32.mrf.mxu0 }
 0x334   : > { %v1956_v29 = vpack.c.bf16 %v1948_v28, %v1947_v22  ;;  %v1935_v34 = vadd.f32 %v2253_v49, %v1934_v45 }
 0x335   : > { %v2606_v32 = vpop.f32.mrf.mxu0 }
 0x336   : > { %2623 = vmatmul.mubr.msk.bf16.gmra.mxu1 %vm1734_vm9, %v1956_v29  ;;  %v1949_v30 = vmax.f32 %v1935_v34, 0.0 }
 0x337   : > { %v1937_v26 = vpop.f32.mrf.mxu0  ;;  %2626 = vmatprep.mubr.msk.bf16.mxu1 %vm2692_vm0, %v2691_v2 }
 0x338   : > { %v1938_v38 = vadd.f32 %v2253_v49, %v1937_v26 }
 0x339   : > { %v2607_v41 = vpop.f32.mrf.mxu0 }
 0x33a   : > { %v1950_v23 = vmax.f32 %v1938_v38, 0.0 }
 0x33c   : > { %v1957_v54 = vpack.c.bf16 %v1950_v23, %v1949_v30 }
 0x33e   : > { %2627 = vmatmul.mubr.msk.bf16.gmra.mxu1 %vm1734_vm9, %v1957_v54 }
 0x3de   : > { %v2016_v31 = vpop.f32.mrf.mxu1 }
 0x3df   : > { %v2017_v2 = vadd.f32 %v2259_v35, %v2016_v31 }
 0x3e0   : > { %v2612_v17 = vpop.f32.mrf.mxu1 }
 0x3e1   : > { %2056 = vst.msk [vmem:[%s3268_s28] sm:$0xff] %vm2055_vm10, %v2017_v2 }
 0x3e2   : > { %v2019_v50 = vpop.f32.mrf.mxu1 }
 0x3e3   : > { %v2020_v62 = vadd.f32 %v2259_v35, %v2019_v50 }
 0x3e4   : > { %v2613_v24 = vpop.f32.mrf.mxu1 }
 0x3e5   : > { %2057 = vst.msk [vmem:[%s3268_s28 + $0x8] sm:$0xff] %vm2055_vm10, %v2020_v62 }
 0x3e6   : > { %v2024_v57 = vpop.f32.mrf.mxu1 }
 0x3e7   : > { %v2025_v36 = vadd.f32 %v2259_v35, %v2024_v57 }
 0x3e8   : > { %v2616_v58 = vpop.f32.mrf.mxu1 }
 0x3e9   : > { %2058 = vst.msk [vmem:[%s3268_s28 + $0x10] sm:$0xff] %vm2055_vm10, %v2025_v36 }
 0x3ea   : > { %v2027_v60 = vpop.f32.mrf.mxu1 }
 0x3eb   : > { %v2028_v0 = vadd.f32 %v2259_v35, %v2027_v60 }
 0x3ec   : > { %v2617_v43 = vpop.f32.mrf.mxu1 }
 0x3ed   : > { %2059 = vst.msk [vmem:[%s3268_s28 + $0x18] sm:$0xff] %vm2055_vm10, %v2028_v0 }
 0x3ee   : > { %v2032_v1 = vpop.f32.mrf.mxu1 }
 0x3ef   : > { %v2033_v19 = vadd.f32 %v2259_v35, %v2032_v1 }
 0x3f0   : > { %v2620_v6 = vpop.f32.mrf.mxu1 }
 0x3f1   : > { %2060 = vst.msk [vmem:[%s3268_s28 + $0x20] sm:$0xff] %vm2055_vm10, %v2033_v19 }
 0x3f2   : > { %v2035_v48 = vpop.f32.mrf.mxu1 }
 0x3f3   : > { %v2036_v40 = vadd.f32 %v2259_v35, %v2035_v48 }
 0x3f4   : > { %v2621_v49 = vpop.f32.mrf.mxu1 }
 0x3f5   : > { %2061 = vst.msk [vmem:[%s3268_s28 + $0x28] sm:$0xff] %vm2055_vm10, %v2036_v40 }
 0x3f6   : > { %v2040_v51 = vpop.f32.mrf.mxu1 }
 0x3f7   : > { %v2041_v53 = vadd.f32 %v2259_v35, %v2040_v51 }
 0x3f8   : > { %v2624_v8 = vpop.f32.mrf.mxu1 }
 0x3f9   : > { %2062 = vst.msk [vmem:[%s3268_s28 + $0x30] sm:$0xff] %vm2055_vm10, %v2041_v53 }
 0x3fa   : > { %v2043_v52 = vpop.f32.mrf.mxu1 }
 0x3fb   : > { %v2044_v9 = vadd.f32 %v2259_v35, %v2043_v52 }
 0x3fc   : > { %v2625_v56 = vpop.f32.mrf.mxu1 }
 0x3fd   : > { %2063 = vst.msk [vmem:[%s3268_s28 + $0x38] sm:$0xff] %vm2055_vm10, %v2044_v9 }
 0x3fe   : > { %v2048_v20 = vpop.f32.mrf.mxu1 }
 0x3ff   : > { %v2049_v13 = vadd.f32 %v2259_v35, %v2048_v20 }
 0x400   : > { %v2628_v59 = vpop.f32.mrf.mxu1 }
 0x401   : > { %2064 = vst.msk [vmem:[%s3268_s28 + $0x40] sm:$0xff] %vm2055_vm10, %v2049_v13 }
 0x402   : > { %v2051_v44 = vpop.f32.mrf.mxu1 }
 0x403   : > { %v2052_v4 = vadd.f32 %v2259_v35, %v2051_v44 }
 0x404   : > { %v2629_v42 = vpop.f32.mrf.mxu1 }
 0x405   : > { %2065 = vst.msk [vmem:[%s3268_s28 + $0x48] sm:$0xff] %vm2055_vm10, %v2052_v4 }
 0x406 PF: > { %s21_s11 = sadd.s32 1, %s2689_s11  }
 0x407   : > { %p18_p4 = scmp.ge.s32.totalorder %s21_s11, 4  }
 0x409   :  { %20 = sbr.rel (!%p18_p4) target bundleno = 3 (0x3), region = 94 }

</bundles_post_ra>
